<compile_context>
chip_gen: v6e
topology: v6e:2x2x1
jax: 0.10.0
libtpu: 0.0.40
codegen_flags: <defaults>
</compile_context>

<pallas_src>
import functools
import math

import jax
import jax.numpy as jnp
import numpy as np
from jax.experimental import pallas as pl
from jax.experimental.pallas import tpu as pltpu

_HI = jax.lax.Precision.HIGHEST  # reference only


# ----------------------------- Pallas kernel ---------------------------------
def _bottleneck_kernel(x_ref, b1_ref, s1_ref, t1_ref, mb_ref, sc_ref, tc_ref,
                       b3_ref, s3_ref, t3_ref, o_ref):
    nb, H = x_ref.shape[0], x_ref.shape[1]
    M = nb * H
    nums = mb_ref.shape[0]
    cw = mb_ref.shape[-1]                       # width * W (lanes of each branch)

    # conv1 (1x1) + bn1 + relu -- block-diagonal bf16 matmul, f32 accumulation.
    x2 = x_ref[...].reshape(M, x_ref.shape[-1])                  # (M, Cin*W) bf16
    h1 = jnp.dot(x2, b1_ref[...], preferred_element_type=jnp.float32)
    h1 = jnp.maximum(h1 * s1_ref[...] + t1_ref[...], 0.0).astype(jnp.bfloat16)

    scale = h1.shape[1] // cw
    chunks = [h1[:, i * cw:(i + 1) * cw] for i in range(scale)]  # bf16 views

    # Boundary masks (flattened row r is image row r % H); hoisted & full width:
    # JAX does not CSE broadcast_in_dim, so broadcast once and reuse per branch.
    # They also kill the circular wrap of the roll across neighbouring images.
    row = jax.lax.broadcasted_iota(jnp.int32, (M, cw), 0) % H
    mask_up = (row > 0).astype(jnp.float32)         # image row h-1 exists
    mask_dn = (row < H - 1).astype(jnp.float32)     # image row h+1 exists

    # conv3 accumulator (K-sliced per piece, interleaved with the branch chain).
    y = jnp.zeros((M, o_ref.shape[-1]), jnp.float32)

    sp = None
    for i in range(nums):                       # hierarchical 3x3 branches
        sp = chunks[i].astype(jnp.float32) if i == 0 else sp + chunks[i]
        # Vertical taps ky=0,1,2 (input rows h-1, h, h+1) via sublane rolls (XLU);
        # three accumulating K=cw matmuls against the ky sub-blocks of mb_ref[i]
        # (avoids materializing a (M, 3*cw) tap concat).
        up = pltpu.roll(sp, shift=1, axis=0) * mask_up           # in[h-1]
        dn = pltpu.roll(sp, shift=M - 1, axis=0) * mask_dn       # in[h+1]
        acc = jnp.dot(sp.astype(jnp.bfloat16), mb_ref[i, cw:2 * cw, :],
                      preferred_element_type=jnp.float32)
        acc = acc + jnp.dot(up.astype(jnp.bfloat16), mb_ref[i, :cw, :],
                            preferred_element_type=jnp.float32)
        acc = acc + jnp.dot(dn.astype(jnp.bfloat16), mb_ref[i, 2 * cw:, :],
                            preferred_element_type=jnp.float32)
        sp = jnp.maximum(acc * sc_ref[i] + tc_ref[i], 0.0)       # bn_i + relu (f32)
        # conv3 partial: consume piece i as soon as it exists.
        y = y + jnp.dot(sp.astype(jnp.bfloat16), b3_ref[i * cw:(i + 1) * cw, :],
                        preferred_element_type=jnp.float32)
    if scale != 1:                              # stype == 'normal': pass-through chunk
        y = y + jnp.dot(chunks[nums], b3_ref[nums * cw:(nums + 1) * cw, :],
                        preferred_element_type=jnp.float32)
    # TODO(synk): stype == 'stage' (AvgPool2d on the last chunk) not implemented.

    # bn3 + residual (downsample is None) + relu.
    y = y * s3_ref[...] + t3_ref[...]
    x_res = x_ref[...].reshape(M, x_ref.shape[-1]).astype(jnp.float32)  # re-read late
    y = jnp.maximum(y + x_res, 0.0)
    o_ref[...] = y.reshape(nb, H, o_ref.shape[-1]).astype(o_ref.dtype)


# ------------------------- parameter preprocessing ----------------------------
def _fold_bn(gamma, beta, mean, var, eps=1e-5):
    s = gamma / jnp.sqrt(var + eps)
    return s, beta - mean * s


def _band_matrix(k_ky, W):
    # k_ky: (co, ci, 3) weights for a fixed ky.  Builds M with
    # M[ci*W + w_in, co*W + w_out] = k_ky[co, ci, kx] for w_out - w_in = 1 - kx
    # (zero padding at the w borders falls out of the banded structure).
    co, ci, _ = k_ky.shape
    m = jnp.zeros((ci, W, co, W), jnp.float32)
    for kx in range(3):
        d = jnp.eye(W, k=1 - kx, dtype=jnp.float32)
        kk = jnp.transpose(k_ky[:, :, kx])                  # (ci, co)
        m = m + kk[:, None, :, None] * d[None, :, None, :]
    return m.reshape(ci * W, co * W)


def init_params(key, inplanes, planes, baseWidth, scale):
    width = int(math.floor(planes * (baseWidth / 64.0)))
    nums = scale - 1 if scale > 1 else 1
    cmid, cout = width * scale, planes * 4
    ks = jax.random.split(key, 15)
    n = lambda k, s: jax.random.normal(k, s, jnp.float32)
    p = dict(
        conv1_w=0.1 * n(ks[0], (cmid, inplanes, 1, 1)),          # OIHW
        convs_w=0.1 * n(ks[1], (nums, width, width, 3, 3)),       # per-branch OIHW
        conv3_w=0.1 * n(ks[2], (cout, cmid, 1, 1)),
        bn1_g=1.0 + 0.1 * n(ks[3], (cmid,)), bn1_b=0.1 * n(ks[4], (cmid,)),
        bn1_m=0.1 * n(ks[5], (cmid,)), bn1_v=0.5 + jnp.abs(n(ks[6], (cmid,))),
        bnc_g=1.0 + 0.1 * n(ks[7], (nums, width)), bnc_b=0.1 * n(ks[8], (nums, width)),
        bnc_m=0.1 * n(ks[9], (nums, width)), bnc_v=0.5 + jnp.abs(n(ks[10], (nums, width))),
        bn3_g=1.0 + 0.1 * n(ks[11], (cout,)), bn3_b=0.1 * n(ks[12], (cout,)),
        bn3_m=0.1 * n(ks[13], (cout,)), bn3_v=0.5 + jnp.abs(n(ks[14], (cout,))),
    )
    return p, width


# --------------------------- generation heuristics -----------------------------
def _device_kind():
    try:
        return jax.devices()[0].device_kind.lower()
    except Exception:
        return ""


def _vmem_limit_bytes():
    # Generation-aware scoped-VMEM limit with headroom (defaults are 16/32 MiB,
    # far below physical: 128 MiB on v5e/v6e, 64 MiB on v7x).
    try:
        cap = pltpu.get_tpu_info().vmem_capacity_bytes
        return int(min(cap * 3 // 4, 100 * 2**20))
    except Exception:
        pass
    kind = _device_kind()
    if "v7" in kind or "7x" in kind:
        return 48 * 2**20
    return 96 * 2**20


def _pick_batch_block(N, H):
    kind = _device_kind()
    # v5e MXU rows are 128-wide; v6e/v7x 256-wide.
    m_target = 128 if "v5" in kind else 256
    cap = max(1, m_target // H)
    nb = next(d for d in range(min(N, cap), 0, -1) if N % d == 0)
    # v7x has two TensorCores: keep at least 2 parallel grid steps.
    if ("v7" in kind or "7x" in kind) and N >= 2 and N // nb < 2:
        nb = next(d for d in range(max(1, N // 2), 0, -1) if N % d == 0)
    return nb


# ------------------------------ wrapper ---------------------------------------
def special_bottleneck(x_nchw, p, batch_block=None, single_buffer_weights=True):
    N, Cin, H, W = x_nchw.shape
    wc = p['convs_w']
    nums, width = wc.shape[0], wc.shape[1]
    Cmid, Cout = p['conv1_w'].shape[0], p['conv3_w'].shape[0]
    assert Cout == Cin, "downsample is None => inplanes must equal planes*expansion"
    cw = width * W

    nb = _pick_batch_block(N, H) if batch_block is None else batch_block
    assert N % nb == 0

    s1, t1 = _fold_bn(p['bn1_g'], p['bn1_b'], p['bn1_m'], p['bn1_v'])
    s3, t3 = _fold_bn(p['bn3_g'], p['bn3_b'], p['bn3_m'], p['bn3_v'])
    sc, tc = _fold_bn(p['bnc_g'], p['bnc_b'], p['bnc_m'], p['bnc_v'])

    eyeW = jnp.eye(W, dtype=jnp.float32)
    # 1x1 convs as block-diagonal matmuls in the (rows, C*W) layout (bf16 weights).
    # TODO(synk): at large C*W switch to a channel-contracting (N*H*W, C) x (C, C')
    # formulation; the kron form scales as (C*W)^2 in VMEM and wastes MXU FLOPs (Wx).
    B1 = jnp.kron(jnp.transpose(p['conv1_w'][:, :, 0, 0]), eyeW).astype(jnp.bfloat16)
    B3 = jnp.kron(jnp.transpose(p['conv3_w'][:, :, 0, 0]), eyeW).astype(jnp.bfloat16)
    # Per-branch fused tap matrix (3*width*W, width*W), row blocks ordered ky = 0, 1, 2.
    Mb = jnp.stack([
        jnp.concatenate([_band_matrix(wc[i][:, :, ky, :], W) for ky in range(3)], axis=0)
        for i in range(nums)]).astype(jnp.bfloat16)              # (nums, 3*cw, cw)

    s1v, t1v = jnp.repeat(s1, W)[None, :], jnp.repeat(t1, W)[None, :]
    s3v, t3v = jnp.repeat(s3, W)[None, :], jnp.repeat(t3, W)[None, :]
    scv = jnp.repeat(sc, W, axis=1)[:, None, :]                  # (nums, 1, width*W)
    tcv = jnp.repeat(tc, W, axis=1)[:, None, :]

    # NCHW -> (N, H, C*W) channel-major lanes, bf16 at the kernel boundary.
    # TODO(synk): keep the surrounding model in this layout to drop the two
    # standalone HBM-round-trip transposes at the kernel boundary.
    x2 = jnp.transpose(x_nchw, (0, 2, 1, 3)).reshape(N, H, Cin * W).astype(jnp.bfloat16)

    def weight_spec(a):
        nd = a.ndim
        # Constant index_map: each weight block is DMA'd only once across the grid;
        # single-buffered so the (C*W)^2-sized weights don't take 2x VMEM residency.
        if single_buffer_weights:
            return pl.BlockSpec(a.shape, lambda n, nd=nd: (0,) * nd,
                                pipeline_mode=pl.Buffered(1))
        return pl.BlockSpec(a.shape, lambda n, nd=nd: (0,) * nd)

    # Advisory cost estimate (actual MXU work of the kron'd formulation).
    flops = 2 * N * H * ((Cin * W) * (Cmid * W)
                         + nums * 3 * cw * cw
                         + (Cmid * W) * (Cout * W))
    bytes_accessed = (x2.size * 2 + N * H * Cout * W * 2
                      + B1.size * 2 + B3.size * 2 + Mb.size * 2
                      + (s1v.size + t1v.size + s3v.size + t3v.size
                         + scv.size + tcv.size) * 4)
    ce = pl.CostEstimate(flops=int(flops), transcendentals=0,
                         bytes_accessed=int(bytes_accessed))

    out2 = pl.pallas_call(
        _bottleneck_kernel,
        out_shape=jax.ShapeDtypeStruct((N, H, Cout * W), jnp.bfloat16),
        grid_spec=pltpu.PrefetchScalarGridSpec(
            num_scalar_prefetch=0,
            grid=(N // nb,),
            in_specs=[pl.BlockSpec((nb, H, Cin * W), lambda n: (n, 0, 0)),
                      weight_spec(B1), weight_spec(s1v), weight_spec(t1v),
                      weight_spec(Mb), weight_spec(scv), weight_spec(tcv),
                      weight_spec(B3), weight_spec(s3v), weight_spec(t3v)],
            out_specs=pl.BlockSpec((nb, H, Cout * W), lambda n: (n, 0, 0)),
        ),
        compiler_params=pltpu.CompilerParams(
            dimension_semantics=("parallel",),
            vmem_limit_bytes=_vmem_limit_bytes()),
        cost_estimate=ce,
    )(x2, B1, s1v, t1v, Mb, scv, tcv, B3, s3v, t3v)

    # (N, H, Cout*W) -> NCHW (f32 for the caller / reference check).
    return jnp.transpose(out2.reshape(N, H, Cout, W), (0, 2, 1, 3)).astype(jnp.float32)


# ------------------------ pure-JAX reference (NCHW) ----------------------------
def reference_forward(x, p):
    dn = ('NCHW', 'OIHW', 'NCHW')
    conv = functools.partial(jax.lax.conv_general_dilated, window_strides=(1, 1),
                             dimension_numbers=dn, precision=_HI)

    def bn(z, g, b, m, v, eps=1e-5):
        s = g / jnp.sqrt(v + eps)
        return z * s[None, :, None, None] + (b - m * s)[None, :, None, None]

    wc = p['convs_w']
    nums, width = wc.shape[0], wc.shape[1]
    scale = p['conv1_w'].shape[0] // width
    out = jax.nn.relu(bn(conv(x, p['conv1_w'], padding='VALID'),
                         p['bn1_g'], p['bn1_b'], p['bn1_m'], p['bn1_v']))
    spx = [out[:, i * width:(i + 1) * width] for i in range(scale)]
    pieces, sp = [], None
    for i in range(nums):
        sp = spx[i] if i == 0 else sp + spx[i]
        sp = conv(sp, wc[i], padding=((1, 1), (1, 1)))
        sp = jax.nn.relu(bn(sp, p['bnc_g'][i], p['bnc_b'][i], p['bnc_m'][i], p['bnc_v'][i]))
        pieces.append(sp)
    if scale != 1:
        pieces.append(spx[nums])          # stype == 'normal'
    out = jnp.concatenate(pieces, axis=1)
    out = bn(conv(out, p['conv3_w'], padding='VALID'),
             p['bn3_g'], p['bn3_b'], p['bn3_m'], p['bn3_v'])
    return jax.nn.relu(out + x)


# --------------------------------- main ----------------------------------------
if __name__ == "__main__":
    key = jax.random.PRNGKey(0)
    kx, kp = jax.random.split(key)

    # SpecialBottleNeck(inplanes=64, planes=16, stride=1, downsample=None,
    #                   baseWidth=32, scale=4, stype='normal')
    inplanes, planes, baseWidth, scale = 64, 16, 32, 4
    N, H, W = 2, 16, 16

    x = jax.random.normal(kx, (N, inplanes, H, W), jnp.float32)   # NCHW like PyTorch
    params, _width = init_params(kp, inplanes, planes, baseWidth, scale)

    try:
        out = jax.block_until_ready(special_bottleneck(x, params))
    except Exception:
        # TODO(synk): drop fallback once pipeline_mode=pl.Buffered(1) is available
        # everywhere; it only changes VMEM residency of the constant weights.
        out = jax.block_until_ready(
            special_bottleneck(x, params, single_buffer_weights=False))

    ref = jax.block_until_ready(reference_forward(x, params))
    # bf16 kernel I/O + bf16 MXU operands (f32 accumulation) vs the HIGHEST-precision
    # f32 reference -> tolerance sized for end-to-end bf16 rounding.
    np.testing.assert_allclose(np.asarray(out), np.asarray(ref), rtol=5e-2, atol=7e-2)
    print("KERNEL_OK")
</pallas_src>

<mosaic_0001>
module attributes {stable_mosaic.version = 11 : i64} {
  func.func @_bottleneck_kernel(%arg0: i32, %arg1: memref<2x16x1024xbf16, #tpu.memory_space<vmem>>, %arg2: memref<1024x512xbf16, #tpu.memory_space<vmem>>, %arg3: memref<1x512xf32, #tpu.memory_space<vmem>>, %arg4: memref<1x512xf32, #tpu.memory_space<vmem>>, %arg5: memref<3x384x128xbf16, #tpu.memory_space<vmem>>, %arg6: memref<3x1x128xf32, #tpu.memory_space<vmem>>, %arg7: memref<3x1x128xf32, #tpu.memory_space<vmem>>, %arg8: memref<512x1024xbf16, #tpu.memory_space<vmem>>, %arg9: memref<1x1024xf32, #tpu.memory_space<vmem>>, %arg10: memref<1x1024xf32, #tpu.memory_space<vmem>>, %arg11: memref<2x16x1024xbf16, #tpu.memory_space<vmem>>) attributes {dimension_semantics = [#tpu.dimension_semantics<parallel>], iteration_bounds = array<i64: 1>, scalar_prefetch = 0 : i64, scratch_operands = 0 : i64, tpu.core_type = #tpu.core_type<tc>, window_params = [{transform_indices = @transform_0, window_bounds = array<i64: 2, 16, 1024>}, {pipeline_mode = #tpu.pipeline_mode<synchronous>, transform_indices = @transform_1, window_bounds = array<i64: 1024, 512>}, {pipeline_mode = #tpu.pipeline_mode<synchronous>, transform_indices = @transform_2, window_bounds = array<i64: 1, 512>}, {pipeline_mode = #tpu.pipeline_mode<synchronous>, transform_indices = @transform_3, window_bounds = array<i64: 1, 512>}, {pipeline_mode = #tpu.pipeline_mode<synchronous>, transform_indices = @transform_4, window_bounds = array<i64: 3, 384, 128>}, {pipeline_mode = #tpu.pipeline_mode<synchronous>, transform_indices = @transform_5, window_bounds = array<i64: 3, 1, 128>}, {pipeline_mode = #tpu.pipeline_mode<synchronous>, transform_indices = @transform_6, window_bounds = array<i64: 3, 1, 128>}, {pipeline_mode = #tpu.pipeline_mode<synchronous>, transform_indices = @transform_7, window_bounds = array<i64: 512, 1024>}, {pipeline_mode = #tpu.pipeline_mode<synchronous>, transform_indices = @transform_8, window_bounds = array<i64: 1, 1024>}, {pipeline_mode = #tpu.pipeline_mode<synchronous>, transform_indices = @transform_9, window_bounds = array<i64: 1, 1024>}, {transform_indices = @transform_10, window_bounds = array<i64: 2, 16, 1024>}]} {
    %c0 = arith.constant 0 : index
    %c0_0 = arith.constant 0 : index
    %c0_1 = arith.constant 0 : index
    %0 = vector.load %arg1[%c0, %c0_0, %c0_1] : memref<2x16x1024xbf16, #tpu.memory_space<vmem>>, vector<2x16x1024xbf16>
    %1 = vector.shape_cast %0 : vector<2x16x1024xbf16> to vector<32x1024xbf16>
    %c0_2 = arith.constant 0 : index
    %c0_3 = arith.constant 0 : index
    %2 = vector.load %arg2[%c0_2, %c0_3] : memref<1024x512xbf16, #tpu.memory_space<vmem>>, vector<1024x512xbf16>
    %cst = arith.constant dense<0.000000e+00> : vector<32x512xf32>
    %3 = tpu.matmul %1, %2, %cst {dimension_numbers = #tpu.dot_dimension_numbers<[1], [0], [0], [1], [0, 0, 1, 1], [], []>} : vector<32x1024xbf16>, vector<1024x512xbf16>, vector<32x512xf32> -> vector<32x512xf32>
    %c0_4 = arith.constant 0 : index
    %c0_5 = arith.constant 0 : index
    %4 = vector.load %arg3[%c0_4, %c0_5] : memref<1x512xf32, #tpu.memory_space<vmem>>, vector<1x512xf32>
    %5 = vector.broadcast %4 : vector<1x512xf32> to vector<32x512xf32>
    %6 = arith.mulf %3, %5 : vector<32x512xf32>
    %c0_6 = arith.constant 0 : index
    %c0_7 = arith.constant 0 : index
    %7 = vector.load %arg4[%c0_6, %c0_7] : memref<1x512xf32, #tpu.memory_space<vmem>>, vector<1x512xf32>
    %8 = vector.broadcast %7 : vector<1x512xf32> to vector<32x512xf32>
    %9 = arith.addf %6, %8 : vector<32x512xf32>
    %cst_8 = arith.constant 0.000000e+00 : f32
    %10 = vector.broadcast %cst_8 : f32 to vector<32x512xf32>
    %11 = arith.maximumf %9, %10 : vector<32x512xf32>
    %12 = arith.truncf %11 : vector<32x512xf32> to vector<32x512xbf16>
    %13 = vector.extract_strided_slice %12 {offsets = [0, 0], sizes = [32, 128], strides = [1, 1]} : vector<32x512xbf16> to vector<32x128xbf16>
    %14 = vector.extract_strided_slice %12 {offsets = [0, 128], sizes = [32, 128], strides = [1, 1]} : vector<32x512xbf16> to vector<32x128xbf16>
    %15 = vector.extract_strided_slice %12 {offsets = [0, 256], sizes = [32, 128], strides = [1, 1]} : vector<32x512xbf16> to vector<32x128xbf16>
    %16 = vector.extract_strided_slice %12 {offsets = [0, 384], sizes = [32, 128], strides = [1, 1]} : vector<32x512xbf16> to vector<32x128xbf16>
    %17 = tpu.iota {dimensions = array<i32: 0>} : vector<32x128xi32>
    %c16_i32 = arith.constant 16 : i32
    %c0_i32 = arith.constant 0 : i32
    %18 = arith.cmpi eq, %c16_i32, %c0_i32 : i32
    %c1_i32 = arith.constant 1 : i32
    %19 = arith.select %18, %c1_i32, %c16_i32 : i32
    %20 = vector.broadcast %19 : i32 to vector<32x128xi32>
    %21 = arith.remsi %17, %20 : vector<32x128xi32>
    %c0_i32_9 = arith.constant 0 : i32
    %22 = vector.broadcast %c0_i32_9 : i32 to vector<32x128xi32>
    %23 = arith.cmpi ne, %21, %22 : vector<32x128xi32>
    %c0_i32_10 = arith.constant 0 : i32
    %24 = vector.broadcast %c0_i32_10 : i32 to vector<32x128xi32>
    %25 = arith.cmpi slt, %21, %24 : vector<32x128xi32>
    %c0_i32_11 = arith.constant 0 : i32
    %26 = arith.cmpi slt, %19, %c0_i32_11 : i32
    %27 = vector.broadcast %26 : i1 to vector<32x128xi1>
    %28 = vector.broadcast %27 : vector<32x128xi1> to vector<32x128xi1>
    %29 = arith.xori %25, %28 : vector<32x128xi1>
    %30 = arith.andi %29, %23 : vector<32x128xi1>
    %31 = vector.broadcast %19 : i32 to vector<32x128xi32>
    %32 = arith.addi %21, %31 : vector<32x128xi32>
    %33 = arith.select %30, %32, %21 : vector<32x128xi1>, vector<32x128xi32>
    %c0_i32_12 = arith.constant 0 : i32
    %34 = vector.broadcast %c0_i32_12 : i32 to vector<32x128xi32>
    %35 = arith.cmpi sgt, %33, %34 : vector<32x128xi32>
    %36 = arith.extui %35 : vector<32x128xi1> to vector<32x128xi32>
    %37 = arith.sitofp %36 : vector<32x128xi32> to vector<32x128xf32>
    %c15_i32 = arith.constant 15 : i32
    %38 = vector.broadcast %c15_i32 : i32 to vector<32x128xi32>
    %39 = arith.cmpi slt, %33, %38 : vector<32x128xi32>
    %40 = arith.extui %39 : vector<32x128xi1> to vector<32x128xi32>
    %41 = arith.sitofp %40 : vector<32x128xi32> to vector<32x128xf32>
    %cst_13 = arith.constant 0.000000e+00 : f32
    %42 = vector.broadcast %cst_13 : f32 to vector<32x1024xf32>
    %43 = arith.extf %13 : vector<32x128xbf16> to vector<32x128xf32>
    %c1_i32_14 = arith.constant 1 : i32
    %44 = tpu.dynamic_rotate %43 by %c1_i32_14 dim 0 : vector<32x128xf32>, i32 -> vector<32x128xf32>
    %45 = arith.mulf %44, %37 : vector<32x128xf32>
    %c31_i32 = arith.constant 31 : i32
    %46 = tpu.dynamic_rotate %43 by %c31_i32 dim 0 : vector<32x128xf32>, i32 -> vector<32x128xf32>
    %47 = arith.mulf %46, %41 : vector<32x128xf32>
    %48 = arith.truncf %43 : vector<32x128xf32> to vector<32x128xbf16>
    %c0_15 = arith.constant 0 : index
    %c128 = arith.constant 128 : index
    %c0_16 = arith.constant 0 : index
    %49 = vector.load %arg5[%c0_15, %c128, %c0_16] : memref<3x384x128xbf16, #tpu.memory_space<vmem>>, vector<1x128x128xbf16>
    %50 = vector.shape_cast %49 : vector<1x128x128xbf16> to vector<128x128xbf16>
    %cst_17 = arith.constant dense<0.000000e+00> : vector<32x128xf32>
    %51 = tpu.matmul %48, %50, %cst_17 {dimension_numbers = #tpu.dot_dimension_numbers<[1], [0], [0], [1], [0, 0, 1, 1], [], []>} : vector<32x128xbf16>, vector<128x128xbf16>, vector<32x128xf32> -> vector<32x128xf32>
    %52 = arith.truncf %45 : vector<32x128xf32> to vector<32x128xbf16>
    %c0_18 = arith.constant 0 : index
    %c0_19 = arith.constant 0 : index
    %c0_20 = arith.constant 0 : index
    %53 = vector.load %arg5[%c0_18, %c0_19, %c0_20] : memref<3x384x128xbf16, #tpu.memory_space<vmem>>, vector<1x128x128xbf16>
    %54 = vector.shape_cast %53 : vector<1x128x128xbf16> to vector<128x128xbf16>
    %cst_21 = arith.constant dense<0.000000e+00> : vector<32x128xf32>
    %55 = tpu.matmul %52, %54, %cst_21 {dimension_numbers = #tpu.dot_dimension_numbers<[1], [0], [0], [1], [0, 0, 1, 1], [], []>} : vector<32x128xbf16>, vector<128x128xbf16>, vector<32x128xf32> -> vector<32x128xf32>
    %56 = arith.addf %51, %55 : vector<32x128xf32>
    %57 = arith.truncf %47 : vector<32x128xf32> to vector<32x128xbf16>
    %c0_22 = arith.constant 0 : index
    %c256 = arith.constant 256 : index
    %c0_23 = arith.constant 0 : index
    %58 = vector.load %arg5[%c0_22, %c256, %c0_23] : memref<3x384x128xbf16, #tpu.memory_space<vmem>>, vector<1x128x128xbf16>
    %59 = vector.shape_cast %58 : vector<1x128x128xbf16> to vector<128x128xbf16>
    %cst_24 = arith.constant dense<0.000000e+00> : vector<32x128xf32>
    %60 = tpu.matmul %57, %59, %cst_24 {dimension_numbers = #tpu.dot_dimension_numbers<[1], [0], [0], [1], [0, 0, 1, 1], [], []>} : vector<32x128xbf16>, vector<128x128xbf16>, vector<32x128xf32> -> vector<32x128xf32>
    %61 = arith.addf %56, %60 : vector<32x128xf32>
    %c0_25 = arith.constant 0 : index
    %c0_26 = arith.constant 0 : index
    %c0_27 = arith.constant 0 : index
    %62 = vector.load %arg6[%c0_25, %c0_26, %c0_27] : memref<3x1x128xf32, #tpu.memory_space<vmem>>, vector<1x1x128xf32>
    %63 = vector.shape_cast %62 : vector<1x1x128xf32> to vector<1x128xf32>
    %64 = vector.broadcast %63 : vector<1x128xf32> to vector<32x128xf32>
    %65 = arith.mulf %61, %64 : vector<32x128xf32>
    %c0_28 = arith.constant 0 : index
    %c0_29 = arith.constant 0 : index
    %c0_30 = arith.constant 0 : index
    %66 = vector.load %arg7[%c0_28, %c0_29, %c0_30] : memref<3x1x128xf32, #tpu.memory_space<vmem>>, vector<1x1x128xf32>
    %67 = vector.shape_cast %66 : vector<1x1x128xf32> to vector<1x128xf32>
    %68 = vector.broadcast %67 : vector<1x128xf32> to vector<32x128xf32>
    %69 = arith.addf %65, %68 : vector<32x128xf32>
    %cst_31 = arith.constant 0.000000e+00 : f32
    %70 = vector.broadcast %cst_31 : f32 to vector<32x128xf32>
    %71 = arith.maximumf %69, %70 : vector<32x128xf32>
    %72 = arith.truncf %71 : vector<32x128xf32> to vector<32x128xbf16>
    %c0_32 = arith.constant 0 : index
    %c0_33 = arith.constant 0 : index
    %73 = vector.load %arg8[%c0_32, %c0_33] : memref<512x1024xbf16, #tpu.memory_space<vmem>>, vector<128x1024xbf16>
    %cst_34 = arith.constant dense<0.000000e+00> : vector<32x1024xf32>
    %74 = tpu.matmul %72, %73, %cst_34 {dimension_numbers = #tpu.dot_dimension_numbers<[1], [0], [0], [1], [0, 0, 1, 1], [], []>} : vector<32x128xbf16>, vector<128x1024xbf16>, vector<32x1024xf32> -> vector<32x1024xf32>
    %75 = arith.addf %42, %74 : vector<32x1024xf32>
    %76 = arith.extf %14 : vector<32x128xbf16> to vector<32x128xf32>
    %77 = arith.addf %71, %76 : vector<32x128xf32>
    %c1_i32_35 = arith.constant 1 : i32
    %78 = tpu.dynamic_rotate %77 by %c1_i32_35 dim 0 : vector<32x128xf32>, i32 -> vector<32x128xf32>
    %79 = arith.mulf %78, %37 : vector<32x128xf32>
    %c31_i32_36 = arith.constant 31 : i32
    %80 = tpu.dynamic_rotate %77 by %c31_i32_36 dim 0 : vector<32x128xf32>, i32 -> vector<32x128xf32>
    %81 = arith.mulf %80, %41 : vector<32x128xf32>
    %82 = arith.truncf %77 : vector<32x128xf32> to vector<32x128xbf16>
    %c1 = arith.constant 1 : index
    %c128_37 = arith.constant 128 : index
    %c0_38 = arith.constant 0 : index
    %83 = vector.load %arg5[%c1, %c128_37, %c0_38] : memref<3x384x128xbf16, #tpu.memory_space<vmem>>, vector<1x128x128xbf16>
    %84 = vector.shape_cast %83 : vector<1x128x128xbf16> to vector<128x128xbf16>
    %cst_39 = arith.constant dense<0.000000e+00> : vector<32x128xf32>
    %85 = tpu.matmul %82, %84, %cst_39 {dimension_numbers = #tpu.dot_dimension_numbers<[1], [0], [0], [1], [0, 0, 1, 1], [], []>} : vector<32x128xbf16>, vector<128x128xbf16>, vector<32x128xf32> -> vector<32x128xf32>
    %86 = arith.truncf %79 : vector<32x128xf32> to vector<32x128xbf16>
    %c1_40 = arith.constant 1 : index
    %c0_41 = arith.constant 0 : index
    %c0_42 = arith.constant 0 : index
    %87 = vector.load %arg5[%c1_40, %c0_41, %c0_42] : memref<3x384x128xbf16, #tpu.memory_space<vmem>>, vector<1x128x128xbf16>
    %88 = vector.shape_cast %87 : vector<1x128x128xbf16> to vector<128x128xbf16>
    %cst_43 = arith.constant dense<0.000000e+00> : vector<32x128xf32>
    %89 = tpu.matmul %86, %88, %cst_43 {dimension_numbers = #tpu.dot_dimension_numbers<[1], [0], [0], [1], [0, 0, 1, 1], [], []>} : vector<32x128xbf16>, vector<128x128xbf16>, vector<32x128xf32> -> vector<32x128xf32>
    %90 = arith.addf %85, %89 : vector<32x128xf32>
    %91 = arith.truncf %81 : vector<32x128xf32> to vector<32x128xbf16>
    %c1_44 = arith.constant 1 : index
    %c256_45 = arith.constant 256 : index
    %c0_46 = arith.constant 0 : index
    %92 = vector.load %arg5[%c1_44, %c256_45, %c0_46] : memref<3x384x128xbf16, #tpu.memory_space<vmem>>, vector<1x128x128xbf16>
    %93 = vector.shape_cast %92 : vector<1x128x128xbf16> to vector<128x128xbf16>
    %cst_47 = arith.constant dense<0.000000e+00> : vector<32x128xf32>
    %94 = tpu.matmul %91, %93, %cst_47 {dimension_numbers = #tpu.dot_dimension_numbers<[1], [0], [0], [1], [0, 0, 1, 1], [], []>} : vector<32x128xbf16>, vector<128x128xbf16>, vector<32x128xf32> -> vector<32x128xf32>
    %95 = arith.addf %90, %94 : vector<32x128xf32>
    %c1_48 = arith.constant 1 : index
    %c0_49 = arith.constant 0 : index
    %c0_50 = arith.constant 0 : index
    %96 = vector.load %arg6[%c1_48, %c0_49, %c0_50] : memref<3x1x128xf32, #tpu.memory_space<vmem>>, vector<1x1x128xf32>
    %97 = vector.shape_cast %96 : vector<1x1x128xf32> to vector<1x128xf32>
    %98 = vector.broadcast %97 : vector<1x128xf32> to vector<32x128xf32>
    %99 = arith.mulf %95, %98 : vector<32x128xf32>
    %c1_51 = arith.constant 1 : index
    %c0_52 = arith.constant 0 : index
    %c0_53 = arith.constant 0 : index
    %100 = vector.load %arg7[%c1_51, %c0_52, %c0_53] : memref<3x1x128xf32, #tpu.memory_space<vmem>>, vector<1x1x128xf32>
    %101 = vector.shape_cast %100 : vector<1x1x128xf32> to vector<1x128xf32>
    %102 = vector.broadcast %101 : vector<1x128xf32> to vector<32x128xf32>
    %103 = arith.addf %99, %102 : vector<32x128xf32>
    %cst_54 = arith.constant 0.000000e+00 : f32
    %104 = vector.broadcast %cst_54 : f32 to vector<32x128xf32>
    %105 = arith.maximumf %103, %104 : vector<32x128xf32>
    %106 = arith.truncf %105 : vector<32x128xf32> to vector<32x128xbf16>
    %c128_55 = arith.constant 128 : index
    %c0_56 = arith.constant 0 : index
    %107 = vector.load %arg8[%c128_55, %c0_56] : memref<512x1024xbf16, #tpu.memory_space<vmem>>, vector<128x1024xbf16>
    %cst_57 = arith.constant dense<0.000000e+00> : vector<32x1024xf32>
    %108 = tpu.matmul %106, %107, %cst_57 {dimension_numbers = #tpu.dot_dimension_numbers<[1], [0], [0], [1], [0, 0, 1, 1], [], []>} : vector<32x128xbf16>, vector<128x1024xbf16>, vector<32x1024xf32> -> vector<32x1024xf32>
    %109 = arith.addf %75, %108 : vector<32x1024xf32>
    %110 = arith.extf %15 : vector<32x128xbf16> to vector<32x128xf32>
    %111 = arith.addf %105, %110 : vector<32x128xf32>
    %c1_i32_58 = arith.constant 1 : i32
    %112 = tpu.dynamic_rotate %111 by %c1_i32_58 dim 0 : vector<32x128xf32>, i32 -> vector<32x128xf32>
    %113 = arith.mulf %112, %37 : vector<32x128xf32>
    %c31_i32_59 = arith.constant 31 : i32
    %114 = tpu.dynamic_rotate %111 by %c31_i32_59 dim 0 : vector<32x128xf32>, i32 -> vector<32x128xf32>
    %115 = arith.mulf %114, %41 : vector<32x128xf32>
    %116 = arith.truncf %111 : vector<32x128xf32> to vector<32x128xbf16>
    %c2 = arith.constant 2 : index
    %c128_60 = arith.constant 128 : index
    %c0_61 = arith.constant 0 : index
    %117 = vector.load %arg5[%c2, %c128_60, %c0_61] : memref<3x384x128xbf16, #tpu.memory_space<vmem>>, vector<1x128x128xbf16>
    %118 = vector.shape_cast %117 : vector<1x128x128xbf16> to vector<128x128xbf16>
    %cst_62 = arith.constant dense<0.000000e+00> : vector<32x128xf32>
    %119 = tpu.matmul %116, %118, %cst_62 {dimension_numbers = #tpu.dot_dimension_numbers<[1], [0], [0], [1], [0, 0, 1, 1], [], []>} : vector<32x128xbf16>, vector<128x128xbf16>, vector<32x128xf32> -> vector<32x128xf32>
    %120 = arith.truncf %113 : vector<32x128xf32> to vector<32x128xbf16>
    %c2_63 = arith.constant 2 : index
    %c0_64 = arith.constant 0 : index
    %c0_65 = arith.constant 0 : index
    %121 = vector.load %arg5[%c2_63, %c0_64, %c0_65] : memref<3x384x128xbf16, #tpu.memory_space<vmem>>, vector<1x128x128xbf16>
    %122 = vector.shape_cast %121 : vector<1x128x128xbf16> to vector<128x128xbf16>
    %cst_66 = arith.constant dense<0.000000e+00> : vector<32x128xf32>
    %123 = tpu.matmul %120, %122, %cst_66 {dimension_numbers = #tpu.dot_dimension_numbers<[1], [0], [0], [1], [0, 0, 1, 1], [], []>} : vector<32x128xbf16>, vector<128x128xbf16>, vector<32x128xf32> -> vector<32x128xf32>
    %124 = arith.addf %119, %123 : vector<32x128xf32>
    %125 = arith.truncf %115 : vector<32x128xf32> to vector<32x128xbf16>
    %c2_67 = arith.constant 2 : index
    %c256_68 = arith.constant 256 : index
    %c0_69 = arith.constant 0 : index
    %126 = vector.load %arg5[%c2_67, %c256_68, %c0_69] : memref<3x384x128xbf16, #tpu.memory_space<vmem>>, vector<1x128x128xbf16>
    %127 = vector.shape_cast %126 : vector<1x128x128xbf16> to vector<128x128xbf16>
    %cst_70 = arith.constant dense<0.000000e+00> : vector<32x128xf32>
    %128 = tpu.matmul %125, %127, %cst_70 {dimension_numbers = #tpu.dot_dimension_numbers<[1], [0], [0], [1], [0, 0, 1, 1], [], []>} : vector<32x128xbf16>, vector<128x128xbf16>, vector<32x128xf32> -> vector<32x128xf32>
    %129 = arith.addf %124, %128 : vector<32x128xf32>
    %c2_71 = arith.constant 2 : index
    %c0_72 = arith.constant 0 : index
    %c0_73 = arith.constant 0 : index
    %130 = vector.load %arg6[%c2_71, %c0_72, %c0_73] : memref<3x1x128xf32, #tpu.memory_space<vmem>>, vector<1x1x128xf32>
    %131 = vector.shape_cast %130 : vector<1x1x128xf32> to vector<1x128xf32>
    %132 = vector.broadcast %131 : vector<1x128xf32> to vector<32x128xf32>
    %133 = arith.mulf %129, %132 : vector<32x128xf32>
    %c2_74 = arith.constant 2 : index
    %c0_75 = arith.constant 0 : index
    %c0_76 = arith.constant 0 : index
    %134 = vector.load %arg7[%c2_74, %c0_75, %c0_76] : memref<3x1x128xf32, #tpu.memory_space<vmem>>, vector<1x1x128xf32>
    %135 = vector.shape_cast %134 : vector<1x1x128xf32> to vector<1x128xf32>
    %136 = vector.broadcast %135 : vector<1x128xf32> to vector<32x128xf32>
    %137 = arith.addf %133, %136 : vector<32x128xf32>
    %cst_77 = arith.constant 0.000000e+00 : f32
    %138 = vector.broadcast %cst_77 : f32 to vector<32x128xf32>
    %139 = arith.maximumf %137, %138 : vector<32x128xf32>
    %140 = arith.truncf %139 : vector<32x128xf32> to vector<32x128xbf16>
    %c256_78 = arith.constant 256 : index
    %c0_79 = arith.constant 0 : index
    %141 = vector.load %arg8[%c256_78, %c0_79] : memref<512x1024xbf16, #tpu.memory_space<vmem>>, vector<128x1024xbf16>
    %cst_80 = arith.constant dense<0.000000e+00> : vector<32x1024xf32>
    %142 = tpu.matmul %140, %141, %cst_80 {dimension_numbers = #tpu.dot_dimension_numbers<[1], [0], [0], [1], [0, 0, 1, 1], [], []>} : vector<32x128xbf16>, vector<128x1024xbf16>, vector<32x1024xf32> -> vector<32x1024xf32>
    %143 = arith.addf %109, %142 : vector<32x1024xf32>
    %c384 = arith.constant 384 : index
    %c0_81 = arith.constant 0 : index
    %144 = vector.load %arg8[%c384, %c0_81] : memref<512x1024xbf16, #tpu.memory_space<vmem>>, vector<128x1024xbf16>
    %cst_82 = arith.constant dense<0.000000e+00> : vector<32x1024xf32>
    %145 = tpu.matmul %16, %144, %cst_82 {dimension_numbers = #tpu.dot_dimension_numbers<[1], [0], [0], [1], [0, 0, 1, 1], [], []>} : vector<32x128xbf16>, vector<128x1024xbf16>, vector<32x1024xf32> -> vector<32x1024xf32>
    %146 = arith.addf %143, %145 : vector<32x1024xf32>
    %c0_83 = arith.constant 0 : index
    %c0_84 = arith.constant 0 : index
    %147 = vector.load %arg9[%c0_83, %c0_84] : memref<1x1024xf32, #tpu.memory_space<vmem>>, vector<1x1024xf32>
    %148 = vector.broadcast %147 : vector<1x1024xf32> to vector<32x1024xf32>
    %149 = arith.mulf %146, %148 : vector<32x1024xf32>
    %c0_85 = arith.constant 0 : index
    %c0_86 = arith.constant 0 : index
    %150 = vector.load %arg10[%c0_85, %c0_86] : memref<1x1024xf32, #tpu.memory_space<vmem>>, vector<1x1024xf32>
    %151 = vector.broadcast %150 : vector<1x1024xf32> to vector<32x1024xf32>
    %152 = arith.addf %149, %151 : vector<32x1024xf32>
    %c0_87 = arith.constant 0 : index
    %c0_88 = arith.constant 0 : index
    %c0_89 = arith.constant 0 : index
    %153 = vector.load %arg1[%c0_87, %c0_88, %c0_89] : memref<2x16x1024xbf16, #tpu.memory_space<vmem>>, vector<2x16x1024xbf16>
    %154 = vector.shape_cast %153 : vector<2x16x1024xbf16> to vector<32x1024xbf16>
    %155 = arith.extf %154 : vector<32x1024xbf16> to vector<32x1024xf32>
    %156 = arith.addf %152, %155 : vector<32x1024xf32>
    %cst_90 = arith.constant 0.000000e+00 : f32
    %157 = vector.broadcast %cst_90 : f32 to vector<32x1024xf32>
    %158 = arith.maximumf %156, %157 : vector<32x1024xf32>
    %159 = vector.shape_cast %158 : vector<32x1024xf32> to vector<2x16x1024xf32>
    %160 = arith.truncf %159 : vector<2x16x1024xf32> to vector<2x16x1024xbf16>
    %c0_91 = arith.constant 0 : index
    %c0_92 = arith.constant 0 : index
    %c0_93 = arith.constant 0 : index
    %161 = vector.load %arg11[%c0_91, %c0_92, %c0_93] : memref<2x16x1024xbf16, #tpu.memory_space<vmem>>, vector<2x16x1024xbf16>
    tpu.vector_store %arg11[%c0_91, %c0_92, %c0_93], %160 {strides = array<i32>} : memref<2x16x1024xbf16, #tpu.memory_space<vmem>>, vector<2x16x1024xbf16>,
    return
  }
  func.func @transform_0(%arg0: i32) -> (i32, i32, i32) {
    %c0_i32 = arith.constant 0 : i32
    %c0_i32_0 = arith.constant 0 : i32
    %c0_i32_1 = arith.constant 0 : i32
    return %arg0, %c0_i32, %c0_i32_0 : i32, i32, i32
  }
  func.func @transform_1(%arg0: i32) -> (i32, i32) {
    %c0_i32 = arith.constant 0 : i32
    %c0_i32_0 = arith.constant 0 : i32
    %c0_i32_1 = arith.constant 0 : i32
    return %c0_i32, %c0_i32_0 : i32, i32
  }
  func.func @transform_2(%arg0: i32) -> (i32, i32) {
    %c0_i32 = arith.constant 0 : i32
    %c0_i32_0 = arith.constant 0 : i32
    %c0_i32_1 = arith.constant 0 : i32
    return %c0_i32, %c0_i32_0 : i32, i32
  }
  func.func @transform_3(%arg0: i32) -> (i32, i32) {
    %c0_i32 = arith.constant 0 : i32
    %c0_i32_0 = arith.constant 0 : i32
    %c0_i32_1 = arith.constant 0 : i32
    return %c0_i32, %c0_i32_0 : i32, i32
  }
  func.func @transform_4(%arg0: i32) -> (i32, i32, i32) {
    %c0_i32 = arith.constant 0 : i32
    %c0_i32_0 = arith.constant 0 : i32
    %c0_i32_1 = arith.constant 0 : i32
    %c0_i32_2 = arith.constant 0 : i32
    return %c0_i32, %c0_i32_0, %c0_i32_1 : i32, i32, i32
  }
  func.func @transform_5(%arg0: i32) -> (i32, i32, i32) {
    %c0_i32 = arith.constant 0 : i32
    %c0_i32_0 = arith.constant 0 : i32
    %c0_i32_1 = arith.constant 0 : i32
    %c0_i32_2 = arith.constant 0 : i32
    return %c0_i32, %c0_i32_0, %c0_i32_1 : i32, i32, i32
  }
  func.func @transform_6(%arg0: i32) -> (i32, i32, i32) {
    %c0_i32 = arith.constant 0 : i32
    %c0_i32_0 = arith.constant 0 : i32
    %c0_i32_1 = arith.constant 0 : i32
    %c0_i32_2 = arith.constant 0 : i32
    return %c0_i32, %c0_i32_0, %c0_i32_1 : i32, i32, i32
  }
  func.func @transform_7(%arg0: i32) -> (i32, i32) {
    %c0_i32 = arith.constant 0 : i32
    %c0_i32_0 = arith.constant 0 : i32
    %c0_i32_1 = arith.constant 0 : i32
    return %c0_i32, %c0_i32_0 : i32, i32
  }
  func.func @transform_8(%arg0: i32) -> (i32, i32) {
    %c0_i32 = arith.constant 0 : i32
    %c0_i32_0 = arith.constant 0 : i32
    %c0_i32_1 = arith.constant 0 : i32
    return %c0_i32, %c0_i32_0 : i32, i32
  }
  func.func @transform_9(%arg0: i32) -> (i32, i32) {
    %c0_i32 = arith.constant 0 : i32
    %c0_i32_0 = arith.constant 0 : i32
    %c0_i32_1 = arith.constant 0 : i32
    return %c0_i32, %c0_i32_0 : i32, i32
  }
  func.func @transform_10(%arg0: i32) -> (i32, i32, i32) {
    %c0_i32 = arith.constant 0 : i32
    %c0_i32_0 = arith.constant 0 : i32
    %c0_i32_1 = arith.constant 0 : i32
    return %arg0, %c0_i32, %c0_i32_0 : i32, i32, i32
  }
}

module attributes {stable_mosaic.version = 11 : i64} {
  func.func @_bottleneck_kernel(%arg0: i32, %arg1: memref<2x16x1024xbf16, #tpu.memory_space<vmem>>, %arg2: memref<1024x512xbf16, #tpu.memory_space<vmem>>, %arg3: memref<1x512xf32, #tpu.memory_space<vmem>>, %arg4: memref<1x512xf32, #tpu.memory_space<vmem>>, %arg5: memref<3x384x128xbf16, #tpu.memory_space<vmem>>, %arg6: memref<3x1x128xf32, #tpu.memory_space<vmem>>, %arg7: memref<3x1x128xf32, #tpu.memory_space<vmem>>, %arg8: memref<512x1024xbf16, #tpu.memory_space<vmem>>, %arg9: memref<1x1024xf32, #tpu.memory_space<vmem>>, %arg10: memref<1x1024xf32, #tpu.memory_space<vmem>>, %arg11: memref<2x16x1024xbf16, #tpu.memory_space<vmem>>) attributes {dimension_semantics = [#tpu.dimension_semantics<parallel>], iteration_bounds = array<i64: 1>, scalar_prefetch = 0 : i64, scratch_operands = 0 : i64, tpu.core_type = #tpu.core_type<tc>, window_params = [{transform_indices = @transform_0, window_bounds = array<i64: 2, 16, 1024>}, {pipeline_mode = #tpu.pipeline_mode<synchronous>, transform_indices = @transform_1, window_bounds = array<i64: 1024, 512>}, {pipeline_mode = #tpu.pipeline_mode<synchronous>, transform_indices = @transform_2, window_bounds = array<i64: 1, 512>}, {pipeline_mode = #tpu.pipeline_mode<synchronous>, transform_indices = @transform_3, window_bounds = array<i64: 1, 512>}, {pipeline_mode = #tpu.pipeline_mode<synchronous>, transform_indices = @transform_4, window_bounds = array<i64: 3, 384, 128>}, {pipeline_mode = #tpu.pipeline_mode<synchronous>, transform_indices = @transform_5, window_bounds = array<i64: 3, 1, 128>}, {pipeline_mode = #tpu.pipeline_mode<synchronous>, transform_indices = @transform_6, window_bounds = array<i64: 3, 1, 128>}, {pipeline_mode = #tpu.pipeline_mode<synchronous>, transform_indices = @transform_7, window_bounds = array<i64: 512, 1024>}, {pipeline_mode = #tpu.pipeline_mode<synchronous>, transform_indices = @transform_8, window_bounds = array<i64: 1, 1024>}, {pipeline_mode = #tpu.pipeline_mode<synchronous>, transform_indices = @transform_9, window_bounds = array<i64: 1, 1024>}, {transform_indices = @transform_10, window_bounds = array<i64: 2, 16, 1024>}]} {
    %c0 = arith.constant 0 : index
    %c0_0 = arith.constant 0 : index
    %c0_1 = arith.constant 0 : index
    %0 = vector.load %arg1[%c0, %c0_0, %c0_1] : memref<2x16x1024xbf16, #tpu.memory_space<vmem>>, vector<2x16x1024xbf16>
    %1 = vector.shape_cast %0 : vector<2x16x1024xbf16> to vector<32x1024xbf16>
    %c0_2 = arith.constant 0 : index
    %c0_3 = arith.constant 0 : index
    %2 = vector.load %arg2[%c0_2, %c0_3] : memref<1024x512xbf16, #tpu.memory_space<vmem>>, vector<1024x512xbf16>
    %cst = arith.constant dense<0.000000e+00> : vector<32x512xf32>
    %3 = tpu.matmul %1, %2, %cst {dimension_numbers = #tpu.dot_dimension_numbers<[1], [0], [0], [1], [0, 0, 1, 1], [], []>} : vector<32x1024xbf16>, vector<1024x512xbf16>, vector<32x512xf32> -> vector<32x512xf32>
    %c0_4 = arith.constant 0 : index
    %c0_5 = arith.constant 0 : index
    %4 = vector.load %arg3[%c0_4, %c0_5] : memref<1x512xf32, #tpu.memory_space<vmem>>, vector<1x512xf32>
    %5 = vector.broadcast %4 : vector<1x512xf32> to vector<32x512xf32>
    %6 = arith.mulf %3, %5 : vector<32x512xf32>
    %c0_6 = arith.constant 0 : index
    %c0_7 = arith.constant 0 : index
    %7 = vector.load %arg4[%c0_6, %c0_7] : memref<1x512xf32, #tpu.memory_space<vmem>>, vector<1x512xf32>
    %8 = vector.broadcast %7 : vector<1x512xf32> to vector<32x512xf32>
    %9 = arith.addf %6, %8 : vector<32x512xf32>
    %cst_8 = arith.constant 0.000000e+00 : f32
    %10 = vector.broadcast %cst_8 : f32 to vector<32x512xf32>
    %11 = arith.maximumf %9, %10 : vector<32x512xf32>
    %12 = arith.truncf %11 : vector<32x512xf32> to vector<32x512xbf16>
    %13 = vector.extract_strided_slice %12 {offsets = [0, 0], sizes = [32, 128], strides = [1, 1]} : vector<32x512xbf16> to vector<32x128xbf16>
    %14 = vector.extract_strided_slice %12 {offsets = [0, 128], sizes = [32, 128], strides = [1, 1]} : vector<32x512xbf16> to vector<32x128xbf16>
    %15 = vector.extract_strided_slice %12 {offsets = [0, 256], sizes = [32, 128], strides = [1, 1]} : vector<32x512xbf16> to vector<32x128xbf16>
    %16 = vector.extract_strided_slice %12 {offsets = [0, 384], sizes = [32, 128], strides = [1, 1]} : vector<32x512xbf16> to vector<32x128xbf16>
    %17 = tpu.iota {dimensions = array<i32: 0>} : vector<32x128xi32>
    %c16_i32 = arith.constant 16 : i32
    %c0_i32 = arith.constant 0 : i32
    %18 = arith.cmpi eq, %c16_i32, %c0_i32 : i32
    %c1_i32 = arith.constant 1 : i32
    %19 = arith.select %18, %c1_i32, %c16_i32 : i32
    %20 = vector.broadcast %19 : i32 to vector<32x128xi32>
    %21 = arith.remsi %17, %20 : vector<32x128xi32>
    %c0_i32_9 = arith.constant 0 : i32
    %22 = vector.broadcast %c0_i32_9 : i32 to vector<32x128xi32>
    %23 = arith.cmpi ne, %21, %22 : vector<32x128xi32>
    %c0_i32_10 = arith.constant 0 : i32
    %24 = vector.broadcast %c0_i32_10 : i32 to vector<32x128xi32>
    %25 = arith.cmpi slt, %21, %24 : vector<32x128xi32>
    %c0_i32_11 = arith.constant 0 : i32
    %26 = arith.cmpi slt, %19, %c0_i32_11 : i32
    %27 = vector.broadcast %26 : i1 to vector<32x128xi1>
    %28 = vector.broadcast %27 : vector<32x128xi1> to vector<32x128xi1>
    %29 = arith.xori %25, %28 : vector<32x128xi1>
    %30 = arith.andi %29, %23 : vector<32x128xi1>
    %31 = vector.broadcast %19 : i32 to vector<32x128xi32>
    %32 = arith.addi %21, %31 : vector<32x128xi32>
    %33 = arith.select %30, %32, %21 : vector<32x128xi1>, vector<32x128xi32>
    %c0_i32_12 = arith.constant 0 : i32
    %34 = vector.broadcast %c0_i32_12 : i32 to vector<32x128xi32>
    %35 = arith.cmpi sgt, %33, %34 : vector<32x128xi32>
    %36 = arith.extui %35 : vector<32x128xi1> to vector<32x128xi32>
    %37 = arith.sitofp %36 : vector<32x128xi32> to vector<32x128xf32>
    %c15_i32 = arith.constant 15 : i32
    %38 = vector.broadcast %c15_i32 : i32 to vector<32x128xi32>
    %39 = arith.cmpi slt, %33, %38 : vector<32x128xi32>
    %40 = arith.extui %39 : vector<32x128xi1> to vector<32x128xi32>
    %41 = arith.sitofp %40 : vector<32x128xi32> to vector<32x128xf32>
    %cst_13 = arith.constant 0.000000e+00 : f32
    %42 = vector.broadcast %cst_13 : f32 to vector<32x1024xf32>
    %43 = arith.extf %13 : vector<32x128xbf16> to vector<32x128xf32>
    %c1_i32_14 = arith.constant 1 : i32
    %44 = tpu.dynamic_rotate %43 by %c1_i32_14 dim 0 : vector<32x128xf32>, i32 -> vector<32x128xf32>
    %45 = arith.mulf %44, %37 : vector<32x128xf32>
    %c31_i32 = arith.constant 31 : i32
    %46 = tpu.dynamic_rotate %43 by %c31_i32 dim 0 : vector<32x128xf32>, i32 -> vector<32x128xf32>
    %47 = arith.mulf %46, %41 : vector<32x128xf32>
    %48 = arith.truncf %43 : vector<32x128xf32> to vector<32x128xbf16>
    %c0_15 = arith.constant 0 : index
    %c128 = arith.constant 128 : index
    %c0_16 = arith.constant 0 : index
    %49 = vector.load %arg5[%c0_15, %c128, %c0_16] : memref<3x384x128xbf16, #tpu.memory_space<vmem>>, vector<1x128x128xbf16>
    %50 = vector.shape_cast %49 : vector<1x128x128xbf16> to vector<128x128xbf16>
    %cst_17 = arith.constant dense<0.000000e+00> : vector<32x128xf32>
    %51 = tpu.matmul %48, %50, %cst_17 {dimension_numbers = #tpu.dot_dimension_numbers<[1], [0], [0], [1], [0, 0, 1, 1], [], []>} : vector<32x128xbf16>, vector<128x128xbf16>, vector<32x128xf32> -> vector<32x128xf32>
    %52 = arith.truncf %45 : vector<32x128xf32> to vector<32x128xbf16>
    %c0_18 = arith.constant 0 : index
    %c0_19 = arith.constant 0 : index
    %c0_20 = arith.constant 0 : index
    %53 = vector.load %arg5[%c0_18, %c0_19, %c0_20] : memref<3x384x128xbf16, #tpu.memory_space<vmem>>, vector<1x128x128xbf16>
    %54 = vector.shape_cast %53 : vector<1x128x128xbf16> to vector<128x128xbf16>
    %cst_21 = arith.constant dense<0.000000e+00> : vector<32x128xf32>
    %55 = tpu.matmul %52, %54, %cst_21 {dimension_numbers = #tpu.dot_dimension_numbers<[1], [0], [0], [1], [0, 0, 1, 1], [], []>} : vector<32x128xbf16>, vector<128x128xbf16>, vector<32x128xf32> -> vector<32x128xf32>
    %56 = arith.addf %51, %55 : vector<32x128xf32>
    %57 = arith.truncf %47 : vector<32x128xf32> to vector<32x128xbf16>
    %c0_22 = arith.constant 0 : index
    %c256 = arith.constant 256 : index
    %c0_23 = arith.constant 0 : index
    %58 = vector.load %arg5[%c0_22, %c256, %c0_23] : memref<3x384x128xbf16, #tpu.memory_space<vmem>>, vector<1x128x128xbf16>
    %59 = vector.shape_cast %58 : vector<1x128x128xbf16> to vector<128x128xbf16>
    %cst_24 = arith.constant dense<0.000000e+00> : vector<32x128xf32>
    %60 = tpu.matmul %57, %59, %cst_24 {dimension_numbers = #tpu.dot_dimension_numbers<[1], [0], [0], [1], [0, 0, 1, 1], [], []>} : vector<32x128xbf16>, vector<128x128xbf16>, vector<32x128xf32> -> vector<32x128xf32>
    %61 = arith.addf %56, %60 : vector<32x128xf32>
    %c0_25 = arith.constant 0 : index
    %c0_26 = arith.constant 0 : index
    %c0_27 = arith.constant 0 : index
    %62 = vector.load %arg6[%c0_25, %c0_26, %c0_27] : memref<3x1x128xf32, #tpu.memory_space<vmem>>, vector<1x1x128xf32>
    %63 = vector.shape_cast %62 : vector<1x1x128xf32> to vector<1x128xf32>
    %64 = vector.broadcast %63 : vector<1x128xf32> to vector<32x128xf32>
    %65 = arith.mulf %61, %64 : vector<32x128xf32>
    %c0_28 = arith.constant 0 : index
    %c0_29 = arith.constant 0 : index
    %c0_30 = arith.constant 0 : index
    %66 = vector.load %arg7[%c0_28, %c0_29, %c0_30] : memref<3x1x128xf32, #tpu.memory_space<vmem>>, vector<1x1x128xf32>
    %67 = vector.shape_cast %66 : vector<1x1x128xf32> to vector<1x128xf32>
    %68 = vector.broadcast %67 : vector<1x128xf32> to vector<32x128xf32>
    %69 = arith.addf %65, %68 : vector<32x128xf32>
    %cst_31 = arith.constant 0.000000e+00 : f32
    %70 = vector.broadcast %cst_31 : f32 to vector<32x128xf32>
    %71 = arith.maximumf %69, %70 : vector<32x128xf32>
    %72 = arith.truncf %71 : vector<32x128xf32> to vector<32x128xbf16>
    %c0_32 = arith.constant 0 : index
    %c0_33 = arith.constant 0 : index
    %73 = vector.load %arg8[%c0_32, %c0_33] : memref<512x1024xbf16, #tpu.memory_space<vmem>>, vector<128x1024xbf16>
    %cst_34 = arith.constant dense<0.000000e+00> : vector<32x1024xf32>
    %74 = tpu.matmul %72, %73, %cst_34 {dimension_numbers = #tpu.dot_dimension_numbers<[1], [0], [0], [1], [0, 0, 1, 1], [], []>} : vector<32x128xbf16>, vector<128x1024xbf16>, vector<32x1024xf32> -> vector<32x1024xf32>
    %75 = arith.addf %42, %74 : vector<32x1024xf32>
    %76 = arith.extf %14 : vector<32x128xbf16> to vector<32x128xf32>
    %77 = arith.addf %71, %76 : vector<32x128xf32>
    %c1_i32_35 = arith.constant 1 : i32
    %78 = tpu.dynamic_rotate %77 by %c1_i32_35 dim 0 : vector<32x128xf32>, i32 -> vector<32x128xf32>
    %79 = arith.mulf %78, %37 : vector<32x128xf32>
    %c31_i32_36 = arith.constant 31 : i32
    %80 = tpu.dynamic_rotate %77 by %c31_i32_36 dim 0 : vector<32x128xf32>, i32 -> vector<32x128xf32>
    %81 = arith.mulf %80, %41 : vector<32x128xf32>
    %82 = arith.truncf %77 : vector<32x128xf32> to vector<32x128xbf16>
    %c1 = arith.constant 1 : index
    %c128_37 = arith.constant 128 : index
    %c0_38 = arith.constant 0 : index
    %83 = vector.load %arg5[%c1, %c128_37, %c0_38] : memref<3x384x128xbf16, #tpu.memory_space<vmem>>, vector<1x128x128xbf16>
    %84 = vector.shape_cast %83 : vector<1x128x128xbf16> to vector<128x128xbf16>
    %cst_39 = arith.constant dense<0.000000e+00> : vector<32x128xf32>
    %85 = tpu.matmul %82, %84, %cst_39 {dimension_numbers = #tpu.dot_dimension_numbers<[1], [0], [0], [1], [0, 0, 1, 1], [], []>} : vector<32x128xbf16>, vector<128x128xbf16>, vector<32x128xf32> -> vector<32x128xf32>
    %86 = arith.truncf %79 : vector<32x128xf32> to vector<32x128xbf16>
    %c1_40 = arith.constant 1 : index
    %c0_41 = arith.constant 0 : index
    %c0_42 = arith.constant 0 : index
    %87 = vector.load %arg5[%c1_40, %c0_41, %c0_42] : memref<3x384x128xbf16, #tpu.memory_space<vmem>>, vector<1x128x128xbf16>
    %88 = vector.shape_cast %87 : vector<1x128x128xbf16> to vector<128x128xbf16>
    %cst_43 = arith.constant dense<0.000000e+00> : vector<32x128xf32>
    %89 = tpu.matmul %86, %88, %cst_43 {dimension_numbers = #tpu.dot_dimension_numbers<[1], [0], [0], [1], [0, 0, 1, 1], [], []>} : vector<32x128xbf16>, vector<128x128xbf16>, vector<32x128xf32> -> vector<32x128xf32>
    %90 = arith.addf %85, %89 : vector<32x128xf32>
    %91 = arith.truncf %81 : vector<32x128xf32> to vector<32x128xbf16>
    %c1_44 = arith.constant 1 : index
    %c256_45 = arith.constant 256 : index
    %c0_46 = arith.constant 0 : index
    %92 = vector.load %arg5[%c1_44, %c256_45, %c0_46] : memref<3x384x128xbf16, #tpu.memory_space<vmem>>, vector<1x128x128xbf16>
    %93 = vector.shape_cast %92 : vector<1x128x128xbf16> to vector<128x128xbf16>
    %cst_47 = arith.constant dense<0.000000e+00> : vector<32x128xf32>
    %94 = tpu.matmul %91, %93, %cst_47 {dimension_numbers = #tpu.dot_dimension_numbers<[1], [0], [0], [1], [0, 0, 1, 1], [], []>} : vector<32x128xbf16>, vector<128x128xbf16>, vector<32x128xf32> -> vector<32x128xf32>
    %95 = arith.addf %90, %94 : vector<32x128xf32>
    %c1_48 = arith.constant 1 : index
    %c0_49 = arith.constant 0 : index
    %c0_50 = arith.constant 0 : index
    %96 = vector.load %arg6[%c1_48, %c0_49, %c0_50] : memref<3x1x128xf32, #tpu.memory_space<vmem>>, vector<1x1x128xf32>
    %97 = vector.shape_cast %96 : vector<1x1x128xf32> to vector<1x128xf32>
    %98 = vector.broadcast %97 : vector<1x128xf32> to vector<32x128xf32>
    %99 = arith.mulf %95, %98 : vector<32x128xf32>
    %c1_51 = arith.constant 1 : index
    %c0_52 = arith.constant 0 : index
    %c0_53 = arith.constant 0 : index
    %100 = vector.load %arg7[%c1_51, %c0_52, %c0_53] : memref<3x1x128xf32, #tpu.memory_space<vmem>>, vector<1x1x128xf32>
    %101 = vector.shape_cast %100 : vector<1x1x128xf32> to vector<1x128xf32>
    %102 = vector.broadcast %101 : vector<1x128xf32> to vector<32x128xf32>
    %103 = arith.addf %99, %102 : vector<32x128xf32>
    %cst_54 = arith.constant 0.000000e+00 : f32
    %104 = vector.broadcast %cst_54 : f32 to vector<32x128xf32>
    %105 = arith.maximumf %103, %104 : vector<32x128xf32>
    %106 = arith.truncf %105 : vector<32x128xf32> to vector<32x128xbf16>
    %c128_55 = arith.constant 128 : index
    %c0_56 = arith.constant 0 : index
    %107 = vector.load %arg8[%c128_55, %c0_56] : memref<512x1024xbf16, #tpu.memory_space<vmem>>, vector<128x1024xbf16>
    %cst_57 = arith.constant dense<0.000000e+00> : vector<32x1024xf32>
    %108 = tpu.matmul %106, %107, %cst_57 {dimension_numbers = #tpu.dot_dimension_numbers<[1], [0], [0], [1], [0, 0, 1, 1], [], []>} : vector<32x128xbf16>, vector<128x1024xbf16>, vector<32x1024xf32> -> vector<32x1024xf32>
    %109 = arith.addf %75, %108 : vector<32x1024xf32>
    %110 = arith.extf %15 : vector<32x128xbf16> to vector<32x128xf32>
    %111 = arith.addf %105, %110 : vector<32x128xf32>
    %c1_i32_58 = arith.constant 1 : i32
    %112 = tpu.dynamic_rotate %111 by %c1_i32_58 dim 0 : vector<32x128xf32>, i32 -> vector<32x128xf32>
    %113 = arith.mulf %112, %37 : vector<32x128xf32>
    %c31_i32_59 = arith.constant 31 : i32
    %114 = tpu.dynamic_rotate %111 by %c31_i32_59 dim 0 : vector<32x128xf32>, i32 -> vector<32x128xf32>
    %115 = arith.mulf %114, %41 : vector<32x128xf32>
    %116 = arith.truncf %111 : vector<32x128xf32> to vector<32x128xbf16>
    %c2 = arith.constant 2 : index
    %c128_60 = arith.constant 128 : index
    %c0_61 = arith.constant 0 : index
    %117 = vector.load %arg5[%c2, %c128_60, %c0_61] : memref<3x384x128xbf16, #tpu.memory_space<vmem>>, vector<1x128x128xbf16>
    %118 = vector.shape_cast %117 : vector<1x128x128xbf16> to vector<128x128xbf16>
    %cst_62 = arith.constant dense<0.000000e+00> : vector<32x128xf32>
    %119 = tpu.matmul %116, %118, %cst_62 {dimension_numbers = #tpu.dot_dimension_numbers<[1], [0], [0], [1], [0, 0, 1, 1], [], []>} : vector<32x128xbf16>, vector<128x128xbf16>, vector<32x128xf32> -> vector<32x128xf32>
    %120 = arith.truncf %113 : vector<32x128xf32> to vector<32x128xbf16>
    %c2_63 = arith.constant 2 : index
    %c0_64 = arith.constant 0 : index
    %c0_65 = arith.constant 0 : index
    %121 = vector.load %arg5[%c2_63, %c0_64, %c0_65] : memref<3x384x128xbf16, #tpu.memory_space<vmem>>, vector<1x128x128xbf16>
    %122 = vector.shape_cast %121 : vector<1x128x128xbf16> to vector<128x128xbf16>
    %cst_66 = arith.constant dense<0.000000e+00> : vector<32x128xf32>
    %123 = tpu.matmul %120, %122, %cst_66 {dimension_numbers = #tpu.dot_dimension_numbers<[1], [0], [0], [1], [0, 0, 1, 1], [], []>} : vector<32x128xbf16>, vector<128x128xbf16>, vector<32x128xf32> -> vector<32x128xf32>
    %124 = arith.addf %119, %123 : vector<32x128xf32>
    %125 = arith.truncf %115 : vector<32x128xf32> to vector<32x128xbf16>
    %c2_67 = arith.constant 2 : index
    %c256_68 = arith.constant 256 : index
    %c0_69 = arith.constant 0 : index
    %126 = vector.load %arg5[%c2_67, %c256_68, %c0_69] : memref<3x384x128xbf16, #tpu.memory_space<vmem>>, vector<1x128x128xbf16>
    %127 = vector.shape_cast %126 : vector<1x128x128xbf16> to vector<128x128xbf16>
    %cst_70 = arith.constant dense<0.000000e+00> : vector<32x128xf32>
    %128 = tpu.matmul %125, %127, %cst_70 {dimension_numbers = #tpu.dot_dimension_numbers<[1], [0], [0], [1], [0, 0, 1, 1], [], []>} : vector<32x128xbf16>, vector<128x128xbf16>, vector<32x128xf32> -> vector<32x128xf32>
    %129 = arith.addf %124, %128 : vector<32x128xf32>
    %c2_71 = arith.constant 2 : index
    %c0_72 = arith.constant 0 : index
    %c0_73 = arith.constant 0 : index
    %130 = vector.load %arg6[%c2_71, %c0_72, %c0_73] : memref<3x1x128xf32, #tpu.memory_space<vmem>>, vector<1x1x128xf32>
    %131 = vector.shape_cast %130 : vector<1x1x128xf32> to vector<1x128xf32>
    %132 = vector.broadcast %131 : vector<1x128xf32> to vector<32x128xf32>
    %133 = arith.mulf %129, %132 : vector<32x128xf32>
    %c2_74 = arith.constant 2 : index
    %c0_75 = arith.constant 0 : index
    %c0_76 = arith.constant 0 : index
    %134 = vector.load %arg7[%c2_74, %c0_75, %c0_76] : memref<3x1x128xf32, #tpu.memory_space<vmem>>, vector<1x1x128xf32>
    %135 = vector.shape_cast %134 : vector<1x1x128xf32> to vector<1x128xf32>
    %136 = vector.broadcast %135 : vector<1x128xf32> to vector<32x128xf32>
    %137 = arith.addf %133, %136 : vector<32x128xf32>
    %cst_77 = arith.constant 0.000000e+00 : f32
    %138 = vector.broadcast %cst_77 : f32 to vector<32x128xf32>
    %139 = arith.maximumf %137, %138 : vector<32x128xf32>
    %140 = arith.truncf %139 : vector<32x128xf32> to vector<32x128xbf16>
    %c256_78 = arith.constant 256 : index
    %c0_79 = arith.constant 0 : index
    %141 = vector.load %arg8[%c256_78, %c0_79] : memref<512x1024xbf16, #tpu.memory_space<vmem>>, vector<128x1024xbf16>
    %cst_80 = arith.constant dense<0.000000e+00> : vector<32x1024xf32>
    %142 = tpu.matmul %140, %141, %cst_80 {dimension_numbers = #tpu.dot_dimension_numbers<[1], [0], [0], [1], [0, 0, 1, 1], [], []>} : vector<32x128xbf16>, vector<128x1024xbf16>, vector<32x1024xf32> -> vector<32x1024xf32>
    %143 = arith.addf %109, %142 : vector<32x1024xf32>
    %c384 = arith.constant 384 : index
    %c0_81 = arith.constant 0 : index
    %144 = vector.load %arg8[%c384, %c0_81] : memref<512x1024xbf16, #tpu.memory_space<vmem>>, vector<128x1024xbf16>
    %cst_82 = arith.constant dense<0.000000e+00> : vector<32x1024xf32>
    %145 = tpu.matmul %16, %144, %cst_82 {dimension_numbers = #tpu.dot_dimension_numbers<[1], [0], [0], [1], [0, 0, 1, 1], [], []>} : vector<32x128xbf16>, vector<128x1024xbf16>, vector<32x1024xf32> -> vector<32x1024xf32>
    %146 = arith.addf %143, %145 : vector<32x1024xf32>
    %c0_83 = arith.constant 0 : index
    %c0_84 = arith.constant 0 : index
    %147 = vector.load %arg9[%c0_83, %c0_84] : memref<1x1024xf32, #tpu.memory_space<vmem>>, vector<1x1024xf32>
    %148 = vector.broadcast %147 : vector<1x1024xf32> to vector<32x1024xf32>
    %149 = arith.mulf %146, %148 : vector<32x1024xf32>
    %c0_85 = arith.constant 0 : index
    %c0_86 = arith.constant 0 : index
    %150 = vector.load %arg10[%c0_85, %c0_86] : memref<1x1024xf32, #tpu.memory_space<vmem>>, vector<1x1024xf32>
    %151 = vector.broadcast %150 : vector<1x1024xf32> to vector<32x1024xf32>
    %152 = arith.addf %149, %151 : vector<32x1024xf32>
    %c0_87 = arith.constant 0 : index
    %c0_88 = arith.constant 0 : index
    %c0_89 = arith.constant 0 : index
    %153 = vector.load %arg1[%c0_87, %c0_88, %c0_89] : memref<2x16x1024xbf16, #tpu.memory_space<vmem>>, vector<2x16x1024xbf16>
    %154 = vector.shape_cast %153 : vector<2x16x1024xbf16> to vector<32x1024xbf16>
    %155 = arith.extf %154 : vector<32x1024xbf16> to vector<32x1024xf32>
    %156 = arith.addf %152, %155 : vector<32x1024xf32>
    %cst_90 = arith.constant 0.000000e+00 : f32
    %157 = vector.broadcast %cst_90 : f32 to vector<32x1024xf32>
    %158 = arith.maximumf %156, %157 : vector<32x1024xf32>
    %159 = vector.shape_cast %158 : vector<32x1024xf32> to vector<2x16x1024xf32>
    %160 = arith.truncf %159 : vector<2x16x1024xf32> to vector<2x16x1024xbf16>
    %c0_91 = arith.constant 0 : index
    %c0_92 = arith.constant 0 : index
    %c0_93 = arith.constant 0 : index
    %161 = vector.load %arg11[%c0_91, %c0_92, %c0_93] : memref<2x16x1024xbf16, #tpu.memory_space<vmem>>, vector<2x16x1024xbf16>
    tpu.vector_store %arg11[%c0_91, %c0_92, %c0_93], %160 {strides = array<i32>} : memref<2x16x1024xbf16, #tpu.memory_space<vmem>>, vector<2x16x1024xbf16>,
    return
  }
  func.func @transform_0(%arg0: i32) -> (i32, i32, i32) {
    %c0_i32 = arith.constant 0 : i32
    %c0_i32_0 = arith.constant 0 : i32
    %c0_i32_1 = arith.constant 0 : i32
    return %arg0, %c0_i32, %c0_i32_0 : i32, i32, i32
  }
  func.func @transform_1(%arg0: i32) -> (i32, i32) {
    %c0_i32 = arith.constant 0 : i32
    %c0_i32_0 = arith.constant 0 : i32
    %c0_i32_1 = arith.constant 0 : i32
    return %c0_i32, %c0_i32_0 : i32, i32
  }
  func.func @transform_2(%arg0: i32) -> (i32, i32) {
    %c0_i32 = arith.constant 0 : i32
    %c0_i32_0 = arith.constant 0 : i32
    %c0_i32_1 = arith.constant 0 : i32
    return %c0_i32, %c0_i32_0 : i32, i32
  }
  func.func @transform_3(%arg0: i32) -> (i32, i32) {
    %c0_i32 = arith.constant 0 : i32
    %c0_i32_0 = arith.constant 0 : i32
    %c0_i32_1 = arith.constant 0 : i32
    return %c0_i32, %c0_i32_0 : i32, i32
  }
  func.func @transform_4(%arg0: i32) -> (i32, i32, i32) {
    %c0_i32 = arith.constant 0 : i32
    %c0_i32_0 = arith.constant 0 : i32
    %c0_i32_1 = arith.constant 0 : i32
    %c0_i32_2 = arith.constant 0 : i32
    return %c0_i32, %c0_i32_0, %c0_i32_1 : i32, i32, i32
  }
  func.func @transform_5(%arg0: i32) -> (i32, i32, i32) {
    %c0_i32 = arith.constant 0 : i32
    %c0_i32_0 = arith.constant 0 : i32
    %c0_i32_1 = arith.constant 0 : i32
    %c0_i32_2 = arith.constant 0 : i32
    return %c0_i32, %c0_i32_0, %c0_i32_1 : i32, i32, i32
  }
  func.func @transform_6(%arg0: i32) -> (i32, i32, i32) {
    %c0_i32 = arith.constant 0 : i32
    %c0_i32_0 = arith.constant 0 : i32
    %c0_i32_1 = arith.constant 0 : i32
    %c0_i32_2 = arith.constant 0 : i32
    return %c0_i32, %c0_i32_0, %c0_i32_1 : i32, i32, i32
  }
  func.func @transform_7(%arg0: i32) -> (i32, i32) {
    %c0_i32 = arith.constant 0 : i32
    %c0_i32_0 = arith.constant 0 : i32
    %c0_i32_1 = arith.constant 0 : i32
    return %c0_i32, %c0_i32_0 : i32, i32
  }
  func.func @transform_8(%arg0: i32) -> (i32, i32) {
    %c0_i32 = arith.constant 0 : i32
    %c0_i32_0 = arith.constant 0 : i32
    %c0_i32_1 = arith.constant 0 : i32
    return %c0_i32, %c0_i32_0 : i32, i32
  }
  func.func @transform_9(%arg0: i32) -> (i32, i32) {
    %c0_i32 = arith.constant 0 : i32
    %c0_i32_0 = arith.constant 0 : i32
    %c0_i32_1 = arith.constant 0 : i32
    return %c0_i32, %c0_i32_0 : i32, i32
  }
  func.func @transform_10(%arg0: i32) -> (i32, i32, i32) {
    %c0_i32 = arith.constant 0 : i32
    %c0_i32_0 = arith.constant 0 : i32
    %c0_i32_1 = arith.constant 0 : i32
    return %arg0, %c0_i32, %c0_i32_0 : i32, i32, i32
  }
}

</mosaic_0001>

<bundles_post_ra>
// kernel: tpu_custom_call.1
= control target key start
LH: loop header
LB: loop body
LE: loop exit
PB: predicated region body
PF: predicated region fallthrough
CT: control target
= control target key end

     0   :  { %15 = vsyncpa [#allocation3], 0  ;;  %s9140_s0 = inlined_call_operand.hbm [shape: bf16[2,16,1024], index: 0, kind: input, shape index: {}]   ;;  %s9141_s1 = inlined_call_operand.hbm [shape: bf16[1024,512], index: 1, kind: input, shape index: {}]   ;;  %s9142_s2 = inlined_call_operand.hbm [shape: f32[1,512], index: 2, kind: input, shape index: {}]   ;;  %s9143_s3 = inlined_call_operand.hbm [shape: f32[1,512], index: 3, kind: input, shape index: {}]   ;;  %s9144_s4 = inlined_call_operand.hbm [shape: bf16[3,384,128], index: 4, kind: input, shape index: {}]   ;;  %s9145_s5 = inlined_call_operand.hbm [shape: f32[3,1,128], index: 5, kind: input, shape index: {}]   ;;  %s9146_s6 = inlined_call_operand.hbm [shape: f32[3,1,128], index: 6, kind: input, shape index: {}]   ;;  %s9147_s7 = inlined_call_operand.hbm [shape: bf16[512,1024], index: 7, kind: input, shape index: {}]   ;;  %s9148_s8 = inlined_call_operand.vmem [shape: f32[1,1024], index: 8, kind: input, shape index: {}]   ;;  %s9149_s9 = inlined_call_operand.vmem [shape: f32[1,1024], index: 9, kind: input, shape index: {}]   ;;  %s9150_s10 = inlined_call_operand.hbm [shape: bf16[2,16,1024], index: 10, kind: output, shape index: {}]  }
   0x1   :  { %16 = vsyncpa [#allocation6], 0 }
   0x2   :  { %17 = vsyncpa [#allocation9], 0 }
   0x3   :  { %18 = vsyncpa [#allocation12], 0 }
   0x4   :  { %19 = vsyncpa [#allocation15], 0 }
   0x5   :  { %20 = vsyncpa [#allocation4], 0  ;;  %s8039_s13 = smov [#allocation5]  }
   0x6   :  { %s38_s14 = sshll.u32 %s8039_s13, 4  ;;  %s39_s14 = int_to_ptr.vmem [resolvable:$true] %s38_s14 }
   0x7   :  { %s7855_s15 = scalar_lea.vmem %s39_s14, 32768  ;;  %p7860_p1 = scmp.lt.s32.totalorder %s39_s14, %s39_s14 }
   0x8   :  { %p7856_p0 = scmp.ne.s32.totalorder %s39_s14, %s7855_s15  ;;  %p7861_p2 = scmp.lt.s32.totalorder %s7855_s15, %s7855_s15 }
   0xa   :  { %p7862_p3 = por %p7861_p2, %p7860_p1 }
   0xc   :  { %p7863_p4 = pnand %p7862_p3, %p7856_p0 }
   0xe   :  { %7866 = shalt.err (!%p7863_p4)
}
   0xf   :  { %s8040_s16 = smov 256   ;;  %s8041_s17 = smov 16  }
  0x10   :  { %44 = dma.hbm_to_vmem [thread:$0]  %s9141_s1, 32768, %s39_s14, [#allocation6], %s8040_s16, %s8040_s16, %s8041_s17  }
  0x11   :  { %s8042_s20 = smov [#allocation8]   ;;  %s8043_s22 = smov [#allocation11]  }
  0x12   :  { %s61_s21 = sshll.u32 %s8042_s20, 4  ;;  %s82_s23 = sshll.u32 %s8043_s22, 4  ;;  %s62_s21 = int_to_ptr.vmem [resolvable:$true] %s61_s21  ;;  %s83_s23 = int_to_ptr.vmem [resolvable:$true] %s82_s23 }
  0x13   :  { %s7875_s24 = scalar_lea.vmem %s62_s21, 64  ;;  %p7880_p6 = scmp.lt.s32.totalorder %s62_s21, %s62_s21 }
  0x14   :  { %p7876_p5 = scmp.ne.s32.totalorder %s62_s21, %s7875_s24  ;;  %p7881_p7 = scmp.lt.s32.totalorder %s7875_s24, %s7875_s24 }
  0x16   :  { %p7882_p8 = por %p7881_p7, %p7880_p6 }
  0x18   :  { %p7883_p9 = pnand %p7882_p8, %p7876_p5 }
  0x1a   :  { %7886 = shalt.err (!%p7883_p9)
}
  0x1b   :  { %64 = dma.hbm_to_vmem [thread:$0]  %s9143_s3, 64, %s62_s21, [#allocation9]  }
  0x1c   :  { %s7895_s27 = scalar_lea.vmem %s83_s23, 48  ;;  %s7899_s1 = scalar_lea.vmem %s83_s23, 64 }
  0x1d   :  { %p7896_p10 = scmp.ne.s32.totalorder %s83_s23, %s7895_s27  ;;  %p7900_p11 = scmp.lt.s32.totalorder %s83_s23, %s83_s23 }
  0x1e   :  { %p7901_p12 = scmp.lt.s32.totalorder %s7899_s1, %s7895_s27 }
  0x20   :  { %p7902_p13 = por %p7901_p12, %p7900_p11 }
  0x22   :  { %p7903_p0 = pnand %p7902_p13, %p7896_p10 }
  0x24   :  { %7906 = shalt.err (!%p7903_p0)
}
  0x25   :  { %s8044_s28 = smov 1   ;;  %s8045_s11 = smov [#allocation2]  }
  0x26   :  { %88 = dma.hbm_to_vmem [thread:$0]  %s9145_s5, 48, %s83_s23, [#allocation12], %s8041_s17, %s8041_s17, %s8044_s28  }
  0x27   :  { %s26_s12 = sshll.u32 %s8045_s11, 4  ;;  %s27_s12 = int_to_ptr.vmem [resolvable:$true] %s26_s12 }
  0x28   :  { %s7915_s3 = scalar_lea.vmem %s27_s12, 2048  ;;  %p7920_p2 = scmp.lt.s32.totalorder %s27_s12, %s27_s12 }
  0x29   :  { %p7916_p1 = scmp.ne.s32.totalorder %s27_s12, %s7915_s3  ;;  %p7921_p3 = scmp.lt.s32.totalorder %s7915_s3, %s7915_s3 }
  0x2b   :  { %p7922_p4 = por %p7921_p3, %p7920_p2 }
  0x2d   :  { %p7923_p5 = pnand %p7922_p4, %p7916_p1 }
  0x2f   :  { %7926 = shalt.err (!%p7923_p5)
}
  0x30   :  { %s8046_s13 = smov 512   ;;  %s8047_s14 = smov 32  }
  0x31   :  { %32 = dma.hbm_to_vmem [thread:$0]  %s9140_s0, 2048, %s27_s12, [#allocation3], %s8046_s13, %s8046_s13, %s8047_s14  }
  0x32   :  { %s8048_s5 = smov [#allocation7]   ;;  %s8049_s19 = smov [#allocation10]  }
  0x33   :  { %s51_s18 = sshll.u32 %s8048_s5, 4  ;;  %s70_s20 = sshll.u32 %s8049_s19, 4  ;;  %s52_s18 = int_to_ptr.vmem [resolvable:$true] %s51_s18  ;;  %s71_s20 = int_to_ptr.vmem [resolvable:$true] %s70_s20 }
  0x34   :  { %s7935_s21 = scalar_lea.vmem %s52_s18, 64  ;;  %p7940_p7 = scmp.lt.s32.totalorder %s52_s18, %s52_s18 }
  0x35   :  { %p7936_p6 = scmp.ne.s32.totalorder %s52_s18, %s7935_s21  ;;  %p7941_p8 = scmp.lt.s32.totalorder %s7935_s21, %s7935_s21 }
  0x37   :  { %p7942_p9 = por %p7941_p8, %p7940_p7 }
  0x39   :  { %p7943_p10 = pnand %p7942_p9, %p7936_p6 }
  0x3b   :  { %7946 = shalt.err (!%p7943_p10)
}
  0x3c   :  { %54 = dma.hbm_to_vmem [thread:$0]  %s9142_s2, 64, %s52_s18, [#allocation6]  }
  0x3d   :  { %s7955_s24 = scalar_lea.vmem %s71_s20, 9216  ;;  %p7960_p12 = scmp.lt.s32.totalorder %s71_s20, %s71_s20 }
  0x3e   :  { %p7956_p11 = scmp.ne.s32.totalorder %s71_s20, %s7955_s24  ;;  %p7961_p13 = scmp.lt.s32.totalorder %s7955_s24, %s7955_s24 }
  0x40   :  { %p7962_p0 = por %p7961_p13, %p7960_p12 }
  0x42   :  { %p7963_p1 = pnand %p7962_p0, %p7956_p11 }
  0x44   :  { %7966 = shalt.err (!%p7963_p1)
}
  0x45   :  { %s8050_s0 = smov 64   ;;  %s8051_s25 = smov 4  }
  0x46   :  { %76 = dma.hbm_to_vmem [thread:$0]  %s9144_s4, 9216, %s71_s20, [#allocation9], %s8050_s0, %s8050_s0, %s8051_s25  }
  0x47   :  { %s8052_s1 = smov [#allocation13]   ;;  %s8053_s30 = smov [#allocation14]  }
  0x48   :  { %s94_s29 = sshll.u32 %s8052_s1, 4  ;;  %s106_s11 = sshll.u32 %s8053_s30, 4  ;;  %s95_s29 = int_to_ptr.vmem [resolvable:$true] %s94_s29  ;;  %s107_s11 = int_to_ptr.vmem [resolvable:$true] %s106_s11 }
  0x49   :  { %s7975_s2 = scalar_lea.vmem %s95_s29, 48  ;;  %s7979_s12 = scalar_lea.vmem %s95_s29, 64 }
  0x4a   :  { %p7976_p2 = scmp.ne.s32.totalorder %s95_s29, %s7975_s2  ;;  %p7980_p3 = scmp.lt.s32.totalorder %s95_s29, %s95_s29 }
  0x4b   :  { %p7981_p4 = scmp.lt.s32.totalorder %s7979_s12, %s7975_s2 }
  0x4d   :  { %p7982_p5 = por %p7981_p4, %p7980_p3 }
  0x4f   :  { %p7983_p6 = pnand %p7982_p5, %p7976_p2 }
  0x51   :  { %7986 = shalt.err (!%p7983_p6)
}
  0x52   :  { %100 = dma.hbm_to_vmem [thread:$0]  %s9146_s6, 48, %s95_s29, [#allocation12], %s8041_s17, %s8041_s17, %s8044_s28  }
  0x53   :  { %s7995_s4 = scalar_lea.vmem %s107_s11, 32768  ;;  %p8000_p8 = scmp.lt.s32.totalorder %s107_s11, %s107_s11 }
  0x54   :  { %p7996_p7 = scmp.ne.s32.totalorder %s107_s11, %s7995_s4  ;;  %p8001_p9 = scmp.lt.s32.totalorder %s7995_s4, %s7995_s4 }
  0x56   :  { %p8002_p10 = por %p8001_p9, %p8000_p8 }
  0x58   :  { %p8003_p11 = pnand %p8002_p10, %p7996_p7 }
  0x5a   :  { %8006 = shalt.err (!%p8003_p11)
}
  0x5b   :  { %112 = dma.hbm_to_vmem [thread:$0]  %s9147_s7, 32768, %s107_s11, [#allocation15], %s8046_s13, %s8046_s13, %s8047_s14  }
  0x5c   :  { %8027 = dma.done.wait [#allocation3], 2048  }
  0x5d   :  { %8028 = vsyncadd [#allocation3], 4294965248 }
  0x5e   :  { %8029 = dma.done.wait [#allocation6], 32832  }
  0x5f   :  { %8030 = vsyncadd [#allocation6], 4294934464 }
  0x60   :  { %8031 = dma.done.wait [#allocation9], 9280  }
  0x61   :  { %8032 = vsyncadd [#allocation9], 4294958016 }
  0x62   :  { %8033 = dma.done.wait [#allocation12], 96  }
  0x63   :  { %8034 = vsyncadd [#allocation12], 4294967200 }
  0x64   :  { %8035 = dma.done.wait [#allocation15], 32768  }
  0x65   :  { %8036 = vsyncadd [#allocation15], 4294934528  ;;  %v7375_v0 = vld [vmem:[#allocation5 + $0xe4] ss:$16 sps:$4 sm:$0xff]   ;;  %v7379_v2 = vld [vmem:[#allocation5 + $0xe0] ss:$16 sps:$4 sm:$0xff]  }
  0x66   :  { %v7377_v1 = vld [vmem:[#allocation5 + $0x2e4] ss:$16 sps:$4 sm:$0xff]   ;;  %1774 = vmatprep.subr.bf16.mxu0 %v7375_v0  ;;  %v7380_v3 = vld [vmem:[#allocation5 + $0x2e0] ss:$16 sps:$4 sm:$0xff]   ;;  %v143_v50 = vld [vmem:[#allocation2 + $0x8] sm:$0xff] }
  0x67   :  { %1827 = vmatprep.subr.bf16.mxu1 %v7377_v1  ;;  %v7381_v4 = vld [vmem:[#allocation5 + $0xc4] ss:$16 sps:$4 sm:$0xff]   ;;  %1775 = vmatpush1.bf16.msra.mxu0 %v7379_v2  ;;  %v7385_v6 = vld [vmem:[#allocation5 + $0xc0] ss:$16 sps:$4 sm:$0xff]   ;;  %v147_v51 = vld [vmem:[#allocation2 + $0x28] sm:$0xff] }
  0x68   :  { %1828 = vmatpush1.bf16.msra.mxu1 %v7380_v3  ;;  %v7383_v5 = vld [vmem:[#allocation5 + $0x2c4] ss:$16 sps:$4 sm:$0xff]   ;;  %1776 = vmatprep.subr.bf16.mxu0 %v7381_v4  ;;  %v7386_v7 = vld [vmem:[#allocation5 + $0x2c0] ss:$16 sps:$4 sm:$0xff]   ;;  %v8151_v54 = vcombine.high %v143_v50, %v147_v51 }
  0x69   :  { %1829 = vmatprep.subr.bf16.mxu1 %v7383_v5  ;;  %v7387_v8 = vld [vmem:[#allocation5 + $0xa4] ss:$16 sps:$4 sm:$0xff]   ;;  %v7391_v10 = vld [vmem:[#allocation5 + $0xa0] ss:$16 sps:$4 sm:$0xff]  }
  0x6a   :  { %v7389_v9 = vld [vmem:[#allocation5 + $0x2a4] ss:$16 sps:$4 sm:$0xff]   ;;  %v7392_v11 = vld [vmem:[#allocation5 + $0x2a0] ss:$16 sps:$4 sm:$0xff]   ;;  %1859 = vmatprep.mubr.bf16.mxu1 %v8151_v54 }
  0x6b   :  { %1777 = vmatpush1.bf16.msra.mxu0 %v7385_v6  ;;  %v7393_v12 = vld [vmem:[#allocation5 + $0x84] ss:$16 sps:$4 sm:$0xff]   ;;  %v7397_v14 = vld [vmem:[#allocation5 + $0x80] ss:$16 sps:$4 sm:$0xff]  }
  0x6c   :  { %1830 = vmatpush1.bf16.msra.mxu1 %v7386_v7  ;;  %1778 = vmatprep.subr.bf16.mxu0 %v7387_v8  ;;  %v7395_v13 = vld [vmem:[#allocation5 + $0x284] ss:$16 sps:$4 sm:$0xff]   ;;  %v7398_v15 = vld [vmem:[#allocation5 + $0x280] ss:$16 sps:$4 sm:$0xff]  }
  0x6d   :  { %1831 = vmatprep.subr.bf16.mxu1 %v7389_v9  ;;  %v7399_v16 = vld [vmem:[#allocation5 + $0x64] ss:$16 sps:$4 sm:$0xff]   ;;  %v7403_v18 = vld [vmem:[#allocation5 + $0x60] ss:$16 sps:$4 sm:$0xff]   ;;  %v8157_v9 = vcombine.low %v143_v50, %v147_v51  ;;  %v8183_v50 = vld [vmem:[#allocation2 + $0x38] sm:$0xff] }
  0x6e   :  { %v7401_v17 = vld [vmem:[#allocation5 + $0x264] ss:$16 sps:$4 sm:$0xff]   ;;  %v7404_v19 = vld [vmem:[#allocation5 + $0x260] ss:$16 sps:$4 sm:$0xff]  }
  0x6f   :  { %1779 = vmatpush1.bf16.msra.mxu0 %v7391_v10  ;;  %v7405_v20 = vld [vmem:[#allocation5 + $0x44] ss:$16 sps:$4 sm:$0xff]   ;;  %v7409_v22 = vld [vmem:[#allocation5 + $0x40] ss:$16 sps:$4 sm:$0xff]  }
  0x70   :  { %1832 = vmatpush1.bf16.msra.mxu1 %v7392_v11  ;;  %1780 = vmatprep.subr.bf16.mxu0 %v7393_v12  ;;  %v7407_v21 = vld [vmem:[#allocation5 + $0x244] ss:$16 sps:$4 sm:$0xff]   ;;  %v7410_v23 = vld [vmem:[#allocation5 + $0x240] ss:$16 sps:$4 sm:$0xff]  }
  0x71   :  { %1833 = vmatprep.subr.bf16.mxu1 %v7395_v13  ;;  %v7411_v24 = vld [vmem:[#allocation5 + $0x24] ss:$16 sps:$4 sm:$0xff]   ;;  %v7415_v26 = vld [vmem:[#allocation5 + $0x20] ss:$16 sps:$4 sm:$0xff]  }
  0x72   :  { %v7413_v25 = vld [vmem:[#allocation5 + $0x224] ss:$16 sps:$4 sm:$0xff]   ;;  %v7416_v27 = vld [vmem:[#allocation5 + $0x220] ss:$16 sps:$4 sm:$0xff]  }
  0x73   :  { %1781 = vmatpush1.bf16.msra.mxu0 %v7397_v14  ;;  %v7417_v28 = vld [vmem:[#allocation5 + $0x4] ss:$16 sps:$4 sm:$0xff]   ;;  %v7421_v30 = vld [vmem:[#allocation5] ss:$16 sps:$4 sm:$0xff]  }
  0x74   :  { %1834 = vmatpush1.bf16.msra.mxu1 %v7398_v15  ;;  %1782 = vmatprep.subr.bf16.mxu0 %v7399_v16  ;;  %v7419_v29 = vld [vmem:[#allocation5 + $0x204] ss:$16 sps:$4 sm:$0xff]   ;;  %v7422_v31 = vld [vmem:[#allocation5 + $0x200] ss:$16 sps:$4 sm:$0xff]  }
  0x75   :  { %1835 = vmatprep.subr.bf16.mxu1 %v7401_v17  ;;  %v7423_v32 = vld [vmem:[#allocation5 + $0x1e4] ss:$16 sps:$4 sm:$0xff]   ;;  %v7427_v34 = vld [vmem:[#allocation5 + $0x1e0] ss:$16 sps:$4 sm:$0xff]  }
  0x76   :  { %v7425_v33 = vld [vmem:[#allocation5 + $0x3e4] ss:$16 sps:$4 sm:$0xff]   ;;  %v7428_v35 = vld [vmem:[#allocation5 + $0x3e0] ss:$16 sps:$4 sm:$0xff]  }
  0x77   :  { %1783 = vmatpush1.bf16.msra.mxu0 %v7403_v18  ;;  %v7429_v36 = vld [vmem:[#allocation5 + $0x1c4] ss:$16 sps:$4 sm:$0xff]   ;;  %v7433_v38 = vld [vmem:[#allocation5 + $0x1c0] ss:$16 sps:$4 sm:$0xff]  }
  0x78   :  { %1836 = vmatpush1.bf16.msra.mxu1 %v7404_v19  ;;  %1784 = vmatprep.subr.bf16.mxu0 %v7405_v20  ;;  %v7431_v37 = vld [vmem:[#allocation5 + $0x3c4] ss:$16 sps:$4 sm:$0xff]   ;;  %v7434_v39 = vld [vmem:[#allocation5 + $0x3c0] ss:$16 sps:$4 sm:$0xff]  }
  0x79   :  { %1837 = vmatprep.subr.bf16.mxu1 %v7407_v21  ;;  %v7435_v40 = vld [vmem:[#allocation5 + $0x1a4] ss:$16 sps:$4 sm:$0xff]   ;;  %v7439_v42 = vld [vmem:[#allocation5 + $0x1a0] ss:$16 sps:$4 sm:$0xff]  }
  0x7a   :  { %v7437_v41 = vld [vmem:[#allocation5 + $0x3a4] ss:$16 sps:$4 sm:$0xff]   ;;  %v7440_v43 = vld [vmem:[#allocation5 + $0x3a0] ss:$16 sps:$4 sm:$0xff]  }
  0x7b   :  { %1785 = vmatpush1.bf16.msra.mxu0 %v7409_v22  ;;  %v7441_v44 = vld [vmem:[#allocation5 + $0x184] ss:$16 sps:$4 sm:$0xff]   ;;  %v7445_v46 = vld [vmem:[#allocation5 + $0x180] ss:$16 sps:$4 sm:$0xff]  }
  0x7c   :  { %1838 = vmatpush1.bf16.msra.mxu1 %v7410_v23  ;;  %1786 = vmatprep.subr.bf16.mxu0 %v7411_v24  ;;  %v7443_v45 = vld [vmem:[#allocation5 + $0x384] ss:$16 sps:$4 sm:$0xff]   ;;  %v7446_v47 = vld [vmem:[#allocation5 + $0x380] ss:$16 sps:$4 sm:$0xff]  }
  0x7d   :  { %1839 = vmatprep.subr.bf16.mxu1 %v7413_v25  ;;  %v142_v48 = vld [vmem:[#allocation2] sm:$0xff] }
  0x7e   :  { %v146_v49 = vld [vmem:[#allocation2 + $0x20] sm:$0xff] }
  0x7f   :  { %1787 = vmatpush1.bf16.msra.mxu0 %v7415_v26  ;;  %v7447_v52 = vld [vmem:[#allocation5 + $0x164] ss:$16 sps:$4 sm:$0xff]   ;;  %v8149_v53 = vcombine.high %v142_v48, %v146_v49  ;;  %v7451_v56 = vld [vmem:[#allocation5 + $0x160] ss:$16 sps:$4 sm:$0xff]   ;;  %v8155_v8 = vcombine.low %v142_v48, %v146_v49  ;;  %v8177_v48 = vld [vmem:[#allocation2 + $0x18] sm:$0xff] }
  0x80   :  { %1840 = vmatpush1.bf16.msra.mxu1 %v7416_v27  ;;  %1788 = vmatprep.subr.bf16.mxu0 %v7417_v28  ;;  %v7449_v55 = vld [vmem:[#allocation5 + $0x364] ss:$16 sps:$4 sm:$0xff]   ;;  %v7452_v57 = vld [vmem:[#allocation5 + $0x360] ss:$16 sps:$4 sm:$0xff]   ;;  %v8187_v51 = vcombine.high %v8177_v48, %v8183_v50 }
  0x81   :  { %1841 = vmatprep.subr.bf16.mxu1 %v7419_v29  ;;  %1806 = vmatprep.mubr.bf16.mxu0 %v8149_v53  ;;  %v7453_v58 = vld [vmem:[#allocation5 + $0x144] ss:$16 sps:$4 sm:$0xff]   ;;  %v7457_v60 = vld [vmem:[#allocation5 + $0x140] ss:$16 sps:$4 sm:$0xff]  }
  0x82   :  { %v7455_v59 = vld [vmem:[#allocation5 + $0x344] ss:$16 sps:$4 sm:$0xff]   ;;  %v7458_v61 = vld [vmem:[#allocation5 + $0x340] ss:$16 sps:$4 sm:$0xff]  }
  0x83   :  { %1789 = vmatpush1.bf16.msra.mxu0 %v7421_v30  ;;  %v7459_v62 = vld [vmem:[#allocation5 + $0x124] ss:$16 sps:$4 sm:$0xff]   ;;  %v7463_v0 = vld [vmem:[#allocation5 + $0x120] ss:$16 sps:$4 sm:$0xff]   ;;  %v151_v30 = vld [vmem:[#allocation2 + $0x48] sm:$0xff] }
  0x84   :  { %1842 = vmatpush1.bf16.msra.mxu1 %v7422_v31  ;;  %1790 = vmatprep.subr.bf16.mxu0 %v7423_v32  ;;  %v7461_v63 = vld [vmem:[#allocation5 + $0x324] ss:$16 sps:$4 sm:$0xff]   ;;  %v7464_v1 = vld [vmem:[#allocation5 + $0x320] ss:$16 sps:$4 sm:$0xff]   ;;  %v155_v31 = vld [vmem:[#allocation2 + $0x68] sm:$0xff] }
  0x85   :  { %1843 = vmatprep.subr.bf16.mxu1 %v7425_v33  ;;  %v7465_v2 = vld [vmem:[#allocation5 + $0x104] ss:$16 sps:$4 sm:$0xff]   ;;  %v7469_v4 = vld [vmem:[#allocation5 + $0x100] ss:$16 sps:$4 sm:$0xff]  }
  0x86   :  { %v7467_v3 = vld [vmem:[#allocation5 + $0x304] ss:$16 sps:$4 sm:$0xff]   ;;  %v7470_v5 = vld [vmem:[#allocation5 + $0x300] ss:$16 sps:$4 sm:$0xff]  }
  0x87   :  { %1791 = vmatpush2.bf16.msra.mxu0 %v7427_v34  ;;  %v7473_v6 = vld [vmem:[#allocation5 + $0x4e4] ss:$16 sps:$4 sm:$0xff]   ;;  %v7471_v10 = vld [vmem:[#allocation5 + $0x4e0] ss:$16 sps:$4 sm:$0xff]   ;;  %v8163_v34 = vcombine.high %v151_v30, %v155_v31 }
  0x88   :  { %1844 = vmatpush2.bf16.msra.mxu1 %v7428_v35  ;;  %1792 = vmatprep.subr.bf16.mxu0 %v7429_v36  ;;  %v7476_v7 = vld [vmem:[#allocation5 + $0x6e4] ss:$16 sps:$4 sm:$0xff]   ;;  %v7474_v11 = vld [vmem:[#allocation5 + $0x6e0] ss:$16 sps:$4 sm:$0xff]  }
  0x89   :  { %1845 = vmatprep.subr.bf16.mxu1 %v7431_v37  ;;  %v7479_v12 = vld [vmem:[#allocation5 + $0x4c4] ss:$16 sps:$4 sm:$0xff]   ;;  %v7477_v14 = vld [vmem:[#allocation5 + $0x4c0] ss:$16 sps:$4 sm:$0xff]   ;;  %v8167_v37 = vcombine.low %v151_v30, %v155_v31 }
  0x8a   :  { %v7482_v13 = vld [vmem:[#allocation5 + $0x6c4] ss:$16 sps:$4 sm:$0xff]   ;;  %v7480_v15 = vld [vmem:[#allocation5 + $0x6c0] ss:$16 sps:$4 sm:$0xff]  }
  0x8b   :  { %1793 = vmatpush2.bf16.msra.mxu0 %v7433_v38  ;;  %v7485_v16 = vld [vmem:[#allocation5 + $0x4a4] ss:$16 sps:$4 sm:$0xff]   ;;  %v7483_v18 = vld [vmem:[#allocation5 + $0x4a0] ss:$16 sps:$4 sm:$0xff]  }
  0x8c   :  { %1846 = vmatpush2.bf16.msra.mxu1 %v7434_v39  ;;  %1794 = vmatprep.subr.bf16.mxu0 %v7435_v40  ;;  %v7488_v17 = vld [vmem:[#allocation5 + $0x6a4] ss:$16 sps:$4 sm:$0xff]   ;;  %v7486_v19 = vld [vmem:[#allocation5 + $0x6a0] ss:$16 sps:$4 sm:$0xff]  }
  0x8d   :  { %1847 = vmatprep.subr.bf16.mxu1 %v7437_v41  ;;  %v7491_v20 = vld [vmem:[#allocation5 + $0x484] ss:$16 sps:$4 sm:$0xff]   ;;  %v7489_v22 = vld [vmem:[#allocation5 + $0x480] ss:$16 sps:$4 sm:$0xff]  }
  0x8e   :  { %v7494_v21 = vld [vmem:[#allocation5 + $0x684] ss:$16 sps:$4 sm:$0xff]   ;;  %v7492_v23 = vld [vmem:[#allocation5 + $0x680] ss:$16 sps:$4 sm:$0xff]  }
  0x8f   :  { %1795 = vmatpush2.bf16.msra.mxu0 %v7439_v42  ;;  %v7497_v24 = vld [vmem:[#allocation5 + $0x464] ss:$16 sps:$4 sm:$0xff]   ;;  %v7495_v26 = vld [vmem:[#allocation5 + $0x460] ss:$16 sps:$4 sm:$0xff]  }
  0x90   :  { %1848 = vmatpush2.bf16.msra.mxu1 %v7440_v43  ;;  %1796 = vmatprep.subr.bf16.mxu0 %v7441_v44  ;;  %v7500_v25 = vld [vmem:[#allocation5 + $0x664] ss:$16 sps:$4 sm:$0xff]   ;;  %v7498_v27 = vld [vmem:[#allocation5 + $0x660] ss:$16 sps:$4 sm:$0xff]  }
  0x91   :  { %1849 = vmatprep.subr.bf16.mxu1 %v7443_v45  ;;  %v150_v28 = vld [vmem:[#allocation2 + $0x40] sm:$0xff]  ;;  %v152_v30 = vld [vmem:[#allocation2 + $0x50] sm:$0xff] }
  0x92   :  { %v154_v29 = vld [vmem:[#allocation2 + $0x60] sm:$0xff]  ;;  %v156_v31 = vld [vmem:[#allocation2 + $0x70] sm:$0xff] }
  0x93   :  { %1797 = vmatpush2.bf16.msra.mxu0 %v7445_v46  ;;  %v7503_v32 = vld [vmem:[#allocation5 + $0x444] ss:$16 sps:$4 sm:$0xff]   ;;  %v8161_v33 = vcombine.high %v150_v28, %v154_v29  ;;  %v8165_v35 = vcombine.low %v150_v28, %v154_v29  ;;  %v7501_v38 = vld [vmem:[#allocation5 + $0x440] ss:$16 sps:$4 sm:$0xff]   ;;  %v7567_v28 = vld [vmem:[#allocation5 + $0xe8] ss:$16 sps:$4 sm:$0xff]  }
  0x94   :  { %1850 = vmatpush2.bf16.msra.mxu1 %v7446_v47  ;;  %1798 = vmatprep.subr.bf16.mxu0 %v7447_v52  ;;  %v7506_v36 = vld [vmem:[#allocation5 + $0x644] ss:$16 sps:$4 sm:$0xff]   ;;  %v7504_v39 = vld [vmem:[#allocation5 + $0x640] ss:$16 sps:$4 sm:$0xff]   ;;  %v7570_v29 = vld [vmem:[#allocation5 + $0x2e8] ss:$16 sps:$4 sm:$0xff]  }
  0x95   :  { %1851 = vmatprep.subr.bf16.mxu1 %v7449_v55  ;;  %v7509_v40 = vld [vmem:[#allocation5 + $0x424] ss:$16 sps:$4 sm:$0xff]   ;;  %v7507_v42 = vld [vmem:[#allocation5 + $0x420] ss:$16 sps:$4 sm:$0xff]  }
  0x96   :  { %v7512_v41 = vld [vmem:[#allocation5 + $0x624] ss:$16 sps:$4 sm:$0xff]   ;;  %v7510_v43 = vld [vmem:[#allocation5 + $0x620] ss:$16 sps:$4 sm:$0xff]  }
  0x97   :  { %1799 = vmatpush2.bf16.msra.mxu0 %v7451_v56  ;;  %v7515_v44 = vld [vmem:[#allocation5 + $0x404] ss:$16 sps:$4 sm:$0xff]   ;;  %v7513_v52 = vld [vmem:[#allocation5 + $0x400] ss:$16 sps:$4 sm:$0xff]  }
  0x98   :  { %1852 = vmatpush2.bf16.msra.mxu1 %v7452_v57  ;;  %1800 = vmatprep.subr.bf16.mxu0 %v7453_v58  ;;  %v7518_v45 = vld [vmem:[#allocation5 + $0x604] ss:$16 sps:$4 sm:$0xff]   ;;  %v7516_v55 = vld [vmem:[#allocation5 + $0x600] ss:$16 sps:$4 sm:$0xff]  }
  0x99   :  { %1853 = vmatprep.subr.bf16.mxu1 %v7455_v59  ;;  %v8173_v46 = vld [vmem:[#allocation2 + $0x10] sm:$0xff] }
  0x9a   :  { %v8175_v47 = vld [vmem:[#allocation2 + $0x30] sm:$0xff] }
  0x9b   :  { %1801 = vmatpush2.bf16.msra.mxu0 %v7457_v60  ;;  %v8181_v49 = vcombine.high %v8173_v46, %v8175_v47  ;;  %v7521_v56 = vld [vmem:[#allocation5 + $0x5e4] ss:$16 sps:$4 sm:$0xff]   ;;  %v7519_v58 = vld [vmem:[#allocation5 + $0x5e0] ss:$16 sps:$4 sm:$0xff]  }
  0x9c   :  { %1854 = vmatpush2.bf16.msra.mxu1 %v7458_v61  ;;  %1802 = vmatprep.subr.bf16.mxu0 %v7459_v62  ;;  %v7524_v57 = vld [vmem:[#allocation5 + $0x7e4] ss:$16 sps:$4 sm:$0xff]   ;;  %v7522_v59 = vld [vmem:[#allocation5 + $0x7e0] ss:$16 sps:$4 sm:$0xff]  }
  0x9d   :  { %1855 = vmatprep.subr.bf16.mxu1 %v7461_v63  ;;  %v7527_v60 = vld [vmem:[#allocation5 + $0x5c4] ss:$16 sps:$4 sm:$0xff]   ;;  %v7525_v62 = vld [vmem:[#allocation5 + $0x5c0] ss:$16 sps:$4 sm:$0xff]  }
  0x9e   :  { %v7530_v61 = vld [vmem:[#allocation5 + $0x7c4] ss:$16 sps:$4 sm:$0xff]   ;;  %v7528_v63 = vld [vmem:[#allocation5 + $0x7c0] ss:$16 sps:$4 sm:$0xff]  }
  0x9f   :  { %1803 = vmatpush2.bf16.msra.mxu0 %v7463_v0  ;;  %v7533_v0 = vld [vmem:[#allocation5 + $0x5a4] ss:$16 sps:$4 sm:$0xff]  }
  0xa0   :  { %1856 = vmatpush2.bf16.msra.mxu1 %v7464_v1  ;;  %1804 = vmatprep.subr.bf16.mxu0 %v7465_v2  ;;  %v7536_v1 = vld [vmem:[#allocation5 + $0x7a4] ss:$16 sps:$4 sm:$0xff]   ;;  %v7531_v2 = vld [vmem:[#allocation5 + $0x5a0] ss:$16 sps:$4 sm:$0xff]  }
  0xa1   :  { %1857 = vmatprep.subr.bf16.mxu1 %v7467_v3  ;;  %v7534_v3 = vld [vmem:[#allocation5 + $0x7a0] ss:$16 sps:$4 sm:$0xff]  }
  0xa3   :  { %1805 = vmatpush2.bf16.msra.mxu0 %v7469_v4  ;;  %v7539_v4 = vld [vmem:[#allocation5 + $0x584] ss:$16 sps:$4 sm:$0xff]  }
  0xa4   :  { %1858 = vmatpush2.bf16.msra.mxu1 %v7470_v5  ;;  %1880 = vmatprep.subr.bf16.mxu0 %v7473_v6  ;;  %v7542_v5 = vld [vmem:[#allocation5 + $0x784] ss:$16 sps:$4 sm:$0xff]   ;;  %v7537_v6 = vld [vmem:[#allocation5 + $0x580] ss:$16 sps:$4 sm:$0xff]  }
  0xa5   :  { %1933 = vmatprep.subr.bf16.mxu1 %v7476_v7  ;;  %v7540_v7 = vld [vmem:[#allocation5 + $0x780] ss:$16 sps:$4 sm:$0xff]  }
  0xa6   :  { %1807 = vmatmul.mubr.bf16.vlgmr.msra.gmra.mxu0 %v8155_v8 }
  0xa7   :  { %1860 = vmatmul.mubr.bf16.vlgmr.msra.gmra.mxu1 %v8157_v9  ;;  %1881 = vmatpush1.bf16.msra.mxu0 %v7471_v10  ;;  %v7545_v10 = vld [vmem:[#allocation5 + $0x564] ss:$16 sps:$4 sm:$0xff]  }
  0xa8   :  { %1934 = vmatpush1.bf16.msra.mxu1 %v7474_v11  ;;  %1882 = vmatprep.subr.bf16.mxu0 %v7479_v12  ;;  %v7548_v11 = vld [vmem:[#allocation5 + $0x764] ss:$16 sps:$4 sm:$0xff]   ;;  %v7543_v12 = vld [vmem:[#allocation5 + $0x560] ss:$16 sps:$4 sm:$0xff]  }
  0xa9   :  { %1935 = vmatprep.subr.bf16.mxu1 %v7482_v13  ;;  %1816 = vmatprep.mubr.bf16.mxu0 %v8161_v33  ;;  %v7546_v13 = vld [vmem:[#allocation5 + $0x760] ss:$16 sps:$4 sm:$0xff]  }
  0xaa   :  { %1869 = vmatprep.mubr.bf16.mxu1 %v8163_v34 }
  0xab   :  { %1883 = vmatpush1.bf16.msra.mxu0 %v7477_v14  ;;  %v7551_v14 = vld [vmem:[#allocation5 + $0x544] ss:$16 sps:$4 sm:$0xff]  }
  0xac   :  { %1936 = vmatpush1.bf16.msra.mxu1 %v7480_v15  ;;  %1884 = vmatprep.subr.bf16.mxu0 %v7485_v16  ;;  %v7554_v15 = vld [vmem:[#allocation5 + $0x744] ss:$16 sps:$4 sm:$0xff]   ;;  %v7549_v16 = vld [vmem:[#allocation5 + $0x540] ss:$16 sps:$4 sm:$0xff]  }
  0xad   :  { %1937 = vmatprep.subr.bf16.mxu1 %v7488_v17  ;;  %v7552_v17 = vld [vmem:[#allocation5 + $0x740] ss:$16 sps:$4 sm:$0xff]  }
  0xae   :  { %1817 = vmatmul.mubr.bf16.gmra.mxu0 %v8165_v35 }
  0xaf   :  { %1885 = vmatpush1.bf16.msra.mxu0 %v7483_v18  ;;  %1870 = vmatmul.mubr.bf16.gmra.mxu1 %v8167_v37  ;;  %v7557_v18 = vld [vmem:[#allocation5 + $0x524] ss:$16 sps:$4 sm:$0xff]  }
  0xb0   :  { %1938 = vmatpush1.bf16.msra.mxu1 %v7486_v19  ;;  %1886 = vmatprep.subr.bf16.mxu0 %v7491_v20  ;;  %v7560_v19 = vld [vmem:[#allocation5 + $0x724] ss:$16 sps:$4 sm:$0xff]   ;;  %v7555_v20 = vld [vmem:[#allocation5 + $0x520] ss:$16 sps:$4 sm:$0xff]  }
  0xb1   :  { %1939 = vmatprep.subr.bf16.mxu1 %v7494_v21  ;;  %1912 = vmatprep.mubr.bf16.mxu0 %v8181_v49  ;;  %v7558_v21 = vld [vmem:[#allocation5 + $0x720] ss:$16 sps:$4 sm:$0xff]  }
  0xb2   :  { %1965 = vmatprep.mubr.bf16.mxu1 %v8187_v51 }
  0xb3   :  { %1887 = vmatpush1.bf16.msra.mxu0 %v7489_v22  ;;  %v7563_v22 = vld [vmem:[#allocation5 + $0x504] ss:$16 sps:$4 sm:$0xff]  }
  0xb4   :  { %1940 = vmatpush1.bf16.msra.mxu1 %v7492_v23  ;;  %1888 = vmatprep.subr.bf16.mxu0 %v7497_v24  ;;  %v7566_v23 = vld [vmem:[#allocation5 + $0x704] ss:$16 sps:$4 sm:$0xff]   ;;  %v7561_v24 = vld [vmem:[#allocation5 + $0x500] ss:$16 sps:$4 sm:$0xff]  }
  0xb5   :  { %1941 = vmatprep.subr.bf16.mxu1 %v7500_v25  ;;  %v7564_v25 = vld [vmem:[#allocation5 + $0x700] ss:$16 sps:$4 sm:$0xff]  }
  0xb7   :  { %1889 = vmatpush1.bf16.msra.mxu0 %v7495_v26  ;;  %v7569_v26 = vld [vmem:[#allocation5 + $0xec] ss:$16 sps:$4 sm:$0xff]  }
  0xb8   :  { %1942 = vmatpush1.bf16.msra.mxu1 %v7498_v27  ;;  %1890 = vmatprep.subr.bf16.mxu0 %v7503_v32  ;;  %v7572_v27 = vld [vmem:[#allocation5 + $0x2ec] ss:$16 sps:$4 sm:$0xff]   ;;  %v8193_v32 = vcombine.low %v8173_v46, %v8175_v47 }
  0xb9   :  { %1943 = vmatprep.subr.bf16.mxu1 %v7506_v36  ;;  %v8197_v36 = vcombine.low %v8177_v48, %v8183_v50  ;;  %v7581_v46 = vld [vmem:[#allocation5 + $0xac] ss:$16 sps:$4 sm:$0xff]   ;;  %v8207_v48 = vcombine.low %v152_v30, %v156_v31 }
  0xba   :  { %v7584_v47 = vld [vmem:[#allocation5 + $0x2ac] ss:$16 sps:$4 sm:$0xff]  }
  0xbb   :  { %1891 = vmatpush1.bf16.msra.mxu0 %v7501_v38  ;;  %v153_v38 = vld [vmem:[#allocation2 + $0x58] sm:$0xff] }
  0xbc   :  { %1944 = vmatpush1.bf16.msra.mxu1 %v7504_v39  ;;  %1892 = vmatprep.subr.bf16.mxu0 %v7509_v40  ;;  %v157_v39 = vld [vmem:[#allocation2 + $0x78] sm:$0xff] }
  0xbd   :  { %1945 = vmatprep.subr.bf16.mxu1 %v7512_v41  ;;  %v7575_v40 = vld [vmem:[#allocation5 + $0xcc] ss:$16 sps:$4 sm:$0xff]   ;;  %v8209_v50 = vcombine.low %v153_v38, %v157_v39 }
  0xbe   :  { %v7578_v41 = vld [vmem:[#allocation5 + $0x2cc] ss:$16 sps:$4 sm:$0xff]  }
  0xbf   :  { %1893 = vmatpush1.bf16.msra.mxu0 %v7507_v42  ;;  %v8199_v42 = vcombine.high %v152_v30, %v156_v31  ;;  %v7639_v30 = vld [vmem:[#allocation5 + $0x168] ss:$16 sps:$4 sm:$0xff]  }
  0xc0   :  { %1946 = vmatpush1.bf16.msra.mxu1 %v7510_v43  ;;  %1894 = vmatprep.subr.bf16.mxu0 %v7515_v44  ;;  %v8201_v43 = vcombine.high %v153_v38, %v157_v39  ;;  %v7573_v44 = vld [vmem:[#allocation5 + $0xc8] ss:$16 sps:$4 sm:$0xff]   ;;  %v7647_v38 = vld [vmem:[#allocation5 + $0x14c] ss:$16 sps:$4 sm:$0xff]  }
  0xc1   :  { %1947 = vmatprep.subr.bf16.mxu1 %v7518_v45  ;;  %v7576_v45 = vld [vmem:[#allocation5 + $0x2c8] ss:$16 sps:$4 sm:$0xff]   ;;  %v7650_v39 = vld [vmem:[#allocation5 + $0x34c] ss:$16 sps:$4 sm:$0xff]  }
  0xc2   :  { %v7642_v31 = vld [vmem:[#allocation5 + $0x368] ss:$16 sps:$4 sm:$0xff]  }
  0xc3   :  { %1895 = vmatpush1.bf16.msra.mxu0 %v7513_v52  ;;  %v7579_v52 = vld [vmem:[#allocation5 + $0xa8] ss:$16 sps:$4 sm:$0xff]  }
  0xc4   :  { %1948 = vmatpush1.bf16.msra.mxu1 %v7516_v55  ;;  %1896 = vmatprep.subr.bf16.mxu0 %v7521_v56  ;;  %v7582_v55 = vld [vmem:[#allocation5 + $0x2a8] ss:$16 sps:$4 sm:$0xff]   ;;  %v7587_v56 = vld [vmem:[#allocation5 + $0x8c] ss:$16 sps:$4 sm:$0xff]  }
  0xc5   :  { %1949 = vmatprep.subr.bf16.mxu1 %v7524_v57  ;;  %v7590_v57 = vld [vmem:[#allocation5 + $0x28c] ss:$16 sps:$4 sm:$0xff]  }
  0xc7   :  { %1897 = vmatpush2.bf16.msra.mxu0 %v7519_v58  ;;  %v7585_v58 = vld [vmem:[#allocation5 + $0x88] ss:$16 sps:$4 sm:$0xff]  }
  0xc8   :  { %1950 = vmatpush2.bf16.msra.mxu1 %v7522_v59  ;;  %1898 = vmatprep.subr.bf16.mxu0 %v7527_v60  ;;  %v7588_v59 = vld [vmem:[#allocation5 + $0x288] ss:$16 sps:$4 sm:$0xff]   ;;  %v7593_v60 = vld [vmem:[#allocation5 + $0x6c] ss:$16 sps:$4 sm:$0xff]  }
  0xc9   :  { %1951 = vmatprep.subr.bf16.mxu1 %v7530_v61  ;;  %v7596_v61 = vld [vmem:[#allocation5 + $0x26c] ss:$16 sps:$4 sm:$0xff]  }
  0xcb   :  { %1899 = vmatpush2.bf16.msra.mxu0 %v7525_v62  ;;  %v7591_v62 = vld [vmem:[#allocation5 + $0x68] ss:$16 sps:$4 sm:$0xff]  }
  0xcc   :  { %1952 = vmatpush2.bf16.msra.mxu1 %v7528_v63  ;;  %1900 = vmatprep.subr.bf16.mxu0 %v7533_v0  ;;  %v7594_v63 = vld [vmem:[#allocation5 + $0x268] ss:$16 sps:$4 sm:$0xff]   ;;  %v7599_v0 = vld [vmem:[#allocation5 + $0x4c] ss:$16 sps:$4 sm:$0xff]  }
  0xcd   :  { %1953 = vmatprep.subr.bf16.mxu1 %v7536_v1  ;;  %v7602_v1 = vld [vmem:[#allocation5 + $0x24c] ss:$16 sps:$4 sm:$0xff]  }
  0xcf   :  { %1901 = vmatpush2.bf16.msra.mxu0 %v7531_v2  ;;  %v7597_v2 = vld [vmem:[#allocation5 + $0x48] ss:$16 sps:$4 sm:$0xff]  }
  0xd0   :  { %1954 = vmatpush2.bf16.msra.mxu1 %v7534_v3  ;;  %1902 = vmatprep.subr.bf16.mxu0 %v7539_v4  ;;  %v7600_v3 = vld [vmem:[#allocation5 + $0x248] ss:$16 sps:$4 sm:$0xff]   ;;  %v7605_v4 = vld [vmem:[#allocation5 + $0x2c] ss:$16 sps:$4 sm:$0xff]  }
  0xd1   :  { %1955 = vmatprep.subr.bf16.mxu1 %v7542_v5  ;;  %v7608_v5 = vld [vmem:[#allocation5 + $0x22c] ss:$16 sps:$4 sm:$0xff]  }
  0xd3   :  { %1903 = vmatpush2.bf16.msra.mxu0 %v7537_v6  ;;  %v7603_v6 = vld [vmem:[#allocation5 + $0x28] ss:$16 sps:$4 sm:$0xff]  }
  0xd4   :  { %1956 = vmatpush2.bf16.msra.mxu1 %v7540_v7  ;;  %1904 = vmatprep.subr.bf16.mxu0 %v7545_v10  ;;  %v7614_v7 = vld [vmem:[#allocation5 + $0x20c] ss:$16 sps:$4 sm:$0xff]   ;;  %v7609_v10 = vld [vmem:[#allocation5 + $0x8] ss:$16 sps:$4 sm:$0xff]  }
  0xd5   :  { %1957 = vmatprep.subr.bf16.mxu1 %v7548_v11  ;;  %v7612_v11 = vld [vmem:[#allocation5 + $0x208] ss:$16 sps:$4 sm:$0xff]  }
  0xd7   :  { %1905 = vmatpush2.bf16.msra.mxu0 %v7543_v12  ;;  %v7617_v12 = vld [vmem:[#allocation5 + $0x1ec] ss:$16 sps:$4 sm:$0xff]  }
  0xd8   :  { %1958 = vmatpush2.bf16.msra.mxu1 %v7546_v13  ;;  %1906 = vmatprep.subr.bf16.mxu0 %v7551_v14  ;;  %v7620_v13 = vld [vmem:[#allocation5 + $0x3ec] ss:$16 sps:$4 sm:$0xff]   ;;  %v7615_v14 = vld [vmem:[#allocation5 + $0x1e8] ss:$16 sps:$4 sm:$0xff]  }
  0xd9   :  { %1959 = vmatprep.subr.bf16.mxu1 %v7554_v15  ;;  %v7618_v15 = vld [vmem:[#allocation5 + $0x3e8] ss:$16 sps:$4 sm:$0xff]  }
  0xdb   :  { %1907 = vmatpush2.bf16.msra.mxu0 %v7549_v16  ;;  %v7623_v16 = vld [vmem:[#allocation5 + $0x1cc] ss:$16 sps:$4 sm:$0xff]  }
  0xdc   :  { %1960 = vmatpush2.bf16.msra.mxu1 %v7552_v17  ;;  %1908 = vmatprep.subr.bf16.mxu0 %v7557_v18  ;;  %v7626_v17 = vld [vmem:[#allocation5 + $0x3cc] ss:$16 sps:$4 sm:$0xff]   ;;  %v7621_v18 = vld [vmem:[#allocation5 + $0x1c8] ss:$16 sps:$4 sm:$0xff]  }
  0xdd   :  { %1961 = vmatprep.subr.bf16.mxu1 %v7560_v19  ;;  %v7624_v19 = vld [vmem:[#allocation5 + $0x3c8] ss:$16 sps:$4 sm:$0xff]  }
  0xdf   :  { %1909 = vmatpush2.bf16.msra.mxu0 %v7555_v20  ;;  %v7629_v20 = vld [vmem:[#allocation5 + $0x1ac] ss:$16 sps:$4 sm:$0xff]  }
  0xe0   :  { %1962 = vmatpush2.bf16.msra.mxu1 %v7558_v21  ;;  %1910 = vmatprep.subr.bf16.mxu0 %v7563_v22  ;;  %v7632_v21 = vld [vmem:[#allocation5 + $0x3ac] ss:$16 sps:$4 sm:$0xff]   ;;  %v7627_v22 = vld [vmem:[#allocation5 + $0x1a8] ss:$16 sps:$4 sm:$0xff]  }
  0xe1   :  { %1963 = vmatprep.subr.bf16.mxu1 %v7566_v23  ;;  %v7630_v23 = vld [vmem:[#allocation5 + $0x3a8] ss:$16 sps:$4 sm:$0xff]  }
  0xe3   :  { %1911 = vmatpush2.bf16.msra.mxu0 %v7561_v24  ;;  %v7635_v24 = vld [vmem:[#allocation5 + $0x18c] ss:$16 sps:$4 sm:$0xff]  }
  0xe4   :  { %1964 = vmatpush2.bf16.msra.mxu1 %v7564_v25  ;;  %1986 = vmatprep.subr.bf16.mxu0 %v7569_v26  ;;  %v7638_v25 = vld [vmem:[#allocation5 + $0x38c] ss:$16 sps:$4 sm:$0xff]   ;;  %v7633_v26 = vld [vmem:[#allocation5 + $0x188] ss:$16 sps:$4 sm:$0xff]  }
  0xe5   :  { %2039 = vmatprep.subr.bf16.mxu1 %v7572_v27  ;;  %v7636_v27 = vld [vmem:[#allocation5 + $0x388] ss:$16 sps:$4 sm:$0xff]  }
  0xe6   :  { %1913 = vmatmul.mubr.bf16.vlgmr.msra.gmra.mxu0 %v8193_v32 }
  0xe7   :  { %1966 = vmatmul.mubr.bf16.vlgmr.msra.gmra.mxu1 %v8197_v36  ;;  %1987 = vmatpush1.bf16.msra.mxu0 %v7567_v28  ;;  %v7641_v28 = vld [vmem:[#allocation5 + $0x16c] ss:$16 sps:$4 sm:$0xff]  }
  0xe8   :  { %2040 = vmatpush1.bf16.msra.mxu1 %v7570_v29  ;;  %1988 = vmatprep.subr.bf16.mxu0 %v7575_v40  ;;  %v7644_v29 = vld [vmem:[#allocation5 + $0x36c] ss:$16 sps:$4 sm:$0xff]   ;;  %v7645_v40 = vld [vmem:[#allocation5 + $0x148] ss:$16 sps:$4 sm:$0xff]  }
  0xe9   :  { %2041 = vmatprep.subr.bf16.mxu1 %v7578_v41  ;;  %1922 = vmatprep.mubr.bf16.mxu0 %v8199_v42  ;;  %v7648_v41 = vld [vmem:[#allocation5 + $0x348] ss:$16 sps:$4 sm:$0xff]  }
  0xea   :  { %1975 = vmatprep.mubr.bf16.mxu1 %v8201_v43 }
  0xeb   :  { %1989 = vmatpush1.bf16.msra.mxu0 %v7573_v44  ;;  %v7653_v44 = vld [vmem:[#allocation5 + $0x12c] ss:$16 sps:$4 sm:$0xff]  }
  0xec   :  { %2042 = vmatpush1.bf16.msra.mxu1 %v7576_v45  ;;  %1990 = vmatprep.subr.bf16.mxu0 %v7581_v46  ;;  %v7656_v45 = vld [vmem:[#allocation5 + $0x32c] ss:$16 sps:$4 sm:$0xff]   ;;  %v7651_v46 = vld [vmem:[#allocation5 + $0x128] ss:$16 sps:$4 sm:$0xff]  }
  0xed   :  { %2043 = vmatprep.subr.bf16.mxu1 %v7584_v47  ;;  %v7654_v47 = vld [vmem:[#allocation5 + $0x328] ss:$16 sps:$4 sm:$0xff]  }
  0xee   :  { %1923 = vmatmul.mubr.bf16.gmra.mxu0 %v8207_v48 }
  0xef   :  { %1976 = vmatmul.mubr.bf16.gmra.mxu1 %v8209_v50  ;;  %1991 = vmatpush1.bf16.msra.mxu0 %v7579_v52  ;;  %v7659_v52 = vld [vmem:[#allocation5 + $0x10c] ss:$16 sps:$4 sm:$0xff]  }
  0xf0   :  { %2044 = vmatpush1.bf16.msra.mxu1 %v7582_v55  ;;  %1992 = vmatprep.subr.bf16.mxu0 %v7587_v56  ;;  %v7662_v55 = vld [vmem:[#allocation5 + $0x30c] ss:$16 sps:$4 sm:$0xff]   ;;  %v7657_v56 = vld [vmem:[#allocation5 + $0x108] ss:$16 sps:$4 sm:$0xff]  }
  0xf1   :  { %2045 = vmatprep.subr.bf16.mxu1 %v7590_v57  ;;  %2018 = vmatprep.mubr.bf16.mxu0 %v8149_v53  ;;  %v7606_v53 = vld [vmem:[#allocation5 + $0x228] ss:$16 sps:$4 sm:$0xff]  }
  0xf2   :  { %2071 = vmatprep.mubr.bf16.mxu1 %v8151_v54  ;;  %v7611_v54 = vld [vmem:[#allocation5 + $0xc] ss:$16 sps:$4 sm:$0xff]   ;;  %v7660_v57 = vld [vmem:[#allocation5 + $0x308] ss:$16 sps:$4 sm:$0xff]  }
  0xf3   :  { %1993 = vmatpush1.bf16.msra.mxu0 %v7585_v58  ;;  %v7665_v58 = vld [vmem:[#allocation5 + $0x4ec] ss:$16 sps:$4 sm:$0xff]  }
  0xf4   :  { %2046 = vmatpush1.bf16.msra.mxu1 %v7588_v59  ;;  %1994 = vmatprep.subr.bf16.mxu0 %v7593_v60  ;;  %v7668_v59 = vld [vmem:[#allocation5 + $0x6ec] ss:$16 sps:$4 sm:$0xff]   ;;  %v7663_v60 = vld [vmem:[#allocation5 + $0x4e8] ss:$16 sps:$4 sm:$0xff]  }
  0xf5   :  { %2047 = vmatprep.subr.bf16.mxu1 %v7596_v61  ;;  %v7666_v61 = vld [vmem:[#allocation5 + $0x6e8] ss:$16 sps:$4 sm:$0xff]  }
  0xf7   :  { %1995 = vmatpush1.bf16.msra.mxu0 %v7591_v62  ;;  %v7671_v62 = vld [vmem:[#allocation5 + $0x4cc] ss:$16 sps:$4 sm:$0xff]  }
  0xf8   :  { %2048 = vmatpush1.bf16.msra.mxu1 %v7594_v63  ;;  %1996 = vmatprep.subr.bf16.mxu0 %v7599_v0  ;;  %v7674_v63 = vld [vmem:[#allocation5 + $0x6cc] ss:$16 sps:$4 sm:$0xff]   ;;  %v7669_v0 = vld [vmem:[#allocation5 + $0x4c8] ss:$16 sps:$4 sm:$0xff]  }
  0xf9   :  { %2049 = vmatprep.subr.bf16.mxu1 %v7602_v1  ;;  %v7672_v1 = vld [vmem:[#allocation5 + $0x6c8] ss:$16 sps:$4 sm:$0xff]  }
  0xfb   :  { %1997 = vmatpush1.bf16.msra.mxu0 %v7597_v2  ;;  %v7677_v2 = vld [vmem:[#allocation5 + $0x4ac] ss:$16 sps:$4 sm:$0xff]  }
  0xfc   :  { %2050 = vmatpush1.bf16.msra.mxu1 %v7600_v3  ;;  %1998 = vmatprep.subr.bf16.mxu0 %v7605_v4  ;;  %v7680_v3 = vld [vmem:[#allocation5 + $0x6ac] ss:$16 sps:$4 sm:$0xff]   ;;  %v7675_v4 = vld [vmem:[#allocation5 + $0x4a8] ss:$16 sps:$4 sm:$0xff]  }
  0xfd   :  { %2051 = vmatprep.subr.bf16.mxu1 %v7608_v5  ;;  %v7678_v5 = vld [vmem:[#allocation5 + $0x6a8] ss:$16 sps:$4 sm:$0xff]  }
  0xff   :  { %1999 = vmatpush1.bf16.msra.mxu0 %v7603_v6  ;;  %v7683_v6 = vld [vmem:[#allocation5 + $0x48c] ss:$16 sps:$4 sm:$0xff]  }
 0x100   :  { %2052 = vmatpush1.bf16.msra.mxu1 %v7606_v53  ;;  %2000 = vmatprep.subr.bf16.mxu0 %v7611_v54  ;;  %v7686_v53 = vld [vmem:[#allocation5 + $0x68c] ss:$16 sps:$4 sm:$0xff]  }
 0x101   :  { %2053 = vmatprep.subr.bf16.mxu1 %v7614_v7  ;;  %v7689_v54 = vld [vmem:[#allocation5 + $0x46c] ss:$16 sps:$4 sm:$0xff]  }
 0x102   :  { %v7692_v7 = vld [vmem:[#allocation5 + $0x66c] ss:$16 sps:$4 sm:$0xff]  }
 0x103   :  { %2001 = vmatpush1.bf16.msra.mxu0 %v7609_v10  ;;  %v7695_v10 = vld [vmem:[#allocation5 + $0x44c] ss:$16 sps:$4 sm:$0xff]  }
 0x104   :  { %2054 = vmatpush1.bf16.msra.mxu1 %v7612_v11  ;;  %2002 = vmatprep.subr.bf16.mxu0 %v7617_v12  ;;  %v7698_v11 = vld [vmem:[#allocation5 + $0x64c] ss:$16 sps:$4 sm:$0xff]   ;;  %v7696_v12 = vld [vmem:[#allocation5 + $0x648] ss:$16 sps:$4 sm:$0xff]  }
 0x105   :  { %2055 = vmatprep.subr.bf16.mxu1 %v7620_v13  ;;  %v7704_v13 = vld [vmem:[#allocation5 + $0x62c] ss:$16 sps:$4 sm:$0xff]  }
 0x107   :  { %2003 = vmatpush2.bf16.msra.mxu0 %v7615_v14  ;;  %v7699_v14 = vld [vmem:[#allocation5 + $0x428] ss:$16 sps:$4 sm:$0xff]  }
 0x108   :  { %2056 = vmatpush2.bf16.msra.mxu1 %v7618_v15  ;;  %2004 = vmatprep.subr.bf16.mxu0 %v7623_v16  ;;  %v7702_v15 = vld [vmem:[#allocation5 + $0x628] ss:$16 sps:$4 sm:$0xff]  }
 0x109   :  { %2057 = vmatprep.subr.bf16.mxu1 %v7626_v17  ;;  %v7705_v16 = vld [vmem:[#allocation5 + $0x408] ss:$16 sps:$4 sm:$0xff]  }
 0x10a   :  { %v7708_v17 = vld [vmem:[#allocation5 + $0x608] ss:$16 sps:$4 sm:$0xff]  }
 0x10b   :  { %2005 = vmatpush2.bf16.msra.mxu0 %v7621_v18  ;;  %v7713_v18 = vld [vmem:[#allocation5 + $0x5ec] ss:$16 sps:$4 sm:$0xff]  }
 0x10c   :  { %2058 = vmatpush2.bf16.msra.mxu1 %v7624_v19  ;;  %2006 = vmatprep.subr.bf16.mxu0 %v7629_v20  ;;  %v7716_v19 = vld [vmem:[#allocation5 + $0x7ec] ss:$16 sps:$4 sm:$0xff]   ;;  %v7711_v20 = vld [vmem:[#allocation5 + $0x5e8] ss:$16 sps:$4 sm:$0xff]  }
 0x10d   :  { %2059 = vmatprep.subr.bf16.mxu1 %v7632_v21  ;;  %v7714_v21 = vld [vmem:[#allocation5 + $0x7e8] ss:$16 sps:$4 sm:$0xff]  }
 0x10f   :  { %2007 = vmatpush2.bf16.msra.mxu0 %v7627_v22  ;;  %v7719_v22 = vld [vmem:[#allocation5 + $0x5cc] ss:$16 sps:$4 sm:$0xff]  }
 0x110   :  { %2060 = vmatpush2.bf16.msra.mxu1 %v7630_v23  ;;  %2008 = vmatprep.subr.bf16.mxu0 %v7635_v24  ;;  %v7722_v23 = vld [vmem:[#allocation5 + $0x7cc] ss:$16 sps:$4 sm:$0xff]   ;;  %v7717_v24 = vld [vmem:[#allocation5 + $0x5c8] ss:$16 sps:$4 sm:$0xff]  }
 0x111   :  { %2061 = vmatprep.subr.bf16.mxu1 %v7638_v25  ;;  %v7720_v25 = vld [vmem:[#allocation5 + $0x7c8] ss:$16 sps:$4 sm:$0xff]  }
 0x113   :  { %2009 = vmatpush2.bf16.msra.mxu0 %v7633_v26  ;;  %v7725_v26 = vld [vmem:[#allocation5 + $0x5ac] ss:$16 sps:$4 sm:$0xff]  }
 0x114   :  { %2062 = vmatpush2.bf16.msra.mxu1 %v7636_v27  ;;  %2010 = vmatprep.subr.bf16.mxu0 %v7641_v28  ;;  %v7728_v27 = vld [vmem:[#allocation5 + $0x7ac] ss:$16 sps:$4 sm:$0xff]   ;;  %v7723_v28 = vld [vmem:[#allocation5 + $0x5a8] ss:$16 sps:$4 sm:$0xff]  }
 0x115   :  { %2063 = vmatprep.subr.bf16.mxu1 %v7644_v29  ;;  %v7726_v29 = vld [vmem:[#allocation5 + $0x7a8] ss:$16 sps:$4 sm:$0xff]  }
 0x117   :  { %2011 = vmatpush2.bf16.msra.mxu0 %v7639_v30  ;;  %v7731_v30 = vld [vmem:[#allocation5 + $0x58c] ss:$16 sps:$4 sm:$0xff]  }
 0x118   :  { %2064 = vmatpush2.bf16.msra.mxu1 %v7642_v31  ;;  %2012 = vmatprep.subr.bf16.mxu0 %v7647_v38  ;;  %v7734_v31 = vld [vmem:[#allocation5 + $0x78c] ss:$16 sps:$4 sm:$0xff]   ;;  %v7729_v38 = vld [vmem:[#allocation5 + $0x588] ss:$16 sps:$4 sm:$0xff]  }
 0x119   :  { %2065 = vmatprep.subr.bf16.mxu1 %v7650_v39  ;;  %v7732_v39 = vld [vmem:[#allocation5 + $0x788] ss:$16 sps:$4 sm:$0xff]  }
 0x11b   :  { %2013 = vmatpush2.bf16.msra.mxu0 %v7645_v40  ;;  %v7737_v40 = vld [vmem:[#allocation5 + $0x56c] ss:$16 sps:$4 sm:$0xff]  }
 0x11c   :  { %2066 = vmatpush2.bf16.msra.mxu1 %v7648_v41  ;;  %2014 = vmatprep.subr.bf16.mxu0 %v7653_v44  ;;  %v7740_v41 = vld [vmem:[#allocation5 + $0x76c] ss:$16 sps:$4 sm:$0xff]   ;;  %v7735_v44 = vld [vmem:[#allocation5 + $0x568] ss:$16 sps:$4 sm:$0xff]  }
 0x11d   :  { %2067 = vmatprep.subr.bf16.mxu1 %v7656_v45  ;;  %v7738_v45 = vld [vmem:[#allocation5 + $0x768] ss:$16 sps:$4 sm:$0xff]  }
 0x11f   :  { %2015 = vmatpush2.bf16.msra.mxu0 %v7651_v46  ;;  %v7743_v46 = vld [vmem:[#allocation5 + $0x54c] ss:$16 sps:$4 sm:$0xff]  }
 0x120   :  { %2068 = vmatpush2.bf16.msra.mxu1 %v7654_v47  ;;  %2016 = vmatprep.subr.bf16.mxu0 %v7659_v52  ;;  %v7746_v47 = vld [vmem:[#allocation5 + $0x74c] ss:$16 sps:$4 sm:$0xff]   ;;  %v7741_v52 = vld [vmem:[#allocation5 + $0x548] ss:$16 sps:$4 sm:$0xff]  }
 0x121   :  { %2069 = vmatprep.subr.bf16.mxu1 %v7662_v55  ;;  %v7744_v55 = vld [vmem:[#allocation5 + $0x748] ss:$16 sps:$4 sm:$0xff]  }
 0x123   :  { %2017 = vmatpush2.bf16.msra.mxu0 %v7657_v56  ;;  %v7749_v56 = vld [vmem:[#allocation5 + $0x52c] ss:$16 sps:$4 sm:$0xff]  }
 0x124   :  { %2070 = vmatpush2.bf16.msra.mxu1 %v7660_v57  ;;  %2092 = vmatprep.subr.bf16.mxu0 %v7665_v58  ;;  %v7752_v57 = vld [vmem:[#allocation5 + $0x72c] ss:$16 sps:$4 sm:$0xff]   ;;  %v7747_v58 = vld [vmem:[#allocation5 + $0x528] ss:$16 sps:$4 sm:$0xff]  }
 0x125   :  { %2145 = vmatprep.subr.bf16.mxu1 %v7668_v59  ;;  %v7750_v59 = vld [vmem:[#allocation5 + $0x728] ss:$16 sps:$4 sm:$0xff]  }
 0x126   :  { %2019 = vmatmul.mubr.bf16.vlgmr.msra.gmra.mxu0 %v8155_v8  ;;  %v7681_v8 = vld [vmem:[#allocation5 + $0x488] ss:$16 sps:$4 sm:$0xff]  }
 0x127   :  { %2072 = vmatmul.mubr.bf16.vlgmr.msra.gmra.mxu1 %v8157_v9  ;;  %2093 = vmatpush1.bf16.msra.mxu0 %v7663_v60  ;;  %v7684_v9 = vld [vmem:[#allocation5 + $0x688] ss:$16 sps:$4 sm:$0xff]   ;;  %v7755_v60 = vld [vmem:[#allocation5 + $0x50c] ss:$16 sps:$4 sm:$0xff]  }
 0x128   :  { %2146 = vmatpush1.bf16.msra.mxu1 %v7666_v61  ;;  %2094 = vmatprep.subr.bf16.mxu0 %v7671_v62  ;;  %v7758_v61 = vld [vmem:[#allocation5 + $0x70c] ss:$16 sps:$4 sm:$0xff]   ;;  %v7753_v62 = vld [vmem:[#allocation5 + $0x508] ss:$16 sps:$4 sm:$0xff]  }
 0x129   :  { %2147 = vmatprep.subr.bf16.mxu1 %v7674_v63  ;;  %2028 = vmatprep.mubr.bf16.mxu0 %v8161_v33  ;;  %v7687_v33 = vld [vmem:[#allocation5 + $0x468] ss:$16 sps:$4 sm:$0xff]  }
 0x12a   :  { %2081 = vmatprep.mubr.bf16.mxu1 %v8163_v34  ;;  %v7690_v34 = vld [vmem:[#allocation5 + $0x668] ss:$16 sps:$4 sm:$0xff]  }
 0x12b   :  { %2095 = vmatpush1.bf16.msra.mxu0 %v7669_v0  ;;  %v7756_v63 = vld [vmem:[#allocation5 + $0x708] ss:$16 sps:$4 sm:$0xff]   ;;  %v7759_v0 = vld [vmem:[#allocation10 + $0x78] sm:$0xff]  }
 0x12c   :  { %2148 = vmatpush1.bf16.msra.mxu1 %v7672_v1  ;;  %2096 = vmatprep.subr.bf16.mxu0 %v7677_v2  ;;  %v7762_v1 = vld [vmem:[#allocation10 + $0x38] sm:$0xff]   ;;  %v7760_v2 = vld [vmem:[#allocation10 + $0x70] sm:$0xff]  }
 0x12d   :  { %2149 = vmatprep.subr.bf16.mxu1 %v7680_v3  ;;  %v7764_v3 = vld [vmem:[#allocation10 + $0x30] sm:$0xff]  }
 0x12e   :  { %2029 = vmatmul.mubr.bf16.gmra.mxu0 %v8165_v35  ;;  %v7693_v35 = vld [vmem:[#allocation5 + $0x448] ss:$16 sps:$4 sm:$0xff]  }
 0x12f   :  { %2082 = vmatmul.mubr.bf16.gmra.mxu1 %v8167_v37  ;;  %2097 = vmatpush1.bf16.msra.mxu0 %v7675_v4  ;;  %v7701_v37 = vld [vmem:[#allocation5 + $0x42c] ss:$16 sps:$4 sm:$0xff]  }
 0x130   :  { %2150 = vmatpush1.bf16.msra.mxu1 %v7678_v5  ;;  %2098 = vmatprep.subr.bf16.mxu0 %v7683_v6 }
 0x131   :  { %2151 = vmatprep.subr.bf16.mxu1 %v7686_v53  ;;  %2124 = vmatprep.mubr.bf16.mxu0 %v8181_v49  ;;  %v7707_v49 = vld [vmem:[#allocation5 + $0x40c] ss:$16 sps:$4 sm:$0xff]  }
 0x132   :  { %2177 = vmatprep.mubr.bf16.mxu1 %v8187_v51  ;;  %v7710_v51 = vld [vmem:[#allocation5 + $0x60c] ss:$16 sps:$4 sm:$0xff]  }
 0x133   :  { %2099 = vmatpush1.bf16.msra.mxu0 %v7681_v8 }
 0x134   :  { %2152 = vmatpush1.bf16.msra.mxu1 %v7684_v9  ;;  %2100 = vmatprep.subr.bf16.mxu0 %v7689_v54  ;;  %v7761_v9 = vld [vmem:[#allocation10 + $0x68] sm:$0xff]  }
 0x135   :  { %2153 = vmatprep.subr.bf16.mxu1 %v7692_v7  ;;  %v7766_v54 = vld [vmem:[#allocation10 + $0x28] sm:$0xff]   ;;  %v7765_v7 = vld [vmem:[#allocation10 + $0x58] sm:$0xff]  }
 0x137   :  { %2101 = vmatpush1.bf16.msra.mxu0 %v7687_v33  ;;  %v7770_v33 = vld [vmem:[#allocation10 + $0x18] sm:$0xff]  }
 0x138   :  { %2154 = vmatpush1.bf16.msra.mxu1 %v7690_v34  ;;  %2102 = vmatprep.subr.bf16.mxu0 %v7695_v10 }
 0x139   :  { %2155 = vmatprep.subr.bf16.mxu1 %v7698_v11  ;;  %v7767_v11 = vld [vmem:[#allocation10 + $0x50] sm:$0xff]  }
 0x13b   :  { %2103 = vmatpush1.bf16.msra.mxu0 %v7693_v35  ;;  %v7772_v35 = vld [vmem:[#allocation10 + $0x10] sm:$0xff]  }
 0x13c   :  { %2156 = vmatpush1.bf16.msra.mxu1 %v7696_v12  ;;  %2104 = vmatprep.subr.bf16.mxu0 %v7701_v37 }
 0x13d   :  { %2157 = vmatprep.subr.bf16.mxu1 %v7704_v13 }
 0x13f   :  { %2105 = vmatpush1.bf16.msra.mxu0 %v7699_v14  ;;  %v7769_v14 = vld [vmem:[#allocation10 + $0x48] sm:$0xff]  }
 0x140   :  { %2158 = vmatpush1.bf16.msra.mxu1 %v7702_v15  ;;  %2106 = vmatprep.subr.bf16.mxu0 %v7707_v49  ;;  %v7773_v15 = vld [vmem:[#allocation10 + $0x8] sm:$0xff]  }
 0x141   :  { %2159 = vmatprep.subr.bf16.mxu1 %v7710_v51 }
 0x143   :  { %2107 = vmatpush1.bf16.msra.mxu0 %v7705_v16 }
 0x144   :  { %2160 = vmatpush1.bf16.msra.mxu1 %v7708_v17  ;;  %2108 = vmatprep.subr.bf16.mxu0 %v7713_v18 }
 0x145   :  { %2161 = vmatprep.subr.bf16.mxu1 %v7716_v19  ;;  %v7771_v19 = vld [vmem:[#allocation10 + $0x40] sm:$0xff]  }
 0x147   :  { %2109 = vmatpush2.bf16.msra.mxu0 %v7711_v20  ;;  %v7774_v20 = vld [vmem:[#allocation10] sm:$0xff]  }
 0x148   :  { %2162 = vmatpush2.bf16.msra.mxu1 %v7714_v21  ;;  %2110 = vmatprep.subr.bf16.mxu0 %v7719_v22  ;;  %v8239_v21 = vld [vmem:[#allocation10 + $0xb8] sm:$0xff]   ;;  %v2200_v22 = vlaneseq }
 0x149   :  { %2163 = vmatprep.subr.bf16.mxu1 %v7722_v23 }
 0x14a   :  { %v8242_v23 = vshrl.u32 %v2200_v22, 7 }
 0x14b   :  { %2111 = vmatpush2.bf16.msra.mxu0 %v7717_v24 }
 0x14c   :  { %2164 = vmatpush2.bf16.msra.mxu1 %v7720_v25  ;;  %2112 = vmatprep.subr.bf16.mxu0 %v7725_v26  ;;  %v8245_v24 = vsub.s32 0, %v8242_v23  ;;  %v8249_v26 = vld [vmem:[#allocation7] sm:$0xf]  ;;  %vm2383_vm3 = vcmp.lt.s32.totalorder %v8242_v23, 1  ;;  %vm2396_vm4 = vcmp.lt.s32.totalorder %v8242_v23, 7 }
 0x14d   :  { %2165 = vmatprep.subr.bf16.mxu1 %v7728_v27  ;;  %v8252_v27 = vsub.s32 1, %v8242_v23 }
 0x14f   :  { %2113 = vmatpush2.bf16.msra.mxu0 %v7723_v28 }
 0x150   :  { %2166 = vmatpush2.bf16.msra.mxu1 %v7726_v29  ;;  %2114 = vmatprep.subr.bf16.mxu0 %v7731_v30 }
 0x151   :  { %2167 = vmatprep.subr.bf16.mxu1 %v7734_v31  ;;  %v2203_v31 = vrot.slane %v8249_v26, %v8245_v24 }
 0x153   :  { %2115 = vmatpush2.bf16.msra.mxu0 %v7729_v38 }
 0x154   :  { %2168 = vmatpush2.bf16.msra.mxu1 %v7732_v39  ;;  %2116 = vmatprep.subr.bf16.mxu0 %v7737_v40 }
 0x155   :  { %2169 = vmatprep.subr.bf16.mxu1 %v7740_v41 }
 0x157   :  { %2117 = vmatpush2.bf16.msra.mxu0 %v7735_v44  ;;  %v8256_v44 = vld [vmem:[#allocation8] sm:$0xf] }
 0x158   :  { %2170 = vmatpush2.bf16.msra.mxu1 %v7738_v45  ;;  %2118 = vmatprep.subr.bf16.mxu0 %v7743_v46  ;;  %v2207_v46 = vrot.slane %v8249_v26, %v8252_v27 }
 0x159   :  { %2171 = vmatprep.subr.bf16.mxu1 %v7746_v47 }
 0x15b   :  { %2119 = vmatpush2.bf16.msra.mxu0 %v7741_v52 }
 0x15c   :  { %2172 = vmatpush2.bf16.msra.mxu1 %v7744_v55  ;;  %2120 = vmatprep.subr.bf16.mxu0 %v7749_v56 }
 0x15d   :  { %2173 = vmatprep.subr.bf16.mxu1 %v7752_v57 }
 0x15f   :  { %2121 = vmatpush2.bf16.msra.mxu0 %v7747_v58 }
 0x160   :  { %2174 = vmatpush2.bf16.msra.mxu1 %v7750_v59  ;;  %2122 = vmatprep.subr.bf16.mxu0 %v7755_v60  ;;  %v2241_v59 = vrot.slane %v8256_v44, %v8245_v24  ;;  %v2245_v60 = vrot.slane %v8256_v44, %v8252_v27 }
 0x161   :  { %2175 = vmatprep.subr.bf16.mxu1 %v7758_v61 }
 0x163   :  { %2123 = vmatpush2.bf16.msra.mxu0 %v7753_v62 }
 0x164   :  { %2176 = vmatpush2.bf16.msra.mxu1 %v7756_v63  ;;  %7161 = vmatprep.subr.bf16.mxu0 %v7762_v1 }
 0x165   :  { %7181 = vmatprep.subr.bf16.mxu1 %v7759_v0 }
 0x166   :  { %v8223_v4 = vpop.f32.mrf.mxu0  ;;  %2125 = vmatmul.mubr.bf16.vlgmr.msra.gmra.mxu0 %v8193_v32  ;;  %v7763_v32 = vld [vmem:[#allocation10 + $0x60] sm:$0xff]  }
 0x167   :  { %v8225_v5 = vpop.f32.mrf.mxu1  ;;  %2178 = vmatmul.mubr.bf16.vlgmr.msra.gmra.mxu1 %v8197_v36  ;;  %2134 = vmatprep.mubr.bf16.mxu0 %v8199_v42  ;;  %v7768_v36 = vld [vmem:[#allocation10 + $0x20] sm:$0xff]  }
 0x168   :  { %2187 = vmatprep.mubr.bf16.mxu1 %v8201_v43  ;;  %v1810_v6 = vpop.f32.mrf.mxu0  ;;  %7182 = vmatpush3.bf16.msra.mxu1 %v7759_v0  ;;  %v1862_v25 = vadd.f32 %v8225_v5, %v8223_v4 }
 0x169   :  { %v1863_v53 = vpop.f32.mrf.mxu1  ;;  %7162 = vmatpush3.bf16.msra.mxu0 %v7762_v1  ;;  %7183 = vmatprep.subr.bf16.mxu1 %v7760_v2 }
 0x16a   :  { %v8231_v8 = vadd.f32 %v1863_v53, %v1810_v6  ;;  %7163 = vmatprep.subr.bf16.mxu0 %v7764_v3  ;;  %v1812_v42 = vpop.f32.mrf.mxu0 }
 0x16b   :  { %v1865_v43 = vpop.f32.mrf.mxu1 }
 0x16c   :  { %7184 = vmatpush3.bf16.msra.mxu1 %v7760_v2  ;;  %v1814_v34 = vpop.f32.mrf.mxu0  ;;  %v1866_v40 = vadd.f32 %v1865_v43, %v1812_v42 }
 0x16d   :  { %7164 = vmatpush3.bf16.msra.mxu0 %v7764_v3  ;;  %7185 = vmatprep.subr.bf16.mxu1 %v7761_v9  ;;  %v1867_v10 = vpop.f32.mrf.mxu1 }
 0x16e   :  { %7165 = vmatprep.subr.bf16.mxu0 %v7766_v54  ;;  %2135 = vmatmul.mubr.bf16.gmra.mxu0 %v8207_v48  ;;  %v1818_v12 = vpop.f32.mrf.mxu0  ;;  %v1868_v55 = vadd.f32 %v1867_v10, %v1814_v34 }
 0x16f   :  { %2188 = vmatmul.mubr.bf16.gmra.mxu1 %v8209_v50  ;;  %v1871_v48 = vpop.f32.mrf.mxu1 }
 0x170   :  { %7186 = vmatpush3.bf16.msra.mxu1 %v7761_v9  ;;  %v1820_v37 = vpop.f32.mrf.mxu0  ;;  %v1872_v2 = vadd.f32 %v1871_v48, %v1818_v12 }
 0x171   :  { %7166 = vmatpush3.bf16.msra.mxu0 %v7766_v54  ;;  %7187 = vmatprep.subr.bf16.mxu1 %v7763_v32  ;;  %v1873_v50 = vpop.f32.mrf.mxu1 }
 0x172   :  { %7167 = vmatprep.subr.bf16.mxu0 %v7768_v36  ;;  %v8235_v13 = vadd.f32 %v1873_v50, %v1820_v37  ;;  %v1822_v49 = vpop.f32.mrf.mxu0 }
 0x173   :  { %v1875_v51 = vpop.f32.mrf.mxu1 }
 0x174   :  { %7188 = vmatpush3.bf16.msra.mxu1 %v7763_v32  ;;  %v1824_v16 = vpop.f32.mrf.mxu0 }
 0x175   :  { %7168 = vmatpush3.bf16.msra.mxu0 %v7768_v36  ;;  %7189 = vmatprep.subr.bf16.mxu1 %v7765_v7  ;;  %v1877_v17 = vpop.f32.mrf.mxu1  ;;  %v1876_v36 = vadd.f32 %v1875_v51, %v1822_v49 }
 0x176   :  { %7169 = vmatprep.subr.bf16.mxu0 %v7770_v33  ;;  %v8237_v18 = vadd.f32 %v1877_v17, %v1824_v16  ;;  %v2300_v17 = vadd.s32 8, %v8242_v23 }
 0x178   :  { %7190 = vmatpush3.bf16.msra.mxu1 %v7765_v7 }
 0x179   :  { %7170 = vmatpush3.bf16.msra.mxu0 %v7770_v33  ;;  %7191 = vmatprep.subr.bf16.mxu1 %v7767_v11 }
 0x17a   :  { %7171 = vmatprep.subr.bf16.mxu0 %v7772_v35 }
 0x17c   :  { %7192 = vmatpush3.bf16.msra.mxu1 %v7767_v11  ;;  %v2301_v11 = vadd.s32 16, %v8242_v23 }
 0x17d   :  { %7172 = vmatpush3.bf16.msra.mxu0 %v7772_v35  ;;  %7193 = vmatprep.subr.bf16.mxu1 %v7769_v14 }
 0x17e   :  { %7173 = vmatprep.subr.bf16.mxu0 %v7773_v15 }
 0x180   :  { %7194 = vmatpush3.bf16.msra.mxu1 %v7769_v14 }
 0x181   :  { %7174 = vmatpush3.bf16.msra.mxu0 %v7773_v15  ;;  %7195 = vmatprep.subr.bf16.mxu1 %v7771_v19 }
 0x182   :  { %7175 = vmatprep.subr.bf16.mxu0 %v7774_v20 }
 0x184   :  { %7196 = vmatpush3.bf16.msra.mxu1 %v7771_v19 }
 0x185   :  { %7176 = vmatpush3.bf16.msra.mxu0 %v7774_v20 }
 0x186   :  { %7201 = vmatprep.subr.bf16.mxu0 %v8239_v21 }
 0x1a6   :  { %v1914_v28 = vpop.f32.mrf.mxu0 }
 0x1a7   :  { %v1967_v29 = vpop.f32.mrf.mxu1  ;;  %v1915_v30 = vadd.f32 %v1914_v28, %v1862_v25 }
 0x1a8   :  { %v1916_v38 = vpop.f32.mrf.mxu0 }
 0x1a9   :  { %v1969_v39 = vpop.f32.mrf.mxu1  ;;  %v1968_v41 = vadd.f32 %v1967_v29, %v1915_v30  ;;  %v1917_v45 = vadd.f32 %v1916_v38, %v8231_v8  ;;  %v2307_v38 = vand.u32 15, %v8242_v23 }
 0x1aa   :  { %v1918_v47 = vpop.f32.mrf.mxu0 }
 0x1ab   :  { %v1971_v52 = vpop.f32.mrf.mxu1  ;;  %v1970_v56 = vadd.f32 %v1969_v39, %v1917_v45  ;;  %v1919_v57 = vadd.f32 %v1918_v47, %v1866_v40  ;;  %v2220_v58 = vmul.f32 %v2203_v31, %v1968_v41  ;;  %v2321_v39 = vand.u32 15, %v2301_v11 }
 0x1ac   :  { %v1920_v61 = vpop.f32.mrf.mxu0  ;;  %v2314_v47 = vand.u32 15, %v2300_v17  ;;  %vm2351_vm0 = vcmp.gt.s32.totalorder %v2307_v38, 0  ;;  %v7781_v17 = vld [vmem:[#allocation10 + $0x88] sm:$0xff]  }
 0x1ad   :  { %v1973_v62 = vpop.f32.mrf.mxu1  ;;  %v2221_v63 = vmul.f32 %v2207_v46, %v1970_v56  ;;  %v1972_v0 = vadd.f32 %v1971_v52, %v1919_v57  ;;  %v1921_v1 = vadd.f32 %v1920_v61, %v1868_v55  ;;  %v2258_v53 = vadd.f32 %v2241_v59, %v2220_v58 }
 0x1ae   :  { %v1924_v3 = vpop.f32.mrf.mxu0  ;;  %vm2353_vm1 = vcmp.gt.s32.totalorder %v2321_v39, 0  ;;  %vm2364_vm2 = vcmp.lt.s32.totalorder %v2314_v47, 15 }
 0x1af   :  { %v1977_v4 = vpop.f32.mrf.mxu1  ;;  %v2224_v5 = vmul.f32 %v2203_v31, %v1972_v0  ;;  %v1974_v6 = vadd.f32 %v1973_v62, %v1921_v1  ;;  %v2259_v8 = vadd.f32 %v2245_v60, %v2221_v63  ;;  %v1925_v9 = vadd.f32 %v1924_v3, %v1872_v2 }
 0x1b0   :  { %v1926_v54 = vpop.f32.mrf.mxu0  ;;  %v2274_v50 = vmax.f32 %v2258_v53, 0.0  ;;  %v8054_v1 = vmov 0.0  }
 0x1b1   :  { %v1979_v32 = vpop.f32.mrf.mxu1  ;;  %v2262_v42 = vadd.f32 %v2241_v59, %v2224_v5  ;;  %v2225_v43 = vmul.f32 %v2207_v46, %v1974_v6  ;;  %v1927_v7 = vadd.f32 %v1926_v54, %v8235_v13  ;;  %v1978_v33 = vadd.f32 %v1977_v4, %v1925_v9 }
 0x1b2   :  { %v1928_v34 = vpop.f32.mrf.mxu0  ;;  %v2275_v14 = vmax.f32 %v2259_v8, 0.0  ;;  %v8276_v3 = vsel %vm2353_vm1, 1.0, %v8054_v1 }
 0x1b3   :  { %v1981_v10 = vpop.f32.mrf.mxu1  ;;  %v2278_v35 = vmax.f32 %v2262_v42, 0.0  ;;  %v2263_v12 = vadd.f32 %v2245_v60, %v2225_v43  ;;  %v1980_v48 = vadd.f32 %v1979_v32, %v1927_v7  ;;  %v1929_v37 = vadd.f32 %v1928_v34, %v1876_v36 }
 0x1b4   :  { %v2228_v15 = vmul.f32 %v2203_v31, %v1978_v33  ;;  %v1930_v16 = vpop.f32.mrf.mxu0 }
 0x1b5   :  { %v2279_v49 = vmax.f32 %v2263_v12, 0.0  ;;  %v2229_v51 = vmul.f32 %v2207_v46, %v1980_v48  ;;  %v1982_v19 = vadd.f32 %v1981_v10, %v1929_v37  ;;  %v1931_v13 = vadd.f32 %v1930_v16, %v8237_v18  ;;  %v1983_v20 = vpop.f32.mrf.mxu1  ;;  %v7777_v48 = vld [vmem:[#allocation10 + $0xa8] sm:$0xff]   ;;  %v7778_v37 = vld [vmem:[#allocation10 + $0xa0] sm:$0xff]  }
 0x1b6   :  { %v2290_v22 = vpack.c.bf16 %v2278_v35, %v2274_v50  ;;  %v2266_v28 = vadd.f32 %v2241_v59, %v2228_v15  ;;  %v7776_v35 = vld [vmem:[#allocation10 + $0xb0] sm:$0xff]   ;;  %v7779_v50 = vld [vmem:[#allocation10 + $0x98] sm:$0xff]  }
 0x1b7   :  { %v8269_v25 = vpack.c.bf16 %v2279_v49, %v2275_v14  ;;  %v2232_v29 = vmul.f32 %v2203_v31, %v1982_v19  ;;  %v1984_v30 = vadd.f32 %v1983_v20, %v1931_v13  ;;  %v2267_v40 = vadd.f32 %v2245_v60, %v2229_v51  ;;  %v7780_v15 = vld [vmem:[#allocation10 + $0x90] sm:$0xff]  }
 0x1b8   :  { %7197 = vmatprep.mubr.bf16.mxu1 %v2290_v22  ;;  %v2282_v52 = vmax.f32 %v2266_v28, 0.0  ;;  %v2375_v57 = vunpack.c.l.bf16 %v2290_v22  ;;  %v2376_v18 = vunpack.c.h.bf16 %v2290_v22  ;;  %v2302_v14 = vadd.s32 24, %v8242_v23 }
 0x1b9   :  { %v2270_v41 = vadd.f32 %v2241_v59, %v2232_v29  ;;  %v2233_v45 = vmul.f32 %v2207_v46, %v1984_v30  ;;  %v2283_v58 = vmax.f32 %v2267_v40, 0.0  ;;  %v8274_v59 = vsel %vm2351_vm0, 1.0, %v8054_v1 }
 0x1ba   :  { %v2379_v46 = vrot.slane %v2375_v57, 7  ;;  %v2380_v2 = vrot.slane %v2376_v18, 7  ;;  %v2393_v6 = vrot.slane %v2376_v18, 1  ;;  %v2392_v54 = vrot.slane %v2375_v57, 1 }
 0x1bb   :  { %v2286_v55 = vmax.f32 %v2270_v41, 0.0  ;;  %v2271_v56 = vadd.f32 %v2245_v60, %v2233_v45  ;;  %v8278_v60 = vsel %vm2364_vm2, 1.0, %v8054_v1  ;;  %v2328_v16 = vand.u32 15, %v2302_v14 }
 0x1bc   :  { %v2386_v7 = vsel %vm2383_vm3, %v2379_v46, %v2380_v2  ;;  %v2399_v11 = vsel %vm2396_vm4, %v2392_v54, %v2393_v6 }
 0x1bd   :  { %v2294_v61 = vpack.c.bf16 %v2286_v55, %v2282_v52  ;;  %v2287_v62 = vmax.f32 %v2271_v56, 0.0  ;;  %vm2366_vm5 = vcmp.lt.s32.totalorder %v2328_v16, 15 }
 0x1be   :  { %v8299_v51 = vsel %vm2366_vm5, 1.0, %v8054_v1 }
 0x1bf   :  { %v2377_v31 = vunpack.c.l.bf16 %v2294_v61  ;;  %v2378_v63 = vunpack.c.h.bf16 %v2294_v61  ;;  %v8272_v0 = vpack.c.bf16 %v2287_v62, %v2283_v58  ;;  %7198 = vmatmul.mubr.bf16.vlgmr.msra.gmra.mxu1 %v2294_v61 }
 0x1c1   :  { %v2381_v4 = vrot.slane %v2377_v31, 7  ;;  %v2382_v5 = vrot.slane %v2378_v63, 7  ;;  %v2394_v53 = vrot.slane %v2377_v31, 1  ;;  %v2395_v49 = vrot.slane %v2378_v63, 1 }
 0x1c3   :  { %v2385_v8 = vsel %vm2383_vm3, %v2380_v2, %v2381_v4  ;;  %v2387_v9 = vsel %vm2383_vm3, %v2382_v5, %v2379_v46  ;;  %v2398_v32 = vsel %vm2396_vm4, %v2393_v6, %v2394_v53  ;;  %v2384_v33 = vsel %vm2383_vm3, %v2381_v4, %v2382_v5  ;;  %v7783_v6 = vld [vmem:[#allocation10 + $0x138] sm:$0xff]  }
 0x1c4   :  { %v2388_v36 = vmul.f32 %v8274_v59, %v2387_v9  ;;  %v2390_v42 = vmul.f32 %v8276_v3, %v2385_v8  ;;  %v2402_v43 = vmul.f32 %v8278_v60, %v2398_v32  ;;  %v2400_v19 = vsel %vm2396_vm4, %v2395_v49, %v2392_v54  ;;  %v7785_v8 = vld [vmem:[#allocation10 + $0x130] sm:$0xff]   ;;  %v7787_v54 = vld [vmem:[#allocation10 + $0x128] sm:$0xff]  }
 0x1c5   :  { %v2404_v13 = vmul.f32 %v8299_v51, %v2400_v19  ;;  %v2397_v20 = vsel %vm2396_vm4, %v2394_v53, %v2395_v49  ;;  %v7784_v53 = vld [vmem:[#allocation10 + $0xf8] sm:$0xff]   ;;  %v7786_v9 = vld [vmem:[#allocation10 + $0xf0] sm:$0xff]   ;;  %v7788_v32 = vld [vmem:[#allocation10 + $0xe8] sm:$0xff]  }
 0x1c6   :  { %v2421_v34 = vpack.c.bf16 %v2386_v7, %v2388_v36  ;;  %v2422_v10 = vpack.c.bf16 %v2384_v33, %v2390_v42  ;;  %v2633_v12 = vpack.c.bf16 %v2402_v43, %v2399_v11  ;;  %7221 = vmatprep.subr.bf16.mxu1 %v7784_v53  ;;  %v8315_v36 = vsub.s32 2, %v8242_v23  ;;  %v7790_v19 = vld [vmem:[#allocation10 + $0xe0] sm:$0xff]  }
 0x1c7   :  { %v2634_v29 = vpack.c.bf16 %v2404_v13, %v2397_v20  ;;  %7222 = vmatpush3.bf16.msra.mxu1 %v7784_v53  ;;  %v8318_v42 = vsub.s32 3, %v8242_v23 }
 0x1c8   :  { %7177 = vmatprep.mubr.bf16.mxu0 %v2421_v34  ;;  %7223 = vmatprep.subr.bf16.mxu1 %v7786_v9  ;;  %v8322_v34 = vrot.slane %v8249_v26, %v8315_v36 }
 0x1c9   :  { %7178 = vmatmul.mubr.bf16.vlgmr.msra.gmra.mxu0 %v2422_v10 }
 0x1ca   :  { %7202 = vmatpush3.bf16.msra.mxu0 %v8239_v21  ;;  %7217 = vmatprep.mubr.bf16.mxu0 %v2633_v12  ;;  %v7782_v21 = vld [vmem:[#allocation10 + $0x80] sm:$0xff]  }
 0x1cb   :  { %7203 = vmatprep.subr.bf16.mxu0 %v7776_v35  ;;  %7224 = vmatpush3.bf16.msra.mxu1 %v7786_v9  ;;  %v7794_v9 = vld [vmem:[#allocation10 + $0xd0] sm:$0xff]  }
 0x1cc   :  { %7225 = vmatprep.subr.bf16.mxu1 %v7788_v32 }
 0x1ce   :  { %7204 = vmatpush3.bf16.msra.mxu0 %v7776_v35  ;;  %v7789_v35 = vld [vmem:[#allocation10 + $0x120] sm:$0xff]  }
 0x1cf   :  { %7205 = vmatprep.subr.bf16.mxu0 %v7777_v48  ;;  %7226 = vmatpush3.bf16.msra.mxu1 %v7788_v32 }
 0x1d0   :  { %7227 = vmatprep.subr.bf16.mxu1 %v7790_v19 }
 0x1d2   :  { %7206 = vmatpush3.bf16.msra.mxu0 %v7777_v48 }
 0x1d3   :  { %7207 = vmatprep.subr.bf16.mxu0 %v7778_v37  ;;  %7228 = vmatpush3.bf16.msra.mxu1 %v7790_v19 }
 0x1d6   :  { %7208 = vmatpush3.bf16.msra.mxu0 %v7778_v37  ;;  %v8326_v37 = vrot.slane %v8256_v44, %v8315_v36 }
 0x1d7   :  { %7209 = vmatprep.subr.bf16.mxu0 %v7779_v50 }
 0x1da   :  { %7210 = vmatpush3.bf16.msra.mxu0 %v7779_v50  ;;  %v8330_v50 = vrot.slane %v8249_v26, %v8318_v42 }
 0x1db   :  { %7211 = vmatprep.subr.bf16.mxu0 %v7780_v15 }
 0x1de   :  { %7212 = vmatpush3.bf16.msra.mxu0 %v7780_v15 }
 0x1df   :  { %7213 = vmatprep.subr.bf16.mxu0 %v7781_v17 }
 0x1e2   :  { %7214 = vmatpush3.bf16.msra.mxu0 %v7781_v17 }
 0x1e3   :  { %7215 = vmatprep.subr.bf16.mxu0 %v7782_v21 }
 0x1e6   :  { %7216 = vmatpush3.bf16.msra.mxu0 %v7782_v21  ;;  %v2020_v22 = vpop.f32.mrf.mxu0  ;;  %v8335_v21 = vrot.slane %v8256_v44, %v8318_v42 }
 0x1e7   :  { %v2073_v28 = vpop.f32.mrf.mxu1  ;;  %7241 = vmatprep.subr.bf16.mxu0 %v7783_v6 }
 0x1e8   :  { %v2074_v30 = vadd.f32 %v2073_v28, %v2020_v22  ;;  %v2022_v38 = vpop.f32.mrf.mxu0  ;;  %v7791_v22 = vld [vmem:[#allocation10 + $0x118] sm:$0xff]  }
 0x1e9   :  { %v2075_v39 = vpop.f32.mrf.mxu1  ;;  %7218 = vmatmul.mubr.bf16.vlgmr.msra.gmra.mxu0 %v2634_v29 }
 0x1ea   :  { %v2076_v40 = vadd.f32 %v2075_v39, %v2022_v38  ;;  %v2024_v41 = vpop.f32.mrf.mxu0  ;;  %7242 = vmatpush3.bf16.msra.mxu0 %v7783_v6 }
 0x1eb   :  { %v2077_v45 = vpop.f32.mrf.mxu1  ;;  %7243 = vmatprep.subr.bf16.mxu0 %v7785_v8 }
 0x1ec   :  { %v2078_v47 = vadd.f32 %v2077_v45, %v2024_v41  ;;  %v2026_v52 = vpop.f32.mrf.mxu0  ;;  %v7792_v45 = vld [vmem:[#allocation10 + $0xd8] sm:$0xff]  }
 0x1ed   :  { %v2079_v55 = vpop.f32.mrf.mxu1  ;;  %7229 = vmatprep.subr.bf16.mxu1 %v7792_v45 }
 0x1ee   :  { %v2080_v56 = vadd.f32 %v2079_v55, %v2026_v52  ;;  %v2030_v57 = vpop.f32.mrf.mxu0  ;;  %7244 = vmatpush3.bf16.msra.mxu0 %v7785_v8  ;;  %7230 = vmatpush3.bf16.msra.mxu1 %v7792_v45 }
 0x1ef   :  { %v2083_v18 = vpop.f32.mrf.mxu1  ;;  %7245 = vmatprep.subr.bf16.mxu0 %v7787_v54  ;;  %7231 = vmatprep.subr.bf16.mxu1 %v7794_v9 }
 0x1f0   :  { %v8306_v58 = vadd.f32 %v2083_v18, %v2030_v57  ;;  %v2032_v61 = vpop.f32.mrf.mxu0  ;;  %v7793_v57 = vld [vmem:[#allocation10 + $0x110] sm:$0xff]  }
 0x1f1   :  { %v2085_v62 = vpop.f32.mrf.mxu1 }
 0x1f2   :  { %v8308_v31 = vadd.f32 %v2085_v62, %v2032_v61  ;;  %v2034_v63 = vpop.f32.mrf.mxu0  ;;  %7246 = vmatpush3.bf16.msra.mxu0 %v7787_v54  ;;  %7232 = vmatpush3.bf16.msra.mxu1 %v7794_v9 }
 0x1f3   :  { %v2087_v1 = vpop.f32.mrf.mxu1  ;;  %7247 = vmatprep.subr.bf16.mxu0 %v7789_v35 }
 0x1f4   :  { %v8310_v46 = vadd.f32 %v2087_v1, %v2034_v63  ;;  %v2036_v2 = vpop.f32.mrf.mxu0 }
 0x1f5   :  { %v2089_v4 = vpop.f32.mrf.mxu1 }
 0x1f6   :  { %v8312_v5 = vadd.f32 %v2089_v4, %v2036_v2  ;;  %7248 = vmatpush3.bf16.msra.mxu0 %v7789_v35 }
 0x1f7   :  { %7249 = vmatprep.subr.bf16.mxu0 %v7791_v22 }
 0x1fa   :  { %7250 = vmatpush3.bf16.msra.mxu0 %v7791_v22 }
 0x1fb   :  { %7251 = vmatprep.subr.bf16.mxu0 %v7793_v57 }
 0x1fe   :  { %7252 = vmatpush3.bf16.msra.mxu0 %v7793_v57  ;;  %v6730_v57 = vld [vmem:[#allocation13] ss:$0 sm:$0xff] }
 0x226   :  { %v2126_v43 = vpop.f32.mrf.mxu0 }
 0x227   :  { %v2179_v7 = vpop.f32.mrf.mxu1  ;;  %v2127_v33 = vadd.f32 %v2126_v43, %v2074_v30 }
 0x228   :  { %v2128_v10 = vpop.f32.mrf.mxu0 }
 0x229   :  { %v2181_v11 = vpop.f32.mrf.mxu1  ;;  %v2129_v12 = vadd.f32 %v2128_v10, %v2076_v40  ;;  %v2180_v48 = vadd.f32 %v2179_v7, %v2127_v33 }
 0x22a   :  { %v2130_v14 = vpop.f32.mrf.mxu0 }
 0x22b   :  { %v2183_v15 = vpop.f32.mrf.mxu1  ;;  %v2222_v16 = vmul.f32 %v8322_v34, %v2180_v48  ;;  %v2131_v17 = vadd.f32 %v2130_v14, %v2078_v47  ;;  %v2182_v49 = vadd.f32 %v2181_v11, %v2129_v12 }
 0x22c   :  { %v2132_v13 = vpop.f32.mrf.mxu0 }
 0x22d   :  { %v2185_v20 = vpop.f32.mrf.mxu1  ;;  %v2260_v28 = vadd.f32 %v8326_v37, %v2222_v16  ;;  %v2223_v26 = vmul.f32 %v8330_v50, %v2182_v49  ;;  %v2133_v29 = vadd.f32 %v2132_v13, %v2080_v56  ;;  %v2184_v30 = vadd.f32 %v2183_v15, %v2131_v17  ;;  %v7796_v15 = vld [vmem:[#allocation10 + $0xc8] sm:$0xff]   ;;  %v7797_v17 = vld [vmem:[#allocation10 + $0x100] sm:$0xff]  }
 0x22e   :  { %v2136_v38 = vpop.f32.mrf.mxu0  ;;  %v7798_v49 = vld [vmem:[#allocation10 + $0xc0] sm:$0xff]   ;;  %7233 = vmatprep.subr.bf16.mxu1 %v7796_v15 }
 0x22f   :  { %v2189_v39 = vpop.f32.mrf.mxu1  ;;  %v2261_v40 = vadd.f32 %v8335_v21, %v2223_v26  ;;  %v2226_v44 = vmul.f32 %v8322_v34, %v2184_v30  ;;  %v2186_v41 = vadd.f32 %v2185_v20, %v2133_v29  ;;  %v2137_v47 = vadd.f32 %v2136_v38, %v8306_v58  ;;  %7234 = vmatpush3.bf16.msra.mxu1 %v7796_v15  ;;  %v8364_v30 = vld [vmem:[#allocation10 + $0x178] sm:$0xff]  }
 0x230   :  { %v2138_v52 = vpop.f32.mrf.mxu0  ;;  %v2276_v18 = vmax.f32 %v2260_v28, 0.0  ;;  %7235 = vmatprep.subr.bf16.mxu1 %v7798_v49 }
 0x231   :  { %v2191_v55 = vpop.f32.mrf.mxu1  ;;  %v2264_v56 = vadd.f32 %v8326_v37, %v2226_v44  ;;  %v2227_v61 = vmul.f32 %v8330_v50, %v2186_v41  ;;  %v2139_v62 = vadd.f32 %v2138_v52, %v8308_v31  ;;  %v2277_v63 = vmax.f32 %v2261_v40, 0.0  ;;  %v7795_v31 = vld [vmem:[#allocation10 + $0x108] sm:$0xff]  }
 0x232   :  { %v2190_v1 = vadd.f32 %v2189_v39, %v2137_v47  ;;  %v2140_v2 = vpop.f32.mrf.mxu0  ;;  %7253 = vmatprep.subr.bf16.mxu0 %v7795_v31  ;;  %v6729_v47 = vld [vmem:[#allocation11] ss:$0 sm:$0xff] }
 0x233   :  { %v2193_v4 = vpop.f32.mrf.mxu1  ;;  %v2280_v6 = vmax.f32 %v2264_v56, 0.0  ;;  %v2265_v58 = vadd.f32 %v8335_v21, %v2227_v61  ;;  %v2141_v53 = vadd.f32 %v2140_v2, %v8310_v46  ;;  %v2192_v8 = vadd.f32 %v2191_v55, %v2139_v62  ;;  %7254 = vmatpush3.bf16.msra.mxu0 %v7795_v31  ;;  %7236 = vmatpush3.bf16.msra.mxu1 %v7798_v49 }
 0x234   :  { %v2230_v54 = vmul.f32 %v8322_v34, %v2190_v1  ;;  %v2142_v32 = vpop.f32.mrf.mxu0  ;;  %7255 = vmatprep.subr.bf16.mxu0 %v7797_v17  ;;  %7261 = vmatprep.subr.bf16.mxu1 %v8364_v30 }
 0x235   :  { %v2195_v43 = vpop.f32.mrf.mxu1  ;;  %v8348_v7 = vpack.c.bf16 %v2280_v6, %v2276_v18  ;;  %v2281_v33 = vmax.f32 %v2265_v58, 0.0  ;;  %v2231_v10 = vmul.f32 %v8330_v50, %v2192_v8  ;;  %v2143_v11 = vadd.f32 %v2142_v32, %v8312_v5 }
 0x236   :  { %v2268_v35 = vadd.f32 %v8326_v37, %v2230_v54  ;;  %v2194_v12 = vadd.f32 %v2193_v4, %v2141_v53 }
 0x237   :  { %v8353_v46 = vpack.c.bf16 %v2281_v33, %v2277_v63  ;;  %v2269_v48 = vadd.f32 %v8335_v21, %v2231_v10  ;;  %v2196_v14 = vadd.f32 %v2195_v43, %v2143_v11  ;;  %7256 = vmatpush3.bf16.msra.mxu0 %v7797_v17  ;;  %v2846_v10 = vunpack.c.l.bf16 %v8272_v0 }
 0x238   :  { %v2234_v16 = vmul.f32 %v8322_v34, %v2194_v12  ;;  %v2284_v5 = vmax.f32 %v2268_v35, 0.0  ;;  %v2844_v11 = vunpack.c.l.bf16 %v8269_v25  ;;  %v2847_v12 = vunpack.c.h.bf16 %v8272_v0 }
 0x239   :  { %v2235_v19 = vmul.f32 %v8330_v50, %v2196_v14  ;;  %v2285_v20 = vmax.f32 %v2269_v48, 0.0 }
 0x23a   :  { %v2272_v13 = vadd.f32 %v8326_v37, %v2234_v16 }
 0x23b   :  { %v2273_v22 = vadd.f32 %v8335_v21, %v2235_v19  ;;  %v2845_v19 = vunpack.c.h.bf16 %v8269_v25 }
 0x23c   :  { %v2288_v28 = vmax.f32 %v2272_v13, 0.0 }
 0x23d   :  { %v2289_v26 = vmax.f32 %v2273_v22, 0.0 }
 0x23e   :  { %v8360_v29 = vpack.c.bf16 %v2288_v28, %v2284_v5 }
 0x23f   :  { %v8362_v34 = vpack.c.bf16 %v2289_v26, %v2285_v20 }
 0x27f   :  { %v7199_v38 = vpop.f32.mrf.mxu1 }
 0x281   :  { %v2618_v40 = vpop.f32.mrf.mxu1 }
 0x283   :  { %v7200_v41 = vpop.f32.mrf.mxu1 }
 0x285   :  { %v2621_v63 = vpop.f32.mrf.mxu1 }
 0x289   :  { %v7179_v50 = vpop.f32.mrf.mxu0 }
 0x28a   :  { %v2627_v21 = vadd.f32 %v7199_v38, %v7179_v50 }
 0x28b   :  { %v2521_v37 = vpop.f32.mrf.mxu0 }
 0x28c   :  { %v2619_v52 = vadd.f32 %v2618_v40, %v2521_v37 }
 0x28d   :  { %v7180_v39 = vpop.f32.mrf.mxu0 }
 0x28e   :  { %v2630_v56 = vadd.f32 %v7200_v41, %v7180_v39 }
 0x28f   :  { %v2524_v44 = vpop.f32.mrf.mxu0 }
 0x290   :  { %v2622_v2 = vadd.f32 %v2621_v63, %v2524_v44 }
 0x2a9   :  { %v7219_v45 = vpop.f32.mrf.mxu0 }
 0x2aa   :  { %v2750_v55 = vadd.f32 %v7219_v45, %v2627_v21 }
 0x2ab   :  { %v2733_v18 = vpop.f32.mrf.mxu0 }
 0x2ac   :  { %v2761_v61 = vmul.f32 %v6729_v47, %v2750_v55  ;;  %v2748_v62 = vadd.f32 %v2733_v18, %v2619_v52 }
 0x2ad   :  { %v7220_v1 = vpop.f32.mrf.mxu0 }
 0x2ae   :  { %v2772_v4 = vadd.f32 %v6730_v57, %v2761_v61  ;;  %v2759_v6 = vmul.f32 %v6729_v47, %v2748_v62  ;;  %v2751_v58 = vadd.f32 %v7220_v1, %v2630_v56 }
 0x2af   :  { %v2736_v53 = vpop.f32.mrf.mxu0 }
 0x2b0   :  { %v2770_v8 = vadd.f32 %v6730_v57, %v2759_v6  ;;  %v2762_v9 = vmul.f32 %v6729_v47, %v2751_v58  ;;  %v2749_v54 = vadd.f32 %v2736_v53, %v2622_v2  ;;  %v2776_v32 = vmax.f32 %v2772_v4, 0.0  ;;  %v7800_v2 = vld [vmem:[#allocation10 + $0x170] sm:$0xff]   ;;  %v7801_v6 = vld [vmem:[#allocation10 + $0x168] sm:$0xff]   ;;  %v7802_v58 = vld [vmem:[#allocation10 + $0x160] sm:$0xff]  }
 0x2b1   :  { %v7803_v53 = vld [vmem:[#allocation10 + $0x158] sm:$0xff]  }
 0x2b2   :  { %v2774_v43 = vmax.f32 %v2770_v8, 0.0  ;;  %v2773_v31 = vadd.f32 %v6730_v57, %v2762_v9  ;;  %v2760_v33 = vmul.f32 %v6729_v47, %v2749_v54  ;;  %v2850_v14 = vadd.f32 %v2846_v10, %v2776_v32  ;;  %v7804_v8 = vld [vmem:[#allocation10 + $0x150] sm:$0xff]   ;;  %v7805_v9 = vld [vmem:[#allocation10 + $0x148] sm:$0xff]   ;;  %v7806_v54 = vld [vmem:[#allocation10 + $0x140] sm:$0xff]  }
 0x2b3   :  { %v3317_v10 = vld [vmem:[#allocation14 + $0x3e8] sm:$0xff] }
 0x2b4   :  { %v2777_v35 = vmax.f32 %v2773_v31, 0.0  ;;  %v2771_v48 = vadd.f32 %v6730_v57, %v2760_v33  ;;  %v2848_v15 = vadd.f32 %v2844_v11, %v2774_v43  ;;  %v2854_v22 = vrot.slane %v2850_v14, 7  ;;  %v3304_v11 = vld [vmem:[#allocation14 + $0x380] sm:$0xff] }
 0x2b5   :  { %v2866_v39 = vrot.slane %v2850_v14, 1 }
 0x2b6   :  { %v8370_v16 = vpack.c.bf16 %v2777_v35, %v2776_v32  ;;  %v2851_v17 = vadd.f32 %v2847_v12, %v2777_v35  ;;  %v2775_v49 = vmax.f32 %v2771_v48, 0.0  ;;  %v2852_v28 = vrot.slane %v2848_v15, 7  ;;  %v3316_v32 = vld [vmem:[#allocation14 + $0x3e0] sm:$0xff] }
 0x2b7   :  { %v2864_v50 = vrot.slane %v2848_v15, 1  ;;  %v3308_v35 = vld [vmem:[#allocation14 + $0x3a0] sm:$0xff] }
 0x2b8   :  { %v2867_v5 = vrot.slane %v2851_v17, 1  ;;  %v8373_v13 = vpack.c.bf16 %v2775_v49, %v2774_v43  ;;  %v2849_v20 = vadd.f32 %v2845_v19, %v2775_v49  ;;  %v2855_v26 = vrot.slane %v2851_v17, 7  ;;  %v3313_v43 = vld [vmem:[#allocation14 + $0x3c8] sm:$0xff]  ;;  %v3296_v49 = vld [vmem:[#allocation14 + $0x340] sm:$0xff] }
 0x2b9   :  { %v2877_v40 = vpack.c.bf16 %v2851_v17, %v2850_v14  ;;  %v6815_v12 = vcombine.low %v3313_v43, %v3317_v10  ;;  %v6816_v48 = vcombine.high %v3313_v43, %v3317_v10  ;;  %v6806_v14 = vcombine.high %v3304_v11, %v3308_v35  ;;  %v3309_v17 = vld [vmem:[#allocation14 + $0x3a8] sm:$0xff] }
 0x2ba   :  { %v2876_v37 = vpack.c.bf16 %v2849_v20, %v2848_v15  ;;  %v2853_v38 = vrot.slane %v2849_v20, 7  ;;  %v2865_v0 = vrot.slane %v2849_v20, 1  ;;  %v2859_v44 = vsel %vm2383_vm3, %v2855_v26, %v2852_v28  ;;  %v3305_v15 = vld [vmem:[#allocation14 + $0x388] sm:$0xff] }
 0x2bb   :  { %v2871_v21 = vsel %vm2396_vm4, %v2867_v5, %v2864_v50  ;;  %v2860_v41 = vmul.f32 %v8274_v59, %v2859_v44  ;;  %v2856_v56 = vsel %vm2383_vm3, %v2854_v22, %v2855_v26  ;;  %v2868_v62 = vsel %vm2396_vm4, %v2866_v39, %v2867_v5  ;;  %v3300_v5 = vld [vmem:[#allocation14 + $0x360] sm:$0xff]  ;;  %v3297_v20 = vld [vmem:[#allocation14 + $0x348] sm:$0xff] }
 0x2bc   :  { %7257 = vmatprep.mubr.bf16.mxu0 %v2876_v37  ;;  %v2858_v25 = vsel %vm2383_vm3, %v2852_v28, %v2853_v38  ;;  %v2857_v45 = vsel %vm2383_vm3, %v2853_v38, %v2854_v22  ;;  %v2869_v47 = vsel %vm2396_vm4, %v2865_v0, %v2866_v39  ;;  %v2875_v57 = vmul.f32 %v8299_v51, %v2871_v21  ;;  %v3301_v22 = vld [vmem:[#allocation14 + $0x368] sm:$0xff]  ;;  %v3288_v38 = vld [vmem:[#allocation14 + $0x300] sm:$0xff] }
 0x2bd   :  { %7258 = vmatmul.mubr.bf16.vlgmr.msra.gmra.mxu0 %v2877_v40  ;;  %v2862_v52 = vmul.f32 %v8276_v3, %v2857_v45  ;;  %v2873_v55 = vmul.f32 %v8278_v60, %v2869_v47  ;;  %v2895_v18 = vpack.c.bf16 %v2858_v25, %v2860_v41  ;;  %v2870_v61 = vsel %vm2396_vm4, %v2864_v50, %v2865_v0  ;;  %v3292_v0 = vld [vmem:[#allocation14 + $0x320] sm:$0xff]  ;;  %v3289_v39 = vld [vmem:[#allocation14 + $0x308] sm:$0xff] }
 0x2be   :  { %v3108_v4 = vpack.c.bf16 %v2875_v57, %v2868_v62  ;;  %v6808_v19 = vcombine.high %v3305_v15, %v3309_v17  ;;  %v6805_v28 = vcombine.low %v3304_v11, %v3308_v35  ;;  %v6807_v26 = vcombine.low %v3305_v15, %v3309_v17  ;;  %v3293_v40 = vld [vmem:[#allocation14 + $0x328] sm:$0xff]  ;;  %v3256_v35 = vld [vmem:[#allocation14 + $0x200] sm:$0xff] }
 0x2bf   :  { %v2896_v63 = vpack.c.bf16 %v2856_v56, %v2862_v52  ;;  %v3107_v1 = vpack.c.bf16 %v2873_v55, %v2870_v61  ;;  %7237 = vmatprep.mubr.bf16.mxu1 %v2895_v18  ;;  %v6798_v50 = vcombine.high %v3296_v49, %v3300_v5  ;;  %v6800_v37 = vcombine.high %v3297_v20, %v3301_v22  ;;  %v3280_v52 = vld [vmem:[#allocation14 + $0x2c0] sm:$0xff]  ;;  %v3281_v57 = vld [vmem:[#allocation14 + $0x2c8] sm:$0xff] }
 0x2c0   :  { %v6797_v44 = vcombine.low %v3296_v49, %v3300_v5  ;;  %v6799_v21 = vcombine.low %v3297_v20, %v3301_v22  ;;  %v6790_v25 = vcombine.high %v3288_v38, %v3292_v0  ;;  %v6792_v41 = vcombine.high %v3289_v39, %v3293_v40  ;;  %v3284_v55 = vld [vmem:[#allocation14 + $0x2e0] sm:$0xff]  ;;  %v3285_v56 = vld [vmem:[#allocation14 + $0x2e8] sm:$0xff]  ;;  %v8396_v5 = vld [vmem:[#allocation14 + $0x3d0] sm:$0xff] }
 0x2c1   :  { %7238 = vmatmul.mubr.bf16.vlgmr.msra.gmra.mxu1 %v2896_v63  ;;  %v6789_v45 = vcombine.low %v3288_v38, %v3292_v0  ;;  %v6791_v47 = vcombine.low %v3289_v39, %v3293_v40  ;;  %v6782_v18 = vcombine.high %v3280_v52, %v3284_v55  ;;  %v6781_v61 = vcombine.low %v3280_v52, %v3284_v55  ;;  %v3261_v15 = vld [vmem:[#allocation14 + $0x228] sm:$0xff]  ;;  %v8398_v20 = vld [vmem:[#allocation14 + $0x3f0] sm:$0xff]  ;;  %v8400_v22 = vld [vmem:[#allocation14 + $0x3d8] sm:$0xff] }
 0x2c2   :  { %7262 = vmatpush3.bf16.msra.mxu1 %v8364_v30  ;;  %7277 = vmatprep.mubr.bf16.mxu1 %v3107_v1  ;;  %v3312_v30 = vld [vmem:[#allocation14 + $0x3c0] sm:$0xff]  ;;  %v6783_v62 = vcombine.low %v3281_v57, %v3285_v56  ;;  %v6784_v63 = vcombine.high %v3281_v57, %v3285_v56  ;;  %v6755_v55 = vld [vmem:[#allocation11 + $0x1] ss:$0 sm:$0xff]  ;;  %v6756_v56 = vld [vmem:[#allocation13 + $0x1] ss:$0 sm:$0xff] }
 0x2c3   :  { %7263 = vmatprep.subr.bf16.mxu1 %v7800_v2  ;;  %v6813_v31 = vcombine.low %v3312_v30, %v3316_v32  ;;  %v6814_v33 = vcombine.high %v3312_v30, %v3316_v32  ;;  %v3272_v1 = vld [vmem:[#allocation14 + $0x280] sm:$0xff]  ;;  %v3265_v32 = vld [vmem:[#allocation14 + $0x248] sm:$0xff] }
 0x2c4   :  { %v3268_v30 = vld [vmem:[#allocation14 + $0x260] sm:$0xff] }
 0x2c5   :  { %3640 = vmatprep.subr.bf16.mxu0 %v6814_v33 }
 0x2c6   :  { %7264 = vmatpush3.bf16.msra.mxu1 %v7800_v2  ;;  %3641 = vmatpush1.bf16.msra.mxu0 %v6813_v31  ;;  %v3276_v2 = vld [vmem:[#allocation14 + $0x2a0] sm:$0xff]  ;;  %v3269_v31 = vld [vmem:[#allocation14 + $0x268] sm:$0xff] }
 0x2c7   :  { %7265 = vmatprep.subr.bf16.mxu1 %v7801_v6  ;;  %3642 = vmatprep.subr.bf16.mxu0 %v6806_v14  ;;  %v6767_v10 = vcombine.low %v3265_v32, %v3269_v31  ;;  %v6768_v11 = vcombine.high %v3265_v32, %v3269_v31 }
 0x2ca   :  { %7266 = vmatpush3.bf16.msra.mxu1 %v7801_v6  ;;  %3643 = vmatpush1.bf16.msra.mxu0 %v6805_v28  ;;  %v6774_v6 = vcombine.high %v3272_v1, %v3276_v2  ;;  %v6817_v28 = vcombine.low %v8396_v5, %v8398_v20 }
 0x2cb   :  { %7267 = vmatprep.subr.bf16.mxu1 %v7802_v58  ;;  %3644 = vmatprep.subr.bf16.mxu0 %v6798_v50  ;;  %v8406_v50 = vld [vmem:[#allocation14 + $0x3f8] sm:$0xff] }
 0x2cc   :  { %v6819_v38 = vcombine.low %v8400_v22, %v8406_v50  ;;  %v6820_v0 = vcombine.high %v8400_v22, %v8406_v50 }
 0x2ce   :  { %7268 = vmatpush3.bf16.msra.mxu1 %v7802_v58  ;;  %3645 = vmatpush1.bf16.msra.mxu0 %v6797_v44  ;;  %v3277_v58 = vld [vmem:[#allocation14 + $0x2a8] sm:$0xff] }
 0x2cf   :  { %7269 = vmatprep.subr.bf16.mxu1 %v7803_v53  ;;  %3646 = vmatprep.subr.bf16.mxu0 %v6790_v25 }
 0x2d2   :  { %7270 = vmatpush3.bf16.msra.mxu1 %v7803_v53  ;;  %3647 = vmatpush1.bf16.msra.mxu0 %v6789_v45  ;;  %v6773_v53 = vcombine.low %v3272_v1, %v3276_v2 }
 0x2d3   :  { %7271 = vmatprep.subr.bf16.mxu1 %v7804_v8  ;;  %3648 = vmatprep.subr.bf16.mxu0 %v6782_v18 }
 0x2d6   :  { %7272 = vmatpush3.bf16.msra.mxu1 %v7804_v8  ;;  %3649 = vmatpush1.bf16.msra.mxu0 %v6781_v61 }
 0x2d7   :  { %7273 = vmatprep.subr.bf16.mxu1 %v7805_v9  ;;  %3650 = vmatprep.subr.bf16.mxu0 %v6774_v6 }
 0x2da   :  { %7274 = vmatpush3.bf16.msra.mxu1 %v7805_v9  ;;  %3651 = vmatpush1.bf16.msra.mxu0 %v6773_v53 }
 0x2db   :  { %7275 = vmatprep.subr.bf16.mxu1 %v7806_v54 }
 0x2de   :  { %7276 = vmatpush3.bf16.msra.mxu1 %v7806_v54  ;;  %v3264_v54 = vld [vmem:[#allocation14 + $0x240] sm:$0xff] }
 0x2df   :  { %3693 = vmatprep.subr.bf16.mxu1 %v6816_v48  ;;  %v6766_v43 = vcombine.high %v3264_v54, %v3268_v30  ;;  %v6765_v33 = vcombine.low %v3264_v54, %v3268_v30  ;;  %v3257_v48 = vld [vmem:[#allocation14 + $0x208] sm:$0xff] }
 0x2e0   :  { %v6759_v49 = vcombine.low %v3257_v48, %v3261_v15 }
 0x2e1   :  { %7278 = vmatmul.mubr.bf16.vlgmr.msra.gmra.mxu1 %v3108_v4  ;;  %v3273_v4 = vld [vmem:[#allocation14 + $0x288] sm:$0xff]  ;;  %3652 = vmatprep.subr.bf16.mxu0 %v6766_v43 }
 0x2e2   :  { %3694 = vmatpush1.bf16.msra.mxu1 %v6815_v12  ;;  %v6775_v8 = vcombine.low %v3273_v4, %v3277_v58  ;;  %v6776_v9 = vcombine.high %v3273_v4, %v3277_v58  ;;  %3653 = vmatpush1.bf16.msra.mxu0 %v6765_v33  ;;  %v3260_v12 = vld [vmem:[#allocation14 + $0x220] sm:$0xff]  ;;  %v4384_v33 = vunpack.c.l.bf16 %v8348_v7 }
 0x2e3   :  { %3695 = vmatprep.subr.bf16.mxu1 %v6808_v19  ;;  %v6758_v14 = vcombine.high %v3256_v35, %v3260_v12  ;;  %v6757_v17 = vcombine.low %v3256_v35, %v3260_v12  ;;  %v6760_v19 = vcombine.high %v3257_v48, %v3261_v15  ;;  %v3306_v48 = vld [vmem:[#allocation14 + $0x390] sm:$0xff]  ;;  %v3307_v15 = vld [vmem:[#allocation14 + $0x398] sm:$0xff] }
 0x2e5   :  { %3654 = vmatprep.subr.bf16.mxu0 %v6758_v14  ;;  %v3310_v14 = vld [vmem:[#allocation14 + $0x3b0] sm:$0xff] }
 0x2e6   :  { %3696 = vmatpush1.bf16.msra.mxu1 %v6807_v26  ;;  %3655 = vmatpush1.bf16.msra.mxu0 %v6757_v17  ;;  %v6818_v26 = vcombine.high %v8396_v5, %v8398_v20  ;;  %v3311_v17 = vld [vmem:[#allocation14 + $0x3b8] sm:$0xff] }
 0x2e7   :  { %3697 = vmatprep.subr.bf16.mxu1 %v6800_v37  ;;  %v9151_v37 = vmov 0   ;;  %v3291_v5 = vld [vmem:[#allocation14 + $0x318] sm:$0xff] }
 0x2e8   :  { %3672 = vmatprep.mubr.bf16.mxu0 %v9151_v37  ;;  %3725 = vmatprep.mubr.bf16.mxu1 %v9151_v37  ;;  %v3295_v20 = vld [vmem:[#allocation14 + $0x338] sm:$0xff] }
 0x2e9   :  { %3746 = vmatprep.subr.bf16.mxu0 %v6818_v26 }
 0x2ea   :  { %3698 = vmatpush1.bf16.msra.mxu1 %v6799_v21 }
 0x2eb   :  { %3699 = vmatprep.subr.bf16.mxu1 %v6792_v41 }
 0x2ee   :  { %3700 = vmatpush1.bf16.msra.mxu1 %v6791_v47 }
 0x2ef   :  { %3701 = vmatprep.subr.bf16.mxu1 %v6784_v63 }
 0x2f2   :  { %3702 = vmatpush1.bf16.msra.mxu1 %v6783_v62 }
 0x2f3   :  { %3703 = vmatprep.subr.bf16.mxu1 %v6776_v9  ;;  %v4386_v9 = vunpack.c.l.bf16 %v8360_v29 }
 0x2f6   :  { %3704 = vmatpush1.bf16.msra.mxu1 %v6775_v8 }
 0x2f7   :  { %3705 = vmatprep.subr.bf16.mxu1 %v6768_v11 }
 0x2fa   :  { %3706 = vmatpush1.bf16.msra.mxu1 %v6767_v10 }
 0x2fb   :  { %3707 = vmatprep.subr.bf16.mxu1 %v6760_v19 }
 0x2fe   :  { %3708 = vmatpush1.bf16.msra.mxu1 %v6759_v49  ;;  %v8425_v49 = vld [vmem:[#allocation14 + $0x350] sm:$0xff] }
 0x2ff   :  { %3799 = vmatprep.subr.bf16.mxu1 %v6820_v0  ;;  %v4387_v0 = vunpack.c.h.bf16 %v8360_v29 }
 0x37d   :  { %v7259_v44 = vpop.f32.mrf.mxu0 }
 0x37f   :  { %v3092_v25 = vpop.f32.mrf.mxu0 }
 0x381   :  { %v7239_v39 = vpop.f32.mrf.mxu1  ;;  %v7260_v47 = vpop.f32.mrf.mxu0 }
 0x382   :  { %v3101_v45 = vadd.f32 %v7259_v44, %v7239_v39  ;;  %v8433_v44 = vld [vmem:[#allocation14 + $0x358] sm:$0xff] }
 0x383   :  { %v2995_v40 = vpop.f32.mrf.mxu1  ;;  %v3095_v2 = vpop.f32.mrf.mxu0 }
 0x384   :  { %v3093_v57 = vadd.f32 %v3092_v25, %v2995_v40  ;;  %v8431_v40 = vld [vmem:[#allocation14 + $0x370] sm:$0xff]  ;;  %v4385_v25 = vunpack.c.h.bf16 %v8348_v7 }
 0x385   :  { %v7240_v21 = vpop.f32.mrf.mxu1  ;;  %v6802_v29 = vcombine.high %v8425_v49, %v8431_v40 }
 0x386   :  { %v3104_v62 = vadd.f32 %v7260_v47, %v7240_v21  ;;  %v8435_v21 = vld [vmem:[#allocation14 + $0x378] sm:$0xff] }
 0x387   :  { %v2998_v41 = vpop.f32.mrf.mxu1 }
 0x388   :  { %v3096_v6 = vadd.f32 %v3095_v2, %v2998_v41  ;;  %v6809_v41 = vcombine.low %v3306_v48, %v3310_v14 }
 0x3a1   :  { %v7279_v52 = vpop.f32.mrf.mxu1 }
 0x3a2   :  { %v3224_v18 = vadd.f32 %v7279_v52, %v3101_v45  ;;  %v6810_v45 = vcombine.high %v3306_v48, %v3310_v14  ;;  %v6803_v14 = vcombine.low %v8433_v44, %v8435_v21 }
 0x3a3   :  { %v3207_v61 = vpop.f32.mrf.mxu1 }
 0x3a4   :  { %v3236_v63 = vmul.f32 %v6755_v55, %v3224_v18  ;;  %v3222_v1 = vadd.f32 %v3207_v61, %v3093_v57  ;;  %v6812_v57 = vcombine.high %v3307_v15, %v3311_v17  ;;  %v6801_v18 = vcombine.low %v8425_v49, %v8431_v40  ;;  %v3282_v40 = vld [vmem:[#allocation14 + $0x2d0] sm:$0xff] }
 0x3a5   :  { %v7280_v4 = vpop.f32.mrf.mxu1  ;;  %v6796_v49 = vcombine.high %v3291_v5, %v3295_v20 }
 0x3a6   :  { %v8414_v58 = vadd.f32 %v6756_v56, %v3236_v63  ;;  %v3234_v53 = vmul.f32 %v6755_v55, %v3222_v1  ;;  %v3225_v8 = vadd.f32 %v7280_v4, %v3104_v62 }
 0x3a7   :  { %v3210_v54 = vpop.f32.mrf.mxu1 }
 0x3a8   :  { %v3252_v30 = vmax.f32 %v8414_v58, 0.0  ;;  %v3246_v32 = vadd.f32 %v6756_v56, %v3234_v53  ;;  %v3237_v43 = vmul.f32 %v6755_v55, %v3225_v8  ;;  %v3223_v31 = vadd.f32 %v3210_v54, %v3096_v6 }
 0x3aa   :  { %v8421_v10 = vadd.f32 %v4386_v9, %v3252_v30  ;;  %v3250_v11 = vmax.f32 %v3246_v32, 0.0  ;;  %v8423_v35 = vadd.f32 %v6756_v56, %v3237_v43  ;;  %v3235_v12 = vmul.f32 %v6755_v55, %v3223_v31  ;;  %v3290_v43 = vld [vmem:[#allocation14 + $0x310] sm:$0xff] }
 0x3ab   :  { %v6811_v55 = vcombine.low %v3307_v15, %v3311_v17 }
 0x3ac   :  { %v8427_v19 = vadd.f32 %v4384_v33, %v3250_v11  ;;  %v3253_v26 = vmax.f32 %v8423_v35, 0.0  ;;  %v3247_v39 = vadd.f32 %v6756_v56, %v3235_v12  ;;  %v6804_v56 = vcombine.high %v8433_v44, %v8435_v21  ;;  %v3294_v35 = vld [vmem:[#allocation14 + $0x330] sm:$0xff]  ;;  %v3283_v21 = vld [vmem:[#allocation14 + $0x2d8] sm:$0xff] }
 0x3ad   :  { %v4406_v61 = vrot.slane %v8421_v10, 1  ;;  %v4394_v2 = vrot.slane %v8421_v10, 7  ;;  %v3286_v44 = vld [vmem:[#allocation14 + $0x2f0] sm:$0xff]  ;;  %v6793_v58 = vcombine.low %v3290_v43, %v3294_v35 }
 0x3ae   :  { %v8438_v47 = vadd.f32 %v4387_v0, %v3253_v26  ;;  %v3251_v52 = vmax.f32 %v3247_v39, 0.0  ;;  %v4392_v4 = vrot.slane %v8427_v19, 7  ;;  %v4404_v53 = vrot.slane %v8427_v19, 1 }
 0x3af   :  { %v8516_v39 = vpack.c.bf16 %v3253_v26, %v3252_v30  ;;  %v6795_v30 = vcombine.low %v3291_v5, %v3295_v20  ;;  %v6786_v26 = vcombine.high %v3282_v40, %v3286_v44  ;;  %v3263_v5 = vld [vmem:[#allocation14 + $0x238] sm:$0xff] }
 0x3b0   :  { %v4407_v7 = vrot.slane %v8438_v47, 1  ;;  %v4417_v62 = vpack.c.bf16 %v8438_v47, %v8421_v10  ;;  %v8450_v63 = vpack.c.bf16 %v3251_v52, %v3250_v11  ;;  %v8452_v1 = vadd.f32 %v4385_v25, %v3251_v52  ;;  %v3287_v25 = vld [vmem:[#allocation14 + $0x2f8] sm:$0xff]  ;;  %v3278_v52 = vld [vmem:[#allocation14 + $0x2b0] sm:$0xff]  ;;  %v7829_v10 = vld [vmem:[#allocation10 + $0x208] sm:$0xff]  }
 0x3b1   :  { %v4395_v6 = vrot.slane %v8438_v47, 7  ;;  %v7830_v47 = vld [vmem:[#allocation10 + $0x200] sm:$0xff]  }
 0x3b2   :  { %3673 = vmatmul.mubr.bf16.vlgmr.msra.gmra.mxu0 %v8450_v63  ;;  %3726 = vmatmul.mubr.bf16.vlgmr.msra.gmra.mxu1 %v8450_v63  ;;  %v4393_v8 = vrot.slane %v8452_v1, 7  ;;  %v4416_v9 = vpack.c.bf16 %v8452_v1, %v8427_v19  ;;  %v4405_v54 = vrot.slane %v8452_v1, 1  ;;  %v8466_v32 = vsel %vm2396_vm4, %v4406_v61, %v4407_v7  ;;  %v7821_v19 = vld [vmem:[#allocation10 + $0x180] sm:$0xff]  }
 0x3b3   :  { %3747 = vmatpush1.bf16.msra.mxu0 %v6817_v28  ;;  %3800 = vmatpush1.bf16.msra.mxu1 %v6819_v38  ;;  %v4399_v31 = vsel %vm2383_vm3, %v4395_v6, %v4392_v4  ;;  %v8478_v33 = vsel %vm2383_vm3, %v4394_v2, %v4395_v6  ;;  %v4411_v11 = vsel %vm2396_vm4, %v4407_v7, %v4404_v53  ;;  %v3266_v7 = vld [vmem:[#allocation14 + $0x250] sm:$0xff]  ;;  %v3271_v6 = vld [vmem:[#allocation14 + $0x278] sm:$0xff] }
 0x3b4   :  { %3748 = vmatprep.subr.bf16.mxu0 %v6810_v45  ;;  %3801 = vmatprep.subr.bf16.mxu1 %v6812_v57  ;;  %v4397_v22 = vsel %vm2383_vm3, %v4393_v8, %v4394_v2  ;;  %v8486_v28 = vsel %vm2383_vm3, %v4392_v4, %v4393_v8  ;;  %v8489_v50 = vmul.f32 %v8274_v59, %v4399_v31  ;;  %v3274_v45 = vld [vmem:[#allocation14 + $0x290] sm:$0xff]  ;;  %v3279_v57 = vld [vmem:[#allocation14 + $0x2b8] sm:$0xff] }
 0x3b5   :  { %3682 = vmatprep.mubr.bf16.mxu0 %v9151_v37  ;;  %3735 = vmatprep.mubr.bf16.mxu1 %v9151_v37  ;;  %v8494_v38 = vmul.f32 %v8276_v3, %v4397_v22  ;;  %v4409_v12 = vsel %vm2396_vm4, %v4405_v54, %v4406_v61  ;;  %v8500_v48 = vsel %vm2396_vm4, %v4404_v53, %v4405_v54  ;;  %v3270_v2 = vld [vmem:[#allocation14 + $0x270] sm:$0xff]  ;;  %v3267_v4 = vld [vmem:[#allocation14 + $0x258] sm:$0xff] }
 0x3b6   :  { %v4435_v59 = vpack.c.bf16 %v8486_v28, %v8489_v50  ;;  %v8507_v15 = vmul.f32 %v8278_v60, %v4409_v12  ;;  %v8510_v17 = vmul.f32 %v8299_v51, %v4411_v11  ;;  %v6794_v3 = vcombine.high %v3290_v43, %v3294_v35  ;;  %v3258_v31 = vld [vmem:[#allocation14 + $0x210] sm:$0xff]  ;;  %v3259_v35 = vld [vmem:[#allocation14 + $0x218] sm:$0xff]  ;;  %v7819_v28 = vld [vmem:[#allocation10 + $0x188] sm:$0xff]  }
 0x3b7   :  { %3749 = vmatpush1.bf16.msra.mxu0 %v6809_v41  ;;  %3802 = vmatpush1.bf16.msra.mxu1 %v6811_v55  ;;  %v4436_v0 = vpack.c.bf16 %v8478_v33, %v8494_v38  ;;  %v6788_v41 = vcombine.high %v3283_v21, %v3287_v25  ;;  %v3275_v55 = vld [vmem:[#allocation14 + $0x298] sm:$0xff]  ;;  %v6777_v53 = vcombine.low %v3274_v45, %v3278_v52  ;;  %v3262_v11 = vld [vmem:[#allocation14 + $0x230] sm:$0xff]  ;;  %v7820_v50 = vld [vmem:[#allocation10 + $0x1c8] sm:$0xff]  }
 0x3b8   :  { %3750 = vmatprep.subr.bf16.mxu0 %v6802_v29  ;;  %3803 = vmatprep.subr.bf16.mxu1 %v6804_v56  ;;  %v4647_v60 = vpack.c.bf16 %v8507_v15, %v8500_v48  ;;  %v4648_v51 = vpack.c.bf16 %v8510_v17, %v8466_v32  ;;  %v6785_v29 = vcombine.low %v3282_v40, %v3286_v44  ;;  %v2837_v40 = vld [vmem:[#allocation14 + $0x1c8] sm:$0xff]  ;;  %v7822_v1 = vld [vmem:[#allocation10 + $0x1c0] sm:$0xff]   ;;  %v7827_v33 = vld [vmem:[#allocation10 + $0x218] sm:$0xff]  }
 0x3b9   :  { %v6787_v56 = vcombine.low %v3283_v21, %v3287_v25  ;;  %v6780_v61 = vcombine.high %v3275_v55, %v3279_v57  ;;  %v6779_v8 = vcombine.low %v3275_v55, %v3279_v57  ;;  %v6770_v54 = vcombine.high %v3266_v7, %v3270_v2  ;;  %v2841_v44 = vld [vmem:[#allocation14 + $0x1e8] sm:$0xff] }
 0x3ba   :  { %3683 = vmatmul.mubr.bf16.gmra.mxu0 %v8516_v39  ;;  %3736 = vmatmul.mubr.bf16.gmra.mxu1 %v8516_v39  ;;  %v6772_v43 = vcombine.high %v3267_v4, %v3271_v6  ;;  %v6769_v20 = vcombine.low %v3266_v7, %v3270_v2  ;;  %v6771_v22 = vcombine.low %v3267_v4, %v3271_v6  ;;  %v2821_v7 = vld [vmem:[#allocation14 + $0x148] sm:$0xff] }
 0x3bb   :  { %3751 = vmatpush1.bf16.msra.mxu0 %v6801_v18  ;;  %3804 = vmatpush1.bf16.msra.mxu1 %v6803_v14  ;;  %v6778_v18 = vcombine.high %v3274_v45, %v3278_v52  ;;  %v6762_v12 = vcombine.high %v3258_v31, %v3262_v11  ;;  %v6764_v14 = vcombine.high %v3259_v35, %v3263_v5  ;;  %v2829_v45 = vld [vmem:[#allocation14 + $0x188] sm:$0xff] }
 0x3bc   :  { %3752 = vmatprep.subr.bf16.mxu0 %v6794_v3  ;;  %3805 = vmatprep.subr.bf16.mxu1 %v6796_v49  ;;  %v2836_v3 = vld [vmem:[#allocation14 + $0x1c0] sm:$0xff]  ;;  %v6761_v21 = vcombine.low %v3258_v31, %v3262_v11  ;;  %v6763_v25 = vcombine.low %v3259_v35, %v3263_v5  ;;  %v2833_v52 = vld [vmem:[#allocation14 + $0x1a8] sm:$0xff]  ;;  %v6879_v57 = vcombine.low %v2837_v40, %v2841_v44 }
 0x3bd   :  { %3778 = vmatprep.mubr.bf16.mxu0 %v9151_v37  ;;  %3831 = vmatprep.mubr.bf16.mxu1 %v9151_v37  ;;  %v2840_v49 = vld [vmem:[#allocation14 + $0x1e0] sm:$0xff]  ;;  %v2825_v2 = vld [vmem:[#allocation14 + $0x168] sm:$0xff]  ;;  %v6871_v6 = vcombine.low %v2829_v45, %v2833_v52 }
 0x3be   :  { %v6877_v55 = vcombine.low %v2836_v3, %v2840_v49  ;;  %v2813_v31 = vld [vmem:[#allocation14 + $0x108] sm:$0xff] }
 0x3bf   :  { %3753 = vmatpush1.bf16.msra.mxu0 %v6793_v58  ;;  %3806 = vmatpush1.bf16.msra.mxu1 %v6795_v30  ;;  %v6878_v58 = vcombine.high %v2836_v3, %v2840_v49  ;;  %v6880_v30 = vcombine.high %v2837_v40, %v2841_v44  ;;  %v2817_v11 = vld [vmem:[#allocation14 + $0x128] sm:$0xff] }
 0x3c0   :  { %3754 = vmatprep.subr.bf16.mxu0 %v6786_v26  ;;  %3807 = vmatprep.subr.bf16.mxu1 %v6788_v41  ;;  %v2828_v26 = vld [vmem:[#allocation14 + $0x180] sm:$0xff]  ;;  %v2809_v3 = vld [vmem:[#allocation14 + $0xe8] sm:$0xff]  ;;  %v6855_v40 = vcombine.low %v2813_v31, %v2817_v11 }
 0x3c1   :  { %v2832_v41 = vld [vmem:[#allocation14 + $0x1a0] sm:$0xff]  ;;  %v7828_v38 = vld [vmem:[#allocation10 + $0x210] sm:$0xff]  }
 0x3c2   :  { %v6869_v4 = vcombine.low %v2828_v26, %v2832_v41 }
 0x3c3   :  { %3755 = vmatpush1.bf16.msra.mxu0 %v6785_v29  ;;  %3808 = vmatpush1.bf16.msra.mxu1 %v6787_v56  ;;  %v6870_v29 = vcombine.high %v2828_v26, %v2832_v41  ;;  %v6872_v56 = vcombine.high %v2829_v45, %v2833_v52  ;;  %v2801_v26 = vld [vmem:[#allocation14 + $0xa8] sm:$0xff] }
 0x3c4   :  { %3756 = vmatprep.subr.bf16.mxu0 %v6778_v18  ;;  %3809 = vmatprep.subr.bf16.mxu1 %v6780_v61  ;;  %v2820_v18 = vld [vmem:[#allocation14 + $0x140] sm:$0xff] }
 0x3c5   :  { %v2824_v61 = vld [vmem:[#allocation14 + $0x160] sm:$0xff] }
 0x3c6   :  { %v6861_v35 = vcombine.low %v2820_v18, %v2824_v61 }
 0x3c7   :  { %3757 = vmatpush1.bf16.msra.mxu0 %v6777_v53  ;;  %3810 = vmatpush1.bf16.msra.mxu1 %v6779_v8  ;;  %v6862_v53 = vcombine.high %v2820_v18, %v2824_v61  ;;  %v6864_v8 = vcombine.high %v2821_v7, %v2825_v2 }
 0x3c8   :  { %3758 = vmatprep.subr.bf16.mxu0 %v6770_v54  ;;  %3811 = vmatprep.subr.bf16.mxu1 %v6772_v43  ;;  %v2812_v54 = vld [vmem:[#allocation14 + $0x100] sm:$0xff] }
 0x3c9   :  { %v2816_v43 = vld [vmem:[#allocation14 + $0x120] sm:$0xff] }
 0x3ca   :  { %v6854_v5 = vcombine.high %v2812_v54, %v2816_v43  ;;  %v6853_v49 = vcombine.low %v2812_v54, %v2816_v43 }
 0x3cb   :  { %3759 = vmatpush1.bf16.msra.mxu0 %v6769_v20  ;;  %3812 = vmatpush1.bf16.msra.mxu1 %v6771_v22  ;;  %v6856_v20 = vcombine.high %v2813_v31, %v2817_v11  ;;  %v2804_v22 = vld [vmem:[#allocation14 + $0xc0] sm:$0xff] }
 0x3cc   :  { %3760 = vmatprep.subr.bf16.mxu0 %v6762_v12  ;;  %3813 = vmatprep.subr.bf16.mxu1 %v6764_v14  ;;  %v2808_v12 = vld [vmem:[#allocation14 + $0xe0] sm:$0xff]  ;;  %v2805_v14 = vld [vmem:[#allocation14 + $0xc8] sm:$0xff] }
 0x3cd   :  { %v6846_v44 = vcombine.high %v2804_v22, %v2808_v12  ;;  %v6845_v41 = vcombine.low %v2804_v22, %v2808_v12 }
 0x3cf   :  { %3761 = vmatpush1.bf16.msra.mxu0 %v6761_v21  ;;  %3814 = vmatpush1.bf16.msra.mxu1 %v6763_v25  ;;  %v6848_v21 = vcombine.high %v2805_v14, %v2809_v3  ;;  %v2796_v25 = vld [vmem:[#allocation14 + $0x80] sm:$0xff] }
 0x3d0   :  { %4172 = vmatprep.subr.bf16.mxu0 %v6878_v58  ;;  %4225 = vmatprep.subr.bf16.mxu1 %v6880_v30  ;;  %v2800_v58 = vld [vmem:[#allocation14 + $0xa0] sm:$0xff]  ;;  %v2797_v30 = vld [vmem:[#allocation14 + $0x88] sm:$0xff] }
 0x3d1   :  { %v6838_v45 = vcombine.high %v2796_v25, %v2800_v58  ;;  %v6840_v52 = vcombine.high %v2797_v30, %v2801_v26  ;;  %v6837_v18 = vcombine.low %v2796_v25, %v2800_v58  ;;  %v6839_v61 = vcombine.low %v2797_v30, %v2801_v26 }
 0x3d2   :  { %3779 = vmatmul.mubr.bf16.vlgmr.msra.gmra.mxu0 %v8450_v63  ;;  %3832 = vmatmul.mubr.bf16.vlgmr.msra.gmra.mxu1 %v8450_v63  ;;  %v6863_v63 = vcombine.low %v2821_v7, %v2825_v2 }
 0x3d3   :  { %4173 = vmatpush1.bf16.msra.mxu0 %v6877_v55  ;;  %4226 = vmatpush1.bf16.msra.mxu1 %v6879_v57  ;;  %v2788_v55 = vld [vmem:[#allocation14 + $0x40] sm:$0xff] }
 0x3d4   :  { %4174 = vmatprep.subr.bf16.mxu0 %v6870_v29  ;;  %4227 = vmatprep.subr.bf16.mxu1 %v6872_v56  ;;  %v2792_v57 = vld [vmem:[#allocation14 + $0x60] sm:$0xff]  ;;  %v2789_v29 = vld [vmem:[#allocation14 + $0x48] sm:$0xff] }
 0x3d5   :  { %3788 = vmatprep.mubr.bf16.mxu0 %v9151_v37  ;;  %3841 = vmatprep.mubr.bf16.mxu1 %v9151_v37  ;;  %v2793_v56 = vld [vmem:[#allocation14 + $0x68] sm:$0xff]  ;;  %v6830_v7 = vcombine.high %v2788_v55, %v2792_v57  ;;  %v6829_v54 = vcombine.low %v2788_v55, %v2792_v57 }
 0x3d6   :  { %v6832_v2 = vcombine.high %v2789_v29, %v2793_v56  ;;  %v6831_v43 = vcombine.low %v2789_v29, %v2793_v56 }
 0x3d7   :  { %4175 = vmatpush1.bf16.msra.mxu0 %v6869_v4  ;;  %4228 = vmatpush1.bf16.msra.mxu1 %v6871_v6  ;;  %v2780_v4 = vld [vmem:[#allocation14] sm:$0xff] }
 0x3d8   :  { %4176 = vmatprep.subr.bf16.mxu0 %v6862_v53  ;;  %4229 = vmatprep.subr.bf16.mxu1 %v6864_v8  ;;  %v2784_v6 = vld [vmem:[#allocation14 + $0x20] sm:$0xff]  ;;  %v2781_v53 = vld [vmem:[#allocation14 + $0x8] sm:$0xff] }
 0x3d9   :  { %v2785_v8 = vld [vmem:[#allocation14 + $0x28] sm:$0xff]  ;;  %v6822_v31 = vcombine.high %v2780_v4, %v2784_v6  ;;  %v6821_v22 = vcombine.low %v2780_v4, %v2784_v6 }
 0x3da   :  { %3789 = vmatmul.mubr.bf16.gmra.mxu0 %v8516_v39  ;;  %3842 = vmatmul.mubr.bf16.gmra.mxu1 %v8516_v39  ;;  %v6847_v39 = vcombine.low %v2805_v14, %v2809_v3  ;;  %v6824_v11 = vcombine.high %v2781_v53, %v2785_v8  ;;  %v6823_v12 = vcombine.low %v2781_v53, %v2785_v8 }
 0x3db   :  { %4177 = vmatpush1.bf16.msra.mxu0 %v6861_v35  ;;  %4230 = vmatpush1.bf16.msra.mxu1 %v6863_v63  ;;  %v2838_v35 = vld [vmem:[#allocation14 + $0x1d0] sm:$0xff] }
 0x3dc   :  { %4178 = vmatprep.subr.bf16.mxu0 %v6854_v5  ;;  %4231 = vmatprep.subr.bf16.mxu1 %v6856_v20  ;;  %v2842_v63 = vld [vmem:[#allocation14 + $0x1f0] sm:$0xff]  ;;  %v2839_v5 = vld [vmem:[#allocation14 + $0x1d8] sm:$0xff] }
 0x3dd   :  { %4204 = vmatprep.mubr.bf16.mxu0 %v9151_v37  ;;  %4257 = vmatprep.mubr.bf16.mxu1 %v9151_v37  ;;  %v2843_v20 = vld [vmem:[#allocation14 + $0x1f8] sm:$0xff]  ;;  %v6882_v14 = vcombine.high %v2838_v35, %v2842_v63  ;;  %v6881_v25 = vcombine.low %v2838_v35, %v2842_v63 }
 0x3de   :  { %v6884_v3 = vcombine.high %v2839_v5, %v2843_v20  ;;  %v6883_v58 = vcombine.low %v2839_v5, %v2843_v20 }
 0x3df   :  { %4179 = vmatpush1.bf16.msra.mxu0 %v6853_v49  ;;  %4232 = vmatpush1.bf16.msra.mxu1 %v6855_v40  ;;  %v2830_v49 = vld [vmem:[#allocation14 + $0x190] sm:$0xff] }
 0x3e0   :  { %4180 = vmatprep.subr.bf16.mxu0 %v6846_v44  ;;  %4233 = vmatprep.subr.bf16.mxu1 %v6848_v21  ;;  %v2834_v40 = vld [vmem:[#allocation14 + $0x1b0] sm:$0xff]  ;;  %v2831_v44 = vld [vmem:[#allocation14 + $0x198] sm:$0xff] }
 0x3e1   :  { %v2835_v21 = vld [vmem:[#allocation14 + $0x1b8] sm:$0xff]  ;;  %v6874_v30 = vcombine.high %v2830_v49, %v2834_v40  ;;  %v6873_v55 = vcombine.low %v2830_v49, %v2834_v40 }
 0x3e2   :  { %v6876_v26 = vcombine.high %v2831_v44, %v2835_v21  ;;  %v6875_v57 = vcombine.low %v2831_v44, %v2835_v21 }
 0x3e3   :  { %4181 = vmatpush1.bf16.msra.mxu0 %v6845_v41  ;;  %4234 = vmatpush1.bf16.msra.mxu1 %v6847_v39  ;;  %v2822_v41 = vld [vmem:[#allocation14 + $0x150] sm:$0xff] }
 0x3e4   :  { %4182 = vmatprep.subr.bf16.mxu0 %v6838_v45  ;;  %4235 = vmatprep.subr.bf16.mxu1 %v6840_v52  ;;  %v2826_v39 = vld [vmem:[#allocation14 + $0x170] sm:$0xff]  ;;  %v2823_v45 = vld [vmem:[#allocation14 + $0x158] sm:$0xff] }
 0x3e5   :  { %v2827_v52 = vld [vmem:[#allocation14 + $0x178] sm:$0xff]  ;;  %v6866_v29 = vcombine.high %v2822_v41, %v2826_v39  ;;  %v6865_v4 = vcombine.low %v2822_v41, %v2826_v39 }
 0x3e6   :  { %v6868_v56 = vcombine.high %v2823_v45, %v2827_v52  ;;  %v6867_v6 = vcombine.low %v2823_v45, %v2827_v52 }
 0x3e7   :  { %4183 = vmatpush1.bf16.msra.mxu0 %v6837_v18  ;;  %4236 = vmatpush1.bf16.msra.mxu1 %v6839_v61  ;;  %v2814_v18 = vld [vmem:[#allocation14 + $0x110] sm:$0xff] }
 0x3e8   :  { %4184 = vmatprep.subr.bf16.mxu0 %v6830_v7  ;;  %4237 = vmatprep.subr.bf16.mxu1 %v6832_v2  ;;  %v2818_v61 = vld [vmem:[#allocation14 + $0x130] sm:$0xff]  ;;  %v2815_v7 = vld [vmem:[#allocation14 + $0x118] sm:$0xff] }
 0x3e9   :  { %v2819_v2 = vld [vmem:[#allocation14 + $0x138] sm:$0xff]  ;;  %v6858_v53 = vcombine.high %v2814_v18, %v2818_v61  ;;  %v6857_v35 = vcombine.low %v2814_v18, %v2818_v61 }
 0x3ea   :  { %v6860_v8 = vcombine.high %v2815_v7, %v2819_v2  ;;  %v6859_v63 = vcombine.low %v2815_v7, %v2819_v2 }
 0x3eb   :  { %4185 = vmatpush1.bf16.msra.mxu0 %v6829_v54  ;;  %4238 = vmatpush1.bf16.msra.mxu1 %v6831_v43  ;;  %v2806_v54 = vld [vmem:[#allocation14 + $0xd0] sm:$0xff] }
 0x3ec   :  { %4186 = vmatprep.subr.bf16.mxu0 %v6822_v31  ;;  %4239 = vmatprep.subr.bf16.mxu1 %v6824_v11  ;;  %v2810_v43 = vld [vmem:[#allocation14 + $0xf0] sm:$0xff]  ;;  %v2807_v31 = vld [vmem:[#allocation14 + $0xd8] sm:$0xff] }
 0x3ed   :  { %v2811_v11 = vld [vmem:[#allocation14 + $0xf8] sm:$0xff]  ;;  %v6850_v5 = vcombine.high %v2806_v54, %v2810_v43  ;;  %v6849_v49 = vcombine.low %v2806_v54, %v2810_v43  ;;  %v7809_v54 = vld [vmem:[#allocation10 + $0x1b0] sm:$0xff]  }
 0x3ee   :  { %v6852_v20 = vcombine.high %v2807_v31, %v2811_v11  ;;  %v6851_v40 = vcombine.low %v2807_v31, %v2811_v11  ;;  %v7810_v43 = vld [vmem:[#allocation10 + $0x1f0] sm:$0xff]   ;;  %v7811_v31 = vld [vmem:[#allocation10 + $0x1a8] sm:$0xff]  }
 0x3ef   :  { %4187 = vmatpush1.bf16.msra.mxu0 %v6821_v22  ;;  %4240 = vmatpush1.bf16.msra.mxu1 %v6823_v12  ;;  %v2798_v22 = vld [vmem:[#allocation14 + $0x90] sm:$0xff]  ;;  %v7812_v11 = vld [vmem:[#allocation10 + $0x1e8] sm:$0xff]  }
 0x3f0   :  { %4278 = vmatprep.subr.bf16.mxu0 %v6882_v14  ;;  %4331 = vmatprep.subr.bf16.mxu1 %v6884_v3  ;;  %v2802_v12 = vld [vmem:[#allocation14 + $0xb0] sm:$0xff]  ;;  %v2799_v14 = vld [vmem:[#allocation14 + $0x98] sm:$0xff] }
 0x3f1   :  { %v2803_v3 = vld [vmem:[#allocation14 + $0xb8] sm:$0xff]  ;;  %v6842_v44 = vcombine.high %v2798_v22, %v2802_v12  ;;  %v6841_v41 = vcombine.low %v2798_v22, %v2802_v12  ;;  %v7825_v22 = vld [vmem:[#allocation10 + $0x228] sm:$0xff]  }
 0x3f2   :  { %4205 = vmatmul.mubr.bf16.vlgmr.msra.gmra.mxu0 %v8373_v13  ;;  %4258 = vmatmul.mubr.bf16.vlgmr.msra.gmra.mxu1 %v8373_v13  ;;  %v6844_v21 = vcombine.high %v2799_v14, %v2803_v3  ;;  %v6843_v39 = vcombine.low %v2799_v14, %v2803_v3  ;;  %v7826_v12 = vld [vmem:[#allocation10 + $0x220] sm:$0xff]   ;;  %v4856_v14 = vld [vmem:[#allocation14 + $0x5e0] sm:$0xff]  ;;  %v4853_v3 = vld [vmem:[#allocation14 + $0x5c8] sm:$0xff] }
 0x3f3   :  { %4279 = vmatpush1.bf16.msra.mxu0 %v6881_v25  ;;  %4332 = vmatpush1.bf16.msra.mxu1 %v6883_v58  ;;  %v2790_v25 = vld [vmem:[#allocation14 + $0x50] sm:$0xff] }
 0x3f4   :  { %4280 = vmatprep.subr.bf16.mxu0 %v6874_v30  ;;  %4333 = vmatprep.subr.bf16.mxu1 %v6876_v26  ;;  %v2794_v58 = vld [vmem:[#allocation14 + $0x70] sm:$0xff]  ;;  %v2791_v30 = vld [vmem:[#allocation14 + $0x58] sm:$0xff] }
 0x3f5   :  { %4214 = vmatprep.mubr.bf16.mxu0 %v9151_v37  ;;  %4267 = vmatprep.mubr.bf16.mxu1 %v9151_v37  ;;  %v2795_v26 = vld [vmem:[#allocation14 + $0x78] sm:$0xff]  ;;  %v6834_v45 = vcombine.high %v2790_v25, %v2794_v58  ;;  %v6833_v18 = vcombine.low %v2790_v25, %v2794_v58  ;;  %v4848_v25 = vld [vmem:[#allocation14 + $0x5a0] sm:$0xff]  ;;  %v4845_v58 = vld [vmem:[#allocation14 + $0x588] sm:$0xff] }
 0x3f6   :  { %v6836_v52 = vcombine.high %v2791_v30, %v2795_v26  ;;  %v6835_v61 = vcombine.low %v2791_v30, %v2795_v26  ;;  %v4849_v30 = vld [vmem:[#allocation14 + $0x5a8] sm:$0xff]  ;;  %v4836_v26 = vld [vmem:[#allocation14 + $0x540] sm:$0xff] }
 0x3f7   :  { %4281 = vmatpush1.bf16.msra.mxu0 %v6873_v55  ;;  %4334 = vmatpush1.bf16.msra.mxu1 %v6875_v57  ;;  %v2782_v55 = vld [vmem:[#allocation14 + $0x10] sm:$0xff] }
 0x3f8   :  { %4282 = vmatprep.subr.bf16.mxu0 %v6866_v29  ;;  %4335 = vmatprep.subr.bf16.mxu1 %v6868_v56  ;;  %v2786_v57 = vld [vmem:[#allocation14 + $0x30] sm:$0xff]  ;;  %v2783_v29 = vld [vmem:[#allocation14 + $0x18] sm:$0xff] }
 0x3f9   :  { %v2787_v56 = vld [vmem:[#allocation14 + $0x38] sm:$0xff]  ;;  %v6826_v7 = vcombine.high %v2782_v55, %v2786_v57 }
 0x3fa   :  { %4215 = vmatmul.mubr.bf16.gmra.mxu0 %v8370_v16  ;;  %4268 = vmatmul.mubr.bf16.gmra.mxu1 %v8370_v16  ;;  %v6828_v2 = vcombine.high %v2783_v29, %v2787_v56 }
 0x3fb   :  { %4283 = vmatpush1.bf16.msra.mxu0 %v6865_v4  ;;  %4336 = vmatpush1.bf16.msra.mxu1 %v6867_v6  ;;  %v6825_v4 = vcombine.low %v2782_v55, %v2786_v57  ;;  %v6827_v6 = vcombine.low %v2783_v29, %v2787_v56  ;;  %v6961_v56 = vcombine.low %v4845_v58, %v4849_v30 }
 0x3fc   :  { %4284 = vmatprep.subr.bf16.mxu0 %v6858_v53  ;;  %4337 = vmatprep.subr.bf16.mxu1 %v6860_v8  ;;  %v7807_v53 = vld [vmem:[#allocation10 + $0x1b8] sm:$0xff]  }
 0x3fd   :  { %4310 = vmatprep.mubr.bf16.mxu0 %v9151_v37  ;;  %4363 = vmatprep.mubr.bf16.mxu1 %v9151_v37  ;;  %v7808_v8 = vld [vmem:[#allocation10 + $0x1f8] sm:$0xff]  }
 0x3ff   :  { %4285 = vmatpush1.bf16.msra.mxu0 %v6857_v35  ;;  %4338 = vmatpush1.bf16.msra.mxu1 %v6859_v63  ;;  %v7813_v35 = vld [vmem:[#allocation10 + $0x1a0] sm:$0xff]  }
 0x400   :  { %4286 = vmatprep.subr.bf16.mxu0 %v6850_v5  ;;  %4339 = vmatprep.subr.bf16.mxu1 %v6852_v20  ;;  %v7814_v63 = vld [vmem:[#allocation10 + $0x1e0] sm:$0xff]   ;;  %v7816_v5 = vld [vmem:[#allocation10 + $0x1d8] sm:$0xff]   ;;  %v7817_v20 = vld [vmem:[#allocation10 + $0x190] sm:$0xff]  }
 0x403   :  { %4287 = vmatpush1.bf16.msra.mxu0 %v6849_v49  ;;  %4340 = vmatpush1.bf16.msra.mxu1 %v6851_v40 }
 0x404   :  { %4288 = vmatprep.subr.bf16.mxu0 %v6842_v44  ;;  %4341 = vmatprep.subr.bf16.mxu1 %v6844_v21  ;;  %v4857_v44 = vld [vmem:[#allocation14 + $0x5e8] sm:$0xff]  ;;  %v4844_v21 = vld [vmem:[#allocation14 + $0x580] sm:$0xff] }
 0x405   :  { %v6969_v32 = vcombine.low %v4853_v3, %v4857_v44  ;;  %v6970_v17 = vcombine.high %v4853_v3, %v4857_v44  ;;  %v6959_v29 = vcombine.low %v4844_v21, %v4848_v25  ;;  %v4812_v3 = vld [vmem:[#allocation14 + $0x480] sm:$0xff]  ;;  %v4813_v44 = vld [vmem:[#allocation14 + $0x488] sm:$0xff] }
 0x407   :  { %4289 = vmatpush1.bf16.msra.mxu0 %v6841_v41  ;;  %4342 = vmatpush1.bf16.msra.mxu1 %v6843_v39  ;;  %v6962_v41 = vcombine.high %v4845_v58, %v4849_v30  ;;  %v4840_v39 = vld [vmem:[#allocation14 + $0x560] sm:$0xff] }
 0x408   :  { %4290 = vmatprep.subr.bf16.mxu0 %v6834_v45  ;;  %4343 = vmatprep.subr.bf16.mxu1 %v6836_v52  ;;  %v4837_v45 = vld [vmem:[#allocation14 + $0x548] sm:$0xff]  ;;  %v4804_v30 = vld [vmem:[#allocation14 + $0x440] sm:$0xff] }
 0x409   :  { %v4841_v52 = vld [vmem:[#allocation14 + $0x568] sm:$0xff] }
 0x40b   :  { %4291 = vmatpush1.bf16.msra.mxu0 %v6833_v18  ;;  %4344 = vmatpush1.bf16.msra.mxu1 %v6835_v61  ;;  %v6952_v18 = vcombine.high %v4836_v26, %v4840_v39  ;;  %v6954_v61 = vcombine.high %v4837_v45, %v4841_v52 }
 0x40c   :  { %4292 = vmatprep.subr.bf16.mxu0 %v6826_v7  ;;  %4345 = vmatprep.subr.bf16.mxu1 %v6828_v2  ;;  %v4828_v7 = vld [vmem:[#allocation14 + $0x500] sm:$0xff] }
 0x40d   :  { %v4832_v2 = vld [vmem:[#allocation14 + $0x520] sm:$0xff] }
 0x40f   :  { %4293 = vmatpush1.bf16.msra.mxu0 %v6825_v4  ;;  %4346 = vmatpush1.bf16.msra.mxu1 %v6827_v6  ;;  %v4829_v4 = vld [vmem:[#allocation14 + $0x508] sm:$0xff] }
 0x410   :  { %7281 = vmatprep.subr.bf16.mxu0 %v7807_v53  ;;  %7301 = vmatprep.subr.bf16.mxu1 %v7808_v8  ;;  %v4833_v6 = vld [vmem:[#allocation14 + $0x528] sm:$0xff] }
 0x412   :  { %4311 = vmatmul.mubr.bf16.vlgmr.msra.gmra.mxu0 %v8373_v13  ;;  %4364 = vmatmul.mubr.bf16.vlgmr.msra.gmra.mxu1 %v8373_v13  ;;  %v7815_v13 = vld [vmem:[#allocation10 + $0x198] sm:$0xff]  }
 0x413   :  { %7282 = vmatpush3.bf16.msra.mxu0 %v7807_v53  ;;  %7302 = vmatpush3.bf16.msra.mxu1 %v7808_v8 }
 0x414   :  { %7283 = vmatprep.subr.bf16.mxu0 %v7809_v54  ;;  %7303 = vmatprep.subr.bf16.mxu1 %v7810_v43 }
 0x415   :  { %4320 = vmatprep.mubr.bf16.mxu0 %v9151_v37  ;;  %4373 = vmatprep.mubr.bf16.mxu1 %v9151_v37 }
 0x417   :  { %7284 = vmatpush3.bf16.msra.mxu0 %v7809_v54  ;;  %7304 = vmatpush3.bf16.msra.mxu1 %v7810_v43  ;;  %v6951_v54 = vcombine.low %v4836_v26, %v4840_v39  ;;  %v6953_v43 = vcombine.low %v4837_v45, %v4841_v52  ;;  %v4808_v26 = vld [vmem:[#allocation14 + $0x460] sm:$0xff]  ;;  %v4809_v45 = vld [vmem:[#allocation14 + $0x468] sm:$0xff] }
 0x418   :  { %7285 = vmatprep.subr.bf16.mxu0 %v7811_v31  ;;  %7305 = vmatprep.subr.bf16.mxu1 %v7812_v11  ;;  %v6920_v39 = vcombine.high %v4804_v30, %v4808_v26  ;;  %v6919_v52 = vcombine.low %v4804_v30, %v4808_v26 }
 0x41a   :  { %4321 = vmatmul.mubr.bf16.gmra.mxu0 %v8370_v16  ;;  %4374 = vmatmul.mubr.bf16.gmra.mxu1 %v8370_v16  ;;  %v7818_v16 = vld [vmem:[#allocation10 + $0x1d0] sm:$0xff]  }
 0x41b   :  { %7286 = vmatpush3.bf16.msra.mxu0 %v7811_v31  ;;  %7297 = vmatprep.mubr.bf16.mxu0 %v4435_v59  ;;  %v7824_v59 = vld [vmem:[#allocation10 + $0x230] sm:$0xff]   ;;  %v6944_v31 = vcombine.high %v4828_v7, %v4832_v2 }
 0x41c   :  { %7306 = vmatpush3.bf16.msra.mxu1 %v7812_v11  ;;  %7317 = vmatprep.mubr.bf16.mxu1 %v4416_v9  ;;  %v7823_v9 = vld [vmem:[#allocation10 + $0x238] sm:$0xff]   ;;  %v6946_v11 = vcombine.high %v4829_v4, %v4833_v6 }
 0x41d   :  { %7287 = vmatprep.subr.bf16.mxu0 %v7813_v35  ;;  %7307 = vmatprep.subr.bf16.mxu1 %v7814_v63 }
 0x41f   :  { %7288 = vmatpush3.bf16.msra.mxu0 %v7813_v35 }
 0x420   :  { %7308 = vmatpush3.bf16.msra.mxu1 %v7814_v63  ;;  %7289 = vmatprep.subr.bf16.mxu0 %v7815_v13 }
 0x421   :  { %7309 = vmatprep.subr.bf16.mxu1 %v7816_v5 }
 0x423   :  { %7290 = vmatpush3.bf16.msra.mxu0 %v7815_v13  ;;  %v6943_v13 = vcombine.low %v4828_v7, %v4832_v2  ;;  %v4796_v7 = vld [vmem:[#allocation14 + $0x400] sm:$0xff] }
 0x424   :  { %7310 = vmatpush3.bf16.msra.mxu1 %v7816_v5  ;;  %7291 = vmatprep.subr.bf16.mxu0 %v7817_v20  ;;  %v6945_v5 = vcombine.low %v4829_v4, %v4833_v6  ;;  %v4800_v2 = vld [vmem:[#allocation14 + $0x420] sm:$0xff]  ;;  %v4797_v4 = vld [vmem:[#allocation14 + $0x408] sm:$0xff] }
 0x425   :  { %7311 = vmatprep.subr.bf16.mxu1 %v7818_v16  ;;  %v6912_v6 = vcombine.high %v4796_v7, %v4800_v2 }
 0x427   :  { %7292 = vmatpush3.bf16.msra.mxu0 %v7817_v20 }
 0x428   :  { %7312 = vmatpush3.bf16.msra.mxu1 %v7818_v16  ;;  %7293 = vmatprep.subr.bf16.mxu0 %v7819_v28 }
 0x429   :  { %7313 = vmatprep.subr.bf16.mxu1 %v7820_v50 }
 0x42b   :  { %7294 = vmatpush3.bf16.msra.mxu0 %v7819_v28 }
 0x42c   :  { %7314 = vmatpush3.bf16.msra.mxu1 %v7820_v50  ;;  %7295 = vmatprep.subr.bf16.mxu0 %v7821_v19 }
 0x42d   :  { %7315 = vmatprep.subr.bf16.mxu1 %v7822_v1 }
 0x42f   :  { %7296 = vmatpush3.bf16.msra.mxu0 %v7821_v19  ;;  %v4820_v19 = vld [vmem:[#allocation14 + $0x4c0] sm:$0xff] }
 0x430   :  { %7316 = vmatpush3.bf16.msra.mxu1 %v7822_v1  ;;  %7321 = vmatprep.subr.bf16.mxu0 %v7823_v9  ;;  %v4824_v1 = vld [vmem:[#allocation14 + $0x4e0] sm:$0xff] }
 0x432   :  { %7298 = vmatmul.mubr.bf16.vlgmr.msra.gmra.mxu0 %v4436_v0 }
 0x433   :  { %7318 = vmatmul.mubr.bf16.vlgmr.msra.gmra.mxu1 %v4417_v62  ;;  %7322 = vmatpush3.bf16.msra.mxu0 %v7823_v9  ;;  %v4821_v9 = vld [vmem:[#allocation14 + $0x4c8] sm:$0xff] }
 0x434   :  { %7337 = vmatprep.mubr.bf16.mxu0 %v4647_v60  ;;  %7323 = vmatprep.subr.bf16.mxu0 %v7824_v59  ;;  %v4852_v60 = vld [vmem:[#allocation14 + $0x5c0] sm:$0xff] }
 0x435   :  { %5212 = vmatprep.mubr.bf16.mxu1 %v9151_v37  ;;  %v6967_v49 = vcombine.low %v4852_v60, %v4856_v14  ;;  %v6968_v40 = vcombine.high %v4852_v60, %v4856_v14 }
 0x437   :  { %7324 = vmatpush3.bf16.msra.mxu0 %v7824_v59  ;;  %5180 = vmatprep.subr.bf16.mxu1 %v6968_v40 }
 0x438   :  { %7325 = vmatprep.subr.bf16.mxu0 %v7825_v22  ;;  %5181 = vmatpush1.bf16.msra.mxu1 %v6967_v49  ;;  %v4816_v49 = vld [vmem:[#allocation14 + $0x4a0] sm:$0xff] }
 0x439   :  { %v6928_v40 = vcombine.high %v4812_v3, %v4816_v49 }
 0x43b   :  { %7326 = vmatpush3.bf16.msra.mxu0 %v7825_v22 }
 0x43c   :  { %7327 = vmatprep.subr.bf16.mxu0 %v7826_v12 }
 0x43f   :  { %7328 = vmatpush3.bf16.msra.mxu0 %v7826_v12  ;;  %v6936_v12 = vcombine.high %v4820_v19, %v4824_v1 }
 0x440   :  { %7329 = vmatprep.subr.bf16.mxu0 %v7827_v33 }
 0x443   :  { %7330 = vmatpush3.bf16.msra.mxu0 %v7827_v33  ;;  %v4825_v33 = vld [vmem:[#allocation14 + $0x4e8] sm:$0xff] }
 0x444   :  { %7331 = vmatprep.subr.bf16.mxu0 %v7828_v38 }
 0x447   :  { %7332 = vmatpush3.bf16.msra.mxu0 %v7828_v38  ;;  %v6935_v38 = vcombine.low %v4820_v19, %v4824_v1  ;;  %v8616_v19 = vld [vmem:[#allocation14 + $0x5d0] sm:$0xff] }
 0x448   :  { %7333 = vmatprep.subr.bf16.mxu0 %v7829_v10  ;;  %v8618_v1 = vld [vmem:[#allocation14 + $0x5f0] sm:$0xff] }
 0x44b   :  { %7334 = vmatpush3.bf16.msra.mxu0 %v7829_v10  ;;  %v6937_v10 = vcombine.low %v4821_v9, %v4825_v33 }
 0x44c   :  { %7335 = vmatprep.subr.bf16.mxu0 %v7830_v47 }
 0x44f   :  { %7336 = vmatpush3.bf16.msra.mxu0 %v7830_v47  ;;  %v6938_v47 = vcombine.high %v4821_v9, %v4825_v33  ;;  %v8620_v9 = vld [vmem:[#allocation14 + $0x5d8] sm:$0xff]  ;;  %v6972_v33 = vcombine.high %v8616_v19, %v8618_v1 }
 0x450   :  { %5233 = vmatprep.subr.bf16.mxu0 %v6970_v17 }
 0x452   :  { %7338 = vmatmul.mubr.bf16.vlgmr.msra.gmra.mxu0 %v4648_v51  ;;  %v6960_v51 = vcombine.high %v4844_v21, %v4848_v25  ;;  %v4817_v21 = vld [vmem:[#allocation14 + $0x4a8] sm:$0xff]  ;;  %v6927_v25 = vcombine.low %v4812_v3, %v4816_v49 }
 0x453   :  { %5265 = vmatprep.mubr.bf16.mxu0 %v9151_v37  ;;  %5234 = vmatpush1.bf16.msra.mxu0 %v6969_v32  ;;  %v6929_v32 = vcombine.low %v4813_v44, %v4817_v21  ;;  %v6930_v17 = vcombine.high %v4813_v44, %v4817_v21 }
 0x454   :  { %5182 = vmatprep.subr.bf16.mxu1 %v6960_v51  ;;  %5235 = vmatprep.subr.bf16.mxu0 %v6962_v41  ;;  %v4805_v41 = vld [vmem:[#allocation14 + $0x448] sm:$0xff] }
 0x455   :  { %5183 = vmatpush1.bf16.msra.mxu1 %v6959_v29  ;;  %v6921_v29 = vcombine.low %v4805_v41, %v4809_v45 }
 0x456   :  { %5184 = vmatprep.subr.bf16.mxu1 %v6952_v18 }
 0x457   :  { %5236 = vmatpush1.bf16.msra.mxu0 %v6961_v56  ;;  %v6922_v56 = vcombine.high %v4805_v41, %v4809_v45 }
 0x458   :  { %5237 = vmatprep.subr.bf16.mxu0 %v6954_v61 }
 0x459   :  { %5185 = vmatpush1.bf16.msra.mxu1 %v6951_v54  ;;  %v4801_v54 = vld [vmem:[#allocation14 + $0x428] sm:$0xff] }
 0x45a   :  { %5186 = vmatprep.subr.bf16.mxu1 %v6944_v31  ;;  %v6913_v31 = vcombine.low %v4797_v4, %v4801_v54 }
 0x45b   :  { %5238 = vmatpush1.bf16.msra.mxu0 %v6953_v43  ;;  %v6911_v43 = vcombine.low %v4796_v7, %v4800_v2 }
 0x45c   :  { %5239 = vmatprep.subr.bf16.mxu0 %v6946_v11  ;;  %v6914_v11 = vcombine.high %v4797_v4, %v4801_v54 }
 0x45d   :  { %5187 = vmatpush1.bf16.msra.mxu1 %v6943_v13 }
 0x45e   :  { %5188 = vmatprep.subr.bf16.mxu1 %v6936_v12 }
 0x45f   :  { %5240 = vmatpush1.bf16.msra.mxu0 %v6945_v5 }
 0x460   :  { %5241 = vmatprep.subr.bf16.mxu0 %v6938_v47 }
 0x461   :  { %5189 = vmatpush1.bf16.msra.mxu1 %v6935_v38  ;;  %v8626_v38 = vld [vmem:[#allocation14 + $0x5f8] sm:$0xff] }
 0x462   :  { %5190 = vmatprep.subr.bf16.mxu1 %v6928_v40  ;;  %v6974_v47 = vcombine.high %v8620_v9, %v8626_v38 }
 0x463   :  { %5242 = vmatpush1.bf16.msra.mxu0 %v6937_v10 }
 0x464   :  { %5243 = vmatprep.subr.bf16.mxu0 %v6930_v17 }
 0x465   :  { %5191 = vmatpush1.bf16.msra.mxu1 %v6927_v25 }
 0x466   :  { %5192 = vmatprep.subr.bf16.mxu1 %v6920_v39 }
 0x467   :  { %5244 = vmatpush1.bf16.msra.mxu0 %v6929_v32 }
 0x468   :  { %5245 = vmatprep.subr.bf16.mxu0 %v6922_v56 }
 0x469   :  { %5193 = vmatpush1.bf16.msra.mxu1 %v6919_v52 }
 0x46a   :  { %5194 = vmatprep.subr.bf16.mxu1 %v6912_v6 }
 0x46b   :  { %5246 = vmatpush1.bf16.msra.mxu0 %v6921_v29 }
 0x46c   :  { %5247 = vmatprep.subr.bf16.mxu0 %v6914_v11 }
 0x46d   :  { %5195 = vmatpush1.bf16.msra.mxu1 %v6911_v43 }
 0x46e   :  { %5286 = vmatprep.subr.bf16.mxu1 %v6972_v33 }
 0x46f   :  { %5248 = vmatpush1.bf16.msra.mxu0 %v6913_v31 }
 0x470   :  { %5339 = vmatprep.subr.bf16.mxu0 %v6974_v47 }
 0x472   :  { %v8568_v62 = vpop.f32.mrf.mxu0  ;;  %v8570_v48 = vpop.f32.mrf.mxu1 }
 0x474   :  { %v8572_v15 = vpop.f32.mrf.mxu0  ;;  %v8574_v0 = vpop.f32.mrf.mxu1 }
 0x476   :  { %v8576_v55 = vpop.f32.mrf.mxu0  ;;  %v8578_v57 = vpop.f32.mrf.mxu1 }
 0x478   :  { %v8580_v53 = vpop.f32.mrf.mxu0  ;;  %v8582_v8 = vpop.f32.mrf.mxu1 }
 0x47a   :  { %v8584_v35 = vpop.f32.mrf.mxu0  ;;  %v8586_v63 = vpop.f32.mrf.mxu1 }
 0x47c   :  { %v8588_v20 = vpop.f32.mrf.mxu0  ;;  %v8590_v16 = vpop.f32.mrf.mxu1 }
 0x47e   :  { %v8592_v28 = vpop.f32.mrf.mxu0  ;;  %v8594_v50 = vpop.f32.mrf.mxu1 }
 0x480   :  { %v8596_v59 = vpop.f32.mrf.mxu0  ;;  %v8598_v22 = vpop.f32.mrf.mxu1 }
 0x492   :  { %v8600_v60 = vpop.f32.mrf.mxu0  ;;  %v8602_v14 = vpop.f32.mrf.mxu1 }
 0x494   :  { %v8604_v51 = vpop.f32.mrf.mxu0  ;;  %v8606_v58 = vpop.f32.mrf.mxu1 }
 0x496   :  { %v8608_v18 = vpop.f32.mrf.mxu0  ;;  %v8610_v61 = vpop.f32.mrf.mxu1 }
 0x498   :  { %v8612_v13 = vpop.f32.mrf.mxu0  ;;  %v8614_v5 = vpop.f32.mrf.mxu1 }
 0x49a   :  { %v3790_v3 = vpop.f32.mrf.mxu0  ;;  %v3843_v49 = vpop.f32.mrf.mxu1 }
 0x49c   :  { %v3792_v40 = vpop.f32.mrf.mxu0  ;;  %v3845_v44 = vpop.f32.mrf.mxu1 }
 0x49e   :  { %v3794_v21 = vpop.f32.mrf.mxu0  ;;  %v3847_v25 = vpop.f32.mrf.mxu1 }
 0x4a0   :  { %v8632_v32 = vpop.f32.mrf.mxu0  ;;  %v8634_v17 = vpop.f32.mrf.mxu1 }
 0x4b2   :  { %v4206_v30 = vpop.f32.mrf.mxu0  ;;  %v4259_v26 = vpop.f32.mrf.mxu1 }
 0x4b3   :  { %v8637_v41 = vadd.f32 %v4206_v30, %v8568_v62  ;;  %v8640_v39 = vadd.f32 %v4259_v26, %v8570_v48 }
 0x4b4   :  { %v4208_v45 = vpop.f32.mrf.mxu0  ;;  %v4261_v52 = vpop.f32.mrf.mxu1 }
 0x4b5   :  { %v8643_v29 = vadd.f32 %v4208_v45, %v8572_v15  ;;  %v8646_v56 = vadd.f32 %v4261_v52, %v8574_v0 }
 0x4b6   :  { %v4210_v7 = vpop.f32.mrf.mxu0  ;;  %v4263_v2 = vpop.f32.mrf.mxu1 }
 0x4b7   :  { %v8649_v4 = vadd.f32 %v4210_v7, %v8576_v55  ;;  %v8652_v6 = vadd.f32 %v4263_v2, %v8578_v57 }
 0x4b8   :  { %v4212_v62 = vpop.f32.mrf.mxu0  ;;  %v4265_v54 = vpop.f32.mrf.mxu1 }
 0x4b9   :  { %v8655_v48 = vadd.f32 %v4212_v62, %v8580_v53  ;;  %v8658_v43 = vadd.f32 %v4265_v54, %v8582_v8 }
 0x4ba   :  { %v4216_v15 = vpop.f32.mrf.mxu0  ;;  %v4269_v31 = vpop.f32.mrf.mxu1 }
 0x4bb   :  { %v8661_v0 = vadd.f32 %v4216_v15, %v8584_v35  ;;  %v8664_v11 = vadd.f32 %v4269_v31, %v8586_v63 }
 0x4bc   :  { %v4218_v55 = vpop.f32.mrf.mxu0  ;;  %v4271_v33 = vpop.f32.mrf.mxu1 }
 0x4bd   :  { %v8667_v57 = vadd.f32 %v4218_v55, %v8588_v20  ;;  %v8670_v47 = vadd.f32 %v4271_v33, %v8590_v16 }
 0x4be   :  { %v4220_v53 = vpop.f32.mrf.mxu0  ;;  %v4273_v30 = vpop.f32.mrf.mxu1 }
 0x4bf   :  { %v8673_v8 = vadd.f32 %v4220_v53, %v8592_v28  ;;  %v8676_v26 = vadd.f32 %v4273_v30, %v8594_v50 }
 0x4c0   :  { %v4222_v35 = vpop.f32.mrf.mxu0  ;;  %v4275_v45 = vpop.f32.mrf.mxu1 }
 0x4c1   :  { %v8679_v63 = vadd.f32 %v4222_v35, %v8596_v59  ;;  %v8682_v52 = vadd.f32 %v4275_v45, %v8598_v22 }
 0x4d2   :  { %v4312_v20 = vpop.f32.mrf.mxu0  ;;  %v4365_v7 = vpop.f32.mrf.mxu1 }
 0x4d3   :  { %v8685_v16 = vadd.f32 %v4312_v20, %v8600_v60  ;;  %v8688_v2 = vadd.f32 %v4365_v7, %v8602_v14 }
 0x4d4   :  { %v4314_v28 = vpop.f32.mrf.mxu0  ;;  %v4367_v62 = vpop.f32.mrf.mxu1 }
 0x4d5   :  { %9153 = vst [vmem:[#allocation23_spill] sm:$0xff] %v8688_v2  ;;  %v8691_v50 = vadd.f32 %v4314_v28, %v8604_v51  ;;  %v8694_v54 = vadd.f32 %v4367_v62, %v8606_v58 }
 0x4d6   :  { %v4316_v59 = vpop.f32.mrf.mxu0  ;;  %v4369_v15 = vpop.f32.mrf.mxu1 }
 0x4d7   :  { %9154 = vst [vmem:[#allocation24_spill] sm:$0xff] %v8691_v50  ;;  %9155 = vst [vmem:[#allocation25_spill] sm:$0xff] %v8694_v54  ;;  %v8697_v22 = vadd.f32 %v4316_v59, %v8608_v18  ;;  %v8700_v31 = vadd.f32 %v4369_v15, %v8610_v61 }
 0x4d8   :  { %v4318_v60 = vpop.f32.mrf.mxu0  ;;  %v4371_v55 = vpop.f32.mrf.mxu1 }
 0x4d9   :  { %9156 = vst [vmem:[#allocation26_spill] sm:$0xff] %v8697_v22  ;;  %9157 = vst [vmem:[#allocation27_spill] sm:$0xff] %v8700_v31  ;;  %v8703_v14 = vadd.f32 %v4318_v60, %v8612_v13  ;;  %v8706_v33 = vadd.f32 %v4371_v55, %v8614_v5  ;;  %v4846_v31 = vld [vmem:[#allocation14 + $0x590] sm:$0xff]  ;;  %v4851_v22 = vld [vmem:[#allocation14 + $0x5b8] sm:$0xff] }
 0x4da   :  { %v4322_v51 = vpop.f32.mrf.mxu0  ;;  %v4375_v53 = vpop.f32.mrf.mxu1 }
 0x4db   :  { %9158 = vst [vmem:[#allocation28_spill] sm:$0xff] %v8703_v14  ;;  %9159 = vst [vmem:[#allocation29_spill] sm:$0xff] %v8706_v33  ;;  %v8708_v58 = vadd.f32 %v4322_v51, %v3790_v3  ;;  %v8710_v30 = vadd.f32 %v4375_v53, %v3843_v49 }
 0x4dc   :  { %v4324_v35 = vpop.f32.mrf.mxu0  ;;  %v4377_v18 = vpop.f32.mrf.mxu1 }
 0x4dd   :  { %9160 = vst [vmem:[#allocation30_spill] sm:$0xff] %v8708_v58  ;;  %v8712_v45 = vadd.f32 %v4324_v35, %v3792_v40  ;;  %v8714_v61 = vadd.f32 %v4377_v18, %v3845_v44 }
 0x4de   :  { %v4326_v20 = vpop.f32.mrf.mxu0  ;;  %v4379_v7 = vpop.f32.mrf.mxu1 }
 0x4df   :  { %9161 = vst [vmem:[#allocation31_spill] sm:$0xff] %v8712_v45  ;;  %v8716_v28 = vadd.f32 %v4326_v20, %v3794_v21  ;;  %v8718_v13 = vadd.f32 %v4379_v7, %v3847_v25  ;;  %v6909_v20 = vld [vmem:[#allocation11 + $0x2] ss:$0 sm:$0xff] }
 0x4e0   :  { %v4328_v5 = vpop.f32.mrf.mxu0  ;;  %v4381_v62 = vpop.f32.mrf.mxu1 }
 0x4e1   :  { %9162 = vst [vmem:[#allocation32_spill] sm:$0xff] %v8716_v28  ;;  %v8721_v59 = vadd.f32 %v4328_v5, %v8632_v32  ;;  %v8724_v3 = vadd.f32 %v4381_v62, %v8634_v17 }
 0x4e3   :  { %9163 = vst [vmem:[#allocation33_spill] sm:$0xff] %v8721_v59  ;;  %v6910_v59 = vld [vmem:[#allocation13 + $0x2] ss:$0 sm:$0xff] }
 0x4f2   :  { %v7299_v49 = vpop.f32.mrf.mxu0 }
 0x4f3   :  { %v7319_v15 = vpop.f32.mrf.mxu1 }
 0x4f4   :  { %v4535_v40 = vpop.f32.mrf.mxu0  ;;  %v4641_v17 = vadd.f32 %v7319_v15, %v7299_v49  ;;  %v4839_v15 = vld [vmem:[#allocation14 + $0x558] sm:$0xff] }
 0x4f5   :  { %v4632_v60 = vpop.f32.mrf.mxu1 }
 0x4f6   :  { %v7300_v44 = vpop.f32.mrf.mxu0  ;;  %v4633_v21 = vadd.f32 %v4632_v60, %v4535_v40  ;;  %v4850_v40 = vld [vmem:[#allocation14 + $0x5b0] sm:$0xff]  ;;  %v4847_v60 = vld [vmem:[#allocation14 + $0x598] sm:$0xff] }
 0x4f7   :  { %v7320_v55 = vpop.f32.mrf.mxu1  ;;  %v6966_v49 = vcombine.high %v4847_v60, %v4851_v22 }
 0x4f8   :  { %v4538_v51 = vpop.f32.mrf.mxu0  ;;  %v4644_v37 = vadd.f32 %v7320_v55, %v7300_v44 }
 0x4f9   :  { %v4635_v35 = vpop.f32.mrf.mxu1 }
 0x4fa   :  { %v4636_v32 = vadd.f32 %v4635_v35, %v4538_v51  ;;  %v6964_v51 = vcombine.high %v4846_v31, %v4850_v40 }
 0x512   :  { %v7339_v53 = vpop.f32.mrf.mxu0 }
 0x513   :  { %v4764_v28 = vadd.f32 %v7339_v53, %v4641_v17  ;;  %v4843_v53 = vld [vmem:[#allocation14 + $0x578] sm:$0xff]  ;;  %v4826_v17 = vld [vmem:[#allocation14 + $0x4f0] sm:$0xff] }
 0x514   :  { %v4747_v25 = vpop.f32.mrf.mxu0 }
 0x515   :  { %v4762_v18 = vadd.f32 %v4747_v25, %v4633_v21  ;;  %v4776_v21 = vmul.f32 %v6909_v20, %v4764_v28  ;;  %v6958_v28 = vcombine.high %v4839_v15, %v4843_v53 }
 0x516   :  { %v7340_v7 = vpop.f32.mrf.mxu0 }
 0x517   :  { %v4774_v5 = vmul.f32 %v6909_v20, %v4762_v18  ;;  %v4765_v62 = vadd.f32 %v7340_v7, %v4644_v37  ;;  %v4838_v37 = vld [vmem:[#allocation14 + $0x550] sm:$0xff]  ;;  %v4788_v35 = vadd.f32 %v6910_v59, %v4776_v21  ;;  %v9166_v18 = vmov 0   ;;  %v4831_v7 = vld [vmem:[#allocation14 + $0x518] sm:$0xff] }
 0x518   :  { %v4750_v10 = vpop.f32.mrf.mxu0 }
 0x519   :  { %v4763_v12 = vadd.f32 %v4750_v10, %v4636_v32  ;;  %v4786_v45 = vadd.f32 %v6910_v59, %v4774_v5  ;;  %v4777_v33 = vmul.f32 %v6909_v20, %v4765_v62  ;;  %v4842_v10 = vld [vmem:[#allocation14 + $0x570] sm:$0xff]  ;;  %v4823_v62 = vld [vmem:[#allocation14 + $0x4d8] sm:$0xff] }
 0x51a   :  { %v4822_v5 = vld [vmem:[#allocation14 + $0x4d0] sm:$0xff] }
 0x51b   :  { %v4775_v58 = vmul.f32 %v6909_v20, %v4763_v12  ;;  %v4790_v25 = vmax.f32 %v4786_v45, 0.0  ;;  %v4789_v44 = vadd.f32 %v6910_v59, %v4777_v33  ;;  %v9164_v12 = vcombine.low %v8616_v19, %v8618_v1  ;;  %v4834_v20 = vld [vmem:[#allocation14 + $0x530] sm:$0xff]  ;;  %v4835_v19 = vld [vmem:[#allocation14 + $0x538] sm:$0xff] }
 0x51c   :  { %v6965_v33 = vcombine.low %v4847_v60, %v4851_v22  ;;  %v6956_v45 = vcombine.high %v4838_v37, %v4842_v10  ;;  %v4792_v1 = vmax.f32 %v4788_v35, 0.0  ;;  %v6950_v32 = vcombine.high %v4831_v7, %v4835_v19 }
 0x51d   :  { %v4787_v14 = vadd.f32 %v6910_v59, %v4775_v58  ;;  %v4793_v58 = vmax.f32 %v4789_v44, 0.0  ;;  %v4830_v59 = vld [vmem:[#allocation14 + $0x510] sm:$0xff]  ;;  %v6949_v21 = vcombine.low %v4831_v7, %v4835_v19 }
 0x51e   :  { %v6948_v22 = vcombine.high %v4830_v59, %v4834_v20  ;;  %v6947_v60 = vcombine.low %v4830_v59, %v4834_v20  ;;  %v4798_v7 = vld [vmem:[#allocation14 + $0x410] sm:$0xff] }
 0x51f   :  { %v4791_v54 = vmax.f32 %v4787_v14, 0.0  ;;  %v9165_v14 = vcombine.low %v8620_v9, %v8626_v38  ;;  %v6955_v9 = vcombine.low %v4838_v37, %v4842_v10  ;;  %v6957_v38 = vcombine.low %v4839_v15, %v4843_v53  ;;  %v4815_v37 = vld [vmem:[#allocation14 + $0x498] sm:$0xff]  ;;  %v4802_v19 = vld [vmem:[#allocation14 + $0x430] sm:$0xff] }
 0x520   :  { %v4819_v10 = vld [vmem:[#allocation14 + $0x4b8] sm:$0xff]  ;;  %v6939_v15 = vcombine.low %v4822_v5, %v4826_v17 }
 0x521   :  { %v8726_v55 = vpack.c.bf16 %v4791_v54, %v4790_v25  ;;  %v6963_v54 = vcombine.low %v4846_v31, %v4850_v40  ;;  %v8738_v31 = vpack.c.bf16 %v4793_v58, %v4792_v1  ;;  %v4827_v40 = vld [vmem:[#allocation14 + $0x4f8] sm:$0xff]  ;;  %v6940_v25 = vcombine.high %v4822_v5, %v4826_v17  ;;  %v5480_v17 = vld [vmem:[#allocation14 + $0x7c0] sm:$0xff] }
 0x522   :  { %v6942_v44 = vcombine.high %v4823_v62, %v4827_v40  ;;  %v6941_v53 = vcombine.low %v4823_v62, %v4827_v40  ;;  %v4811_v58 = vld [vmem:[#allocation14 + $0x478] sm:$0xff]  ;;  %v5484_v62 = vld [vmem:[#allocation14 + $0x7e0] sm:$0xff]  ;;  %v5481_v40 = vld [vmem:[#allocation14 + $0x7c8] sm:$0xff] }
 0x523   :  { %5213 = vmatmul.mubr.bf16.vlgmr.msra.gmra.mxu1 %v8726_v55  ;;  %5266 = vmatmul.mubr.bf16.vlgmr.msra.gmra.mxu0 %v8726_v55  ;;  %v4799_v1 = vld [vmem:[#allocation14 + $0x418] sm:$0xff] }
 0x524   :  { %5287 = vmatpush1.bf16.msra.mxu1 %v9164_v12  ;;  %5340 = vmatpush1.bf16.msra.mxu0 %v9165_v14  ;;  %v6934_v12 = vcombine.high %v4815_v37, %v4819_v10  ;;  %v4806_v14 = vld [vmem:[#allocation14 + $0x450] sm:$0xff] }
 0x525   :  { %5288 = vmatprep.subr.bf16.mxu1 %v6964_v51  ;;  %5341 = vmatprep.subr.bf16.mxu0 %v6966_v49  ;;  %v4814_v51 = vld [vmem:[#allocation14 + $0x490] sm:$0xff] }
 0x526   :  { %5222 = vmatprep.mubr.bf16.mxu1 %v9166_v18  ;;  %5275 = vmatprep.mubr.bf16.mxu0 %v9166_v18  ;;  %v4818_v49 = vld [vmem:[#allocation14 + $0x4b0] sm:$0xff] }
 0x527   :  { %v6932_v35 = vcombine.high %v4814_v51, %v4818_v49 }
 0x528   :  { %5289 = vmatpush1.bf16.msra.mxu1 %v6963_v54  ;;  %5342 = vmatpush1.bf16.msra.mxu0 %v6965_v33  ;;  %v4810_v54 = vld [vmem:[#allocation14 + $0x470] sm:$0xff]  ;;  %v4807_v33 = vld [vmem:[#allocation14 + $0x458] sm:$0xff] }
 0x529   :  { %5290 = vmatprep.subr.bf16.mxu1 %v6956_v45  ;;  %5343 = vmatprep.subr.bf16.mxu0 %v6958_v28  ;;  %v6931_v45 = vcombine.low %v4814_v51, %v4818_v49  ;;  %v6933_v28 = vcombine.low %v4815_v37, %v4819_v10  ;;  %v6924_v59 = vcombine.high %v4806_v14, %v4810_v54  ;;  %v5472_v49 = vld [vmem:[#allocation14 + $0x780] sm:$0xff]  ;;  %v5473_v10 = vld [vmem:[#allocation14 + $0x788] sm:$0xff] }
 0x52a   :  { %v6926_v20 = vcombine.high %v4807_v33, %v4811_v58  ;;  %v5476_v37 = vld [vmem:[#allocation14 + $0x7a0] sm:$0xff] }
 0x52b   :  { %5223 = vmatmul.mubr.bf16.gmra.mxu1 %v8738_v31  ;;  %5276 = vmatmul.mubr.bf16.gmra.mxu0 %v8738_v31 }
 0x52c   :  { %5291 = vmatpush1.bf16.msra.mxu1 %v6955_v9  ;;  %5344 = vmatpush1.bf16.msra.mxu0 %v6957_v38  ;;  %v4803_v9 = vld [vmem:[#allocation14 + $0x438] sm:$0xff]  ;;  %v6923_v38 = vcombine.low %v4806_v14, %v4810_v54  ;;  %v5464_v54 = vld [vmem:[#allocation14 + $0x740] sm:$0xff] }
 0x52d   :  { %5292 = vmatprep.subr.bf16.mxu1 %v6948_v22  ;;  %5345 = vmatprep.subr.bf16.mxu0 %v6950_v32  ;;  %v6925_v22 = vcombine.low %v4807_v33, %v4811_v58  ;;  %v6916_v32 = vcombine.high %v4798_v7, %v4802_v19  ;;  %v6918_v5 = vcombine.high %v4799_v1, %v4803_v9  ;;  %v5468_v33 = vld [vmem:[#allocation14 + $0x760] sm:$0xff]  ;;  %v5465_v58 = vld [vmem:[#allocation14 + $0x748] sm:$0xff] }
 0x52e   :  { %5318 = vmatprep.mubr.bf16.mxu1 %v9166_v18  ;;  %5371 = vmatprep.mubr.bf16.mxu0 %v9166_v18 }
 0x530   :  { %5293 = vmatpush1.bf16.msra.mxu1 %v6947_v60  ;;  %5346 = vmatpush1.bf16.msra.mxu0 %v6949_v21  ;;  %v5485_v60 = vld [vmem:[#allocation14 + $0x7e8] sm:$0xff]  ;;  %v6915_v21 = vcombine.low %v4798_v7, %v4802_v19  ;;  %v5456_v19 = vld [vmem:[#allocation14 + $0x700] sm:$0xff] }
 0x531   :  { %5294 = vmatprep.subr.bf16.mxu1 %v6940_v25  ;;  %5347 = vmatprep.subr.bf16.mxu0 %v6942_v44  ;;  %v6917_v25 = vcombine.low %v4799_v1, %v4803_v9  ;;  %v7032_v44 = vcombine.high %v5480_v17, %v5484_v62  ;;  %v7034_v51 = vcombine.high %v5481_v40, %v5485_v60  ;;  %v5460_v1 = vld [vmem:[#allocation14 + $0x720] sm:$0xff]  ;;  %v5457_v9 = vld [vmem:[#allocation14 + $0x708] sm:$0xff] }
 0x534   :  { %5295 = vmatpush1.bf16.msra.mxu1 %v6939_v15  ;;  %5348 = vmatpush1.bf16.msra.mxu0 %v6941_v53  ;;  %v5477_v15 = vld [vmem:[#allocation14 + $0x7a8] sm:$0xff]  ;;  %v7031_v53 = vcombine.low %v5480_v17, %v5484_v62  ;;  %v5448_v17 = vld [vmem:[#allocation14 + $0x6c0] sm:$0xff] }
 0x535   :  { %5296 = vmatprep.subr.bf16.mxu1 %v6932_v35  ;;  %5349 = vmatprep.subr.bf16.mxu0 %v6934_v12  ;;  %v7033_v35 = vcombine.low %v5481_v40, %v5485_v60  ;;  %v7024_v12 = vcombine.high %v5472_v49, %v5476_v37  ;;  %v7026_v14 = vcombine.high %v5473_v10, %v5477_v15  ;;  %v5452_v62 = vld [vmem:[#allocation14 + $0x6e0] sm:$0xff]  ;;  %v5449_v40 = vld [vmem:[#allocation14 + $0x6c8] sm:$0xff] }
 0x536   :  { %v5453_v60 = vld [vmem:[#allocation14 + $0x6e8] sm:$0xff] }
 0x538   :  { %5297 = vmatpush1.bf16.msra.mxu1 %v6931_v45  ;;  %5350 = vmatpush1.bf16.msra.mxu0 %v6933_v28  ;;  %v5469_v45 = vld [vmem:[#allocation14 + $0x768] sm:$0xff]  ;;  %v7023_v28 = vcombine.low %v5472_v49, %v5476_v37  ;;  %v5440_v49 = vld [vmem:[#allocation14 + $0x680] sm:$0xff] }
 0x539   :  { %5298 = vmatprep.subr.bf16.mxu1 %v6924_v59  ;;  %5351 = vmatprep.subr.bf16.mxu0 %v6926_v20  ;;  %v7025_v59 = vcombine.low %v5473_v10, %v5477_v15  ;;  %v7016_v20 = vcombine.high %v5464_v54, %v5468_v33  ;;  %v7018_v7 = vcombine.high %v5465_v58, %v5469_v45  ;;  %v5444_v37 = vld [vmem:[#allocation14 + $0x6a0] sm:$0xff]  ;;  %v5441_v10 = vld [vmem:[#allocation14 + $0x688] sm:$0xff] }
 0x53a   :  { %v5445_v15 = vld [vmem:[#allocation14 + $0x6a8] sm:$0xff] }
 0x53c   :  { %5299 = vmatpush1.bf16.msra.mxu1 %v6923_v38  ;;  %5352 = vmatpush1.bf16.msra.mxu0 %v6925_v22  ;;  %v5461_v38 = vld [vmem:[#allocation14 + $0x728] sm:$0xff]  ;;  %v7015_v22 = vcombine.low %v5464_v54, %v5468_v33  ;;  %v5436_v54 = vld [vmem:[#allocation14 + $0x660] sm:$0xff] }
 0x53d   :  { %5300 = vmatprep.subr.bf16.mxu1 %v6916_v32  ;;  %5353 = vmatprep.subr.bf16.mxu0 %v6918_v5  ;;  %v7008_v32 = vcombine.high %v5456_v19, %v5460_v1  ;;  %v7010_v5 = vcombine.high %v5457_v9, %v5461_v38  ;;  %v5433_v33 = vld [vmem:[#allocation14 + $0x648] sm:$0xff] }
 0x540   :  { %5301 = vmatpush1.bf16.msra.mxu1 %v6915_v21  ;;  %5354 = vmatpush1.bf16.msra.mxu0 %v6917_v25  ;;  %v7007_v21 = vcombine.low %v5456_v19, %v5460_v1  ;;  %v7009_v25 = vcombine.low %v5457_v9, %v5461_v38  ;;  %v5428_v19 = vld [vmem:[#allocation14 + $0x620] sm:$0xff]  ;;  %v5425_v1 = vld [vmem:[#allocation14 + $0x608] sm:$0xff] }
 0x541   :  { %5808 = vmatprep.subr.bf16.mxu1 %v7032_v44  ;;  %5861 = vmatprep.subr.bf16.mxu0 %v7034_v51  ;;  %v7000_v44 = vcombine.high %v5448_v17, %v5452_v62  ;;  %v7002_v51 = vcombine.high %v5449_v40, %v5453_v60  ;;  %v5429_v9 = vld [vmem:[#allocation14 + $0x628] sm:$0xff] }
 0x543   :  { %5319 = vmatmul.mubr.bf16.vlgmr.msra.gmra.mxu1 %v8726_v55  ;;  %5372 = vmatmul.mubr.bf16.vlgmr.msra.gmra.mxu0 %v8726_v55  ;;  %v7017_v55 = vcombine.low %v5465_v58, %v5469_v45  ;;  %v5437_v58 = vld [vmem:[#allocation14 + $0x668] sm:$0xff]  ;;  %v6991_v45 = vcombine.low %v5440_v49, %v5444_v37 }
 0x544   :  { %5809 = vmatpush1.bf16.msra.mxu1 %v7031_v53  ;;  %5862 = vmatpush1.bf16.msra.mxu0 %v7033_v35  ;;  %v6999_v53 = vcombine.low %v5448_v17, %v5452_v62  ;;  %v6992_v35 = vcombine.high %v5440_v49, %v5444_v37  ;;  %v5486_v17 = vld [vmem:[#allocation14 + $0x7f0] sm:$0xff]  ;;  %v5483_v62 = vld [vmem:[#allocation14 + $0x7d8] sm:$0xff] }
 0x545   :  { %5810 = vmatprep.subr.bf16.mxu1 %v7024_v12  ;;  %5863 = vmatprep.subr.bf16.mxu0 %v7026_v14  ;;  %v6994_v12 = vcombine.high %v5441_v10, %v5445_v15  ;;  %v5432_v14 = vld [vmem:[#allocation14 + $0x640] sm:$0xff]  ;;  %v5478_v49 = vld [vmem:[#allocation14 + $0x7b0] sm:$0xff]  ;;  %v5475_v37 = vld [vmem:[#allocation14 + $0x798] sm:$0xff] }
 0x546   :  { %5328 = vmatprep.mubr.bf16.mxu1 %v9166_v18  ;;  %5381 = vmatprep.mubr.bf16.mxu0 %v9166_v18  ;;  %v6983_v38 = vcombine.low %v5432_v14, %v5436_v54 }
 0x548   :  { %5811 = vmatpush1.bf16.msra.mxu1 %v7023_v28  ;;  %5864 = vmatpush1.bf16.msra.mxu0 %v7025_v59  ;;  %v6993_v28 = vcombine.low %v5441_v10, %v5445_v15  ;;  %v6984_v59 = vcombine.high %v5432_v14, %v5436_v54  ;;  %v5479_v10 = vld [vmem:[#allocation14 + $0x7b8] sm:$0xff]  ;;  %v5470_v14 = vld [vmem:[#allocation14 + $0x770] sm:$0xff] }
 0x549   :  { %5812 = vmatprep.subr.bf16.mxu1 %v7016_v20  ;;  %5865 = vmatprep.subr.bf16.mxu0 %v7018_v7  ;;  %v6986_v20 = vcombine.high %v5433_v33, %v5437_v58  ;;  %v5424_v7 = vld [vmem:[#allocation14 + $0x600] sm:$0xff]  ;;  %v5467_v54 = vld [vmem:[#allocation14 + $0x758] sm:$0xff] }
 0x54b   :  { %5329 = vmatmul.mubr.bf16.gmra.mxu1 %v8738_v31  ;;  %5382 = vmatmul.mubr.bf16.gmra.mxu0 %v8738_v31  ;;  %v7001_v31 = vcombine.low %v5449_v40, %v5453_v60  ;;  %v5487_v40 = vld [vmem:[#allocation14 + $0x7f8] sm:$0xff]  ;;  %v6975_v60 = vcombine.low %v5424_v7, %v5428_v19 }
 0x54c   :  { %5813 = vmatpush1.bf16.msra.mxu1 %v7015_v22  ;;  %5866 = vmatpush1.bf16.msra.mxu0 %v7017_v55  ;;  %v6985_v22 = vcombine.low %v5433_v33, %v5437_v58  ;;  %v6976_v55 = vcombine.high %v5424_v7, %v5428_v19  ;;  %v5471_v33 = vld [vmem:[#allocation14 + $0x778] sm:$0xff]  ;;  %v5462_v7 = vld [vmem:[#allocation14 + $0x730] sm:$0xff] }
 0x54d   :  { %5814 = vmatprep.subr.bf16.mxu1 %v7008_v32  ;;  %5867 = vmatprep.subr.bf16.mxu0 %v7010_v5  ;;  %v6978_v32 = vcombine.high %v5425_v1, %v5429_v9  ;;  %v5482_v5 = vld [vmem:[#allocation14 + $0x7d0] sm:$0xff]  ;;  %v5459_v19 = vld [vmem:[#allocation14 + $0x718] sm:$0xff] }
 0x54e   :  { %5840 = vmatprep.mubr.bf16.mxu1 %v9166_v18  ;;  %5893 = vmatprep.mubr.bf16.mxu0 %v9166_v18  ;;  %v7035_v15 = vcombine.low %v5482_v5, %v5486_v17 }
 0x550   :  { %5815 = vmatpush1.bf16.msra.mxu1 %v7007_v21  ;;  %5868 = vmatpush1.bf16.msra.mxu0 %v7009_v25  ;;  %v6977_v21 = vcombine.low %v5425_v1, %v5429_v9  ;;  %v7036_v25 = vcombine.high %v5482_v5, %v5486_v17  ;;  %v5463_v1 = vld [vmem:[#allocation14 + $0x738] sm:$0xff]  ;;  %v5454_v5 = vld [vmem:[#allocation14 + $0x6f0] sm:$0xff] }
 0x551   :  { %5816 = vmatprep.subr.bf16.mxu1 %v7000_v44  ;;  %5869 = vmatprep.subr.bf16.mxu0 %v7002_v51  ;;  %v8752_v44 = vcombine.high %v5483_v62, %v5487_v40  ;;  %v5474_v51 = vld [vmem:[#allocation14 + $0x790] sm:$0xff]  ;;  %v5451_v17 = vld [vmem:[#allocation14 + $0x6d8] sm:$0xff] }
 0x552   :  { %v7027_v58 = vcombine.low %v5474_v51, %v5478_v49 }
 0x554   :  { %5817 = vmatpush1.bf16.msra.mxu1 %v6999_v53  ;;  %5870 = vmatpush1.bf16.msra.mxu0 %v7001_v31  ;;  %v8754_v53 = vcombine.low %v5483_v62, %v5487_v40  ;;  %v7028_v31 = vcombine.high %v5474_v51, %v5478_v49  ;;  %v5455_v62 = vld [vmem:[#allocation14 + $0x6f8] sm:$0xff]  ;;  %v5442_v51 = vld [vmem:[#allocation14 + $0x690] sm:$0xff] }
 0x555   :  { %5818 = vmatprep.subr.bf16.mxu1 %v6992_v35  ;;  %5871 = vmatprep.subr.bf16.mxu0 %v6994_v12  ;;  %v8757_v35 = vcombine.high %v5475_v37, %v5479_v10  ;;  %v5466_v12 = vld [vmem:[#allocation14 + $0x750] sm:$0xff] }
 0x556   :  { %v7019_v9 = vcombine.low %v5466_v12, %v5470_v14  ;;  %v5446_v49 = vld [vmem:[#allocation14 + $0x6b0] sm:$0xff] }
 0x558   :  { %5819 = vmatpush1.bf16.msra.mxu1 %v6991_v45  ;;  %5872 = vmatpush1.bf16.msra.mxu0 %v6993_v28  ;;  %v8762_v45 = vcombine.low %v5475_v37, %v5479_v10  ;;  %v7020_v28 = vcombine.high %v5466_v12, %v5470_v14  ;;  %v5443_v37 = vld [vmem:[#allocation14 + $0x698] sm:$0xff]  ;;  %v6996_v12 = vcombine.high %v5442_v51, %v5446_v49 }
 0x559   :  { %5820 = vmatprep.subr.bf16.mxu1 %v6984_v59  ;;  %5873 = vmatprep.subr.bf16.mxu0 %v6986_v20  ;;  %v8765_v59 = vcombine.high %v5467_v54, %v5471_v33  ;;  %v5458_v20 = vld [vmem:[#allocation14 + $0x710] sm:$0xff]  ;;  %v5447_v10 = vld [vmem:[#allocation14 + $0x6b8] sm:$0xff] }
 0x55a   :  { %v7011_v40 = vcombine.low %v5458_v20, %v5462_v7  ;;  %v6998_v14 = vcombine.high %v5443_v37, %v5447_v10 }
 0x55c   :  { %5821 = vmatpush1.bf16.msra.mxu1 %v6983_v38  ;;  %5874 = vmatpush1.bf16.msra.mxu0 %v6985_v22  ;;  %v8770_v38 = vcombine.low %v5467_v54, %v5471_v33  ;;  %v7012_v22 = vcombine.high %v5458_v20, %v5462_v7  ;;  %v5434_v54 = vld [vmem:[#allocation14 + $0x650] sm:$0xff]  ;;  %v6995_v20 = vcombine.low %v5442_v51, %v5446_v49 }
 0x55d   :  { %5822 = vmatprep.subr.bf16.mxu1 %v6976_v55  ;;  %5875 = vmatprep.subr.bf16.mxu0 %v6978_v32  ;;  %v8773_v55 = vcombine.high %v5459_v19, %v5463_v1  ;;  %v5450_v32 = vld [vmem:[#allocation14 + $0x6d0] sm:$0xff]  ;;  %v6997_v7 = vcombine.low %v5443_v37, %v5447_v10 }
 0x55e   :  { %v5438_v33 = vld [vmem:[#allocation14 + $0x670] sm:$0xff] }
 0x560   :  { %5823 = vmatpush1.bf16.msra.mxu1 %v6975_v60  ;;  %5876 = vmatpush1.bf16.msra.mxu0 %v6977_v21  ;;  %v7013_v60 = vcombine.low %v5459_v19, %v5463_v1  ;;  %v7004_v21 = vcombine.high %v5450_v32, %v5454_v5  ;;  %v6988_v19 = vcombine.high %v5434_v54, %v5438_v33 }
 0x561   :  { %5914 = vmatprep.subr.bf16.mxu1 %v7036_v25  ;;  %5967 = vmatprep.subr.bf16.mxu0 %v8752_v44  ;;  %v7006_v25 = vcombine.high %v5451_v17, %v5455_v62 }
 0x563   :  { %5841 = vmatmul.mubr.bf16.vlgmr.msra.gmra.mxu1 %v8353_v46  ;;  %5894 = vmatmul.mubr.bf16.vlgmr.msra.gmra.mxu0 %v8353_v46 }
 0x564   :  { %5915 = vmatpush1.bf16.msra.mxu1 %v7035_v15  ;;  %5968 = vmatpush1.bf16.msra.mxu0 %v8754_v53  ;;  %v7003_v15 = vcombine.low %v5450_v32, %v5454_v5  ;;  %v5427_v32 = vld [vmem:[#allocation14 + $0x618] sm:$0xff] }
 0x565   :  { %5916 = vmatprep.subr.bf16.mxu1 %v7028_v31  ;;  %5969 = vmatprep.subr.bf16.mxu0 %v8757_v35  ;;  %v7005_v31 = vcombine.low %v5451_v17, %v5455_v62  ;;  %v5431_v5 = vld [vmem:[#allocation14 + $0x638] sm:$0xff]  ;;  %v6987_v17 = vcombine.low %v5434_v54, %v5438_v33 }
 0x566   :  { %5850 = vmatprep.mubr.bf16.mxu1 %v9166_v18  ;;  %5903 = vmatprep.mubr.bf16.mxu0 %v9166_v18  ;;  %v6981_v49 = vcombine.low %v5427_v32, %v5431_v5 }
 0x568   :  { %5917 = vmatpush1.bf16.msra.mxu1 %v7027_v58  ;;  %5970 = vmatpush1.bf16.msra.mxu0 %v8762_v45  ;;  %v5435_v58 = vld [vmem:[#allocation14 + $0x658] sm:$0xff] }
 0x569   :  { %5918 = vmatprep.subr.bf16.mxu1 %v7020_v28  ;;  %5971 = vmatprep.subr.bf16.mxu0 %v8765_v59  ;;  %v5439_v28 = vld [vmem:[#allocation14 + $0x678] sm:$0xff] }
 0x56a   :  { %v6990_v1 = vcombine.high %v5435_v58, %v5439_v28  ;;  %v6989_v62 = vcombine.low %v5435_v58, %v5439_v28 }
 0x56b   :  { %5851 = vmatmul.mubr.bf16.gmra.mxu1 %v8362_v34  ;;  %5904 = vmatmul.mubr.bf16.gmra.mxu0 %v8362_v34 }
 0x56c   :  { %5919 = vmatpush1.bf16.msra.mxu1 %v7019_v9  ;;  %5972 = vmatpush1.bf16.msra.mxu0 %v8770_v38  ;;  %v5426_v9 = vld [vmem:[#allocation14 + $0x610] sm:$0xff] }
 0x56d   :  { %5920 = vmatprep.subr.bf16.mxu1 %v7012_v22  ;;  %5973 = vmatprep.subr.bf16.mxu0 %v8773_v55  ;;  %v5430_v22 = vld [vmem:[#allocation14 + $0x630] sm:$0xff] }
 0x56e   :  { %5946 = vmatprep.mubr.bf16.mxu1 %v9166_v18  ;;  %5999 = vmatprep.mubr.bf16.mxu0 %v9166_v18  ;;  %v6979_v51 = vcombine.low %v5426_v9, %v5430_v22 }
 0x570   :  { %5921 = vmatpush1.bf16.msra.mxu1 %v7011_v40  ;;  %5974 = vmatpush1.bf16.msra.mxu0 %v7013_v60  ;;  %v6980_v40 = vcombine.high %v5426_v9, %v5430_v22 }
 0x571   :  { %5922 = vmatprep.subr.bf16.mxu1 %v7004_v21  ;;  %5975 = vmatprep.subr.bf16.mxu0 %v7006_v25  ;;  %v6982_v21 = vcombine.high %v5427_v32, %v5431_v5 }
 0x574   :  { %5923 = vmatpush1.bf16.msra.mxu1 %v7003_v15  ;;  %5976 = vmatpush1.bf16.msra.mxu0 %v7005_v31 }
 0x575   :  { %5924 = vmatprep.subr.bf16.mxu1 %v6996_v12  ;;  %5977 = vmatprep.subr.bf16.mxu0 %v6998_v14 }
 0x578   :  { %5925 = vmatpush1.bf16.msra.mxu1 %v6995_v20  ;;  %5978 = vmatpush1.bf16.msra.mxu0 %v6997_v7 }
 0x579   :  { %5926 = vmatprep.subr.bf16.mxu1 %v6988_v19  ;;  %5979 = vmatprep.subr.bf16.mxu0 %v6990_v1 }
 0x57c   :  { %5927 = vmatpush1.bf16.msra.mxu1 %v6987_v17  ;;  %5980 = vmatpush1.bf16.msra.mxu0 %v6989_v62 }
 0x57d   :  { %5928 = vmatprep.subr.bf16.mxu1 %v6980_v40  ;;  %5981 = vmatprep.subr.bf16.mxu0 %v6982_v21 }
 0x580   :  { %5929 = vmatpush1.bf16.msra.mxu1 %v6979_v51  ;;  %5982 = vmatpush1.bf16.msra.mxu0 %v6981_v49 }
 0x581   :  { %7341 = vmatprep.subr.bf16.mxu1 %v8752_v44 }
 0x583   :  { %5947 = vmatmul.mubr.bf16.vlgmr.msra.gmra.mxu1 %v8353_v46  ;;  %6000 = vmatmul.mubr.bf16.vlgmr.msra.gmra.mxu0 %v8353_v46 }
 0x584   :  { %7349 = vmatpush1.bf16.msra.mxu1 %v8754_v53  ;;  %5956 = vmatprep.mubr.bf16.mxu1 %v9166_v18 }
 0x585   :  { %7342 = vmatprep.subr.bf16.mxu1 %v8757_v35 }
 0x588   :  { %7350 = vmatpush1.bf16.msra.mxu1 %v8762_v45 }
 0x589   :  { %7343 = vmatprep.subr.bf16.mxu1 %v8765_v59 }
 0x58b   :  { %5957 = vmatmul.mubr.bf16.gmra.mxu1 %v8362_v34 }
 0x58c   :  { %7351 = vmatpush1.bf16.msra.mxu1 %v8770_v38  ;;  %6009 = vmatprep.mubr.bf16.mxu1 %v9166_v18 }
 0x58d   :  { %7344 = vmatprep.subr.bf16.mxu1 %v8773_v55 }
 0x590   :  { %7352 = vmatpush1.bf16.msra.mxu1 %v7013_v60 }
 0x591   :  { %7345 = vmatprep.subr.bf16.mxu1 %v7006_v25 }
 0x594   :  { %7353 = vmatpush1.bf16.msra.mxu1 %v7005_v31 }
 0x595   :  { %7346 = vmatprep.subr.bf16.mxu1 %v6998_v14 }
 0x598   :  { %7354 = vmatpush1.bf16.msra.mxu1 %v6997_v7 }
 0x599   :  { %7347 = vmatprep.subr.bf16.mxu1 %v6990_v1 }
 0x59c   :  { %7355 = vmatpush1.bf16.msra.mxu1 %v6989_v62 }
 0x59d   :  { %7348 = vmatprep.subr.bf16.mxu1 %v6982_v21  ;;  %v8857_v21 = vld [vmem:[%s9148_s8] sm:$0xff]  ;;  %s8056_s8 = smov [#allocation16]  }
 0x5a0   :  { %7356 = vmatpush1.bf16.msra.mxu1 %v6981_v49  ;;  %v8876_v49 = vrot.slane %v8857_v21, %v8315_v36 }
 0x5a3   :  { %6010 = vmatmul.mubr.bf16.vlgmr.msra.gmra.mxu1 %v8362_v34 }
 0x5e3   :  { %v5267_v46 = vpop.f32.mrf.mxu0  ;;  %v5214_v44 = vpop.f32.mrf.mxu1 }
 0x5e5   :  { %v8794_v53 = vpop.f32.mrf.mxu0  ;;  %v8796_v35 = vpop.f32.mrf.mxu1 }
 0x5e7   :  { %v8798_v18 = vpop.f32.mrf.mxu0  ;;  %v8800_v45 = vpop.f32.mrf.mxu1 }
 0x5e9   :  { %v8802_v59 = vpop.f32.mrf.mxu0  ;;  %v8804_v38 = vpop.f32.mrf.mxu1 }
 0x5eb   :  { %v8806_v55 = vpop.f32.mrf.mxu0  ;;  %v8808_v60 = vpop.f32.mrf.mxu1 }
 0x5ed   :  { %v8810_v25 = vpop.f32.mrf.mxu0  ;;  %v8812_v34 = vpop.f32.mrf.mxu1 }
 0x5ef   :  { %v8814_v37 = vpop.f32.mrf.mxu0  ;;  %v8816_v10 = vpop.f32.mrf.mxu1 }
 0x5f1   :  { %v8818_v15 = vpop.f32.mrf.mxu0  ;;  %v8820_v31 = vpop.f32.mrf.mxu1 }
 0x603   :  { %v8822_v12 = vpop.f32.mrf.mxu0  ;;  %v8824_v14 = vpop.f32.mrf.mxu1 }
 0x604   :  { %9167 = vst [vmem:[#allocation34_spill] sm:$0xff] %v8822_v12  ;;  %9168 = vst [vmem:[#allocation35_spill] sm:$0xff] %v8824_v14  ;;  %v8926_v12 = vld [vmem:[#allocation2 + $0x60] sm:$0xff] }
 0x605   :  { %v8826_v54 = vpop.f32.mrf.mxu0  ;;  %v8830_v58 = vpop.f32.mrf.mxu1 }
 0x606   :  { %9169 = vst [vmem:[#allocation36_spill] sm:$0xff] %v8826_v54  ;;  %9171 = vst [vmem:[#allocation38_spill] sm:$0xff] %v8830_v58  ;;  %v8918_v54 = vld [vmem:[#allocation2 + $0x40] sm:$0xff] }
 0x607   :  { %v8828_v33 = vpop.f32.mrf.mxu0  ;;  %v8837_v19 = vpop.f32.mrf.mxu1 }
 0x608   :  { %9170 = vst [vmem:[#allocation37_spill] sm:$0xff] %v8828_v33  ;;  %9174 = vst [vmem:[#allocation41_spill] sm:$0xff] %v8837_v19  ;;  %v5392_v19 = vadd.f32 %v5214_v44, %v8637_v41  ;;  %v8929_v44 = vld [vmem:[#allocation2 + $0x68] sm:$0xff]  ;;  %v5400_v33 = vadd.f32 %v8800_v45, %v8649_v4  ;;  %v5401_v41 = vadd.f32 %v8804_v38, %v8655_v48 }
 0x609   :  { %v8832_v28 = vpop.f32.mrf.mxu0  ;;  %v8845_v5 = vpop.f32.mrf.mxu1  ;;  %v5408_v4 = vadd.f32 %v8808_v60, %v8661_v0  ;;  %v5409_v48 = vadd.f32 %v8812_v34, %v8667_v57  ;;  %v5416_v0 = vadd.f32 %v8816_v10, %v8673_v8 }
 0x60a   :  { %9172 = vst [vmem:[#allocation39_spill] sm:$0xff] %v8832_v28  ;;  %9177 = vst [vmem:[#allocation44_spill] sm:$0xff] %v8845_v5  ;;  %v8911_v5 = vld [vmem:[#allocation2 + $0x28] sm:$0xff]  ;;  %v5395_v28 = vadd.f32 %v8794_v53, %v8646_v56 }
 0x60b   :  { %v5383_v20 = vpop.f32.mrf.mxu0  ;;  %v8850_v40 = vpop.f32.mrf.mxu1 }
 0x60c   :  { %v8835_v7 = vadd.f32 %v5383_v20, %v8710_v30  ;;  %9179 = vst [vmem:[#allocation46_spill] sm:$0xff] %v8850_v40  ;;  %v8908_v40 = vld [vmem:[#allocation2 + $0x20] sm:$0xff] }
 0x60d   :  { %v5385_v1 = vpop.f32.mrf.mxu0  ;;  %v8852_v30 = vpop.f32.mrf.mxu1 }
 0x60e   :  { %9173 = vst [vmem:[#allocation40_spill] sm:$0xff] %v8835_v7  ;;  %v8840_v9 = vadd.f32 %v5385_v1, %v8714_v61  ;;  %9180 = vst [vmem:[#allocation47_spill] sm:$0xff] %v8852_v30  ;;  %v8862_v61 = vld [vmem:[%s9149_s9] sm:$0xff]  ;;  %s6413_s9 = sshll.u32 %s8056_s8, 4  ;;  %s6414_s9 = int_to_ptr.vmem [resolvable:$true] %s6413_s9 }
 0x60f   :  { %v5387_v22 = vpop.f32.mrf.mxu0  ;;  %v8872_v51 = vrot.slane %v8862_v61, %v8245_v24  ;;  %v8880_v20 = vrot.slane %v8862_v61, %v8315_v36  ;;  %v8882_v1 = vld [vmem:[#allocation2] sm:$0xff]  ;;  %v8898_v36 = vrot.slane %v8862_v61, %v8252_v27  ;;  %v8903_v7 = vrot.slane %v8862_v61, %v8318_v42  ;;  %s8007_s18 = scalar_lea.vmem %s6414_s9, 2048  ;;  %p8012_p13 = scmp.lt.s32.totalorder %s6414_s9, %s6414_s9 }
 0x610   :  { %9175 = vst [vmem:[#allocation42_spill] sm:$0xff] %v8840_v9  ;;  %v8843_v32 = vadd.f32 %v5387_v22, %v8718_v13  ;;  %v8864_v13 = vpop.f32.mrf.mxu1  ;;  %v6200_v22 = vunpack.c.l.bf16 %v8882_v1  ;;  %p8008_p12 = scmp.ne.s32.totalorder %s6414_s9, %s8007_s18  ;;  %p8013_p0 = scmp.lt.s32.totalorder %s8007_s18, %s8007_s18 }
 0x611   :  { %v5389_v17 = vpop.f32.mrf.mxu0  ;;  %9181 = vst [vmem:[#allocation48_spill] sm:$0xff] %v8864_v13 }
 0x612   :  { %9176 = vst [vmem:[#allocation43_spill] sm:$0xff] %v8843_v32  ;;  %v8848_v62 = vadd.f32 %v5389_v17, %v8724_v3  ;;  %v8868_v3 = vrot.slane %v8857_v21, %v8245_v24  ;;  %v8885_v17 = vld [vmem:[#allocation2 + $0x8] sm:$0xff]  ;;  %v8890_v24 = vrot.slane %v8857_v21, %v8252_v27  ;;  %v8894_v32 = vrot.slane %v8857_v21, %v8318_v42  ;;  %v8906_v30 = vpop.f32.mrf.mxu1  ;;  %p8014_p1 = por %p8013_p0, %p8012_p13 }
 0x613   :  { %9182 = vst [vmem:[#allocation49_spill] sm:$0xff] %v8906_v30  ;;  %v5394_v42 = vadd.f32 %v5267_v46, %v8640_v39  ;;  %v8921_v30 = vld [vmem:[#allocation2 + $0x48] sm:$0xff]  ;;  %v5393_v46 = vadd.f32 %v8796_v35, %v8643_v29  ;;  %v5402_v27 = vadd.f32 %v8798_v18, %v8652_v6  ;;  %v5403_v39 = vadd.f32 %v8802_v59, %v8658_v43 }
 0x614   :  { %9178 = vst [vmem:[#allocation45_spill] sm:$0xff] %v8848_v62  ;;  %v6202_v62 = vunpack.c.l.bf16 %v8885_v17  ;;  %v5410_v6 = vadd.f32 %v8806_v55, %v8664_v11  ;;  %v5411_v43 = vadd.f32 %v8810_v25, %v8670_v47  ;;  %v5418_v11 = vadd.f32 %v8814_v37, %v8676_v26  ;;  %p8015_p2 = pnand %p8014_p1, %p8008_p12 }
 0x615   :  { %v9183_v37 = vunpack.c.h.bf16 %v8882_v1  ;;  %v9185_v1 = vunpack.c.l.bf16 %v8908_v40 }
 0x623   :  { %v5842_v58 = vpop.f32.mrf.mxu1  ;;  %v5895_v50 = vpop.f32.mrf.mxu0 }
 0x624   :  { %v6020_v13 = vadd.f32 %v5842_v58, %v5392_v19  ;;  %v6022_v9 = vadd.f32 %v5895_v50, %v5394_v42 }
 0x625   :  { %v5844_v2 = vpop.f32.mrf.mxu1  ;;  %v5897_v14 = vpop.f32.mrf.mxu0 }
 0x626   :  { %v6094_v29 = vmul.f32 %v8868_v3, %v6020_v13  ;;  %v6096_v56 = vmul.f32 %v8876_v49, %v6022_v9  ;;  %v6021_v53 = vadd.f32 %v5844_v2, %v5393_v46  ;;  %v6023_v50 = vadd.f32 %v5897_v14, %v5395_v28 }
 0x627   :  { %v5846_v35 = vpop.f32.mrf.mxu1  ;;  %v5899_v18 = vpop.f32.mrf.mxu0 }
 0x628   :  { %v6168_v45 = vadd.f32 %v8872_v51, %v6094_v29  ;;  %v6170_v59 = vadd.f32 %v8880_v20, %v6096_v56  ;;  %v6095_v2 = vmul.f32 %v8890_v24, %v6021_v53  ;;  %v6097_v38 = vmul.f32 %v8894_v32, %v6023_v50 }
 0x629   :  { %v6028_v57 = vadd.f32 %v5846_v35, %v5400_v33  ;;  %v6030_v55 = vadd.f32 %v5899_v18, %v5402_v27  ;;  %v5848_v60 = vpop.f32.mrf.mxu1  ;;  %v5901_v47 = vpop.f32.mrf.mxu0 }
 0x62a   :  { %v6232_v25 = vadd.f32 %v6200_v22, %v6168_v45  ;;  %v6234_v34 = vadd.f32 %v6202_v62, %v6170_v59  ;;  %v6169_v14 = vadd.f32 %v8898_v36, %v6095_v2  ;;  %v6171_v58 = vadd.f32 %v8903_v7, %v6097_v38 }
 0x62b   :  { %v6102_v28 = vmul.f32 %v8868_v3, %v6028_v57  ;;  %v6104_v19 = vmul.f32 %v8876_v49, %v6030_v55  ;;  %v6029_v9 = vadd.f32 %v5848_v60, %v5401_v41  ;;  %v6031_v13 = vadd.f32 %v5901_v47, %v5403_v39  ;;  %v5852_v8 = vpop.f32.mrf.mxu1  ;;  %v5905_v10 = vpop.f32.mrf.mxu0 }
 0x62c   :  { %v6264_v42 = vmax.f32 %v6232_v25, 0.0  ;;  %v6266_v26 = vmax.f32 %v6234_v34, 0.0  ;;  %v6233_v33 = vadd.f32 %v9183_v37, %v6169_v14  ;;  %v9184_v22 = vunpack.c.h.bf16 %v8885_v17 }
 0x62d   :  { %v6176_v27 = vadd.f32 %v8872_v51, %v6102_v28  ;;  %v6178_v46 = vadd.f32 %v8880_v20, %v6104_v19  ;;  %v6103_v29 = vmul.f32 %v8890_v24, %v6029_v9  ;;  %v6105_v56 = vmul.f32 %v8894_v32, %v6031_v13  ;;  %v5854_v41 = vpop.f32.mrf.mxu1  ;;  %v5907_v39 = vpop.f32.mrf.mxu0 }
 0x62e   :  { %v6235_v62 = vadd.f32 %v9184_v22, %v6171_v58  ;;  %v6265_v53 = vmax.f32 %v6233_v33, 0.0  ;;  %v6036_v35 = vadd.f32 %v5852_v8, %v5408_v4  ;;  %v6038_v18 = vadd.f32 %v5905_v10, %v5410_v6 }
 0x62f   :  { %v6240_v45 = vadd.f32 %v9185_v1, %v6176_v27  ;;  %v9186_v17 = vunpack.c.l.bf16 %v8911_v5  ;;  %v6177_v2 = vadd.f32 %v8898_v36, %v6103_v29  ;;  %v6179_v38 = vadd.f32 %v8903_v7, %v6105_v56  ;;  %v5856_v25 = vpop.f32.mrf.mxu1  ;;  %v5909_v34 = vpop.f32.mrf.mxu0 }
 0x630   :  { %v6267_v50 = vmax.f32 %v6235_v62, 0.0  ;;  %v7055_v57 = vpack.c.bf16 %v6265_v53, %v6264_v42  ;;  %v6110_v60 = vmul.f32 %v8868_v3, %v6036_v35  ;;  %v6112_v47 = vmul.f32 %v8876_v49, %v6038_v18 }
 0x631   :  { %v6242_v59 = vadd.f32 %v9186_v17, %v6178_v46  ;;  %v6272_v4 = vmax.f32 %v6240_v45, 0.0  ;;  %v9187_v14 = vunpack.c.h.bf16 %v8908_v40  ;;  %v9188_v28 = vunpack.c.h.bf16 %v8911_v5  ;;  %v5858_v27 = vpop.f32.mrf.mxu1  ;;  %v5911_v46 = vpop.f32.mrf.mxu0 }
 0x632   :  { %v7056_v55 = vpack.c.bf16 %v6267_v50, %v6266_v26  ;;  %6392 = vst [vmem:[#allocation16] sm:$0xff] %v7055_v57  ;;  %v6184_v9 = vadd.f32 %v8872_v51, %v6110_v60  ;;  %v6186_v13 = vadd.f32 %v8880_v20, %v6112_v47  ;;  %v6037_v8 = vadd.f32 %v5854_v41, %v5409_v48 }
 0x633   :  { %v6274_v6 = vmax.f32 %v6242_v59, 0.0  ;;  %v6241_v58 = vadd.f32 %v9187_v14, %v6177_v2  ;;  %v6243_v19 = vadd.f32 %v9188_v28, %v6179_v38  ;;  %v6039_v10 = vadd.f32 %v5907_v39, %v5411_v43  ;;  %v9028_v28 = vld [vmem:[#allocation2 + $0x10] sm:$0xff] }
 0x634   :  { %6393 = vst [vmem:[#allocation16 + $0x8] sm:$0xff] %v7056_v55  ;;  %v6044_v37 = vadd.f32 %v5856_v25, %v5416_v0  ;;  %v6046_v33 = vadd.f32 %v5909_v34, %v5418_v11  ;;  %v5417_v22 = vadd.f32 %v8820_v31, %v8679_v63  ;;  %v5419_v40 = vadd.f32 %v8818_v15, %v8682_v52 }
 0x635   :  { %v6273_v42 = vmax.f32 %v6241_v58, 0.0  ;;  %v6275_v26 = vmax.f32 %v6243_v19, 0.0  ;;  %v6111_v5 = vmul.f32 %v8890_v24, %v6037_v8  ;;  %v6113_v62 = vmul.f32 %v8894_v32, %v6039_v10  ;;  %v9037_v10 = vld [vmem:[#allocation2 + $0x18] sm:$0xff] }
 0x636   :  { %v6118_v48 = vmul.f32 %v8868_v3, %v6044_v37  ;;  %v6120_v43 = vmul.f32 %v8876_v49, %v6046_v33  ;;  %v9189_v0 = vunpack.c.l.bf16 %v8918_v54  ;;  %v9190_v63 = vunpack.c.l.bf16 %v8921_v30 }
 0x637   :  { %v7059_v29 = vpack.c.bf16 %v6273_v42, %v6272_v4  ;;  %v7060_v56 = vpack.c.bf16 %v6275_v26, %v6274_v6  ;;  %v6185_v52 = vadd.f32 %v8898_v36, %v6111_v5  ;;  %v6187_v15 = vadd.f32 %v8903_v7, %v6113_v62  ;;  %v9195_v62 = vld [vmem:[#allocation35_spill] sm:$0xff] }
 0x638   :  { %v6248_v11 = vadd.f32 %v9189_v0, %v6184_v9  ;;  %v6250_v31 = vadd.f32 %v9190_v63, %v6186_v13  ;;  %v6192_v41 = vadd.f32 %v8872_v51, %v6118_v48  ;;  %v6194_v39 = vadd.f32 %v8880_v20, %v6120_v43 }
 0x639   :  { %6396 = vst [vmem:[#allocation16 + $0x20] sm:$0xff] %v7059_v29  ;;  %6397 = vst [vmem:[#allocation16 + $0x28] sm:$0xff] %v7060_v56  ;;  %v6045_v53 = vadd.f32 %v5858_v27, %v5417_v22  ;;  %v6047_v3 = vadd.f32 %v5911_v46, %v5419_v40  ;;  %v9191_v49 = vunpack.c.h.bf16 %v8918_v54  ;;  %v9192_v35 = vunpack.c.h.bf16 %v8921_v30  ;;  %v9196_v46 = vld [vmem:[#allocation23_spill] sm:$0xff]  ;;  %v9197_v29 = vld [vmem:[#allocation34_spill] sm:$0xff] }
 0x63a   :  { %v6225_v1 = vunpack.c.h.bf16 %v8926_v12  ;;  %v6227_v45 = vunpack.c.h.bf16 %v8929_v44  ;;  %v6072_v51 = vsub.s32 4, %v8242_v23  ;;  %v6080_v20 = vsub.s32 6, %v8242_v23 }
 0x63b   :  { %v6249_v50 = vadd.f32 %v9191_v49, %v6185_v52  ;;  %v6251_v18 = vadd.f32 %v9192_v35, %v6187_v15  ;;  %v6119_v17 = vmul.f32 %v8890_v24, %v6045_v53  ;;  %v6121_v59 = vmul.f32 %v8894_v32, %v6047_v3  ;;  %v9200_v53 = vld [vmem:[#allocation25_spill] sm:$0xff]  ;;  %v9201_v3 = vld [vmem:[#allocation36_spill] sm:$0xff] }
 0x63c   :  { %v6280_v2 = vmax.f32 %v6248_v11, 0.0  ;;  %v6282_v38 = vmax.f32 %v6250_v31, 0.0  ;;  %v9193_v55 = vunpack.c.l.bf16 %v8926_v12  ;;  %v9194_v60 = vunpack.c.l.bf16 %v8929_v44  ;;  %v9058_v11 = vld [vmem:[#allocation2 + $0x30] sm:$0xff]  ;;  %v9061_v31 = vld [vmem:[#allocation2 + $0x38] sm:$0xff] }
 0x63d   :  { %v6281_v57 = vmax.f32 %v6249_v50, 0.0  ;;  %v6283_v54 = vmax.f32 %v6251_v18, 0.0  ;;  %v6193_v25 = vadd.f32 %v8898_v36, %v6119_v17  ;;  %v6195_v24 = vadd.f32 %v8903_v7, %v6121_v59  ;;  %v9202_v18 = vld [vmem:[#allocation26_spill] sm:$0xff]  ;;  %v9204_v17 = vld [vmem:[#allocation27_spill] sm:$0xff]  ;;  %v9205_v59 = vld [vmem:[#allocation37_spill] sm:$0xff] }
 0x63e   :  { %v6256_v30 = vadd.f32 %v9193_v55, %v6192_v41  ;;  %v6258_v47 = vadd.f32 %v9194_v60, %v6194_v39  ;;  %v6076_v4 = vsub.s32 5, %v8242_v23  ;;  %v6084_v6 = vsub.s32 7, %v8242_v23  ;;  %v9199_v41 = vld [vmem:[#allocation38_spill] sm:$0xff] }
 0x63f   :  { %v7063_v34 = vpack.c.bf16 %v6281_v57, %v6280_v2  ;;  %v7064_v32 = vpack.c.bf16 %v6283_v54, %v6282_v38  ;;  %v6257_v14 = vadd.f32 %v6225_v1, %v6193_v25  ;;  %v6259_v58 = vadd.f32 %v6227_v45, %v6195_v24  ;;  %v9203_v1 = vld [vmem:[#allocation41_spill] sm:$0xff]  ;;  %v9074_v38 = vld [vmem:[#allocation2 + $0x50] sm:$0xff]  ;;  %v9206_v25 = vld [vmem:[#allocation28_spill] sm:$0xff] }
 0x640   :  { %v9023_v12 = vrot.slane %v8857_v21, %v6072_v51  ;;  %v9026_v44 = vrot.slane %v8862_v61, %v6072_v51  ;;  %v6204_v7 = vunpack.c.l.bf16 %v9028_v28  ;;  %v9032_v36 = vrot.slane %v8857_v21, %v6080_v20  ;;  %v9207_v24 = vld [vmem:[#allocation44_spill] sm:$0xff] }
 0x641   :  { %6400 = vst [vmem:[#allocation16 + $0x40] sm:$0xff] %v7063_v34  ;;  %6401 = vst [vmem:[#allocation16 + $0x48] sm:$0xff] %v7064_v32  ;;  %v6288_v19 = vmax.f32 %v6256_v30, 0.0  ;;  %v6290_v9 = vmax.f32 %v6258_v47, 0.0  ;;  %v6289_v23 = vmax.f32 %v6257_v14, 0.0  ;;  %v6291_v13 = vmax.f32 %v6259_v58, 0.0 }
 0x642   :  { %v9035_v8 = vrot.slane %v8862_v61, %v6080_v20  ;;  %v6206_v42 = vunpack.c.l.bf16 %v9037_v10  ;;  %v9041_v26 = vrot.slane %v8857_v21, %v6076_v4  ;;  %v9044_v37 = vrot.slane %v8857_v21, %v6084_v6  ;;  %v9208_v32 = vld [vmem:[#allocation29_spill] sm:$0xff]  ;;  %v9210_v14 = vld [vmem:[#allocation30_spill] sm:$0xff] }
 0x643   :  { %v7067_v33 = vpack.c.bf16 %v6289_v23, %v6288_v19  ;;  %v7068_v22 = vpack.c.bf16 %v6291_v13, %v6290_v9  ;;  %v9047_v40 = vrot.slane %v8862_v61, %v6076_v4  ;;  %v6205_v5 = vunpack.c.h.bf16 %v9028_v28  ;;  %v5948_v21 = vpop.f32.mrf.mxu1  ;;  %v6001_v0 = vpop.f32.mrf.mxu0  ;;  %v9209_v4 = vld [vmem:[#allocation39_spill] sm:$0xff]  ;;  %v9211_v58 = vld [vmem:[#allocation46_spill] sm:$0xff] }
 0x644   :  { %v5396_v27 = vadd.f32 %v9195_v62, %v8685_v16  ;;  %v5398_v56 = vadd.f32 %v9197_v29, %v9196_v46  ;;  %v9055_v48 = vrot.slane %v8862_v61, %v6084_v6  ;;  %v6207_v43 = vunpack.c.h.bf16 %v9037_v10  ;;  %v9198_v61 = vld [vmem:[#allocation24_spill] sm:$0xff]  ;;  %v9212_v19 = vld [vmem:[#allocation31_spill] sm:$0xff] }
 0x645   :  { %6404 = vst [vmem:[#allocation16 + $0x60] sm:$0xff] %v7067_v33  ;;  %6405 = vst [vmem:[#allocation16 + $0x68] sm:$0xff] %v7068_v22  ;;  %v6212_v63 = vunpack.c.l.bf16 %v9058_v11  ;;  %v6214_v16 = vunpack.c.l.bf16 %v9061_v31  ;;  %v6213_v52 = vunpack.c.h.bf16 %v9058_v11  ;;  %v6215_v15 = vunpack.c.h.bf16 %v9061_v31  ;;  %v5950_v20 = vpop.f32.mrf.mxu1  ;;  %v6003_v2 = vpop.f32.mrf.mxu0  ;;  %v9213_v9 = vld [vmem:[#allocation47_spill] sm:$0xff]  ;;  %v9214_v46 = vld [vmem:[#allocation32_spill] sm:$0xff] }
 0x646   :  { %v5397_v39 = vadd.f32 %v9199_v41, %v9198_v61  ;;  %v5399_v49 = vadd.f32 %v9201_v3, %v9200_v53  ;;  %v6024_v50 = vadd.f32 %v5948_v21, %v5396_v27  ;;  %v6026_v35 = vadd.f32 %v6001_v0, %v5398_v56  ;;  %v9215_v29 = vld [vmem:[#allocation48_spill] sm:$0xff]  ;;  %v9216_v21 = vld [vmem:[#allocation33_spill] sm:$0xff] }
 0x647   :  { %v5404_v45 = vadd.f32 %v9203_v1, %v9202_v18  ;;  %v5406_v51 = vadd.f32 %v9205_v59, %v9204_v17  ;;  %v6220_v57 = vunpack.c.l.bf16 %v9074_v38  ;;  %v6221_v54 = vunpack.c.h.bf16 %v9074_v38  ;;  %v5952_v13 = vpop.f32.mrf.mxu1  ;;  %v6005_v10 = vpop.f32.mrf.mxu0  ;;  %v9217_v0 = vld [vmem:[#allocation49_spill] sm:$0xff] }
 0x648   :  { %v6098_v55 = vmul.f32 %v9023_v12, %v6024_v50  ;;  %v6100_v30 = vmul.f32 %v9032_v36, %v6026_v35  ;;  %v6025_v60 = vadd.f32 %v5950_v20, %v5397_v39  ;;  %v6027_v47 = vadd.f32 %v6003_v2, %v5399_v49 }
 0x649   :  { %v5405_v34 = vadd.f32 %v9207_v24, %v9206_v25  ;;  %v5407_v6 = vadd.f32 %v9209_v4, %v9208_v32  ;;  %v5412_v28 = vadd.f32 %v9211_v58, %v9210_v14  ;;  %v5413_v23 = vadd.f32 %v9213_v9, %v9212_v19  ;;  %v5954_v53 = vpop.f32.mrf.mxu1  ;;  %v6007_v3 = vpop.f32.mrf.mxu0 }
 0x64a   :  { %v6172_v33 = vadd.f32 %v9026_v44, %v6098_v55  ;;  %v6174_v22 = vadd.f32 %v9035_v8, %v6100_v30  ;;  %v6099_v62 = vmul.f32 %v9041_v26, %v6025_v60  ;;  %v6101_v27 = vmul.f32 %v9044_v37, %v6027_v47 }
 0x64b   :  { %v5420_v56 = vadd.f32 %v9215_v29, %v9214_v46  ;;  %v5421_v61 = vadd.f32 %v9217_v0, %v9216_v21  ;;  %v6032_v41 = vadd.f32 %v5952_v13, %v5404_v45  ;;  %v6034_v39 = vadd.f32 %v6005_v10, %v5406_v51  ;;  %v5958_v2 = vpop.f32.mrf.mxu1 }
 0x64c   :  { %v6236_v49 = vadd.f32 %v6204_v7, %v6172_v33  ;;  %v6238_v50 = vadd.f32 %v6206_v42, %v6174_v22  ;;  %v6173_v35 = vadd.f32 %v9047_v40, %v6099_v62  ;;  %v6175_v18 = vadd.f32 %v9055_v48, %v6101_v27 }
 0x64d   :  { %v6106_v1 = vmul.f32 %v9023_v12, %v6032_v41  ;;  %v6108_v17 = vmul.f32 %v9032_v36, %v6034_v39  ;;  %v6033_v59 = vadd.f32 %v5954_v53, %v5405_v34  ;;  %v6035_v20 = vadd.f32 %v6007_v3, %v5407_v6  ;;  %v5960_v25 = vpop.f32.mrf.mxu1 }
 0x64e   :  { %v6268_v55 = vmax.f32 %v6236_v49, 0.0  ;;  %v6270_v30 = vmax.f32 %v6238_v50, 0.0  ;;  %v6237_v60 = vadd.f32 %v6205_v5, %v6173_v35  ;;  %v6239_v45 = vadd.f32 %v6207_v43, %v6175_v18 }
 0x64f   :  { %v6180_v51 = vadd.f32 %v9026_v44, %v6106_v1  ;;  %v6182_v7 = vadd.f32 %v9035_v8, %v6108_v17  ;;  %v6107_v42 = vmul.f32 %v9041_v26, %v6033_v59  ;;  %v6109_v47 = vmul.f32 %v9044_v37, %v6035_v20  ;;  %v5962_v43 = vpop.f32.mrf.mxu1 }
 0x650   :  { %v6269_v24 = vmax.f32 %v6237_v60, 0.0  ;;  %v6271_v32 = vmax.f32 %v6239_v45, 0.0  ;;  %v6040_v4 = vadd.f32 %v5958_v2, %v5412_v28  ;;  %v6041_v14 = vadd.f32 %v5960_v25, %v5413_v23  ;;  %v7844_v23 = vld [vmem:[#allocation2 + $0x70] sm:$0xff]  ;;  %v7845_v2 = vld [vmem:[#allocation2 + $0x58] sm:$0xff] }
 0x651   :  { %v6244_v34 = vadd.f32 %v6212_v63, %v6180_v51  ;;  %v6246_v6 = vadd.f32 %v6214_v16, %v6182_v7  ;;  %v6181_v58 = vadd.f32 %v9047_v40, %v6107_v42  ;;  %v6183_v5 = vadd.f32 %v9055_v48, %v6109_v47  ;;  %v5964_v16 = vpop.f32.mrf.mxu1  ;;  %v9220_v7 = vld [vmem:[#allocation43_spill] sm:$0xff]  ;;  %v7846_v47 = vld [vmem:[#allocation2 + $0x78] sm:$0xff] }
 0x652   :  { %v7057_v19 = vpack.c.bf16 %v6269_v24, %v6268_v55  ;;  %v7058_v9 = vpack.c.bf16 %v6271_v32, %v6270_v30  ;;  %v6114_v13 = vmul.f32 %v9023_v12, %v6040_v4  ;;  %v6115_v10 = vmul.f32 %v9041_v26, %v6041_v14  ;;  %v9219_v55 = vld [vmem:[#allocation42_spill] sm:$0xff] }
 0x653   :  { %v6245_v33 = vadd.f32 %v6213_v52, %v6181_v58  ;;  %v6247_v28 = vadd.f32 %v6215_v15, %v6183_v5  ;;  %v6228_v63 = vunpack.c.l.bf16 %v7844_v23  ;;  %v6229_v22 = vunpack.c.h.bf16 %v7844_v23 }
 0x654   :  { %6394 = vst [vmem:[#allocation16 + $0x10] sm:$0xff] %v7057_v19  ;;  %6395 = vst [vmem:[#allocation16 + $0x18] sm:$0xff] %v7058_v9  ;;  %v6188_v62 = vadd.f32 %v9026_v44, %v6114_v13  ;;  %v6189_v27 = vadd.f32 %v9047_v40, %v6115_v10  ;;  %v6048_v46 = vadd.f32 %v5962_v43, %v5420_v56  ;;  %v6276_v21 = vmax.f32 %v6244_v34, 0.0  ;;  %v9221_v34 = vld [vmem:[#allocation45_spill] sm:$0xff] }
 0x655   :  { %v6049_v29 = vadd.f32 %v5964_v16, %v5421_v61  ;;  %v6278_v0 = vmax.f32 %v6246_v6, 0.0  ;;  %v6277_v41 = vmax.f32 %v6245_v33, 0.0  ;;  %v6279_v11 = vmax.f32 %v6247_v28, 0.0 }
 0x656   :  { %v6252_v31 = vadd.f32 %v6220_v57, %v6188_v62  ;;  %v6253_v52 = vadd.f32 %v6221_v54, %v6189_v27  ;;  %v6122_v15 = vmul.f32 %v9023_v12, %v6048_v46  ;;  %v6223_v51 = vunpack.c.h.bf16 %v7845_v2 }
 0x657   :  { %v6123_v39 = vmul.f32 %v9041_v26, %v6049_v29  ;;  %v7061_v53 = vpack.c.bf16 %v6277_v41, %v6276_v21  ;;  %v7062_v3 = vpack.c.bf16 %v6279_v11, %v6278_v0  ;;  %v9218_v26 = vld [vmem:[#allocation40_spill] sm:$0xff]  ;;  %v6230_v25 = vunpack.c.l.bf16 %v7846_v47 }
 0x658   :  { %v6284_v49 = vmax.f32 %v6252_v31, 0.0  ;;  %v6285_v50 = vmax.f32 %v6253_v52, 0.0  ;;  %v6196_v56 = vadd.f32 %v9026_v44, %v6122_v15  ;;  %v6222_v44 = vunpack.c.l.bf16 %v7845_v2 }
 0x659   :  { %v6197_v61 = vadd.f32 %v9047_v40, %v6123_v39  ;;  %6398 = vst [vmem:[#allocation16 + $0x30] sm:$0xff] %v7061_v53  ;;  %6399 = vst [vmem:[#allocation16 + $0x38] sm:$0xff] %v7062_v3  ;;  %v6231_v19 = vunpack.c.h.bf16 %v7846_v47 }
 0x65a   :  { %v7065_v35 = vpack.c.bf16 %v6285_v50, %v6284_v49  ;;  %v6260_v18 = vadd.f32 %v6228_v63, %v6196_v56 }
 0x65b   :  { %v6261_v57 = vadd.f32 %v6229_v22, %v6197_v61 }
 0x65c   :  { %6402 = vst [vmem:[#allocation16 + $0x50] sm:$0xff] %v7065_v35  ;;  %v6292_v38 = vmax.f32 %v6260_v18, 0.0 }
 0x65d   :  { %v6293_v54 = vmax.f32 %v6261_v57, 0.0 }
 0x65f   :  { %v7069_v1 = vpack.c.bf16 %v6293_v54, %v6292_v38 }
 0x661   :  { %6406 = vst [vmem:[#allocation16 + $0x70] sm:$0xff] %v7069_v1 }
 0x663   :  { %v6011_v12 = vpop.f32.mrf.mxu1 }
 0x664   :  { %v6042_v17 = vadd.f32 %v6011_v12, %v9218_v26 }
 0x665   :  { %v6013_v59 = vpop.f32.mrf.mxu1 }
 0x666   :  { %v6116_v20 = vmul.f32 %v9032_v36, %v6042_v17  ;;  %v6043_v40 = vadd.f32 %v6013_v59, %v9219_v55 }
 0x667   :  { %v6015_v30 = vpop.f32.mrf.mxu1 }
 0x668   :  { %v6190_v60 = vadd.f32 %v9035_v8, %v6116_v20  ;;  %v6117_v45 = vmul.f32 %v9044_v37, %v6043_v40  ;;  %v6050_v42 = vadd.f32 %v6015_v30, %v9220_v7 }
 0x669   :  { %v6017_v24 = vpop.f32.mrf.mxu1 }
 0x66a   :  { %v6254_v32 = vadd.f32 %v6222_v44, %v6190_v60  ;;  %v6191_v4 = vadd.f32 %v9055_v48, %v6117_v45  ;;  %v6124_v14 = vmul.f32 %v9032_v36, %v6050_v42  ;;  %v6051_v6 = vadd.f32 %v6017_v24, %v9221_v34 }
 0x66c   :  { %v6255_v58 = vadd.f32 %v6223_v51, %v6191_v4  ;;  %v6198_v5 = vadd.f32 %v9035_v8, %v6124_v14  ;;  %v6125_v43 = vmul.f32 %v9044_v37, %v6051_v6  ;;  %v6286_v9 = vmax.f32 %v6254_v32, 0.0 }
 0x66e   :  { %v6287_v13 = vmax.f32 %v6255_v58, 0.0  ;;  %v6262_v10 = vadd.f32 %v6230_v25, %v6198_v5  ;;  %v6199_v33 = vadd.f32 %v9055_v48, %v6125_v43 }
 0x670   :  { %v7066_v28 = vpack.c.bf16 %v6287_v13, %v6286_v9  ;;  %v6263_v23 = vadd.f32 %v6231_v19, %v6199_v33  ;;  %v6294_v63 = vmax.f32 %v6262_v10, 0.0 }
 0x672   :  { %6403 = vst [vmem:[#allocation16 + $0x58] sm:$0xff] %v7066_v28  ;;  %v6295_v36 = vmax.f32 %v6263_v23, 0.0 }
 0x674   :  { %v7070_v16 = vpack.c.bf16 %v6295_v36, %v6294_v63 }
 0x676   :  { %6407 = vst [vmem:[#allocation16 + $0x78] sm:$0xff] %v7070_v16 }
 0x677   :  { %8018 = shalt.err (!%p8015_p2)
}
 0x678   :  { %6419 = dma.vmem_to_hbm [thread:$0]  %s6414_s9, 2048, %s9150_s10, [#allocation4], %s8046_s13, %s8046_s13, %s8047_s14  }
 0x679   :  { %8037 = dma.done.wait [#allocation4], 2048  }
 0x67a   :  { %8038 = vsyncadd [#allocation4], 4294965248 }
 0x67b   :  { %6423 = vsyncpa [#allocation3], 1 }
 0x67c   :  { %6424 = vsyncpa [#allocation6], 1 }
 0x67d   :  { %6425 = vsyncpa [#allocation9], 1 }
 0x67e   :  { %6426 = vsyncpa [#allocation12], 1 }
 0x67f   :  { %6427 = vsyncpa [#allocation15], 1 }
 0x680   :  { %6428 = vsyncpa [#allocation4], 1 }

// kernel: tpu_custom_call.1
= control target key start
LH: loop header
LB: loop body
LE: loop exit
PB: predicated region body
PF: predicated region fallthrough
CT: control target
= control target key end

     0   :  { %15 = vsyncpa [#allocation3], 0  ;;  %s9140_s0 = inlined_call_operand.hbm [shape: bf16[2,16,1024], index: 0, kind: input, shape index: {}]   ;;  %s9141_s1 = inlined_call_operand.hbm [shape: bf16[1024,512], index: 1, kind: input, shape index: {}]   ;;  %s9142_s2 = inlined_call_operand.hbm [shape: f32[1,512], index: 2, kind: input, shape index: {}]   ;;  %s9143_s3 = inlined_call_operand.hbm [shape: f32[1,512], index: 3, kind: input, shape index: {}]   ;;  %s9144_s4 = inlined_call_operand.hbm [shape: bf16[3,384,128], index: 4, kind: input, shape index: {}]   ;;  %s9145_s5 = inlined_call_operand.hbm [shape: f32[3,1,128], index: 5, kind: input, shape index: {}]   ;;  %s9146_s6 = inlined_call_operand.hbm [shape: f32[3,1,128], index: 6, kind: input, shape index: {}]   ;;  %s9147_s7 = inlined_call_operand.hbm [shape: bf16[512,1024], index: 7, kind: input, shape index: {}]   ;;  %s9148_s8 = inlined_call_operand.vmem [shape: f32[1,1024], index: 8, kind: input, shape index: {}]   ;;  %s9149_s9 = inlined_call_operand.vmem [shape: f32[1,1024], index: 9, kind: input, shape index: {}]   ;;  %s9150_s10 = inlined_call_operand.hbm [shape: bf16[2,16,1024], index: 10, kind: output, shape index: {}]  }
   0x1   :  { %16 = vsyncpa [#allocation6], 0 }
   0x2   :  { %17 = vsyncpa [#allocation9], 0 }
   0x3   :  { %18 = vsyncpa [#allocation12], 0 }
   0x4   :  { %19 = vsyncpa [#allocation15], 0 }
   0x5   :  { %20 = vsyncpa [#allocation4], 0  ;;  %s8039_s13 = smov [#allocation5]  }
   0x6   :  { %s38_s14 = sshll.u32 %s8039_s13, 4  ;;  %s39_s14 = int_to_ptr.vmem [resolvable:$true] %s38_s14 }
   0x7   :  { %s7855_s15 = scalar_lea.vmem %s39_s14, 32768  ;;  %p7860_p1 = scmp.lt.s32.totalorder %s39_s14, %s39_s14 }
   0x8   :  { %p7856_p0 = scmp.ne.s32.totalorder %s39_s14, %s7855_s15  ;;  %p7861_p2 = scmp.lt.s32.totalorder %s7855_s15, %s7855_s15 }
   0xa   :  { %p7862_p3 = por %p7861_p2, %p7860_p1 }
   0xc   :  { %p7863_p4 = pnand %p7862_p3, %p7856_p0 }
   0xe   :  { %7866 = shalt.err (!%p7863_p4)
}
   0xf   :  { %s8040_s16 = smov 256   ;;  %s8041_s17 = smov 16  }
  0x10   :  { %44 = dma.hbm_to_vmem [thread:$0]  %s9141_s1, 32768, %s39_s14, [#allocation6], %s8040_s16, %s8040_s16, %s8041_s17  }
  0x11   :  { %s8042_s20 = smov [#allocation8]   ;;  %s8043_s22 = smov [#allocation11]  }
  0x12   :  { %s61_s21 = sshll.u32 %s8042_s20, 4  ;;  %s82_s23 = sshll.u32 %s8043_s22, 4  ;;  %s62_s21 = int_to_ptr.vmem [resolvable:$true] %s61_s21  ;;  %s83_s23 = int_to_ptr.vmem [resolvable:$true] %s82_s23 }
  0x13   :  { %s7875_s24 = scalar_lea.vmem %s62_s21, 64  ;;  %p7880_p6 = scmp.lt.s32.totalorder %s62_s21, %s62_s21 }
  0x14   :  { %p7876_p5 = scmp.ne.s32.totalorder %s62_s21, %s7875_s24  ;;  %p7881_p7 = scmp.lt.s32.totalorder %s7875_s24, %s7875_s24 }
  0x16   :  { %p7882_p8 = por %p7881_p7, %p7880_p6 }
  0x18   :  { %p7883_p9 = pnand %p7882_p8, %p7876_p5 }
  0x1a   :  { %7886 = shalt.err (!%p7883_p9)
}
  0x1b   :  { %64 = dma.hbm_to_vmem [thread:$0]  %s9143_s3, 64, %s62_s21, [#allocation9]  }
  0x1c   :  { %s7895_s27 = scalar_lea.vmem %s83_s23, 48  ;;  %s7899_s1 = scalar_lea.vmem %s83_s23, 64 }
  0x1d   :  { %p7896_p10 = scmp.ne.s32.totalorder %s83_s23, %s7895_s27  ;;  %p7900_p11 = scmp.lt.s32.totalorder %s83_s23, %s83_s23 }
  0x1e   :  { %p7901_p12 = scmp.lt.s32.totalorder %s7899_s1, %s7895_s27 }
  0x20   :  { %p7902_p13 = por %p7901_p12, %p7900_p11 }
  0x22   :  { %p7903_p0 = pnand %p7902_p13, %p7896_p10 }
  0x24   :  { %7906 = shalt.err (!%p7903_p0)
}
  0x25   :  { %s8044_s28 = smov 1   ;;  %s8045_s11 = smov [#allocation2]  }
  0x26   :  { %88 = dma.hbm_to_vmem [thread:$0]  %s9145_s5, 48, %s83_s23, [#allocation12], %s8041_s17, %s8041_s17, %s8044_s28  }
  0x27   :  { %s26_s12 = sshll.u32 %s8045_s11, 4  ;;  %s27_s12 = int_to_ptr.vmem [resolvable:$true] %s26_s12 }
  0x28   :  { %s7915_s3 = scalar_lea.vmem %s27_s12, 2048  ;;  %p7920_p2 = scmp.lt.s32.totalorder %s27_s12, %s27_s12 }
  0x29   :  { %p7916_p1 = scmp.ne.s32.totalorder %s27_s12, %s7915_s3  ;;  %p7921_p3 = scmp.lt.s32.totalorder %s7915_s3, %s7915_s3 }
  0x2b   :  { %p7922_p4 = por %p7921_p3, %p7920_p2 }
  0x2d   :  { %p7923_p5 = pnand %p7922_p4, %p7916_p1 }
  0x2f   :  { %7926 = shalt.err (!%p7923_p5)
}
  0x30   :  { %s8046_s13 = smov 512   ;;  %s8047_s14 = smov 32  }
  0x31   :  { %32 = dma.hbm_to_vmem [thread:$0]  %s9140_s0, 2048, %s27_s12, [#allocation3], %s8046_s13, %s8046_s13, %s8047_s14  }
  0x32   :  { %s8048_s5 = smov [#allocation7]   ;;  %s8049_s19 = smov [#allocation10]  }
  0x33   :  { %s51_s18 = sshll.u32 %s8048_s5, 4  ;;  %s70_s20 = sshll.u32 %s8049_s19, 4  ;;  %s52_s18 = int_to_ptr.vmem [resolvable:$true] %s51_s18  ;;  %s71_s20 = int_to_ptr.vmem [resolvable:$true] %s70_s20 }
  0x34   :  { %s7935_s21 = scalar_lea.vmem %s52_s18, 64  ;;  %p7940_p7 = scmp.lt.s32.totalorder %s52_s18, %s52_s18 }
  0x35   :  { %p7936_p6 = scmp.ne.s32.totalorder %s52_s18, %s7935_s21  ;;  %p7941_p8 = scmp.lt.s32.totalorder %s7935_s21, %s7935_s21 }
  0x37   :  { %p7942_p9 = por %p7941_p8, %p7940_p7 }
  0x39   :  { %p7943_p10 = pnand %p7942_p9, %p7936_p6 }
  0x3b   :  { %7946 = shalt.err (!%p7943_p10)
}
  0x3c   :  { %54 = dma.hbm_to_vmem [thread:$0]  %s9142_s2, 64, %s52_s18, [#allocation6]  }
  0x3d   :  { %s7955_s24 = scalar_lea.vmem %s71_s20, 9216  ;;  %p7960_p12 = scmp.lt.s32.totalorder %s71_s20, %s71_s20 }
  0x3e   :  { %p7956_p11 = scmp.ne.s32.totalorder %s71_s20, %s7955_s24  ;;  %p7961_p13 = scmp.lt.s32.totalorder %s7955_s24, %s7955_s24 }
  0x40   :  { %p7962_p0 = por %p7961_p13, %p7960_p12 }
  0x42   :  { %p7963_p1 = pnand %p7962_p0, %p7956_p11 }
  0x44   :  { %7966 = shalt.err (!%p7963_p1)
}
  0x45   :  { %s8050_s0 = smov 64   ;;  %s8051_s25 = smov 4  }
  0x46   :  { %76 = dma.hbm_to_vmem [thread:$0]  %s9144_s4, 9216, %s71_s20, [#allocation9], %s8050_s0, %s8050_s0, %s8051_s25  }
  0x47   :  { %s8052_s1 = smov [#allocation13]   ;;  %s8053_s30 = smov [#allocation14]  }
  0x48   :  { %s94_s29 = sshll.u32 %s8052_s1, 4  ;;  %s106_s11 = sshll.u32 %s8053_s30, 4  ;;  %s95_s29 = int_to_ptr.vmem [resolvable:$true] %s94_s29  ;;  %s107_s11 = int_to_ptr.vmem [resolvable:$true] %s106_s11 }
  0x49   :  { %s7975_s2 = scalar_lea.vmem %s95_s29, 48  ;;  %s7979_s12 = scalar_lea.vmem %s95_s29, 64 }
  0x4a   :  { %p7976_p2 = scmp.ne.s32.totalorder %s95_s29, %s7975_s2  ;;  %p7980_p3 = scmp.lt.s32.totalorder %s95_s29, %s95_s29 }
  0x4b   :  { %p7981_p4 = scmp.lt.s32.totalorder %s7979_s12, %s7975_s2 }
  0x4d   :  { %p7982_p5 = por %p7981_p4, %p7980_p3 }
  0x4f   :  { %p7983_p6 = pnand %p7982_p5, %p7976_p2 }
  0x51   :  { %7986 = shalt.err (!%p7983_p6)
}
  0x52   :  { %100 = dma.hbm_to_vmem [thread:$0]  %s9146_s6, 48, %s95_s29, [#allocation12], %s8041_s17, %s8041_s17, %s8044_s28  }
  0x53   :  { %s7995_s4 = scalar_lea.vmem %s107_s11, 32768  ;;  %p8000_p8 = scmp.lt.s32.totalorder %s107_s11, %s107_s11 }
  0x54   :  { %p7996_p7 = scmp.ne.s32.totalorder %s107_s11, %s7995_s4  ;;  %p8001_p9 = scmp.lt.s32.totalorder %s7995_s4, %s7995_s4 }
  0x56   :  { %p8002_p10 = por %p8001_p9, %p8000_p8 }
  0x58   :  { %p8003_p11 = pnand %p8002_p10, %p7996_p7 }
  0x5a   :  { %8006 = shalt.err (!%p8003_p11)
}
  0x5b   :  { %112 = dma.hbm_to_vmem [thread:$0]  %s9147_s7, 32768, %s107_s11, [#allocation15], %s8046_s13, %s8046_s13, %s8047_s14  }
  0x5c   :  { %8027 = dma.done.wait [#allocation3], 2048  }
  0x5d   :  { %8028 = vsyncadd [#allocation3], 4294965248 }
  0x5e   :  { %8029 = dma.done.wait [#allocation6], 32832  }
  0x5f   :  { %8030 = vsyncadd [#allocation6], 4294934464 }
  0x60   :  { %8031 = dma.done.wait [#allocation9], 9280  }
  0x61   :  { %8032 = vsyncadd [#allocation9], 4294958016 }
  0x62   :  { %8033 = dma.done.wait [#allocation12], 96  }
  0x63   :  { %8034 = vsyncadd [#allocation12], 4294967200 }
  0x64   :  { %8035 = dma.done.wait [#allocation15], 32768  }
  0x65   :  { %8036 = vsyncadd [#allocation15], 4294934528  ;;  %v7375_v0 = vld [vmem:[#allocation5 + $0xe4] ss:$16 sps:$4 sm:$0xff]   ;;  %v7379_v2 = vld [vmem:[#allocation5 + $0xe0] ss:$16 sps:$4 sm:$0xff]  }
  0x66   :  { %v7377_v1 = vld [vmem:[#allocation5 + $0x2e4] ss:$16 sps:$4 sm:$0xff]   ;;  %1774 = vmatprep.subr.bf16.mxu0 %v7375_v0  ;;  %v7380_v3 = vld [vmem:[#allocation5 + $0x2e0] ss:$16 sps:$4 sm:$0xff]   ;;  %v143_v50 = vld [vmem:[#allocation2 + $0x8] sm:$0xff] }
  0x67   :  { %1827 = vmatprep.subr.bf16.mxu1 %v7377_v1  ;;  %v7381_v4 = vld [vmem:[#allocation5 + $0xc4] ss:$16 sps:$4 sm:$0xff]   ;;  %1775 = vmatpush1.bf16.msra.mxu0 %v7379_v2  ;;  %v7385_v6 = vld [vmem:[#allocation5 + $0xc0] ss:$16 sps:$4 sm:$0xff]   ;;  %v147_v51 = vld [vmem:[#allocation2 + $0x28] sm:$0xff] }
  0x68   :  { %1828 = vmatpush1.bf16.msra.mxu1 %v7380_v3  ;;  %v7383_v5 = vld [vmem:[#allocation5 + $0x2c4] ss:$16 sps:$4 sm:$0xff]   ;;  %1776 = vmatprep.subr.bf16.mxu0 %v7381_v4  ;;  %v7386_v7 = vld [vmem:[#allocation5 + $0x2c0] ss:$16 sps:$4 sm:$0xff]   ;;  %v8151_v54 = vcombine.high %v143_v50, %v147_v51 }
  0x69   :  { %1829 = vmatprep.subr.bf16.mxu1 %v7383_v5  ;;  %v7387_v8 = vld [vmem:[#allocation5 + $0xa4] ss:$16 sps:$4 sm:$0xff]   ;;  %v7391_v10 = vld [vmem:[#allocation5 + $0xa0] ss:$16 sps:$4 sm:$0xff]  }
  0x6a   :  { %v7389_v9 = vld [vmem:[#allocation5 + $0x2a4] ss:$16 sps:$4 sm:$0xff]   ;;  %v7392_v11 = vld [vmem:[#allocation5 + $0x2a0] ss:$16 sps:$4 sm:$0xff]   ;;  %1859 = vmatprep.mubr.bf16.mxu1 %v8151_v54 }
  0x6b   :  { %1777 = vmatpush1.bf16.msra.mxu0 %v7385_v6  ;;  %v7393_v12 = vld [vmem:[#allocation5 + $0x84] ss:$16 sps:$4 sm:$0xff]   ;;  %v7397_v14 = vld [vmem:[#allocation5 + $0x80] ss:$16 sps:$4 sm:$0xff]  }
  0x6c   :  { %1830 = vmatpush1.bf16.msra.mxu1 %v7386_v7  ;;  %1778 = vmatprep.subr.bf16.mxu0 %v7387_v8  ;;  %v7395_v13 = vld [vmem:[#allocation5 + $0x284] ss:$16 sps:$4 sm:$0xff]   ;;  %v7398_v15 = vld [vmem:[#allocation5 + $0x280] ss:$16 sps:$4 sm:$0xff]  }
  0x6d   :  { %1831 = vmatprep.subr.bf16.mxu1 %v7389_v9  ;;  %v7399_v16 = vld [vmem:[#allocation5 + $0x64] ss:$16 sps:$4 sm:$0xff]   ;;  %v7403_v18 = vld [vmem:[#allocation5 + $0x60] ss:$16 sps:$4 sm:$0xff]   ;;  %v8157_v9 = vcombine.low %v143_v50, %v147_v51  ;;  %v8183_v50 = vld [vmem:[#allocation2 + $0x38] sm:$0xff] }
  0x6e   :  { %v7401_v17 = vld [vmem:[#allocation5 + $0x264] ss:$16 sps:$4 sm:$0xff]   ;;  %v7404_v19 = vld [vmem:[#allocation5 + $0x260] ss:$16 sps:$4 sm:$0xff]  }
  0x6f   :  { %1779 = vmatpush1.bf16.msra.mxu0 %v7391_v10  ;;  %v7405_v20 = vld [vmem:[#allocation5 + $0x44] ss:$16 sps:$4 sm:$0xff]   ;;  %v7409_v22 = vld [vmem:[#allocation5 + $0x40] ss:$16 sps:$4 sm:$0xff]  }
  0x70   :  { %1832 = vmatpush1.bf16.msra.mxu1 %v7392_v11  ;;  %1780 = vmatprep.subr.bf16.mxu0 %v7393_v12  ;;  %v7407_v21 = vld [vmem:[#allocation5 + $0x244] ss:$16 sps:$4 sm:$0xff]   ;;  %v7410_v23 = vld [vmem:[#allocation5 + $0x240] ss:$16 sps:$4 sm:$0xff]  }
  0x71   :  { %1833 = vmatprep.subr.bf16.mxu1 %v7395_v13  ;;  %v7411_v24 = vld [vmem:[#allocation5 + $0x24] ss:$16 sps:$4 sm:$0xff]   ;;  %v7415_v26 = vld [vmem:[#allocation5 + $0x20] ss:$16 sps:$4 sm:$0xff]  }
  0x72   :  { %v7413_v25 = vld [vmem:[#allocation5 + $0x224] ss:$16 sps:$4 sm:$0xff]   ;;  %v7416_v27 = vld [vmem:[#allocation5 + $0x220] ss:$16 sps:$4 sm:$0xff]  }
  0x73   :  { %1781 = vmatpush1.bf16.msra.mxu0 %v7397_v14  ;;  %v7417_v28 = vld [vmem:[#allocation5 + $0x4] ss:$16 sps:$4 sm:$0xff]   ;;  %v7421_v30 = vld [vmem:[#allocation5] ss:$16 sps:$4 sm:$0xff]  }
  0x74   :  { %1834 = vmatpush1.bf16.msra.mxu1 %v7398_v15  ;;  %1782 = vmatprep.subr.bf16.mxu0 %v7399_v16  ;;  %v7419_v29 = vld [vmem:[#allocation5 + $0x204] ss:$16 sps:$4 sm:$0xff]   ;;  %v7422_v31 = vld [vmem:[#allocation5 + $0x200] ss:$16 sps:$4 sm:$0xff]  }
  0x75   :  { %1835 = vmatprep.subr.bf16.mxu1 %v7401_v17  ;;  %v7423_v32 = vld [vmem:[#allocation5 + $0x1e4] ss:$16 sps:$4 sm:$0xff]   ;;  %v7427_v34 = vld [vmem:[#allocation5 + $0x1e0] ss:$16 sps:$4 sm:$0xff]  }
  0x76   :  { %v7425_v33 = vld [vmem:[#allocation5 + $0x3e4] ss:$16 sps:$4 sm:$0xff]   ;;  %v7428_v35 = vld [vmem:[#allocation5 + $0x3e0] ss:$16 sps:$4 sm:$0xff]  }
  0x77   :  { %1783 = vmatpush1.bf16.msra.mxu0 %v7403_v18  ;;  %v7429_v36 = vld [vmem:[#allocation5 + $0x1c4] ss:$16 sps:$4 sm:$0xff]   ;;  %v7433_v38 = vld [vmem:[#allocation5 + $0x1c0] ss:$16 sps:$4 sm:$0xff]  }
  0x78   :  { %1836 = vmatpush1.bf16.msra.mxu1 %v7404_v19  ;;  %1784 = vmatprep.subr.bf16.mxu0 %v7405_v20  ;;  %v7431_v37 = vld [vmem:[#allocation5 + $0x3c4] ss:$16 sps:$4 sm:$0xff]   ;;  %v7434_v39 = vld [vmem:[#allocation5 + $0x3c0] ss:$16 sps:$4 sm:$0xff]  }
  0x79   :  { %1837 = vmatprep.subr.bf16.mxu1 %v7407_v21  ;;  %v7435_v40 = vld [vmem:[#allocation5 + $0x1a4] ss:$16 sps:$4 sm:$0xff]   ;;  %v7439_v42 = vld [vmem:[#allocation5 + $0x1a0] ss:$16 sps:$4 sm:$0xff]  }
  0x7a   :  { %v7437_v41 = vld [vmem:[#allocation5 + $0x3a4] ss:$16 sps:$4 sm:$0xff]   ;;  %v7440_v43 = vld [vmem:[#allocation5 + $0x3a0] ss:$16 sps:$4 sm:$0xff]  }
  0x7b   :  { %1785 = vmatpush1.bf16.msra.mxu0 %v7409_v22  ;;  %v7441_v44 = vld [vmem:[#allocation5 + $0x184] ss:$16 sps:$4 sm:$0xff]   ;;  %v7445_v46 = vld [vmem:[#allocation5 + $0x180] ss:$16 sps:$4 sm:$0xff]  }
  0x7c   :  { %1838 = vmatpush1.bf16.msra.mxu1 %v7410_v23  ;;  %1786 = vmatprep.subr.bf16.mxu0 %v7411_v24  ;;  %v7443_v45 = vld [vmem:[#allocation5 + $0x384] ss:$16 sps:$4 sm:$0xff]   ;;  %v7446_v47 = vld [vmem:[#allocation5 + $0x380] ss:$16 sps:$4 sm:$0xff]  }
  0x7d   :  { %1839 = vmatprep.subr.bf16.mxu1 %v7413_v25  ;;  %v142_v48 = vld [vmem:[#allocation2] sm:$0xff] }
  0x7e   :  { %v146_v49 = vld [vmem:[#allocation2 + $0x20] sm:$0xff] }
  0x7f   :  { %1787 = vmatpush1.bf16.msra.mxu0 %v7415_v26  ;;  %v7447_v52 = vld [vmem:[#allocation5 + $0x164] ss:$16 sps:$4 sm:$0xff]   ;;  %v8149_v53 = vcombine.high %v142_v48, %v146_v49  ;;  %v7451_v56 = vld [vmem:[#allocation5 + $0x160] ss:$16 sps:$4 sm:$0xff]   ;;  %v8155_v8 = vcombine.low %v142_v48, %v146_v49  ;;  %v8177_v48 = vld [vmem:[#allocation2 + $0x18] sm:$0xff] }
  0x80   :  { %1840 = vmatpush1.bf16.msra.mxu1 %v7416_v27  ;;  %1788 = vmatprep.subr.bf16.mxu0 %v7417_v28  ;;  %v7449_v55 = vld [vmem:[#allocation5 + $0x364] ss:$16 sps:$4 sm:$0xff]   ;;  %v7452_v57 = vld [vmem:[#allocation5 + $0x360] ss:$16 sps:$4 sm:$0xff]   ;;  %v8187_v51 = vcombine.high %v8177_v48, %v8183_v50 }
  0x81   :  { %1841 = vmatprep.subr.bf16.mxu1 %v7419_v29  ;;  %1806 = vmatprep.mubr.bf16.mxu0 %v8149_v53  ;;  %v7453_v58 = vld [vmem:[#allocation5 + $0x144] ss:$16 sps:$4 sm:$0xff]   ;;  %v7457_v60 = vld [vmem:[#allocation5 + $0x140] ss:$16 sps:$4 sm:$0xff]  }
  0x82   :  { %v7455_v59 = vld [vmem:[#allocation5 + $0x344] ss:$16 sps:$4 sm:$0xff]   ;;  %v7458_v61 = vld [vmem:[#allocation5 + $0x340] ss:$16 sps:$4 sm:$0xff]  }
  0x83   :  { %1789 = vmatpush1.bf16.msra.mxu0 %v7421_v30  ;;  %v7459_v62 = vld [vmem:[#allocation5 + $0x124] ss:$16 sps:$4 sm:$0xff]   ;;  %v7463_v0 = vld [vmem:[#allocation5 + $0x120] ss:$16 sps:$4 sm:$0xff]   ;;  %v151_v30 = vld [vmem:[#allocation2 + $0x48] sm:$0xff] }
  0x84   :  { %1842 = vmatpush1.bf16.msra.mxu1 %v7422_v31  ;;  %1790 = vmatprep.subr.bf16.mxu0 %v7423_v32  ;;  %v7461_v63 = vld [vmem:[#allocation5 + $0x324] ss:$16 sps:$4 sm:$0xff]   ;;  %v7464_v1 = vld [vmem:[#allocation5 + $0x320] ss:$16 sps:$4 sm:$0xff]   ;;  %v155_v31 = vld [vmem:[#allocation2 + $0x68] sm:$0xff] }
  0x85   :  { %1843 = vmatprep.subr.bf16.mxu1 %v7425_v33  ;;  %v7465_v2 = vld [vmem:[#allocation5 + $0x104] ss:$16 sps:$4 sm:$0xff]   ;;  %v7469_v4 = vld [vmem:[#allocation5 + $0x100] ss:$16 sps:$4 sm:$0xff]  }
  0x86   :  { %v7467_v3 = vld [vmem:[#allocation5 + $0x304] ss:$16 sps:$4 sm:$0xff]   ;;  %v7470_v5 = vld [vmem:[#allocation5 + $0x300] ss:$16 sps:$4 sm:$0xff]  }
  0x87   :  { %1791 = vmatpush2.bf16.msra.mxu0 %v7427_v34  ;;  %v7473_v6 = vld [vmem:[#allocation5 + $0x4e4] ss:$16 sps:$4 sm:$0xff]   ;;  %v7471_v10 = vld [vmem:[#allocation5 + $0x4e0] ss:$16 sps:$4 sm:$0xff]   ;;  %v8163_v34 = vcombine.high %v151_v30, %v155_v31 }
  0x88   :  { %1844 = vmatpush2.bf16.msra.mxu1 %v7428_v35  ;;  %1792 = vmatprep.subr.bf16.mxu0 %v7429_v36  ;;  %v7476_v7 = vld [vmem:[#allocation5 + $0x6e4] ss:$16 sps:$4 sm:$0xff]   ;;  %v7474_v11 = vld [vmem:[#allocation5 + $0x6e0] ss:$16 sps:$4 sm:$0xff]  }
  0x89   :  { %1845 = vmatprep.subr.bf16.mxu1 %v7431_v37  ;;  %v7479_v12 = vld [vmem:[#allocation5 + $0x4c4] ss:$16 sps:$4 sm:$0xff]   ;;  %v7477_v14 = vld [vmem:[#allocation5 + $0x4c0] ss:$16 sps:$4 sm:$0xff]   ;;  %v8167_v37 = vcombine.low %v151_v30, %v155_v31 }
  0x8a   :  { %v7482_v13 = vld [vmem:[#allocation5 + $0x6c4] ss:$16 sps:$4 sm:$0xff]   ;;  %v7480_v15 = vld [vmem:[#allocation5 + $0x6c0] ss:$16 sps:$4 sm:$0xff]  }
  0x8b   :  { %1793 = vmatpush2.bf16.msra.mxu0 %v7433_v38  ;;  %v7485_v16 = vld [vmem:[#allocation5 + $0x4a4] ss:$16 sps:$4 sm:$0xff]   ;;  %v7483_v18 = vld [vmem:[#allocation5 + $0x4a0] ss:$16 sps:$4 sm:$0xff]  }
  0x8c   :  { %1846 = vmatpush2.bf16.msra.mxu1 %v7434_v39  ;;  %1794 = vmatprep.subr.bf16.mxu0 %v7435_v40  ;;  %v7488_v17 = vld [vmem:[#allocation5 + $0x6a4] ss:$16 sps:$4 sm:$0xff]   ;;  %v7486_v19 = vld [vmem:[#allocation5 + $0x6a0] ss:$16 sps:$4 sm:$0xff]  }
  0x8d   :  { %1847 = vmatprep.subr.bf16.mxu1 %v7437_v41  ;;  %v7491_v20 = vld [vmem:[#allocation5 + $0x484] ss:$16 sps:$4 sm:$0xff]   ;;  %v7489_v22 = vld [vmem:[#allocation5 + $0x480] ss:$16 sps:$4 sm:$0xff]  }
  0x8e   :  { %v7494_v21 = vld [vmem:[#allocation5 + $0x684] ss:$16 sps:$4 sm:$0xff]   ;;  %v7492_v23 = vld [vmem:[#allocation5 + $0x680] ss:$16 sps:$4 sm:$0xff]  }
  0x8f   :  { %1795 = vmatpush2.bf16.msra.mxu0 %v7439_v42  ;;  %v7497_v24 = vld [vmem:[#allocation5 + $0x464] ss:$16 sps:$4 sm:$0xff]   ;;  %v7495_v26 = vld [vmem:[#allocation5 + $0x460] ss:$16 sps:$4 sm:$0xff]  }
  0x90   :  { %1848 = vmatpush2.bf16.msra.mxu1 %v7440_v43  ;;  %1796 = vmatprep.subr.bf16.mxu0 %v7441_v44  ;;  %v7500_v25 = vld [vmem:[#allocation5 + $0x664] ss:$16 sps:$4 sm:$0xff]   ;;  %v7498_v27 = vld [vmem:[#allocation5 + $0x660] ss:$16 sps:$4 sm:$0xff]  }
  0x91   :  { %1849 = vmatprep.subr.bf16.mxu1 %v7443_v45  ;;  %v150_v28 = vld [vmem:[#allocation2 + $0x40] sm:$0xff]  ;;  %v152_v30 = vld [vmem:[#allocation2 + $0x50] sm:$0xff] }
  0x92   :  { %v154_v29 = vld [vmem:[#allocation2 + $0x60] sm:$0xff]  ;;  %v156_v31 = vld [vmem:[#allocation2 + $0x70] sm:$0xff] }
  0x93   :  { %1797 = vmatpush2.bf16.msra.mxu0 %v7445_v46  ;;  %v7503_v32 = vld [vmem:[#allocation5 + $0x444] ss:$16 sps:$4 sm:$0xff]   ;;  %v8161_v33 = vcombine.high %v150_v28, %v154_v29  ;;  %v8165_v35 = vcombine.low %v150_v28, %v154_v29  ;;  %v7501_v38 = vld [vmem:[#allocation5 + $0x440] ss:$16 sps:$4 sm:$0xff]   ;;  %v7567_v28 = vld [vmem:[#allocation5 + $0xe8] ss:$16 sps:$4 sm:$0xff]  }
  0x94   :  { %1850 = vmatpush2.bf16.msra.mxu1 %v7446_v47  ;;  %1798 = vmatprep.subr.bf16.mxu0 %v7447_v52  ;;  %v7506_v36 = vld [vmem:[#allocation5 + $0x644] ss:$16 sps:$4 sm:$0xff]   ;;  %v7504_v39 = vld [vmem:[#allocation5 + $0x640] ss:$16 sps:$4 sm:$0xff]   ;;  %v7570_v29 = vld [vmem:[#allocation5 + $0x2e8] ss:$16 sps:$4 sm:$0xff]  }
  0x95   :  { %1851 = vmatprep.subr.bf16.mxu1 %v7449_v55  ;;  %v7509_v40 = vld [vmem:[#allocation5 + $0x424] ss:$16 sps:$4 sm:$0xff]   ;;  %v7507_v42 = vld [vmem:[#allocation5 + $0x420] ss:$16 sps:$4 sm:$0xff]  }
  0x96   :  { %v7512_v41 = vld [vmem:[#allocation5 + $0x624] ss:$16 sps:$4 sm:$0xff]   ;;  %v7510_v43 = vld [vmem:[#allocation5 + $0x620] ss:$16 sps:$4 sm:$0xff]  }
  0x97   :  { %1799 = vmatpush2.bf16.msra.mxu0 %v7451_v56  ;;  %v7515_v44 = vld [vmem:[#allocation5 + $0x404] ss:$16 sps:$4 sm:$0xff]   ;;  %v7513_v52 = vld [vmem:[#allocation5 + $0x400] ss:$16 sps:$4 sm:$0xff]  }
  0x98   :  { %1852 = vmatpush2.bf16.msra.mxu1 %v7452_v57  ;;  %1800 = vmatprep.subr.bf16.mxu0 %v7453_v58  ;;  %v7518_v45 = vld [vmem:[#allocation5 + $0x604] ss:$16 sps:$4 sm:$0xff]   ;;  %v7516_v55 = vld [vmem:[#allocation5 + $0x600] ss:$16 sps:$4 sm:$0xff]  }
  0x99   :  { %1853 = vmatprep.subr.bf16.mxu1 %v7455_v59  ;;  %v8173_v46 = vld [vmem:[#allocation2 + $0x10] sm:$0xff] }
  0x9a   :  { %v8175_v47 = vld [vmem:[#allocation2 + $0x30] sm:$0xff] }
  0x9b   :  { %1801 = vmatpush2.bf16.msra.mxu0 %v7457_v60  ;;  %v8181_v49 = vcombine.high %v8173_v46, %v8175_v47  ;;  %v7521_v56 = vld [vmem:[#allocation5 + $0x5e4] ss:$16 sps:$4 sm:$0xff]   ;;  %v7519_v58 = vld [vmem:[#allocation5 + $0x5e0] ss:$16 sps:$4 sm:$0xff]  }
  0x9c   :  { %1854 = vmatpush2.bf16.msra.mxu1 %v7458_v61  ;;  %1802 = vmatprep.subr.bf16.mxu0 %v7459_v62  ;;  %v7524_v57 = vld [vmem:[#allocation5 + $0x7e4] ss:$16 sps:$4 sm:$0xff]   ;;  %v7522_v59 = vld [vmem:[#allocation5 + $0x7e0] ss:$16 sps:$4 sm:$0xff]  }
  0x9d   :  { %1855 = vmatprep.subr.bf16.mxu1 %v7461_v63  ;;  %v7527_v60 = vld [vmem:[#allocation5 + $0x5c4] ss:$16 sps:$4 sm:$0xff]   ;;  %v7525_v62 = vld [vmem:[#allocation5 + $0x5c0] ss:$16 sps:$4 sm:$0xff]  }
  0x9e   :  { %v7530_v61 = vld [vmem:[#allocation5 + $0x7c4] ss:$16 sps:$4 sm:$0xff]   ;;  %v7528_v63 = vld [vmem:[#allocation5 + $0x7c0] ss:$16 sps:$4 sm:$0xff]  }
  0x9f   :  { %1803 = vmatpush2.bf16.msra.mxu0 %v7463_v0  ;;  %v7533_v0 = vld [vmem:[#allocation5 + $0x5a4] ss:$16 sps:$4 sm:$0xff]  }
  0xa0   :  { %1856 = vmatpush2.bf16.msra.mxu1 %v7464_v1  ;;  %1804 = vmatprep.subr.bf16.mxu0 %v7465_v2  ;;  %v7536_v1 = vld [vmem:[#allocation5 + $0x7a4] ss:$16 sps:$4 sm:$0xff]   ;;  %v7531_v2 = vld [vmem:[#allocation5 + $0x5a0] ss:$16 sps:$4 sm:$0xff]  }
  0xa1   :  { %1857 = vmatprep.subr.bf16.mxu1 %v7467_v3  ;;  %v7534_v3 = vld [vmem:[#allocation5 + $0x7a0] ss:$16 sps:$4 sm:$0xff]  }
  0xa3   :  { %1805 = vmatpush2.bf16.msra.mxu0 %v7469_v4  ;;  %v7539_v4 = vld [vmem:[#allocation5 + $0x584] ss:$16 sps:$4 sm:$0xff]  }
  0xa4   :  { %1858 = vmatpush2.bf16.msra.mxu1 %v7470_v5  ;;  %1880 = vmatprep.subr.bf16.mxu0 %v7473_v6  ;;  %v7542_v5 = vld [vmem:[#allocation5 + $0x784] ss:$16 sps:$4 sm:$0xff]   ;;  %v7537_v6 = vld [vmem:[#allocation5 + $0x580] ss:$16 sps:$4 sm:$0xff]  }
  0xa5   :  { %1933 = vmatprep.subr.bf16.mxu1 %v7476_v7  ;;  %v7540_v7 = vld [vmem:[#allocation5 + $0x780] ss:$16 sps:$4 sm:$0xff]  }
  0xa6   :  { %1807 = vmatmul.mubr.bf16.vlgmr.msra.gmra.mxu0 %v8155_v8 }
  0xa7   :  { %1860 = vmatmul.mubr.bf16.vlgmr.msra.gmra.mxu1 %v8157_v9  ;;  %1881 = vmatpush1.bf16.msra.mxu0 %v7471_v10  ;;  %v7545_v10 = vld [vmem:[#allocation5 + $0x564] ss:$16 sps:$4 sm:$0xff]  }
  0xa8   :  { %1934 = vmatpush1.bf16.msra.mxu1 %v7474_v11  ;;  %1882 = vmatprep.subr.bf16.mxu0 %v7479_v12  ;;  %v7548_v11 = vld [vmem:[#allocation5 + $0x764] ss:$16 sps:$4 sm:$0xff]   ;;  %v7543_v12 = vld [vmem:[#allocation5 + $0x560] ss:$16 sps:$4 sm:$0xff]  }
  0xa9   :  { %1935 = vmatprep.subr.bf16.mxu1 %v7482_v13  ;;  %1816 = vmatprep.mubr.bf16.mxu0 %v8161_v33  ;;  %v7546_v13 = vld [vmem:[#allocation5 + $0x760] ss:$16 sps:$4 sm:$0xff]  }
  0xaa   :  { %1869 = vmatprep.mubr.bf16.mxu1 %v8163_v34 }
  0xab   :  { %1883 = vmatpush1.bf16.msra.mxu0 %v7477_v14  ;;  %v7551_v14 = vld [vmem:[#allocation5 + $0x544] ss:$16 sps:$4 sm:$0xff]  }
  0xac   :  { %1936 = vmatpush1.bf16.msra.mxu1 %v7480_v15  ;;  %1884 = vmatprep.subr.bf16.mxu0 %v7485_v16  ;;  %v7554_v15 = vld [vmem:[#allocation5 + $0x744] ss:$16 sps:$4 sm:$0xff]   ;;  %v7549_v16 = vld [vmem:[#allocation5 + $0x540] ss:$16 sps:$4 sm:$0xff]  }
  0xad   :  { %1937 = vmatprep.subr.bf16.mxu1 %v7488_v17  ;;  %v7552_v17 = vld [vmem:[#allocation5 + $0x740] ss:$16 sps:$4 sm:$0xff]  }
  0xae   :  { %1817 = vmatmul.mubr.bf16.gmra.mxu0 %v8165_v35 }
  0xaf   :  { %1885 = vmatpush1.bf16.msra.mxu0 %v7483_v18  ;;  %1870 = vmatmul.mubr.bf16.gmra.mxu1 %v8167_v37  ;;  %v7557_v18 = vld [vmem:[#allocation5 + $0x524] ss:$16 sps:$4 sm:$0xff]  }
  0xb0   :  { %1938 = vmatpush1.bf16.msra.mxu1 %v7486_v19  ;;  %1886 = vmatprep.subr.bf16.mxu0 %v7491_v20  ;;  %v7560_v19 = vld [vmem:[#allocation5 + $0x724] ss:$16 sps:$4 sm:$0xff]   ;;  %v7555_v20 = vld [vmem:[#allocation5 + $0x520] ss:$16 sps:$4 sm:$0xff]  }
  0xb1   :  { %1939 = vmatprep.subr.bf16.mxu1 %v7494_v21  ;;  %1912 = vmatprep.mubr.bf16.mxu0 %v8181_v49  ;;  %v7558_v21 = vld [vmem:[#allocation5 + $0x720] ss:$16 sps:$4 sm:$0xff]  }
  0xb2   :  { %1965 = vmatprep.mubr.bf16.mxu1 %v8187_v51 }
  0xb3   :  { %1887 = vmatpush1.bf16.msra.mxu0 %v7489_v22  ;;  %v7563_v22 = vld [vmem:[#allocation5 + $0x504] ss:$16 sps:$4 sm:$0xff]  }
  0xb4   :  { %1940 = vmatpush1.bf16.msra.mxu1 %v7492_v23  ;;  %1888 = vmatprep.subr.bf16.mxu0 %v7497_v24  ;;  %v7566_v23 = vld [vmem:[#allocation5 + $0x704] ss:$16 sps:$4 sm:$0xff]   ;;  %v7561_v24 = vld [vmem:[#allocation5 + $0x500] ss:$16 sps:$4 sm:$0xff]  }
  0xb5   :  { %1941 = vmatprep.subr.bf16.mxu1 %v7500_v25  ;;  %v7564_v25 = vld [vmem:[#allocation5 + $0x700] ss:$16 sps:$4 sm:$0xff]  }
  0xb7   :  { %1889 = vmatpush1.bf16.msra.mxu0 %v7495_v26  ;;  %v7569_v26 = vld [vmem:[#allocation5 + $0xec] ss:$16 sps:$4 sm:$0xff]  }
  0xb8   :  { %1942 = vmatpush1.bf16.msra.mxu1 %v7498_v27  ;;  %1890 = vmatprep.subr.bf16.mxu0 %v7503_v32  ;;  %v7572_v27 = vld [vmem:[#allocation5 + $0x2ec] ss:$16 sps:$4 sm:$0xff]   ;;  %v8193_v32 = vcombine.low %v8173_v46, %v8175_v47 }
  0xb9   :  { %1943 = vmatprep.subr.bf16.mxu1 %v7506_v36  ;;  %v8197_v36 = vcombine.low %v8177_v48, %v8183_v50  ;;  %v7581_v46 = vld [vmem:[#allocation5 + $0xac] ss:$16 sps:$4 sm:$0xff]   ;;  %v8207_v48 = vcombine.low %v152_v30, %v156_v31 }
  0xba   :  { %v7584_v47 = vld [vmem:[#allocation5 + $0x2ac] ss:$16 sps:$4 sm:$0xff]  }
  0xbb   :  { %1891 = vmatpush1.bf16.msra.mxu0 %v7501_v38  ;;  %v153_v38 = vld [vmem:[#allocation2 + $0x58] sm:$0xff] }
  0xbc   :  { %1944 = vmatpush1.bf16.msra.mxu1 %v7504_v39  ;;  %1892 = vmatprep.subr.bf16.mxu0 %v7509_v40  ;;  %v157_v39 = vld [vmem:[#allocation2 + $0x78] sm:$0xff] }
  0xbd   :  { %1945 = vmatprep.subr.bf16.mxu1 %v7512_v41  ;;  %v7575_v40 = vld [vmem:[#allocation5 + $0xcc] ss:$16 sps:$4 sm:$0xff]   ;;  %v8209_v50 = vcombine.low %v153_v38, %v157_v39 }
  0xbe   :  { %v7578_v41 = vld [vmem:[#allocation5 + $0x2cc] ss:$16 sps:$4 sm:$0xff]  }
  0xbf   :  { %1893 = vmatpush1.bf16.msra.mxu0 %v7507_v42  ;;  %v8199_v42 = vcombine.high %v152_v30, %v156_v31  ;;  %v7639_v30 = vld [vmem:[#allocation5 + $0x168] ss:$16 sps:$4 sm:$0xff]  }
  0xc0   :  { %1946 = vmatpush1.bf16.msra.mxu1 %v7510_v43  ;;  %1894 = vmatprep.subr.bf16.mxu0 %v7515_v44  ;;  %v8201_v43 = vcombine.high %v153_v38, %v157_v39  ;;  %v7573_v44 = vld [vmem:[#allocation5 + $0xc8] ss:$16 sps:$4 sm:$0xff]   ;;  %v7647_v38 = vld [vmem:[#allocation5 + $0x14c] ss:$16 sps:$4 sm:$0xff]  }
  0xc1   :  { %1947 = vmatprep.subr.bf16.mxu1 %v7518_v45  ;;  %v7576_v45 = vld [vmem:[#allocation5 + $0x2c8] ss:$16 sps:$4 sm:$0xff]   ;;  %v7650_v39 = vld [vmem:[#allocation5 + $0x34c] ss:$16 sps:$4 sm:$0xff]  }
  0xc2   :  { %v7642_v31 = vld [vmem:[#allocation5 + $0x368] ss:$16 sps:$4 sm:$0xff]  }
  0xc3   :  { %1895 = vmatpush1.bf16.msra.mxu0 %v7513_v52  ;;  %v7579_v52 = vld [vmem:[#allocation5 + $0xa8] ss:$16 sps:$4 sm:$0xff]  }
  0xc4   :  { %1948 = vmatpush1.bf16.msra.mxu1 %v7516_v55  ;;  %1896 = vmatprep.subr.bf16.mxu0 %v7521_v56  ;;  %v7582_v55 = vld [vmem:[#allocation5 + $0x2a8] ss:$16 sps:$4 sm:$0xff]   ;;  %v7587_v56 = vld [vmem:[#allocation5 + $0x8c] ss:$16 sps:$4 sm:$0xff]  }
  0xc5   :  { %1949 = vmatprep.subr.bf16.mxu1 %v7524_v57  ;;  %v7590_v57 = vld [vmem:[#allocation5 + $0x28c] ss:$16 sps:$4 sm:$0xff]  }
  0xc7   :  { %1897 = vmatpush2.bf16.msra.mxu0 %v7519_v58  ;;  %v7585_v58 = vld [vmem:[#allocation5 + $0x88] ss:$16 sps:$4 sm:$0xff]  }
  0xc8   :  { %1950 = vmatpush2.bf16.msra.mxu1 %v7522_v59  ;;  %1898 = vmatprep.subr.bf16.mxu0 %v7527_v60  ;;  %v7588_v59 = vld [vmem:[#allocation5 + $0x288] ss:$16 sps:$4 sm:$0xff]   ;;  %v7593_v60 = vld [vmem:[#allocation5 + $0x6c] ss:$16 sps:$4 sm:$0xff]  }
  0xc9   :  { %1951 = vmatprep.subr.bf16.mxu1 %v7530_v61  ;;  %v7596_v61 = vld [vmem:[#allocation5 + $0x26c] ss:$16 sps:$4 sm:$0xff]  }
  0xcb   :  { %1899 = vmatpush2.bf16.msra.mxu0 %v7525_v62  ;;  %v7591_v62 = vld [vmem:[#allocation5 + $0x68] ss:$16 sps:$4 sm:$0xff]  }
  0xcc   :  { %1952 = vmatpush2.bf16.msra.mxu1 %v7528_v63  ;;  %1900 = vmatprep.subr.bf16.mxu0 %v7533_v0  ;;  %v7594_v63 = vld [vmem:[#allocation5 + $0x268] ss:$16 sps:$4 sm:$0xff]   ;;  %v7599_v0 = vld [vmem:[#allocation5 + $0x4c] ss:$16 sps:$4 sm:$0xff]  }
  0xcd   :  { %1953 = vmatprep.subr.bf16.mxu1 %v7536_v1  ;;  %v7602_v1 = vld [vmem:[#allocation5 + $0x24c] ss:$16 sps:$4 sm:$0xff]  }
  0xcf   :  { %1901 = vmatpush2.bf16.msra.mxu0 %v7531_v2  ;;  %v7597_v2 = vld [vmem:[#allocation5 + $0x48] ss:$16 sps:$4 sm:$0xff]  }
  0xd0   :  { %1954 = vmatpush2.bf16.msra.mxu1 %v7534_v3  ;;  %1902 = vmatprep.subr.bf16.mxu0 %v7539_v4  ;;  %v7600_v3 = vld [vmem:[#allocation5 + $0x248] ss:$16 sps:$4 sm:$0xff]   ;;  %v7605_v4 = vld [vmem:[#allocation5 + $0x2c] ss:$16 sps:$4 sm:$0xff]  }
  0xd1   :  { %1955 = vmatprep.subr.bf16.mxu1 %v7542_v5  ;;  %v7608_v5 = vld [vmem:[#allocation5 + $0x22c] ss:$16 sps:$4 sm:$0xff]  }
  0xd3   :  { %1903 = vmatpush2.bf16.msra.mxu0 %v7537_v6  ;;  %v7603_v6 = vld [vmem:[#allocation5 + $0x28] ss:$16 sps:$4 sm:$0xff]  }
  0xd4   :  { %1956 = vmatpush2.bf16.msra.mxu1 %v7540_v7  ;;  %1904 = vmatprep.subr.bf16.mxu0 %v7545_v10  ;;  %v7614_v7 = vld [vmem:[#allocation5 + $0x20c] ss:$16 sps:$4 sm:$0xff]   ;;  %v7609_v10 = vld [vmem:[#allocation5 + $0x8] ss:$16 sps:$4 sm:$0xff]  }
  0xd5   :  { %1957 = vmatprep.subr.bf16.mxu1 %v7548_v11  ;;  %v7612_v11 = vld [vmem:[#allocation5 + $0x208] ss:$16 sps:$4 sm:$0xff]  }
  0xd7   :  { %1905 = vmatpush2.bf16.msra.mxu0 %v7543_v12  ;;  %v7617_v12 = vld [vmem:[#allocation5 + $0x1ec] ss:$16 sps:$4 sm:$0xff]  }
  0xd8   :  { %1958 = vmatpush2.bf16.msra.mxu1 %v7546_v13  ;;  %1906 = vmatprep.subr.bf16.mxu0 %v7551_v14  ;;  %v7620_v13 = vld [vmem:[#allocation5 + $0x3ec] ss:$16 sps:$4 sm:$0xff]   ;;  %v7615_v14 = vld [vmem:[#allocation5 + $0x1e8] ss:$16 sps:$4 sm:$0xff]  }
  0xd9   :  { %1959 = vmatprep.subr.bf16.mxu1 %v7554_v15  ;;  %v7618_v15 = vld [vmem:[#allocation5 + $0x3e8] ss:$16 sps:$4 sm:$0xff]  }
  0xdb   :  { %1907 = vmatpush2.bf16.msra.mxu0 %v7549_v16  ;;  %v7623_v16 = vld [vmem:[#allocation5 + $0x1cc] ss:$16 sps:$4 sm:$0xff]  }
  0xdc   :  { %1960 = vmatpush2.bf16.msra.mxu1 %v7552_v17  ;;  %1908 = vmatprep.subr.bf16.mxu0 %v7557_v18  ;;  %v7626_v17 = vld [vmem:[#allocation5 + $0x3cc] ss:$16 sps:$4 sm:$0xff]   ;;  %v7621_v18 = vld [vmem:[#allocation5 + $0x1c8] ss:$16 sps:$4 sm:$0xff]  }
  0xdd   :  { %1961 = vmatprep.subr.bf16.mxu1 %v7560_v19  ;;  %v7624_v19 = vld [vmem:[#allocation5 + $0x3c8] ss:$16 sps:$4 sm:$0xff]  }
  0xdf   :  { %1909 = vmatpush2.bf16.msra.mxu0 %v7555_v20  ;;  %v7629_v20 = vld [vmem:[#allocation5 + $0x1ac] ss:$16 sps:$4 sm:$0xff]  }
  0xe0   :  { %1962 = vmatpush2.bf16.msra.mxu1 %v7558_v21  ;;  %1910 = vmatprep.subr.bf16.mxu0 %v7563_v22  ;;  %v7632_v21 = vld [vmem:[#allocation5 + $0x3ac] ss:$16 sps:$4 sm:$0xff]   ;;  %v7627_v22 = vld [vmem:[#allocation5 + $0x1a8] ss:$16 sps:$4 sm:$0xff]  }
  0xe1   :  { %1963 = vmatprep.subr.bf16.mxu1 %v7566_v23  ;;  %v7630_v23 = vld [vmem:[#allocation5 + $0x3a8] ss:$16 sps:$4 sm:$0xff]  }
  0xe3   :  { %1911 = vmatpush2.bf16.msra.mxu0 %v7561_v24  ;;  %v7635_v24 = vld [vmem:[#allocation5 + $0x18c] ss:$16 sps:$4 sm:$0xff]  }
  0xe4   :  { %1964 = vmatpush2.bf16.msra.mxu1 %v7564_v25  ;;  %1986 = vmatprep.subr.bf16.mxu0 %v7569_v26  ;;  %v7638_v25 = vld [vmem:[#allocation5 + $0x38c] ss:$16 sps:$4 sm:$0xff]   ;;  %v7633_v26 = vld [vmem:[#allocation5 + $0x188] ss:$16 sps:$4 sm:$0xff]  }
  0xe5   :  { %2039 = vmatprep.subr.bf16.mxu1 %v7572_v27  ;;  %v7636_v27 = vld [vmem:[#allocation5 + $0x388] ss:$16 sps:$4 sm:$0xff]  }
  0xe6   :  { %1913 = vmatmul.mubr.bf16.vlgmr.msra.gmra.mxu0 %v8193_v32 }
  0xe7   :  { %1966 = vmatmul.mubr.bf16.vlgmr.msra.gmra.mxu1 %v8197_v36  ;;  %1987 = vmatpush1.bf16.msra.mxu0 %v7567_v28  ;;  %v7641_v28 = vld [vmem:[#allocation5 + $0x16c] ss:$16 sps:$4 sm:$0xff]  }
  0xe8   :  { %2040 = vmatpush1.bf16.msra.mxu1 %v7570_v29  ;;  %1988 = vmatprep.subr.bf16.mxu0 %v7575_v40  ;;  %v7644_v29 = vld [vmem:[#allocation5 + $0x36c] ss:$16 sps:$4 sm:$0xff]   ;;  %v7645_v40 = vld [vmem:[#allocation5 + $0x148] ss:$16 sps:$4 sm:$0xff]  }
  0xe9   :  { %2041 = vmatprep.subr.bf16.mxu1 %v7578_v41  ;;  %1922 = vmatprep.mubr.bf16.mxu0 %v8199_v42  ;;  %v7648_v41 = vld [vmem:[#allocation5 + $0x348] ss:$16 sps:$4 sm:$0xff]  }
  0xea   :  { %1975 = vmatprep.mubr.bf16.mxu1 %v8201_v43 }
  0xeb   :  { %1989 = vmatpush1.bf16.msra.mxu0 %v7573_v44  ;;  %v7653_v44 = vld [vmem:[#allocation5 + $0x12c] ss:$16 sps:$4 sm:$0xff]  }
  0xec   :  { %2042 = vmatpush1.bf16.msra.mxu1 %v7576_v45  ;;  %1990 = vmatprep.subr.bf16.mxu0 %v7581_v46  ;;  %v7656_v45 = vld [vmem:[#allocation5 + $0x32c] ss:$16 sps:$4 sm:$0xff]   ;;  %v7651_v46 = vld [vmem:[#allocation5 + $0x128] ss:$16 sps:$4 sm:$0xff]  }
  0xed   :  { %2043 = vmatprep.subr.bf16.mxu1 %v7584_v47  ;;  %v7654_v47 = vld [vmem:[#allocation5 + $0x328] ss:$16 sps:$4 sm:$0xff]  }
  0xee   :  { %1923 = vmatmul.mubr.bf16.gmra.mxu0 %v8207_v48 }
  0xef   :  { %1976 = vmatmul.mubr.bf16.gmra.mxu1 %v8209_v50  ;;  %1991 = vmatpush1.bf16.msra.mxu0 %v7579_v52  ;;  %v7659_v52 = vld [vmem:[#allocation5 + $0x10c] ss:$16 sps:$4 sm:$0xff]  }
  0xf0   :  { %2044 = vmatpush1.bf16.msra.mxu1 %v7582_v55  ;;  %1992 = vmatprep.subr.bf16.mxu0 %v7587_v56  ;;  %v7662_v55 = vld [vmem:[#allocation5 + $0x30c] ss:$16 sps:$4 sm:$0xff]   ;;  %v7657_v56 = vld [vmem:[#allocation5 + $0x108] ss:$16 sps:$4 sm:$0xff]  }
  0xf1   :  { %2045 = vmatprep.subr.bf16.mxu1 %v7590_v57  ;;  %2018 = vmatprep.mubr.bf16.mxu0 %v8149_v53  ;;  %v7606_v53 = vld [vmem:[#allocation5 + $0x228] ss:$16 sps:$4 sm:$0xff]  }
  0xf2   :  { %2071 = vmatprep.mubr.bf16.mxu1 %v8151_v54  ;;  %v7611_v54 = vld [vmem:[#allocation5 + $0xc] ss:$16 sps:$4 sm:$0xff]   ;;  %v7660_v57 = vld [vmem:[#allocation5 + $0x308] ss:$16 sps:$4 sm:$0xff]  }
  0xf3   :  { %1993 = vmatpush1.bf16.msra.mxu0 %v7585_v58  ;;  %v7665_v58 = vld [vmem:[#allocation5 + $0x4ec] ss:$16 sps:$4 sm:$0xff]  }
  0xf4   :  { %2046 = vmatpush1.bf16.msra.mxu1 %v7588_v59  ;;  %1994 = vmatprep.subr.bf16.mxu0 %v7593_v60  ;;  %v7668_v59 = vld [vmem:[#allocation5 + $0x6ec] ss:$16 sps:$4 sm:$0xff]   ;;  %v7663_v60 = vld [vmem:[#allocation5 + $0x4e8] ss:$16 sps:$4 sm:$0xff]  }
  0xf5   :  { %2047 = vmatprep.subr.bf16.mxu1 %v7596_v61  ;;  %v7666_v61 = vld [vmem:[#allocation5 + $0x6e8] ss:$16 sps:$4 sm:$0xff]  }
  0xf7   :  { %1995 = vmatpush1.bf16.msra.mxu0 %v7591_v62  ;;  %v7671_v62 = vld [vmem:[#allocation5 + $0x4cc] ss:$16 sps:$4 sm:$0xff]  }
  0xf8   :  { %2048 = vmatpush1.bf16.msra.mxu1 %v7594_v63  ;;  %1996 = vmatprep.subr.bf16.mxu0 %v7599_v0  ;;  %v7674_v63 = vld [vmem:[#allocation5 + $0x6cc] ss:$16 sps:$4 sm:$0xff]   ;;  %v7669_v0 = vld [vmem:[#allocation5 + $0x4c8] ss:$16 sps:$4 sm:$0xff]  }
  0xf9   :  { %2049 = vmatprep.subr.bf16.mxu1 %v7602_v1  ;;  %v7672_v1 = vld [vmem:[#allocation5 + $0x6c8] ss:$16 sps:$4 sm:$0xff]  }
  0xfb   :  { %1997 = vmatpush1.bf16.msra.mxu0 %v7597_v2  ;;  %v7677_v2 = vld [vmem:[#allocation5 + $0x4ac] ss:$16 sps:$4 sm:$0xff]  }
  0xfc   :  { %2050 = vmatpush1.bf16.msra.mxu1 %v7600_v3  ;;  %1998 = vmatprep.subr.bf16.mxu0 %v7605_v4  ;;  %v7680_v3 = vld [vmem:[#allocation5 + $0x6ac] ss:$16 sps:$4 sm:$0xff]   ;;  %v7675_v4 = vld [vmem:[#allocation5 + $0x4a8] ss:$16 sps:$4 sm:$0xff]  }
  0xfd   :  { %2051 = vmatprep.subr.bf16.mxu1 %v7608_v5  ;;  %v7678_v5 = vld [vmem:[#allocation5 + $0x6a8] ss:$16 sps:$4 sm:$0xff]  }
  0xff   :  { %1999 = vmatpush1.bf16.msra.mxu0 %v7603_v6  ;;  %v7683_v6 = vld [vmem:[#allocation5 + $0x48c] ss:$16 sps:$4 sm:$0xff]  }
 0x100   :  { %2052 = vmatpush1.bf16.msra.mxu1 %v7606_v53  ;;  %2000 = vmatprep.subr.bf16.mxu0 %v7611_v54  ;;  %v7686_v53 = vld [vmem:[#allocation5 + $0x68c] ss:$16 sps:$4 sm:$0xff]  }
 0x101   :  { %2053 = vmatprep.subr.bf16.mxu1 %v7614_v7  ;;  %v7689_v54 = vld [vmem:[#allocation5 + $0x46c] ss:$16 sps:$4 sm:$0xff]  }
 0x102   :  { %v7692_v7 = vld [vmem:[#allocation5 + $0x66c] ss:$16 sps:$4 sm:$0xff]  }
 0x103   :  { %2001 = vmatpush1.bf16.msra.mxu0 %v7609_v10  ;;  %v7695_v10 = vld [vmem:[#allocation5 + $0x44c] ss:$16 sps:$4 sm:$0xff]  }
 0x104   :  { %2054 = vmatpush1.bf16.msra.mxu1 %v7612_v11  ;;  %2002 = vmatprep.subr.bf16.mxu0 %v7617_v12  ;;  %v7698_v11 = vld [vmem:[#allocation5 + $0x64c] ss:$16 sps:$4 sm:$0xff]   ;;  %v7696_v12 = vld [vmem:[#allocation5 + $0x648] ss:$16 sps:$4 sm:$0xff]  }
 0x105   :  { %2055 = vmatprep.subr.bf16.mxu1 %v7620_v13  ;;  %v7704_v13 = vld [vmem:[#allocation5 + $0x62c] ss:$16 sps:$4 sm:$0xff]  }
 0x107   :  { %2003 = vmatpush2.bf16.msra.mxu0 %v7615_v14  ;;  %v7699_v14 = vld [vmem:[#allocation5 + $0x428] ss:$16 sps:$4 sm:$0xff]  }
 0x108   :  { %2056 = vmatpush2.bf16.msra.mxu1 %v7618_v15  ;;  %2004 = vmatprep.subr.bf16.mxu0 %v7623_v16  ;;  %v7702_v15 = vld [vmem:[#allocation5 + $0x628] ss:$16 sps:$4 sm:$0xff]  }
 0x109   :  { %2057 = vmatprep.subr.bf16.mxu1 %v7626_v17  ;;  %v7705_v16 = vld [vmem:[#allocation5 + $0x408] ss:$16 sps:$4 sm:$0xff]  }
 0x10a   :  { %v7708_v17 = vld [vmem:[#allocation5 + $0x608] ss:$16 sps:$4 sm:$0xff]  }
 0x10b   :  { %2005 = vmatpush2.bf16.msra.mxu0 %v7621_v18  ;;  %v7713_v18 = vld [vmem:[#allocation5 + $0x5ec] ss:$16 sps:$4 sm:$0xff]  }
 0x10c   :  { %2058 = vmatpush2.bf16.msra.mxu1 %v7624_v19  ;;  %2006 = vmatprep.subr.bf16.mxu0 %v7629_v20  ;;  %v7716_v19 = vld [vmem:[#allocation5 + $0x7ec] ss:$16 sps:$4 sm:$0xff]   ;;  %v7711_v20 = vld [vmem:[#allocation5 + $0x5e8] ss:$16 sps:$4 sm:$0xff]  }
 0x10d   :  { %2059 = vmatprep.subr.bf16.mxu1 %v7632_v21  ;;  %v7714_v21 = vld [vmem:[#allocation5 + $0x7e8] ss:$16 sps:$4 sm:$0xff]  }
 0x10f   :  { %2007 = vmatpush2.bf16.msra.mxu0 %v7627_v22  ;;  %v7719_v22 = vld [vmem:[#allocation5 + $0x5cc] ss:$16 sps:$4 sm:$0xff]  }
 0x110   :  { %2060 = vmatpush2.bf16.msra.mxu1 %v7630_v23  ;;  %2008 = vmatprep.subr.bf16.mxu0 %v7635_v24  ;;  %v7722_v23 = vld [vmem:[#allocation5 + $0x7cc] ss:$16 sps:$4 sm:$0xff]   ;;  %v7717_v24 = vld [vmem:[#allocation5 + $0x5c8] ss:$16 sps:$4 sm:$0xff]  }
 0x111   :  { %2061 = vmatprep.subr.bf16.mxu1 %v7638_v25  ;;  %v7720_v25 = vld [vmem:[#allocation5 + $0x7c8] ss:$16 sps:$4 sm:$0xff]  }
 0x113   :  { %2009 = vmatpush2.bf16.msra.mxu0 %v7633_v26  ;;  %v7725_v26 = vld [vmem:[#allocation5 + $0x5ac] ss:$16 sps:$4 sm:$0xff]  }
 0x114   :  { %2062 = vmatpush2.bf16.msra.mxu1 %v7636_v27  ;;  %2010 = vmatprep.subr.bf16.mxu0 %v7641_v28  ;;  %v7728_v27 = vld [vmem:[#allocation5 + $0x7ac] ss:$16 sps:$4 sm:$0xff]   ;;  %v7723_v28 = vld [vmem:[#allocation5 + $0x5a8] ss:$16 sps:$4 sm:$0xff]  }
 0x115   :  { %2063 = vmatprep.subr.bf16.mxu1 %v7644_v29  ;;  %v7726_v29 = vld [vmem:[#allocation5 + $0x7a8] ss:$16 sps:$4 sm:$0xff]  }
 0x117   :  { %2011 = vmatpush2.bf16.msra.mxu0 %v7639_v30  ;;  %v7731_v30 = vld [vmem:[#allocation5 + $0x58c] ss:$16 sps:$4 sm:$0xff]  }
 0x118   :  { %2064 = vmatpush2.bf16.msra.mxu1 %v7642_v31  ;;  %2012 = vmatprep.subr.bf16.mxu0 %v7647_v38  ;;  %v7734_v31 = vld [vmem:[#allocation5 + $0x78c] ss:$16 sps:$4 sm:$0xff]   ;;  %v7729_v38 = vld [vmem:[#allocation5 + $0x588] ss:$16 sps:$4 sm:$0xff]  }
 0x119   :  { %2065 = vmatprep.subr.bf16.mxu1 %v7650_v39  ;;  %v7732_v39 = vld [vmem:[#allocation5 + $0x788] ss:$16 sps:$4 sm:$0xff]  }
 0x11b   :  { %2013 = vmatpush2.bf16.msra.mxu0 %v7645_v40  ;;  %v7737_v40 = vld [vmem:[#allocation5 + $0x56c] ss:$16 sps:$4 sm:$0xff]  }
 0x11c   :  { %2066 = vmatpush2.bf16.msra.mxu1 %v7648_v41  ;;  %2014 = vmatprep.subr.bf16.mxu0 %v7653_v44  ;;  %v7740_v41 = vld [vmem:[#allocation5 + $0x76c] ss:$16 sps:$4 sm:$0xff]   ;;  %v7735_v44 = vld [vmem:[#allocation5 + $0x568] ss:$16 sps:$4 sm:$0xff]  }
 0x11d   :  { %2067 = vmatprep.subr.bf16.mxu1 %v7656_v45  ;;  %v7738_v45 = vld [vmem:[#allocation5 + $0x768] ss:$16 sps:$4 sm:$0xff]  }
 0x11f   :  { %2015 = vmatpush2.bf16.msra.mxu0 %v7651_v46  ;;  %v7743_v46 = vld [vmem:[#allocation5 + $0x54c] ss:$16 sps:$4 sm:$0xff]  }
 0x120   :  { %2068 = vmatpush2.bf16.msra.mxu1 %v7654_v47  ;;  %2016 = vmatprep.subr.bf16.mxu0 %v7659_v52  ;;  %v7746_v47 = vld [vmem:[#allocation5 + $0x74c] ss:$16 sps:$4 sm:$0xff]   ;;  %v7741_v52 = vld [vmem:[#allocation5 + $0x548] ss:$16 sps:$4 sm:$0xff]  }
 0x121   :  { %2069 = vmatprep.subr.bf16.mxu1 %v7662_v55  ;;  %v7744_v55 = vld [vmem:[#allocation5 + $0x748] ss:$16 sps:$4 sm:$0xff]  }
 0x123   :  { %2017 = vmatpush2.bf16.msra.mxu0 %v7657_v56  ;;  %v7749_v56 = vld [vmem:[#allocation5 + $0x52c] ss:$16 sps:$4 sm:$0xff]  }
 0x124   :  { %2070 = vmatpush2.bf16.msra.mxu1 %v7660_v57  ;;  %2092 = vmatprep.subr.bf16.mxu0 %v7665_v58  ;;  %v7752_v57 = vld [vmem:[#allocation5 + $0x72c] ss:$16 sps:$4 sm:$0xff]   ;;  %v7747_v58 = vld [vmem:[#allocation5 + $0x528] ss:$16 sps:$4 sm:$0xff]  }
 0x125   :  { %2145 = vmatprep.subr.bf16.mxu1 %v7668_v59  ;;  %v7750_v59 = vld [vmem:[#allocation5 + $0x728] ss:$16 sps:$4 sm:$0xff]  }
 0x126   :  { %2019 = vmatmul.mubr.bf16.vlgmr.msra.gmra.mxu0 %v8155_v8  ;;  %v7681_v8 = vld [vmem:[#allocation5 + $0x488] ss:$16 sps:$4 sm:$0xff]  }
 0x127   :  { %2072 = vmatmul.mubr.bf16.vlgmr.msra.gmra.mxu1 %v8157_v9  ;;  %2093 = vmatpush1.bf16.msra.mxu0 %v7663_v60  ;;  %v7684_v9 = vld [vmem:[#allocation5 + $0x688] ss:$16 sps:$4 sm:$0xff]   ;;  %v7755_v60 = vld [vmem:[#allocation5 + $0x50c] ss:$16 sps:$4 sm:$0xff]  }
 0x128   :  { %2146 = vmatpush1.bf16.msra.mxu1 %v7666_v61  ;;  %2094 = vmatprep.subr.bf16.mxu0 %v7671_v62  ;;  %v7758_v61 = vld [vmem:[#allocation5 + $0x70c] ss:$16 sps:$4 sm:$0xff]   ;;  %v7753_v62 = vld [vmem:[#allocation5 + $0x508] ss:$16 sps:$4 sm:$0xff]  }
 0x129   :  { %2147 = vmatprep.subr.bf16.mxu1 %v7674_v63  ;;  %2028 = vmatprep.mubr.bf16.mxu0 %v8161_v33  ;;  %v7687_v33 = vld [vmem:[#allocation5 + $0x468] ss:$16 sps:$4 sm:$0xff]  }
 0x12a   :  { %2081 = vmatprep.mubr.bf16.mxu1 %v8163_v34  ;;  %v7690_v34 = vld [vmem:[#allocation5 + $0x668] ss:$16 sps:$4 sm:$0xff]  }
 0x12b   :  { %2095 = vmatpush1.bf16.msra.mxu0 %v7669_v0  ;;  %v7756_v63 = vld [vmem:[#allocation5 + $0x708] ss:$16 sps:$4 sm:$0xff]   ;;  %v7759_v0 = vld [vmem:[#allocation10 + $0x78] sm:$0xff]  }
 0x12c   :  { %2148 = vmatpush1.bf16.msra.mxu1 %v7672_v1  ;;  %2096 = vmatprep.subr.bf16.mxu0 %v7677_v2  ;;  %v7762_v1 = vld [vmem:[#allocation10 + $0x38] sm:$0xff]   ;;  %v7760_v2 = vld [vmem:[#allocation10 + $0x70] sm:$0xff]  }
 0x12d   :  { %2149 = vmatprep.subr.bf16.mxu1 %v7680_v3  ;;  %v7764_v3 = vld [vmem:[#allocation10 + $0x30] sm:$0xff]  }
 0x12e   :  { %2029 = vmatmul.mubr.bf16.gmra.mxu0 %v8165_v35  ;;  %v7693_v35 = vld [vmem:[#allocation5 + $0x448] ss:$16 sps:$4 sm:$0xff]  }
 0x12f   :  { %2082 = vmatmul.mubr.bf16.gmra.mxu1 %v8167_v37  ;;  %2097 = vmatpush1.bf16.msra.mxu0 %v7675_v4  ;;  %v7701_v37 = vld [vmem:[#allocation5 + $0x42c] ss:$16 sps:$4 sm:$0xff]  }
 0x130   :  { %2150 = vmatpush1.bf16.msra.mxu1 %v7678_v5  ;;  %2098 = vmatprep.subr.bf16.mxu0 %v7683_v6 }
 0x131   :  { %2151 = vmatprep.subr.bf16.mxu1 %v7686_v53  ;;  %2124 = vmatprep.mubr.bf16.mxu0 %v8181_v49  ;;  %v7707_v49 = vld [vmem:[#allocation5 + $0x40c] ss:$16 sps:$4 sm:$0xff]  }
 0x132   :  { %2177 = vmatprep.mubr.bf16.mxu1 %v8187_v51  ;;  %v7710_v51 = vld [vmem:[#allocation5 + $0x60c] ss:$16 sps:$4 sm:$0xff]  }
 0x133   :  { %2099 = vmatpush1.bf16.msra.mxu0 %v7681_v8 }
 0x134   :  { %2152 = vmatpush1.bf16.msra.mxu1 %v7684_v9  ;;  %2100 = vmatprep.subr.bf16.mxu0 %v7689_v54  ;;  %v7761_v9 = vld [vmem:[#allocation10 + $0x68] sm:$0xff]  }
 0x135   :  { %2153 = vmatprep.subr.bf16.mxu1 %v7692_v7  ;;  %v7766_v54 = vld [vmem:[#allocation10 + $0x28] sm:$0xff]   ;;  %v7765_v7 = vld [vmem:[#allocation10 + $0x58] sm:$0xff]  }
 0x137   :  { %2101 = vmatpush1.bf16.msra.mxu0 %v7687_v33  ;;  %v7770_v33 = vld [vmem:[#allocation10 + $0x18] sm:$0xff]  }
 0x138   :  { %2154 = vmatpush1.bf16.msra.mxu1 %v7690_v34  ;;  %2102 = vmatprep.subr.bf16.mxu0 %v7695_v10 }
 0x139   :  { %2155 = vmatprep.subr.bf16.mxu1 %v7698_v11  ;;  %v7767_v11 = vld [vmem:[#allocation10 + $0x50] sm:$0xff]  }
 0x13b   :  { %2103 = vmatpush1.bf16.msra.mxu0 %v7693_v35  ;;  %v7772_v35 = vld [vmem:[#allocation10 + $0x10] sm:$0xff]  }
 0x13c   :  { %2156 = vmatpush1.bf16.msra.mxu1 %v7696_v12  ;;  %2104 = vmatprep.subr.bf16.mxu0 %v7701_v37 }
 0x13d   :  { %2157 = vmatprep.subr.bf16.mxu1 %v7704_v13 }
 0x13f   :  { %2105 = vmatpush1.bf16.msra.mxu0 %v7699_v14  ;;  %v7769_v14 = vld [vmem:[#allocation10 + $0x48] sm:$0xff]  }
 0x140   :  { %2158 = vmatpush1.bf16.msra.mxu1 %v7702_v15  ;;  %2106 = vmatprep.subr.bf16.mxu0 %v7707_v49  ;;  %v7773_v15 = vld [vmem:[#allocation10 + $0x8] sm:$0xff]  }
 0x141   :  { %2159 = vmatprep.subr.bf16.mxu1 %v7710_v51 }
 0x143   :  { %2107 = vmatpush1.bf16.msra.mxu0 %v7705_v16 }
 0x144   :  { %2160 = vmatpush1.bf16.msra.mxu1 %v7708_v17  ;;  %2108 = vmatprep.subr.bf16.mxu0 %v7713_v18 }
 0x145   :  { %2161 = vmatprep.subr.bf16.mxu1 %v7716_v19  ;;  %v7771_v19 = vld [vmem:[#allocation10 + $0x40] sm:$0xff]  }
 0x147   :  { %2109 = vmatpush2.bf16.msra.mxu0 %v7711_v20  ;;  %v7774_v20 = vld [vmem:[#allocation10] sm:$0xff]  }
 0x148   :  { %2162 = vmatpush2.bf16.msra.mxu1 %v7714_v21  ;;  %2110 = vmatprep.subr.bf16.mxu0 %v7719_v22  ;;  %v8239_v21 = vld [vmem:[#allocation10 + $0xb8] sm:$0xff]   ;;  %v2200_v22 = vlaneseq }
 0x149   :  { %2163 = vmatprep.subr.bf16.mxu1 %v7722_v23 }
 0x14a   :  { %v8242_v23 = vshrl.u32 %v2200_v22, 7 }
 0x14b   :  { %2111 = vmatpush2.bf16.msra.mxu0 %v7717_v24 }
 0x14c   :  { %2164 = vmatpush2.bf16.msra.mxu1 %v7720_v25  ;;  %2112 = vmatprep.subr.bf16.mxu0 %v7725_v26  ;;  %v8245_v24 = vsub.s32 0, %v8242_v23  ;;  %v8249_v26 = vld [vmem:[#allocation7] sm:$0xf]  ;;  %vm2383_vm3 = vcmp.lt.s32.totalorder %v8242_v23, 1  ;;  %vm2396_vm4 = vcmp.lt.s32.totalorder %v8242_v23, 7 }
 0x14d   :  { %2165 = vmatprep.subr.bf16.mxu1 %v7728_v27  ;;  %v8252_v27 = vsub.s32 1, %v8242_v23 }
 0x14f   :  { %2113 = vmatpush2.bf16.msra.mxu0 %v7723_v28 }
 0x150   :  { %2166 = vmatpush2.bf16.msra.mxu1 %v7726_v29  ;;  %2114 = vmatprep.subr.bf16.mxu0 %v7731_v30 }
 0x151   :  { %2167 = vmatprep.subr.bf16.mxu1 %v7734_v31  ;;  %v2203_v31 = vrot.slane %v8249_v26, %v8245_v24 }
 0x153   :  { %2115 = vmatpush2.bf16.msra.mxu0 %v7729_v38 }
 0x154   :  { %2168 = vmatpush2.bf16.msra.mxu1 %v7732_v39  ;;  %2116 = vmatprep.subr.bf16.mxu0 %v7737_v40 }
 0x155   :  { %2169 = vmatprep.subr.bf16.mxu1 %v7740_v41 }
 0x157   :  { %2117 = vmatpush2.bf16.msra.mxu0 %v7735_v44  ;;  %v8256_v44 = vld [vmem:[#allocation8] sm:$0xf] }
 0x158   :  { %2170 = vmatpush2.bf16.msra.mxu1 %v7738_v45  ;;  %2118 = vmatprep.subr.bf16.mxu0 %v7743_v46  ;;  %v2207_v46 = vrot.slane %v8249_v26, %v8252_v27 }
 0x159   :  { %2171 = vmatprep.subr.bf16.mxu1 %v7746_v47 }
 0x15b   :  { %2119 = vmatpush2.bf16.msra.mxu0 %v7741_v52 }
 0x15c   :  { %2172 = vmatpush2.bf16.msra.mxu1 %v7744_v55  ;;  %2120 = vmatprep.subr.bf16.mxu0 %v7749_v56 }
 0x15d   :  { %2173 = vmatprep.subr.bf16.mxu1 %v7752_v57 }
 0x15f   :  { %2121 = vmatpush2.bf16.msra.mxu0 %v7747_v58 }
 0x160   :  { %2174 = vmatpush2.bf16.msra.mxu1 %v7750_v59  ;;  %2122 = vmatprep.subr.bf16.mxu0 %v7755_v60  ;;  %v2241_v59 = vrot.slane %v8256_v44, %v8245_v24  ;;  %v2245_v60 = vrot.slane %v8256_v44, %v8252_v27 }
 0x161   :  { %2175 = vmatprep.subr.bf16.mxu1 %v7758_v61 }
 0x163   :  { %2123 = vmatpush2.bf16.msra.mxu0 %v7753_v62 }
 0x164   :  { %2176 = vmatpush2.bf16.msra.mxu1 %v7756_v63  ;;  %7161 = vmatprep.subr.bf16.mxu0 %v7762_v1 }
 0x165   :  { %7181 = vmatprep.subr.bf16.mxu1 %v7759_v0 }
 0x166   :  { %v8223_v4 = vpop.f32.mrf.mxu0  ;;  %2125 = vmatmul.mubr.bf16.vlgmr.msra.gmra.mxu0 %v8193_v32  ;;  %v7763_v32 = vld [vmem:[#allocation10 + $0x60] sm:$0xff]  }
 0x167   :  { %v8225_v5 = vpop.f32.mrf.mxu1  ;;  %2178 = vmatmul.mubr.bf16.vlgmr.msra.gmra.mxu1 %v8197_v36  ;;  %2134 = vmatprep.mubr.bf16.mxu0 %v8199_v42  ;;  %v7768_v36 = vld [vmem:[#allocation10 + $0x20] sm:$0xff]  }
 0x168   :  { %2187 = vmatprep.mubr.bf16.mxu1 %v8201_v43  ;;  %v1810_v6 = vpop.f32.mrf.mxu0  ;;  %7182 = vmatpush3.bf16.msra.mxu1 %v7759_v0  ;;  %v1862_v25 = vadd.f32 %v8225_v5, %v8223_v4 }
 0x169   :  { %v1863_v53 = vpop.f32.mrf.mxu1  ;;  %7162 = vmatpush3.bf16.msra.mxu0 %v7762_v1  ;;  %7183 = vmatprep.subr.bf16.mxu1 %v7760_v2 }
 0x16a   :  { %v8231_v8 = vadd.f32 %v1863_v53, %v1810_v6  ;;  %7163 = vmatprep.subr.bf16.mxu0 %v7764_v3  ;;  %v1812_v42 = vpop.f32.mrf.mxu0 }
 0x16b   :  { %v1865_v43 = vpop.f32.mrf.mxu1 }
 0x16c   :  { %7184 = vmatpush3.bf16.msra.mxu1 %v7760_v2  ;;  %v1814_v34 = vpop.f32.mrf.mxu0  ;;  %v1866_v40 = vadd.f32 %v1865_v43, %v1812_v42 }
 0x16d   :  { %7164 = vmatpush3.bf16.msra.mxu0 %v7764_v3  ;;  %7185 = vmatprep.subr.bf16.mxu1 %v7761_v9  ;;  %v1867_v10 = vpop.f32.mrf.mxu1 }
 0x16e   :  { %7165 = vmatprep.subr.bf16.mxu0 %v7766_v54  ;;  %2135 = vmatmul.mubr.bf16.gmra.mxu0 %v8207_v48  ;;  %v1818_v12 = vpop.f32.mrf.mxu0  ;;  %v1868_v55 = vadd.f32 %v1867_v10, %v1814_v34 }
 0x16f   :  { %2188 = vmatmul.mubr.bf16.gmra.mxu1 %v8209_v50  ;;  %v1871_v48 = vpop.f32.mrf.mxu1 }
 0x170   :  { %7186 = vmatpush3.bf16.msra.mxu1 %v7761_v9  ;;  %v1820_v37 = vpop.f32.mrf.mxu0  ;;  %v1872_v2 = vadd.f32 %v1871_v48, %v1818_v12 }
 0x171   :  { %7166 = vmatpush3.bf16.msra.mxu0 %v7766_v54  ;;  %7187 = vmatprep.subr.bf16.mxu1 %v7763_v32  ;;  %v1873_v50 = vpop.f32.mrf.mxu1 }
 0x172   :  { %7167 = vmatprep.subr.bf16.mxu0 %v7768_v36  ;;  %v8235_v13 = vadd.f32 %v1873_v50, %v1820_v37  ;;  %v1822_v49 = vpop.f32.mrf.mxu0 }
 0x173   :  { %v1875_v51 = vpop.f32.mrf.mxu1 }
 0x174   :  { %7188 = vmatpush3.bf16.msra.mxu1 %v7763_v32  ;;  %v1824_v16 = vpop.f32.mrf.mxu0 }
 0x175   :  { %7168 = vmatpush3.bf16.msra.mxu0 %v7768_v36  ;;  %7189 = vmatprep.subr.bf16.mxu1 %v7765_v7  ;;  %v1877_v17 = vpop.f32.mrf.mxu1  ;;  %v1876_v36 = vadd.f32 %v1875_v51, %v1822_v49 }
 0x176   :  { %7169 = vmatprep.subr.bf16.mxu0 %v7770_v33  ;;  %v8237_v18 = vadd.f32 %v1877_v17, %v1824_v16  ;;  %v2300_v17 = vadd.s32 8, %v8242_v23 }
 0x178   :  { %7190 = vmatpush3.bf16.msra.mxu1 %v7765_v7 }
 0x179   :  { %7170 = vmatpush3.bf16.msra.mxu0 %v7770_v33  ;;  %7191 = vmatprep.subr.bf16.mxu1 %v7767_v11 }
 0x17a   :  { %7171 = vmatprep.subr.bf16.mxu0 %v7772_v35 }
 0x17c   :  { %7192 = vmatpush3.bf16.msra.mxu1 %v7767_v11  ;;  %v2301_v11 = vadd.s32 16, %v8242_v23 }
 0x17d   :  { %7172 = vmatpush3.bf16.msra.mxu0 %v7772_v35  ;;  %7193 = vmatprep.subr.bf16.mxu1 %v7769_v14 }
 0x17e   :  { %7173 = vmatprep.subr.bf16.mxu0 %v7773_v15 }
 0x180   :  { %7194 = vmatpush3.bf16.msra.mxu1 %v7769_v14 }
 0x181   :  { %7174 = vmatpush3.bf16.msra.mxu0 %v7773_v15  ;;  %7195 = vmatprep.subr.bf16.mxu1 %v7771_v19 }
 0x182   :  { %7175 = vmatprep.subr.bf16.mxu0 %v7774_v20 }
 0x184   :  { %7196 = vmatpush3.bf16.msra.mxu1 %v7771_v19 }
 0x185   :  { %7176 = vmatpush3.bf16.msra.mxu0 %v7774_v20 }
 0x186   :  { %7201 = vmatprep.subr.bf16.mxu0 %v8239_v21 }
 0x1a6   :  { %v1914_v28 = vpop.f32.mrf.mxu0 }
 0x1a7   :  { %v1967_v29 = vpop.f32.mrf.mxu1  ;;  %v1915_v30 = vadd.f32 %v1914_v28, %v1862_v25 }
 0x1a8   :  { %v1916_v38 = vpop.f32.mrf.mxu0 }
 0x1a9   :  { %v1969_v39 = vpop.f32.mrf.mxu1  ;;  %v1968_v41 = vadd.f32 %v1967_v29, %v1915_v30  ;;  %v1917_v45 = vadd.f32 %v1916_v38, %v8231_v8  ;;  %v2307_v38 = vand.u32 15, %v8242_v23 }
 0x1aa   :  { %v1918_v47 = vpop.f32.mrf.mxu0 }
 0x1ab   :  { %v1971_v52 = vpop.f32.mrf.mxu1  ;;  %v1970_v56 = vadd.f32 %v1969_v39, %v1917_v45  ;;  %v1919_v57 = vadd.f32 %v1918_v47, %v1866_v40  ;;  %v2220_v58 = vmul.f32 %v2203_v31, %v1968_v41  ;;  %v2321_v39 = vand.u32 15, %v2301_v11 }
 0x1ac   :  { %v1920_v61 = vpop.f32.mrf.mxu0  ;;  %v2314_v47 = vand.u32 15, %v2300_v17  ;;  %vm2351_vm0 = vcmp.gt.s32.totalorder %v2307_v38, 0  ;;  %v7781_v17 = vld [vmem:[#allocation10 + $0x88] sm:$0xff]  }
 0x1ad   :  { %v1973_v62 = vpop.f32.mrf.mxu1  ;;  %v2221_v63 = vmul.f32 %v2207_v46, %v1970_v56  ;;  %v1972_v0 = vadd.f32 %v1971_v52, %v1919_v57  ;;  %v1921_v1 = vadd.f32 %v1920_v61, %v1868_v55  ;;  %v2258_v53 = vadd.f32 %v2241_v59, %v2220_v58 }
 0x1ae   :  { %v1924_v3 = vpop.f32.mrf.mxu0  ;;  %vm2353_vm1 = vcmp.gt.s32.totalorder %v2321_v39, 0  ;;  %vm2364_vm2 = vcmp.lt.s32.totalorder %v2314_v47, 15 }
 0x1af   :  { %v1977_v4 = vpop.f32.mrf.mxu1  ;;  %v2224_v5 = vmul.f32 %v2203_v31, %v1972_v0  ;;  %v1974_v6 = vadd.f32 %v1973_v62, %v1921_v1  ;;  %v2259_v8 = vadd.f32 %v2245_v60, %v2221_v63  ;;  %v1925_v9 = vadd.f32 %v1924_v3, %v1872_v2 }
 0x1b0   :  { %v1926_v54 = vpop.f32.mrf.mxu0  ;;  %v2274_v50 = vmax.f32 %v2258_v53, 0.0  ;;  %v8054_v1 = vmov 0.0  }
 0x1b1   :  { %v1979_v32 = vpop.f32.mrf.mxu1  ;;  %v2262_v42 = vadd.f32 %v2241_v59, %v2224_v5  ;;  %v2225_v43 = vmul.f32 %v2207_v46, %v1974_v6  ;;  %v1927_v7 = vadd.f32 %v1926_v54, %v8235_v13  ;;  %v1978_v33 = vadd.f32 %v1977_v4, %v1925_v9 }
 0x1b2   :  { %v1928_v34 = vpop.f32.mrf.mxu0  ;;  %v2275_v14 = vmax.f32 %v2259_v8, 0.0  ;;  %v8276_v3 = vsel %vm2353_vm1, 1.0, %v8054_v1 }
 0x1b3   :  { %v1981_v10 = vpop.f32.mrf.mxu1  ;;  %v2278_v35 = vmax.f32 %v2262_v42, 0.0  ;;  %v2263_v12 = vadd.f32 %v2245_v60, %v2225_v43  ;;  %v1980_v48 = vadd.f32 %v1979_v32, %v1927_v7  ;;  %v1929_v37 = vadd.f32 %v1928_v34, %v1876_v36 }
 0x1b4   :  { %v2228_v15 = vmul.f32 %v2203_v31, %v1978_v33  ;;  %v1930_v16 = vpop.f32.mrf.mxu0 }
 0x1b5   :  { %v2279_v49 = vmax.f32 %v2263_v12, 0.0  ;;  %v2229_v51 = vmul.f32 %v2207_v46, %v1980_v48  ;;  %v1982_v19 = vadd.f32 %v1981_v10, %v1929_v37  ;;  %v1931_v13 = vadd.f32 %v1930_v16, %v8237_v18  ;;  %v1983_v20 = vpop.f32.mrf.mxu1  ;;  %v7777_v48 = vld [vmem:[#allocation10 + $0xa8] sm:$0xff]   ;;  %v7778_v37 = vld [vmem:[#allocation10 + $0xa0] sm:$0xff]  }
 0x1b6   :  { %v2290_v22 = vpack.c.bf16 %v2278_v35, %v2274_v50  ;;  %v2266_v28 = vadd.f32 %v2241_v59, %v2228_v15  ;;  %v7776_v35 = vld [vmem:[#allocation10 + $0xb0] sm:$0xff]   ;;  %v7779_v50 = vld [vmem:[#allocation10 + $0x98] sm:$0xff]  }
 0x1b7   :  { %v8269_v25 = vpack.c.bf16 %v2279_v49, %v2275_v14  ;;  %v2232_v29 = vmul.f32 %v2203_v31, %v1982_v19  ;;  %v1984_v30 = vadd.f32 %v1983_v20, %v1931_v13  ;;  %v2267_v40 = vadd.f32 %v2245_v60, %v2229_v51  ;;  %v7780_v15 = vld [vmem:[#allocation10 + $0x90] sm:$0xff]  }
 0x1b8   :  { %7197 = vmatprep.mubr.bf16.mxu1 %v2290_v22  ;;  %v2282_v52 = vmax.f32 %v2266_v28, 0.0  ;;  %v2375_v57 = vunpack.c.l.bf16 %v2290_v22  ;;  %v2376_v18 = vunpack.c.h.bf16 %v2290_v22  ;;  %v2302_v14 = vadd.s32 24, %v8242_v23 }
 0x1b9   :  { %v2270_v41 = vadd.f32 %v2241_v59, %v2232_v29  ;;  %v2233_v45 = vmul.f32 %v2207_v46, %v1984_v30  ;;  %v2283_v58 = vmax.f32 %v2267_v40, 0.0  ;;  %v8274_v59 = vsel %vm2351_vm0, 1.0, %v8054_v1 }
 0x1ba   :  { %v2379_v46 = vrot.slane %v2375_v57, 7  ;;  %v2380_v2 = vrot.slane %v2376_v18, 7  ;;  %v2393_v6 = vrot.slane %v2376_v18, 1  ;;  %v2392_v54 = vrot.slane %v2375_v57, 1 }
 0x1bb   :  { %v2286_v55 = vmax.f32 %v2270_v41, 0.0  ;;  %v2271_v56 = vadd.f32 %v2245_v60, %v2233_v45  ;;  %v8278_v60 = vsel %vm2364_vm2, 1.0, %v8054_v1  ;;  %v2328_v16 = vand.u32 15, %v2302_v14 }
 0x1bc   :  { %v2386_v7 = vsel %vm2383_vm3, %v2379_v46, %v2380_v2  ;;  %v2399_v11 = vsel %vm2396_vm4, %v2392_v54, %v2393_v6 }
 0x1bd   :  { %v2294_v61 = vpack.c.bf16 %v2286_v55, %v2282_v52  ;;  %v2287_v62 = vmax.f32 %v2271_v56, 0.0  ;;  %vm2366_vm5 = vcmp.lt.s32.totalorder %v2328_v16, 15 }
 0x1be   :  { %v8299_v51 = vsel %vm2366_vm5, 1.0, %v8054_v1 }
 0x1bf   :  { %v2377_v31 = vunpack.c.l.bf16 %v2294_v61  ;;  %v2378_v63 = vunpack.c.h.bf16 %v2294_v61  ;;  %v8272_v0 = vpack.c.bf16 %v2287_v62, %v2283_v58  ;;  %7198 = vmatmul.mubr.bf16.vlgmr.msra.gmra.mxu1 %v2294_v61 }
 0x1c1   :  { %v2381_v4 = vrot.slane %v2377_v31, 7  ;;  %v2382_v5 = vrot.slane %v2378_v63, 7  ;;  %v2394_v53 = vrot.slane %v2377_v31, 1  ;;  %v2395_v49 = vrot.slane %v2378_v63, 1 }
 0x1c3   :  { %v2385_v8 = vsel %vm2383_vm3, %v2380_v2, %v2381_v4  ;;  %v2387_v9 = vsel %vm2383_vm3, %v2382_v5, %v2379_v46  ;;  %v2398_v32 = vsel %vm2396_vm4, %v2393_v6, %v2394_v53  ;;  %v2384_v33 = vsel %vm2383_vm3, %v2381_v4, %v2382_v5  ;;  %v7783_v6 = vld [vmem:[#allocation10 + $0x138] sm:$0xff]  }
 0x1c4   :  { %v2388_v36 = vmul.f32 %v8274_v59, %v2387_v9  ;;  %v2390_v42 = vmul.f32 %v8276_v3, %v2385_v8  ;;  %v2402_v43 = vmul.f32 %v8278_v60, %v2398_v32  ;;  %v2400_v19 = vsel %vm2396_vm4, %v2395_v49, %v2392_v54  ;;  %v7785_v8 = vld [vmem:[#allocation10 + $0x130] sm:$0xff]   ;;  %v7787_v54 = vld [vmem:[#allocation10 + $0x128] sm:$0xff]  }
 0x1c5   :  { %v2404_v13 = vmul.f32 %v8299_v51, %v2400_v19  ;;  %v2397_v20 = vsel %vm2396_vm4, %v2394_v53, %v2395_v49  ;;  %v7784_v53 = vld [vmem:[#allocation10 + $0xf8] sm:$0xff]   ;;  %v7786_v9 = vld [vmem:[#allocation10 + $0xf0] sm:$0xff]   ;;  %v7788_v32 = vld [vmem:[#allocation10 + $0xe8] sm:$0xff]  }
 0x1c6   :  { %v2421_v34 = vpack.c.bf16 %v2386_v7, %v2388_v36  ;;  %v2422_v10 = vpack.c.bf16 %v2384_v33, %v2390_v42  ;;  %v2633_v12 = vpack.c.bf16 %v2402_v43, %v2399_v11  ;;  %7221 = vmatprep.subr.bf16.mxu1 %v7784_v53  ;;  %v8315_v36 = vsub.s32 2, %v8242_v23  ;;  %v7790_v19 = vld [vmem:[#allocation10 + $0xe0] sm:$0xff]  }
 0x1c7   :  { %v2634_v29 = vpack.c.bf16 %v2404_v13, %v2397_v20  ;;  %7222 = vmatpush3.bf16.msra.mxu1 %v7784_v53  ;;  %v8318_v42 = vsub.s32 3, %v8242_v23 }
 0x1c8   :  { %7177 = vmatprep.mubr.bf16.mxu0 %v2421_v34  ;;  %7223 = vmatprep.subr.bf16.mxu1 %v7786_v9  ;;  %v8322_v34 = vrot.slane %v8249_v26, %v8315_v36 }
 0x1c9   :  { %7178 = vmatmul.mubr.bf16.vlgmr.msra.gmra.mxu0 %v2422_v10 }
 0x1ca   :  { %7202 = vmatpush3.bf16.msra.mxu0 %v8239_v21  ;;  %7217 = vmatprep.mubr.bf16.mxu0 %v2633_v12  ;;  %v7782_v21 = vld [vmem:[#allocation10 + $0x80] sm:$0xff]  }
 0x1cb   :  { %7203 = vmatprep.subr.bf16.mxu0 %v7776_v35  ;;  %7224 = vmatpush3.bf16.msra.mxu1 %v7786_v9  ;;  %v7794_v9 = vld [vmem:[#allocation10 + $0xd0] sm:$0xff]  }
 0x1cc   :  { %7225 = vmatprep.subr.bf16.mxu1 %v7788_v32 }
 0x1ce   :  { %7204 = vmatpush3.bf16.msra.mxu0 %v7776_v35  ;;  %v7789_v35 = vld [vmem:[#allocation10 + $0x120] sm:$0xff]  }
 0x1cf   :  { %7205 = vmatprep.subr.bf16.mxu0 %v7777_v48  ;;  %7226 = vmatpush3.bf16.msra.mxu1 %v7788_v32 }
 0x1d0   :  { %7227 = vmatprep.subr.bf16.mxu1 %v7790_v19 }
 0x1d2   :  { %7206 = vmatpush3.bf16.msra.mxu0 %v7777_v48 }
 0x1d3   :  { %7207 = vmatprep.subr.bf16.mxu0 %v7778_v37  ;;  %7228 = vmatpush3.bf16.msra.mxu1 %v7790_v19 }
 0x1d6   :  { %7208 = vmatpush3.bf16.msra.mxu0 %v7778_v37  ;;  %v8326_v37 = vrot.slane %v8256_v44, %v8315_v36 }
 0x1d7   :  { %7209 = vmatprep.subr.bf16.mxu0 %v7779_v50 }
 0x1da   :  { %7210 = vmatpush3.bf16.msra.mxu0 %v7779_v50  ;;  %v8330_v50 = vrot.slane %v8249_v26, %v8318_v42 }
 0x1db   :  { %7211 = vmatprep.subr.bf16.mxu0 %v7780_v15 }
 0x1de   :  { %7212 = vmatpush3.bf16.msra.mxu0 %v7780_v15 }
 0x1df   :  { %7213 = vmatprep.subr.bf16.mxu0 %v7781_v17 }
 0x1e2   :  { %7214 = vmatpush3.bf16.msra.mxu0 %v7781_v17 }
 0x1e3   :  { %7215 = vmatprep.subr.bf16.mxu0 %v7782_v21 }
 0x1e6   :  { %7216 = vmatpush3.bf16.msra.mxu0 %v7782_v21  ;;  %v2020_v22 = vpop.f32.mrf.mxu0  ;;  %v8335_v21 = vrot.slane %v8256_v44, %v8318_v42 }
 0x1e7   :  { %v2073_v28 = vpop.f32.mrf.mxu1  ;;  %7241 = vmatprep.subr.bf16.mxu0 %v7783_v6 }
 0x1e8   :  { %v2074_v30 = vadd.f32 %v2073_v28, %v2020_v22  ;;  %v2022_v38 = vpop.f32.mrf.mxu0  ;;  %v7791_v22 = vld [vmem:[#allocation10 + $0x118] sm:$0xff]  }
 0x1e9   :  { %v2075_v39 = vpop.f32.mrf.mxu1  ;;  %7218 = vmatmul.mubr.bf16.vlgmr.msra.gmra.mxu0 %v2634_v29 }
 0x1ea   :  { %v2076_v40 = vadd.f32 %v2075_v39, %v2022_v38  ;;  %v2024_v41 = vpop.f32.mrf.mxu0  ;;  %7242 = vmatpush3.bf16.msra.mxu0 %v7783_v6 }
 0x1eb   :  { %v2077_v45 = vpop.f32.mrf.mxu1  ;;  %7243 = vmatprep.subr.bf16.mxu0 %v7785_v8 }
 0x1ec   :  { %v2078_v47 = vadd.f32 %v2077_v45, %v2024_v41  ;;  %v2026_v52 = vpop.f32.mrf.mxu0  ;;  %v7792_v45 = vld [vmem:[#allocation10 + $0xd8] sm:$0xff]  }
 0x1ed   :  { %v2079_v55 = vpop.f32.mrf.mxu1  ;;  %7229 = vmatprep.subr.bf16.mxu1 %v7792_v45 }
 0x1ee   :  { %v2080_v56 = vadd.f32 %v2079_v55, %v2026_v52  ;;  %v2030_v57 = vpop.f32.mrf.mxu0  ;;  %7244 = vmatpush3.bf16.msra.mxu0 %v7785_v8  ;;  %7230 = vmatpush3.bf16.msra.mxu1 %v7792_v45 }
 0x1ef   :  { %v2083_v18 = vpop.f32.mrf.mxu1  ;;  %7245 = vmatprep.subr.bf16.mxu0 %v7787_v54  ;;  %7231 = vmatprep.subr.bf16.mxu1 %v7794_v9 }
 0x1f0   :  { %v8306_v58 = vadd.f32 %v2083_v18, %v2030_v57  ;;  %v2032_v61 = vpop.f32.mrf.mxu0  ;;  %v7793_v57 = vld [vmem:[#allocation10 + $0x110] sm:$0xff]  }
 0x1f1   :  { %v2085_v62 = vpop.f32.mrf.mxu1 }
 0x1f2   :  { %v8308_v31 = vadd.f32 %v2085_v62, %v2032_v61  ;;  %v2034_v63 = vpop.f32.mrf.mxu0  ;;  %7246 = vmatpush3.bf16.msra.mxu0 %v7787_v54  ;;  %7232 = vmatpush3.bf16.msra.mxu1 %v7794_v9 }
 0x1f3   :  { %v2087_v1 = vpop.f32.mrf.mxu1  ;;  %7247 = vmatprep.subr.bf16.mxu0 %v7789_v35 }
 0x1f4   :  { %v8310_v46 = vadd.f32 %v2087_v1, %v2034_v63  ;;  %v2036_v2 = vpop.f32.mrf.mxu0 }
 0x1f5   :  { %v2089_v4 = vpop.f32.mrf.mxu1 }
 0x1f6   :  { %v8312_v5 = vadd.f32 %v2089_v4, %v2036_v2  ;;  %7248 = vmatpush3.bf16.msra.mxu0 %v7789_v35 }
 0x1f7   :  { %7249 = vmatprep.subr.bf16.mxu0 %v7791_v22 }
 0x1fa   :  { %7250 = vmatpush3.bf16.msra.mxu0 %v7791_v22 }
 0x1fb   :  { %7251 = vmatprep.subr.bf16.mxu0 %v7793_v57 }
 0x1fe   :  { %7252 = vmatpush3.bf16.msra.mxu0 %v7793_v57  ;;  %v6730_v57 = vld [vmem:[#allocation13] ss:$0 sm:$0xff] }
 0x226   :  { %v2126_v43 = vpop.f32.mrf.mxu0 }
 0x227   :  { %v2179_v7 = vpop.f32.mrf.mxu1  ;;  %v2127_v33 = vadd.f32 %v2126_v43, %v2074_v30 }
 0x228   :  { %v2128_v10 = vpop.f32.mrf.mxu0 }
 0x229   :  { %v2181_v11 = vpop.f32.mrf.mxu1  ;;  %v2129_v12 = vadd.f32 %v2128_v10, %v2076_v40  ;;  %v2180_v48 = vadd.f32 %v2179_v7, %v2127_v33 }
 0x22a   :  { %v2130_v14 = vpop.f32.mrf.mxu0 }
 0x22b   :  { %v2183_v15 = vpop.f32.mrf.mxu1  ;;  %v2222_v16 = vmul.f32 %v8322_v34, %v2180_v48  ;;  %v2131_v17 = vadd.f32 %v2130_v14, %v2078_v47  ;;  %v2182_v49 = vadd.f32 %v2181_v11, %v2129_v12 }
 0x22c   :  { %v2132_v13 = vpop.f32.mrf.mxu0 }
 0x22d   :  { %v2185_v20 = vpop.f32.mrf.mxu1  ;;  %v2260_v28 = vadd.f32 %v8326_v37, %v2222_v16  ;;  %v2223_v26 = vmul.f32 %v8330_v50, %v2182_v49  ;;  %v2133_v29 = vadd.f32 %v2132_v13, %v2080_v56  ;;  %v2184_v30 = vadd.f32 %v2183_v15, %v2131_v17  ;;  %v7796_v15 = vld [vmem:[#allocation10 + $0xc8] sm:$0xff]   ;;  %v7797_v17 = vld [vmem:[#allocation10 + $0x100] sm:$0xff]  }
 0x22e   :  { %v2136_v38 = vpop.f32.mrf.mxu0  ;;  %v7798_v49 = vld [vmem:[#allocation10 + $0xc0] sm:$0xff]   ;;  %7233 = vmatprep.subr.bf16.mxu1 %v7796_v15 }
 0x22f   :  { %v2189_v39 = vpop.f32.mrf.mxu1  ;;  %v2261_v40 = vadd.f32 %v8335_v21, %v2223_v26  ;;  %v2226_v44 = vmul.f32 %v8322_v34, %v2184_v30  ;;  %v2186_v41 = vadd.f32 %v2185_v20, %v2133_v29  ;;  %v2137_v47 = vadd.f32 %v2136_v38, %v8306_v58  ;;  %7234 = vmatpush3.bf16.msra.mxu1 %v7796_v15  ;;  %v8364_v30 = vld [vmem:[#allocation10 + $0x178] sm:$0xff]  }
 0x230   :  { %v2138_v52 = vpop.f32.mrf.mxu0  ;;  %v2276_v18 = vmax.f32 %v2260_v28, 0.0  ;;  %7235 = vmatprep.subr.bf16.mxu1 %v7798_v49 }
 0x231   :  { %v2191_v55 = vpop.f32.mrf.mxu1  ;;  %v2264_v56 = vadd.f32 %v8326_v37, %v2226_v44  ;;  %v2227_v61 = vmul.f32 %v8330_v50, %v2186_v41  ;;  %v2139_v62 = vadd.f32 %v2138_v52, %v8308_v31  ;;  %v2277_v63 = vmax.f32 %v2261_v40, 0.0  ;;  %v7795_v31 = vld [vmem:[#allocation10 + $0x108] sm:$0xff]  }
 0x232   :  { %v2190_v1 = vadd.f32 %v2189_v39, %v2137_v47  ;;  %v2140_v2 = vpop.f32.mrf.mxu0  ;;  %7253 = vmatprep.subr.bf16.mxu0 %v7795_v31  ;;  %v6729_v47 = vld [vmem:[#allocation11] ss:$0 sm:$0xff] }
 0x233   :  { %v2193_v4 = vpop.f32.mrf.mxu1  ;;  %v2280_v6 = vmax.f32 %v2264_v56, 0.0  ;;  %v2265_v58 = vadd.f32 %v8335_v21, %v2227_v61  ;;  %v2141_v53 = vadd.f32 %v2140_v2, %v8310_v46  ;;  %v2192_v8 = vadd.f32 %v2191_v55, %v2139_v62  ;;  %7254 = vmatpush3.bf16.msra.mxu0 %v7795_v31  ;;  %7236 = vmatpush3.bf16.msra.mxu1 %v7798_v49 }
 0x234   :  { %v2230_v54 = vmul.f32 %v8322_v34, %v2190_v1  ;;  %v2142_v32 = vpop.f32.mrf.mxu0  ;;  %7255 = vmatprep.subr.bf16.mxu0 %v7797_v17  ;;  %7261 = vmatprep.subr.bf16.mxu1 %v8364_v30 }
 0x235   :  { %v2195_v43 = vpop.f32.mrf.mxu1  ;;  %v8348_v7 = vpack.c.bf16 %v2280_v6, %v2276_v18  ;;  %v2281_v33 = vmax.f32 %v2265_v58, 0.0  ;;  %v2231_v10 = vmul.f32 %v8330_v50, %v2192_v8  ;;  %v2143_v11 = vadd.f32 %v2142_v32, %v8312_v5 }
 0x236   :  { %v2268_v35 = vadd.f32 %v8326_v37, %v2230_v54  ;;  %v2194_v12 = vadd.f32 %v2193_v4, %v2141_v53 }
 0x237   :  { %v8353_v46 = vpack.c.bf16 %v2281_v33, %v2277_v63  ;;  %v2269_v48 = vadd.f32 %v8335_v21, %v2231_v10  ;;  %v2196_v14 = vadd.f32 %v2195_v43, %v2143_v11  ;;  %7256 = vmatpush3.bf16.msra.mxu0 %v7797_v17  ;;  %v2846_v10 = vunpack.c.l.bf16 %v8272_v0 }
 0x238   :  { %v2234_v16 = vmul.f32 %v8322_v34, %v2194_v12  ;;  %v2284_v5 = vmax.f32 %v2268_v35, 0.0  ;;  %v2844_v11 = vunpack.c.l.bf16 %v8269_v25  ;;  %v2847_v12 = vunpack.c.h.bf16 %v8272_v0 }
 0x239   :  { %v2235_v19 = vmul.f32 %v8330_v50, %v2196_v14  ;;  %v2285_v20 = vmax.f32 %v2269_v48, 0.0 }
 0x23a   :  { %v2272_v13 = vadd.f32 %v8326_v37, %v2234_v16 }
 0x23b   :  { %v2273_v22 = vadd.f32 %v8335_v21, %v2235_v19  ;;  %v2845_v19 = vunpack.c.h.bf16 %v8269_v25 }
 0x23c   :  { %v2288_v28 = vmax.f32 %v2272_v13, 0.0 }
 0x23d   :  { %v2289_v26 = vmax.f32 %v2273_v22, 0.0 }
 0x23e   :  { %v8360_v29 = vpack.c.bf16 %v2288_v28, %v2284_v5 }
 0x23f   :  { %v8362_v34 = vpack.c.bf16 %v2289_v26, %v2285_v20 }
 0x27f   :  { %v7199_v38 = vpop.f32.mrf.mxu1 }
 0x281   :  { %v2618_v40 = vpop.f32.mrf.mxu1 }
 0x283   :  { %v7200_v41 = vpop.f32.mrf.mxu1 }
 0x285   :  { %v2621_v63 = vpop.f32.mrf.mxu1 }
 0x289   :  { %v7179_v50 = vpop.f32.mrf.mxu0 }
 0x28a   :  { %v2627_v21 = vadd.f32 %v7199_v38, %v7179_v50 }
 0x28b   :  { %v2521_v37 = vpop.f32.mrf.mxu0 }
 0x28c   :  { %v2619_v52 = vadd.f32 %v2618_v40, %v2521_v37 }
 0x28d   :  { %v7180_v39 = vpop.f32.mrf.mxu0 }
 0x28e   :  { %v2630_v56 = vadd.f32 %v7200_v41, %v7180_v39 }
 0x28f   :  { %v2524_v44 = vpop.f32.mrf.mxu0 }
 0x290   :  { %v2622_v2 = vadd.f32 %v2621_v63, %v2524_v44 }
 0x2a9   :  { %v7219_v45 = vpop.f32.mrf.mxu0 }
 0x2aa   :  { %v2750_v55 = vadd.f32 %v7219_v45, %v2627_v21 }
 0x2ab   :  { %v2733_v18 = vpop.f32.mrf.mxu0 }
 0x2ac   :  { %v2761_v61 = vmul.f32 %v6729_v47, %v2750_v55  ;;  %v2748_v62 = vadd.f32 %v2733_v18, %v2619_v52 }
 0x2ad   :  { %v7220_v1 = vpop.f32.mrf.mxu0 }
 0x2ae   :  { %v2772_v4 = vadd.f32 %v6730_v57, %v2761_v61  ;;  %v2759_v6 = vmul.f32 %v6729_v47, %v2748_v62  ;;  %v2751_v58 = vadd.f32 %v7220_v1, %v2630_v56 }
 0x2af   :  { %v2736_v53 = vpop.f32.mrf.mxu0 }
 0x2b0   :  { %v2770_v8 = vadd.f32 %v6730_v57, %v2759_v6  ;;  %v2762_v9 = vmul.f32 %v6729_v47, %v2751_v58  ;;  %v2749_v54 = vadd.f32 %v2736_v53, %v2622_v2  ;;  %v2776_v32 = vmax.f32 %v2772_v4, 0.0  ;;  %v7800_v2 = vld [vmem:[#allocation10 + $0x170] sm:$0xff]   ;;  %v7801_v6 = vld [vmem:[#allocation10 + $0x168] sm:$0xff]   ;;  %v7802_v58 = vld [vmem:[#allocation10 + $0x160] sm:$0xff]  }
 0x2b1   :  { %v7803_v53 = vld [vmem:[#allocation10 + $0x158] sm:$0xff]  }
 0x2b2   :  { %v2774_v43 = vmax.f32 %v2770_v8, 0.0  ;;  %v2773_v31 = vadd.f32 %v6730_v57, %v2762_v9  ;;  %v2760_v33 = vmul.f32 %v6729_v47, %v2749_v54  ;;  %v2850_v14 = vadd.f32 %v2846_v10, %v2776_v32  ;;  %v7804_v8 = vld [vmem:[#allocation10 + $0x150] sm:$0xff]   ;;  %v7805_v9 = vld [vmem:[#allocation10 + $0x148] sm:$0xff]   ;;  %v7806_v54 = vld [vmem:[#allocation10 + $0x140] sm:$0xff]  }
 0x2b3   :  { %v3317_v10 = vld [vmem:[#allocation14 + $0x3e8] sm:$0xff] }
 0x2b4   :  { %v2777_v35 = vmax.f32 %v2773_v31, 0.0  ;;  %v2771_v48 = vadd.f32 %v6730_v57, %v2760_v33  ;;  %v2848_v15 = vadd.f32 %v2844_v11, %v2774_v43  ;;  %v2854_v22 = vrot.slane %v2850_v14, 7  ;;  %v3304_v11 = vld [vmem:[#allocation14 + $0x380] sm:$0xff] }
 0x2b5   :  { %v2866_v39 = vrot.slane %v2850_v14, 1 }
 0x2b6   :  { %v8370_v16 = vpack.c.bf16 %v2777_v35, %v2776_v32  ;;  %v2851_v17 = vadd.f32 %v2847_v12, %v2777_v35  ;;  %v2775_v49 = vmax.f32 %v2771_v48, 0.0  ;;  %v2852_v28 = vrot.slane %v2848_v15, 7  ;;  %v3316_v32 = vld [vmem:[#allocation14 + $0x3e0] sm:$0xff] }
 0x2b7   :  { %v2864_v50 = vrot.slane %v2848_v15, 1  ;;  %v3308_v35 = vld [vmem:[#allocation14 + $0x3a0] sm:$0xff] }
 0x2b8   :  { %v2867_v5 = vrot.slane %v2851_v17, 1  ;;  %v8373_v13 = vpack.c.bf16 %v2775_v49, %v2774_v43  ;;  %v2849_v20 = vadd.f32 %v2845_v19, %v2775_v49  ;;  %v2855_v26 = vrot.slane %v2851_v17, 7  ;;  %v3313_v43 = vld [vmem:[#allocation14 + $0x3c8] sm:$0xff]  ;;  %v3296_v49 = vld [vmem:[#allocation14 + $0x340] sm:$0xff] }
 0x2b9   :  { %v2877_v40 = vpack.c.bf16 %v2851_v17, %v2850_v14  ;;  %v6815_v12 = vcombine.low %v3313_v43, %v3317_v10  ;;  %v6816_v48 = vcombine.high %v3313_v43, %v3317_v10  ;;  %v6806_v14 = vcombine.high %v3304_v11, %v3308_v35  ;;  %v3309_v17 = vld [vmem:[#allocation14 + $0x3a8] sm:$0xff] }
 0x2ba   :  { %v2876_v37 = vpack.c.bf16 %v2849_v20, %v2848_v15  ;;  %v2853_v38 = vrot.slane %v2849_v20, 7  ;;  %v2865_v0 = vrot.slane %v2849_v20, 1  ;;  %v2859_v44 = vsel %vm2383_vm3, %v2855_v26, %v2852_v28  ;;  %v3305_v15 = vld [vmem:[#allocation14 + $0x388] sm:$0xff] }
 0x2bb   :  { %v2871_v21 = vsel %vm2396_vm4, %v2867_v5, %v2864_v50  ;;  %v2860_v41 = vmul.f32 %v8274_v59, %v2859_v44  ;;  %v2856_v56 = vsel %vm2383_vm3, %v2854_v22, %v2855_v26  ;;  %v2868_v62 = vsel %vm2396_vm4, %v2866_v39, %v2867_v5  ;;  %v3300_v5 = vld [vmem:[#allocation14 + $0x360] sm:$0xff]  ;;  %v3297_v20 = vld [vmem:[#allocation14 + $0x348] sm:$0xff] }
 0x2bc   :  { %7257 = vmatprep.mubr.bf16.mxu0 %v2876_v37  ;;  %v2858_v25 = vsel %vm2383_vm3, %v2852_v28, %v2853_v38  ;;  %v2857_v45 = vsel %vm2383_vm3, %v2853_v38, %v2854_v22  ;;  %v2869_v47 = vsel %vm2396_vm4, %v2865_v0, %v2866_v39  ;;  %v2875_v57 = vmul.f32 %v8299_v51, %v2871_v21  ;;  %v3301_v22 = vld [vmem:[#allocation14 + $0x368] sm:$0xff]  ;;  %v3288_v38 = vld [vmem:[#allocation14 + $0x300] sm:$0xff] }
 0x2bd   :  { %7258 = vmatmul.mubr.bf16.vlgmr.msra.gmra.mxu0 %v2877_v40  ;;  %v2862_v52 = vmul.f32 %v8276_v3, %v2857_v45  ;;  %v2873_v55 = vmul.f32 %v8278_v60, %v2869_v47  ;;  %v2895_v18 = vpack.c.bf16 %v2858_v25, %v2860_v41  ;;  %v2870_v61 = vsel %vm2396_vm4, %v2864_v50, %v2865_v0  ;;  %v3292_v0 = vld [vmem:[#allocation14 + $0x320] sm:$0xff]  ;;  %v3289_v39 = vld [vmem:[#allocation14 + $0x308] sm:$0xff] }
 0x2be   :  { %v3108_v4 = vpack.c.bf16 %v2875_v57, %v2868_v62  ;;  %v6808_v19 = vcombine.high %v3305_v15, %v3309_v17  ;;  %v6805_v28 = vcombine.low %v3304_v11, %v3308_v35  ;;  %v6807_v26 = vcombine.low %v3305_v15, %v3309_v17  ;;  %v3293_v40 = vld [vmem:[#allocation14 + $0x328] sm:$0xff]  ;;  %v3256_v35 = vld [vmem:[#allocation14 + $0x200] sm:$0xff] }
 0x2bf   :  { %v2896_v63 = vpack.c.bf16 %v2856_v56, %v2862_v52  ;;  %v3107_v1 = vpack.c.bf16 %v2873_v55, %v2870_v61  ;;  %7237 = vmatprep.mubr.bf16.mxu1 %v2895_v18  ;;  %v6798_v50 = vcombine.high %v3296_v49, %v3300_v5  ;;  %v6800_v37 = vcombine.high %v3297_v20, %v3301_v22  ;;  %v3280_v52 = vld [vmem:[#allocation14 + $0x2c0] sm:$0xff]  ;;  %v3281_v57 = vld [vmem:[#allocation14 + $0x2c8] sm:$0xff] }
 0x2c0   :  { %v6797_v44 = vcombine.low %v3296_v49, %v3300_v5  ;;  %v6799_v21 = vcombine.low %v3297_v20, %v3301_v22  ;;  %v6790_v25 = vcombine.high %v3288_v38, %v3292_v0  ;;  %v6792_v41 = vcombine.high %v3289_v39, %v3293_v40  ;;  %v3284_v55 = vld [vmem:[#allocation14 + $0x2e0] sm:$0xff]  ;;  %v3285_v56 = vld [vmem:[#allocation14 + $0x2e8] sm:$0xff]  ;;  %v8396_v5 = vld [vmem:[#allocation14 + $0x3d0] sm:$0xff] }
 0x2c1   :  { %7238 = vmatmul.mubr.bf16.vlgmr.msra.gmra.mxu1 %v2896_v63  ;;  %v6789_v45 = vcombine.low %v3288_v38, %v3292_v0  ;;  %v6791_v47 = vcombine.low %v3289_v39, %v3293_v40  ;;  %v6782_v18 = vcombine.high %v3280_v52, %v3284_v55  ;;  %v6781_v61 = vcombine.low %v3280_v52, %v3284_v55  ;;  %v3261_v15 = vld [vmem:[#allocation14 + $0x228] sm:$0xff]  ;;  %v8398_v20 = vld [vmem:[#allocation14 + $0x3f0] sm:$0xff]  ;;  %v8400_v22 = vld [vmem:[#allocation14 + $0x3d8] sm:$0xff] }
 0x2c2   :  { %7262 = vmatpush3.bf16.msra.mxu1 %v8364_v30  ;;  %7277 = vmatprep.mubr.bf16.mxu1 %v3107_v1  ;;  %v3312_v30 = vld [vmem:[#allocation14 + $0x3c0] sm:$0xff]  ;;  %v6783_v62 = vcombine.low %v3281_v57, %v3285_v56  ;;  %v6784_v63 = vcombine.high %v3281_v57, %v3285_v56  ;;  %v6755_v55 = vld [vmem:[#allocation11 + $0x1] ss:$0 sm:$0xff]  ;;  %v6756_v56 = vld [vmem:[#allocation13 + $0x1] ss:$0 sm:$0xff] }
 0x2c3   :  { %7263 = vmatprep.subr.bf16.mxu1 %v7800_v2  ;;  %v6813_v31 = vcombine.low %v3312_v30, %v3316_v32  ;;  %v6814_v33 = vcombine.high %v3312_v30, %v3316_v32  ;;  %v3272_v1 = vld [vmem:[#allocation14 + $0x280] sm:$0xff]  ;;  %v3265_v32 = vld [vmem:[#allocation14 + $0x248] sm:$0xff] }
 0x2c4   :  { %v3268_v30 = vld [vmem:[#allocation14 + $0x260] sm:$0xff] }
 0x2c5   :  { %3640 = vmatprep.subr.bf16.mxu0 %v6814_v33 }
 0x2c6   :  { %7264 = vmatpush3.bf16.msra.mxu1 %v7800_v2  ;;  %3641 = vmatpush1.bf16.msra.mxu0 %v6813_v31  ;;  %v3276_v2 = vld [vmem:[#allocation14 + $0x2a0] sm:$0xff]  ;;  %v3269_v31 = vld [vmem:[#allocation14 + $0x268] sm:$0xff] }
 0x2c7   :  { %7265 = vmatprep.subr.bf16.mxu1 %v7801_v6  ;;  %3642 = vmatprep.subr.bf16.mxu0 %v6806_v14  ;;  %v6767_v10 = vcombine.low %v3265_v32, %v3269_v31  ;;  %v6768_v11 = vcombine.high %v3265_v32, %v3269_v31 }
 0x2ca   :  { %7266 = vmatpush3.bf16.msra.mxu1 %v7801_v6  ;;  %3643 = vmatpush1.bf16.msra.mxu0 %v6805_v28  ;;  %v6774_v6 = vcombine.high %v3272_v1, %v3276_v2  ;;  %v6817_v28 = vcombine.low %v8396_v5, %v8398_v20 }
 0x2cb   :  { %7267 = vmatprep.subr.bf16.mxu1 %v7802_v58  ;;  %3644 = vmatprep.subr.bf16.mxu0 %v6798_v50  ;;  %v8406_v50 = vld [vmem:[#allocation14 + $0x3f8] sm:$0xff] }
 0x2cc   :  { %v6819_v38 = vcombine.low %v8400_v22, %v8406_v50  ;;  %v6820_v0 = vcombine.high %v8400_v22, %v8406_v50 }
 0x2ce   :  { %7268 = vmatpush3.bf16.msra.mxu1 %v7802_v58  ;;  %3645 = vmatpush1.bf16.msra.mxu0 %v6797_v44  ;;  %v3277_v58 = vld [vmem:[#allocation14 + $0x2a8] sm:$0xff] }
 0x2cf   :  { %7269 = vmatprep.subr.bf16.mxu1 %v7803_v53  ;;  %3646 = vmatprep.subr.bf16.mxu0 %v6790_v25 }
 0x2d2   :  { %7270 = vmatpush3.bf16.msra.mxu1 %v7803_v53  ;;  %3647 = vmatpush1.bf16.msra.mxu0 %v6789_v45  ;;  %v6773_v53 = vcombine.low %v3272_v1, %v3276_v2 }
 0x2d3   :  { %7271 = vmatprep.subr.bf16.mxu1 %v7804_v8  ;;  %3648 = vmatprep.subr.bf16.mxu0 %v6782_v18 }
 0x2d6   :  { %7272 = vmatpush3.bf16.msra.mxu1 %v7804_v8  ;;  %3649 = vmatpush1.bf16.msra.mxu0 %v6781_v61 }
 0x2d7   :  { %7273 = vmatprep.subr.bf16.mxu1 %v7805_v9  ;;  %3650 = vmatprep.subr.bf16.mxu0 %v6774_v6 }
 0x2da   :  { %7274 = vmatpush3.bf16.msra.mxu1 %v7805_v9  ;;  %3651 = vmatpush1.bf16.msra.mxu0 %v6773_v53 }
 0x2db   :  { %7275 = vmatprep.subr.bf16.mxu1 %v7806_v54 }
 0x2de   :  { %7276 = vmatpush3.bf16.msra.mxu1 %v7806_v54  ;;  %v3264_v54 = vld [vmem:[#allocation14 + $0x240] sm:$0xff] }
 0x2df   :  { %3693 = vmatprep.subr.bf16.mxu1 %v6816_v48  ;;  %v6766_v43 = vcombine.high %v3264_v54, %v3268_v30  ;;  %v6765_v33 = vcombine.low %v3264_v54, %v3268_v30  ;;  %v3257_v48 = vld [vmem:[#allocation14 + $0x208] sm:$0xff] }
 0x2e0   :  { %v6759_v49 = vcombine.low %v3257_v48, %v3261_v15 }
 0x2e1   :  { %7278 = vmatmul.mubr.bf16.vlgmr.msra.gmra.mxu1 %v3108_v4  ;;  %v3273_v4 = vld [vmem:[#allocation14 + $0x288] sm:$0xff]  ;;  %3652 = vmatprep.subr.bf16.mxu0 %v6766_v43 }
 0x2e2   :  { %3694 = vmatpush1.bf16.msra.mxu1 %v6815_v12  ;;  %v6775_v8 = vcombine.low %v3273_v4, %v3277_v58  ;;  %v6776_v9 = vcombine.high %v3273_v4, %v3277_v58  ;;  %3653 = vmatpush1.bf16.msra.mxu0 %v6765_v33  ;;  %v3260_v12 = vld [vmem:[#allocation14 + $0x220] sm:$0xff]  ;;  %v4384_v33 = vunpack.c.l.bf16 %v8348_v7 }
 0x2e3   :  { %3695 = vmatprep.subr.bf16.mxu1 %v6808_v19  ;;  %v6758_v14 = vcombine.high %v3256_v35, %v3260_v12  ;;  %v6757_v17 = vcombine.low %v3256_v35, %v3260_v12  ;;  %v6760_v19 = vcombine.high %v3257_v48, %v3261_v15  ;;  %v3306_v48 = vld [vmem:[#allocation14 + $0x390] sm:$0xff]  ;;  %v3307_v15 = vld [vmem:[#allocation14 + $0x398] sm:$0xff] }
 0x2e5   :  { %3654 = vmatprep.subr.bf16.mxu0 %v6758_v14  ;;  %v3310_v14 = vld [vmem:[#allocation14 + $0x3b0] sm:$0xff] }
 0x2e6   :  { %3696 = vmatpush1.bf16.msra.mxu1 %v6807_v26  ;;  %3655 = vmatpush1.bf16.msra.mxu0 %v6757_v17  ;;  %v6818_v26 = vcombine.high %v8396_v5, %v8398_v20  ;;  %v3311_v17 = vld [vmem:[#allocation14 + $0x3b8] sm:$0xff] }
 0x2e7   :  { %3697 = vmatprep.subr.bf16.mxu1 %v6800_v37  ;;  %v9151_v37 = vmov 0   ;;  %v3291_v5 = vld [vmem:[#allocation14 + $0x318] sm:$0xff] }
 0x2e8   :  { %3672 = vmatprep.mubr.bf16.mxu0 %v9151_v37  ;;  %3725 = vmatprep.mubr.bf16.mxu1 %v9151_v37  ;;  %v3295_v20 = vld [vmem:[#allocation14 + $0x338] sm:$0xff] }
 0x2e9   :  { %3746 = vmatprep.subr.bf16.mxu0 %v6818_v26 }
 0x2ea   :  { %3698 = vmatpush1.bf16.msra.mxu1 %v6799_v21 }
 0x2eb   :  { %3699 = vmatprep.subr.bf16.mxu1 %v6792_v41 }
 0x2ee   :  { %3700 = vmatpush1.bf16.msra.mxu1 %v6791_v47 }
 0x2ef   :  { %3701 = vmatprep.subr.bf16.mxu1 %v6784_v63 }
 0x2f2   :  { %3702 = vmatpush1.bf16.msra.mxu1 %v6783_v62 }
 0x2f3   :  { %3703 = vmatprep.subr.bf16.mxu1 %v6776_v9  ;;  %v4386_v9 = vunpack.c.l.bf16 %v8360_v29 }
 0x2f6   :  { %3704 = vmatpush1.bf16.msra.mxu1 %v6775_v8 }
 0x2f7   :  { %3705 = vmatprep.subr.bf16.mxu1 %v6768_v11 }
 0x2fa   :  { %3706 = vmatpush1.bf16.msra.mxu1 %v6767_v10 }
 0x2fb   :  { %3707 = vmatprep.subr.bf16.mxu1 %v6760_v19 }
 0x2fe   :  { %3708 = vmatpush1.bf16.msra.mxu1 %v6759_v49  ;;  %v8425_v49 = vld [vmem:[#allocation14 + $0x350] sm:$0xff] }
 0x2ff   :  { %3799 = vmatprep.subr.bf16.mxu1 %v6820_v0  ;;  %v4387_v0 = vunpack.c.h.bf16 %v8360_v29 }
 0x37d   :  { %v7259_v44 = vpop.f32.mrf.mxu0 }
 0x37f   :  { %v3092_v25 = vpop.f32.mrf.mxu0 }
 0x381   :  { %v7239_v39 = vpop.f32.mrf.mxu1  ;;  %v7260_v47 = vpop.f32.mrf.mxu0 }
 0x382   :  { %v3101_v45 = vadd.f32 %v7259_v44, %v7239_v39  ;;  %v8433_v44 = vld [vmem:[#allocation14 + $0x358] sm:$0xff] }
 0x383   :  { %v2995_v40 = vpop.f32.mrf.mxu1  ;;  %v3095_v2 = vpop.f32.mrf.mxu0 }
 0x384   :  { %v3093_v57 = vadd.f32 %v3092_v25, %v2995_v40  ;;  %v8431_v40 = vld [vmem:[#allocation14 + $0x370] sm:$0xff]  ;;  %v4385_v25 = vunpack.c.h.bf16 %v8348_v7 }
 0x385   :  { %v7240_v21 = vpop.f32.mrf.mxu1  ;;  %v6802_v29 = vcombine.high %v8425_v49, %v8431_v40 }
 0x386   :  { %v3104_v62 = vadd.f32 %v7260_v47, %v7240_v21  ;;  %v8435_v21 = vld [vmem:[#allocation14 + $0x378] sm:$0xff] }
 0x387   :  { %v2998_v41 = vpop.f32.mrf.mxu1 }
 0x388   :  { %v3096_v6 = vadd.f32 %v3095_v2, %v2998_v41  ;;  %v6809_v41 = vcombine.low %v3306_v48, %v3310_v14 }
 0x3a1   :  { %v7279_v52 = vpop.f32.mrf.mxu1 }
 0x3a2   :  { %v3224_v18 = vadd.f32 %v7279_v52, %v3101_v45  ;;  %v6810_v45 = vcombine.high %v3306_v48, %v3310_v14  ;;  %v6803_v14 = vcombine.low %v8433_v44, %v8435_v21 }
 0x3a3   :  { %v3207_v61 = vpop.f32.mrf.mxu1 }
 0x3a4   :  { %v3236_v63 = vmul.f32 %v6755_v55, %v3224_v18  ;;  %v3222_v1 = vadd.f32 %v3207_v61, %v3093_v57  ;;  %v6812_v57 = vcombine.high %v3307_v15, %v3311_v17  ;;  %v6801_v18 = vcombine.low %v8425_v49, %v8431_v40  ;;  %v3282_v40 = vld [vmem:[#allocation14 + $0x2d0] sm:$0xff] }
 0x3a5   :  { %v7280_v4 = vpop.f32.mrf.mxu1  ;;  %v6796_v49 = vcombine.high %v3291_v5, %v3295_v20 }
 0x3a6   :  { %v8414_v58 = vadd.f32 %v6756_v56, %v3236_v63  ;;  %v3234_v53 = vmul.f32 %v6755_v55, %v3222_v1  ;;  %v3225_v8 = vadd.f32 %v7280_v4, %v3104_v62 }
 0x3a7   :  { %v3210_v54 = vpop.f32.mrf.mxu1 }
 0x3a8   :  { %v3252_v30 = vmax.f32 %v8414_v58, 0.0  ;;  %v3246_v32 = vadd.f32 %v6756_v56, %v3234_v53  ;;  %v3237_v43 = vmul.f32 %v6755_v55, %v3225_v8  ;;  %v3223_v31 = vadd.f32 %v3210_v54, %v3096_v6 }
 0x3aa   :  { %v8421_v10 = vadd.f32 %v4386_v9, %v3252_v30  ;;  %v3250_v11 = vmax.f32 %v3246_v32, 0.0  ;;  %v8423_v35 = vadd.f32 %v6756_v56, %v3237_v43  ;;  %v3235_v12 = vmul.f32 %v6755_v55, %v3223_v31  ;;  %v3290_v43 = vld [vmem:[#allocation14 + $0x310] sm:$0xff] }
 0x3ab   :  { %v6811_v55 = vcombine.low %v3307_v15, %v3311_v17 }
 0x3ac   :  { %v8427_v19 = vadd.f32 %v4384_v33, %v3250_v11  ;;  %v3253_v26 = vmax.f32 %v8423_v35, 0.0  ;;  %v3247_v39 = vadd.f32 %v6756_v56, %v3235_v12  ;;  %v6804_v56 = vcombine.high %v8433_v44, %v8435_v21  ;;  %v3294_v35 = vld [vmem:[#allocation14 + $0x330] sm:$0xff]  ;;  %v3283_v21 = vld [vmem:[#allocation14 + $0x2d8] sm:$0xff] }
 0x3ad   :  { %v4406_v61 = vrot.slane %v8421_v10, 1  ;;  %v4394_v2 = vrot.slane %v8421_v10, 7  ;;  %v3286_v44 = vld [vmem:[#allocation14 + $0x2f0] sm:$0xff]  ;;  %v6793_v58 = vcombine.low %v3290_v43, %v3294_v35 }
 0x3ae   :  { %v8438_v47 = vadd.f32 %v4387_v0, %v3253_v26  ;;  %v3251_v52 = vmax.f32 %v3247_v39, 0.0  ;;  %v4392_v4 = vrot.slane %v8427_v19, 7  ;;  %v4404_v53 = vrot.slane %v8427_v19, 1 }
 0x3af   :  { %v8516_v39 = vpack.c.bf16 %v3253_v26, %v3252_v30  ;;  %v6795_v30 = vcombine.low %v3291_v5, %v3295_v20  ;;  %v6786_v26 = vcombine.high %v3282_v40, %v3286_v44  ;;  %v3263_v5 = vld [vmem:[#allocation14 + $0x238] sm:$0xff] }
 0x3b0   :  { %v4407_v7 = vrot.slane %v8438_v47, 1  ;;  %v4417_v62 = vpack.c.bf16 %v8438_v47, %v8421_v10  ;;  %v8450_v63 = vpack.c.bf16 %v3251_v52, %v3250_v11  ;;  %v8452_v1 = vadd.f32 %v4385_v25, %v3251_v52  ;;  %v3287_v25 = vld [vmem:[#allocation14 + $0x2f8] sm:$0xff]  ;;  %v3278_v52 = vld [vmem:[#allocation14 + $0x2b0] sm:$0xff]  ;;  %v7829_v10 = vld [vmem:[#allocation10 + $0x208] sm:$0xff]  }
 0x3b1   :  { %v4395_v6 = vrot.slane %v8438_v47, 7  ;;  %v7830_v47 = vld [vmem:[#allocation10 + $0x200] sm:$0xff]  }
 0x3b2   :  { %3673 = vmatmul.mubr.bf16.vlgmr.msra.gmra.mxu0 %v8450_v63  ;;  %3726 = vmatmul.mubr.bf16.vlgmr.msra.gmra.mxu1 %v8450_v63  ;;  %v4393_v8 = vrot.slane %v8452_v1, 7  ;;  %v4416_v9 = vpack.c.bf16 %v8452_v1, %v8427_v19  ;;  %v4405_v54 = vrot.slane %v8452_v1, 1  ;;  %v8466_v32 = vsel %vm2396_vm4, %v4406_v61, %v4407_v7  ;;  %v7821_v19 = vld [vmem:[#allocation10 + $0x180] sm:$0xff]  }
 0x3b3   :  { %3747 = vmatpush1.bf16.msra.mxu0 %v6817_v28  ;;  %3800 = vmatpush1.bf16.msra.mxu1 %v6819_v38  ;;  %v4399_v31 = vsel %vm2383_vm3, %v4395_v6, %v4392_v4  ;;  %v8478_v33 = vsel %vm2383_vm3, %v4394_v2, %v4395_v6  ;;  %v4411_v11 = vsel %vm2396_vm4, %v4407_v7, %v4404_v53  ;;  %v3266_v7 = vld [vmem:[#allocation14 + $0x250] sm:$0xff]  ;;  %v3271_v6 = vld [vmem:[#allocation14 + $0x278] sm:$0xff] }
 0x3b4   :  { %3748 = vmatprep.subr.bf16.mxu0 %v6810_v45  ;;  %3801 = vmatprep.subr.bf16.mxu1 %v6812_v57  ;;  %v4397_v22 = vsel %vm2383_vm3, %v4393_v8, %v4394_v2  ;;  %v8486_v28 = vsel %vm2383_vm3, %v4392_v4, %v4393_v8  ;;  %v8489_v50 = vmul.f32 %v8274_v59, %v4399_v31  ;;  %v3274_v45 = vld [vmem:[#allocation14 + $0x290] sm:$0xff]  ;;  %v3279_v57 = vld [vmem:[#allocation14 + $0x2b8] sm:$0xff] }
 0x3b5   :  { %3682 = vmatprep.mubr.bf16.mxu0 %v9151_v37  ;;  %3735 = vmatprep.mubr.bf16.mxu1 %v9151_v37  ;;  %v8494_v38 = vmul.f32 %v8276_v3, %v4397_v22  ;;  %v4409_v12 = vsel %vm2396_vm4, %v4405_v54, %v4406_v61  ;;  %v8500_v48 = vsel %vm2396_vm4, %v4404_v53, %v4405_v54  ;;  %v3270_v2 = vld [vmem:[#allocation14 + $0x270] sm:$0xff]  ;;  %v3267_v4 = vld [vmem:[#allocation14 + $0x258] sm:$0xff] }
 0x3b6   :  { %v4435_v59 = vpack.c.bf16 %v8486_v28, %v8489_v50  ;;  %v8507_v15 = vmul.f32 %v8278_v60, %v4409_v12  ;;  %v8510_v17 = vmul.f32 %v8299_v51, %v4411_v11  ;;  %v6794_v3 = vcombine.high %v3290_v43, %v3294_v35  ;;  %v3258_v31 = vld [vmem:[#allocation14 + $0x210] sm:$0xff]  ;;  %v3259_v35 = vld [vmem:[#allocation14 + $0x218] sm:$0xff]  ;;  %v7819_v28 = vld [vmem:[#allocation10 + $0x188] sm:$0xff]  }
 0x3b7   :  { %3749 = vmatpush1.bf16.msra.mxu0 %v6809_v41  ;;  %3802 = vmatpush1.bf16.msra.mxu1 %v6811_v55  ;;  %v4436_v0 = vpack.c.bf16 %v8478_v33, %v8494_v38  ;;  %v6788_v41 = vcombine.high %v3283_v21, %v3287_v25  ;;  %v3275_v55 = vld [vmem:[#allocation14 + $0x298] sm:$0xff]  ;;  %v6777_v53 = vcombine.low %v3274_v45, %v3278_v52  ;;  %v3262_v11 = vld [vmem:[#allocation14 + $0x230] sm:$0xff]  ;;  %v7820_v50 = vld [vmem:[#allocation10 + $0x1c8] sm:$0xff]  }
 0x3b8   :  { %3750 = vmatprep.subr.bf16.mxu0 %v6802_v29  ;;  %3803 = vmatprep.subr.bf16.mxu1 %v6804_v56  ;;  %v4647_v60 = vpack.c.bf16 %v8507_v15, %v8500_v48  ;;  %v4648_v51 = vpack.c.bf16 %v8510_v17, %v8466_v32  ;;  %v6785_v29 = vcombine.low %v3282_v40, %v3286_v44  ;;  %v2837_v40 = vld [vmem:[#allocation14 + $0x1c8] sm:$0xff]  ;;  %v7822_v1 = vld [vmem:[#allocation10 + $0x1c0] sm:$0xff]   ;;  %v7827_v33 = vld [vmem:[#allocation10 + $0x218] sm:$0xff]  }
 0x3b9   :  { %v6787_v56 = vcombine.low %v3283_v21, %v3287_v25  ;;  %v6780_v61 = vcombine.high %v3275_v55, %v3279_v57  ;;  %v6779_v8 = vcombine.low %v3275_v55, %v3279_v57  ;;  %v6770_v54 = vcombine.high %v3266_v7, %v3270_v2  ;;  %v2841_v44 = vld [vmem:[#allocation14 + $0x1e8] sm:$0xff] }
 0x3ba   :  { %3683 = vmatmul.mubr.bf16.gmra.mxu0 %v8516_v39  ;;  %3736 = vmatmul.mubr.bf16.gmra.mxu1 %v8516_v39  ;;  %v6772_v43 = vcombine.high %v3267_v4, %v3271_v6  ;;  %v6769_v20 = vcombine.low %v3266_v7, %v3270_v2  ;;  %v6771_v22 = vcombine.low %v3267_v4, %v3271_v6  ;;  %v2821_v7 = vld [vmem:[#allocation14 + $0x148] sm:$0xff] }
 0x3bb   :  { %3751 = vmatpush1.bf16.msra.mxu0 %v6801_v18  ;;  %3804 = vmatpush1.bf16.msra.mxu1 %v6803_v14  ;;  %v6778_v18 = vcombine.high %v3274_v45, %v3278_v52  ;;  %v6762_v12 = vcombine.high %v3258_v31, %v3262_v11  ;;  %v6764_v14 = vcombine.high %v3259_v35, %v3263_v5  ;;  %v2829_v45 = vld [vmem:[#allocation14 + $0x188] sm:$0xff] }
 0x3bc   :  { %3752 = vmatprep.subr.bf16.mxu0 %v6794_v3  ;;  %3805 = vmatprep.subr.bf16.mxu1 %v6796_v49  ;;  %v2836_v3 = vld [vmem:[#allocation14 + $0x1c0] sm:$0xff]  ;;  %v6761_v21 = vcombine.low %v3258_v31, %v3262_v11  ;;  %v6763_v25 = vcombine.low %v3259_v35, %v3263_v5  ;;  %v2833_v52 = vld [vmem:[#allocation14 + $0x1a8] sm:$0xff]  ;;  %v6879_v57 = vcombine.low %v2837_v40, %v2841_v44 }
 0x3bd   :  { %3778 = vmatprep.mubr.bf16.mxu0 %v9151_v37  ;;  %3831 = vmatprep.mubr.bf16.mxu1 %v9151_v37  ;;  %v2840_v49 = vld [vmem:[#allocation14 + $0x1e0] sm:$0xff]  ;;  %v2825_v2 = vld [vmem:[#allocation14 + $0x168] sm:$0xff]  ;;  %v6871_v6 = vcombine.low %v2829_v45, %v2833_v52 }
 0x3be   :  { %v6877_v55 = vcombine.low %v2836_v3, %v2840_v49  ;;  %v2813_v31 = vld [vmem:[#allocation14 + $0x108] sm:$0xff] }
 0x3bf   :  { %3753 = vmatpush1.bf16.msra.mxu0 %v6793_v58  ;;  %3806 = vmatpush1.bf16.msra.mxu1 %v6795_v30  ;;  %v6878_v58 = vcombine.high %v2836_v3, %v2840_v49  ;;  %v6880_v30 = vcombine.high %v2837_v40, %v2841_v44  ;;  %v2817_v11 = vld [vmem:[#allocation14 + $0x128] sm:$0xff] }
 0x3c0   :  { %3754 = vmatprep.subr.bf16.mxu0 %v6786_v26  ;;  %3807 = vmatprep.subr.bf16.mxu1 %v6788_v41  ;;  %v2828_v26 = vld [vmem:[#allocation14 + $0x180] sm:$0xff]  ;;  %v2809_v3 = vld [vmem:[#allocation14 + $0xe8] sm:$0xff]  ;;  %v6855_v40 = vcombine.low %v2813_v31, %v2817_v11 }
 0x3c1   :  { %v2832_v41 = vld [vmem:[#allocation14 + $0x1a0] sm:$0xff]  ;;  %v7828_v38 = vld [vmem:[#allocation10 + $0x210] sm:$0xff]  }
 0x3c2   :  { %v6869_v4 = vcombine.low %v2828_v26, %v2832_v41 }
 0x3c3   :  { %3755 = vmatpush1.bf16.msra.mxu0 %v6785_v29  ;;  %3808 = vmatpush1.bf16.msra.mxu1 %v6787_v56  ;;  %v6870_v29 = vcombine.high %v2828_v26, %v2832_v41  ;;  %v6872_v56 = vcombine.high %v2829_v45, %v2833_v52  ;;  %v2801_v26 = vld [vmem:[#allocation14 + $0xa8] sm:$0xff] }
 0x3c4   :  { %3756 = vmatprep.subr.bf16.mxu0 %v6778_v18  ;;  %3809 = vmatprep.subr.bf16.mxu1 %v6780_v61  ;;  %v2820_v18 = vld [vmem:[#allocation14 + $0x140] sm:$0xff] }
 0x3c5   :  { %v2824_v61 = vld [vmem:[#allocation14 + $0x160] sm:$0xff] }
 0x3c6   :  { %v6861_v35 = vcombine.low %v2820_v18, %v2824_v61 }
 0x3c7   :  { %3757 = vmatpush1.bf16.msra.mxu0 %v6777_v53  ;;  %3810 = vmatpush1.bf16.msra.mxu1 %v6779_v8  ;;  %v6862_v53 = vcombine.high %v2820_v18, %v2824_v61  ;;  %v6864_v8 = vcombine.high %v2821_v7, %v2825_v2 }
 0x3c8   :  { %3758 = vmatprep.subr.bf16.mxu0 %v6770_v54  ;;  %3811 = vmatprep.subr.bf16.mxu1 %v6772_v43  ;;  %v2812_v54 = vld [vmem:[#allocation14 + $0x100] sm:$0xff] }
 0x3c9   :  { %v2816_v43 = vld [vmem:[#allocation14 + $0x120] sm:$0xff] }
 0x3ca   :  { %v6854_v5 = vcombine.high %v2812_v54, %v2816_v43  ;;  %v6853_v49 = vcombine.low %v2812_v54, %v2816_v43 }
 0x3cb   :  { %3759 = vmatpush1.bf16.msra.mxu0 %v6769_v20  ;;  %3812 = vmatpush1.bf16.msra.mxu1 %v6771_v22  ;;  %v6856_v20 = vcombine.high %v2813_v31, %v2817_v11  ;;  %v2804_v22 = vld [vmem:[#allocation14 + $0xc0] sm:$0xff] }
 0x3cc   :  { %3760 = vmatprep.subr.bf16.mxu0 %v6762_v12  ;;  %3813 = vmatprep.subr.bf16.mxu1 %v6764_v14  ;;  %v2808_v12 = vld [vmem:[#allocation14 + $0xe0] sm:$0xff]  ;;  %v2805_v14 = vld [vmem:[#allocation14 + $0xc8] sm:$0xff] }
 0x3cd   :  { %v6846_v44 = vcombine.high %v2804_v22, %v2808_v12  ;;  %v6845_v41 = vcombine.low %v2804_v22, %v2808_v12 }
 0x3cf   :  { %3761 = vmatpush1.bf16.msra.mxu0 %v6761_v21  ;;  %3814 = vmatpush1.bf16.msra.mxu1 %v6763_v25  ;;  %v6848_v21 = vcombine.high %v2805_v14, %v2809_v3  ;;  %v2796_v25 = vld [vmem:[#allocation14 + $0x80] sm:$0xff] }
 0x3d0   :  { %4172 = vmatprep.subr.bf16.mxu0 %v6878_v58  ;;  %4225 = vmatprep.subr.bf16.mxu1 %v6880_v30  ;;  %v2800_v58 = vld [vmem:[#allocation14 + $0xa0] sm:$0xff]  ;;  %v2797_v30 = vld [vmem:[#allocation14 + $0x88] sm:$0xff] }
 0x3d1   :  { %v6838_v45 = vcombine.high %v2796_v25, %v2800_v58  ;;  %v6840_v52 = vcombine.high %v2797_v30, %v2801_v26  ;;  %v6837_v18 = vcombine.low %v2796_v25, %v2800_v58  ;;  %v6839_v61 = vcombine.low %v2797_v30, %v2801_v26 }
 0x3d2   :  { %3779 = vmatmul.mubr.bf16.vlgmr.msra.gmra.mxu0 %v8450_v63  ;;  %3832 = vmatmul.mubr.bf16.vlgmr.msra.gmra.mxu1 %v8450_v63  ;;  %v6863_v63 = vcombine.low %v2821_v7, %v2825_v2 }
 0x3d3   :  { %4173 = vmatpush1.bf16.msra.mxu0 %v6877_v55  ;;  %4226 = vmatpush1.bf16.msra.mxu1 %v6879_v57  ;;  %v2788_v55 = vld [vmem:[#allocation14 + $0x40] sm:$0xff] }
 0x3d4   :  { %4174 = vmatprep.subr.bf16.mxu0 %v6870_v29  ;;  %4227 = vmatprep.subr.bf16.mxu1 %v6872_v56  ;;  %v2792_v57 = vld [vmem:[#allocation14 + $0x60] sm:$0xff]  ;;  %v2789_v29 = vld [vmem:[#allocation14 + $0x48] sm:$0xff] }
 0x3d5   :  { %3788 = vmatprep.mubr.bf16.mxu0 %v9151_v37  ;;  %3841 = vmatprep.mubr.bf16.mxu1 %v9151_v37  ;;  %v2793_v56 = vld [vmem:[#allocation14 + $0x68] sm:$0xff]  ;;  %v6830_v7 = vcombine.high %v2788_v55, %v2792_v57  ;;  %v6829_v54 = vcombine.low %v2788_v55, %v2792_v57 }
 0x3d6   :  { %v6832_v2 = vcombine.high %v2789_v29, %v2793_v56  ;;  %v6831_v43 = vcombine.low %v2789_v29, %v2793_v56 }
 0x3d7   :  { %4175 = vmatpush1.bf16.msra.mxu0 %v6869_v4  ;;  %4228 = vmatpush1.bf16.msra.mxu1 %v6871_v6  ;;  %v2780_v4 = vld [vmem:[#allocation14] sm:$0xff] }
 0x3d8   :  { %4176 = vmatprep.subr.bf16.mxu0 %v6862_v53  ;;  %4229 = vmatprep.subr.bf16.mxu1 %v6864_v8  ;;  %v2784_v6 = vld [vmem:[#allocation14 + $0x20] sm:$0xff]  ;;  %v2781_v53 = vld [vmem:[#allocation14 + $0x8] sm:$0xff] }
 0x3d9   :  { %v2785_v8 = vld [vmem:[#allocation14 + $0x28] sm:$0xff]  ;;  %v6822_v31 = vcombine.high %v2780_v4, %v2784_v6  ;;  %v6821_v22 = vcombine.low %v2780_v4, %v2784_v6 }
 0x3da   :  { %3789 = vmatmul.mubr.bf16.gmra.mxu0 %v8516_v39  ;;  %3842 = vmatmul.mubr.bf16.gmra.mxu1 %v8516_v39  ;;  %v6847_v39 = vcombine.low %v2805_v14, %v2809_v3  ;;  %v6824_v11 = vcombine.high %v2781_v53, %v2785_v8  ;;  %v6823_v12 = vcombine.low %v2781_v53, %v2785_v8 }
 0x3db   :  { %4177 = vmatpush1.bf16.msra.mxu0 %v6861_v35  ;;  %4230 = vmatpush1.bf16.msra.mxu1 %v6863_v63  ;;  %v2838_v35 = vld [vmem:[#allocation14 + $0x1d0] sm:$0xff] }
 0x3dc   :  { %4178 = vmatprep.subr.bf16.mxu0 %v6854_v5  ;;  %4231 = vmatprep.subr.bf16.mxu1 %v6856_v20  ;;  %v2842_v63 = vld [vmem:[#allocation14 + $0x1f0] sm:$0xff]  ;;  %v2839_v5 = vld [vmem:[#allocation14 + $0x1d8] sm:$0xff] }
 0x3dd   :  { %4204 = vmatprep.mubr.bf16.mxu0 %v9151_v37  ;;  %4257 = vmatprep.mubr.bf16.mxu1 %v9151_v37  ;;  %v2843_v20 = vld [vmem:[#allocation14 + $0x1f8] sm:$0xff]  ;;  %v6882_v14 = vcombine.high %v2838_v35, %v2842_v63  ;;  %v6881_v25 = vcombine.low %v2838_v35, %v2842_v63 }
 0x3de   :  { %v6884_v3 = vcombine.high %v2839_v5, %v2843_v20  ;;  %v6883_v58 = vcombine.low %v2839_v5, %v2843_v20 }
 0x3df   :  { %4179 = vmatpush1.bf16.msra.mxu0 %v6853_v49  ;;  %4232 = vmatpush1.bf16.msra.mxu1 %v6855_v40  ;;  %v2830_v49 = vld [vmem:[#allocation14 + $0x190] sm:$0xff] }
 0x3e0   :  { %4180 = vmatprep.subr.bf16.mxu0 %v6846_v44  ;;  %4233 = vmatprep.subr.bf16.mxu1 %v6848_v21  ;;  %v2834_v40 = vld [vmem:[#allocation14 + $0x1b0] sm:$0xff]  ;;  %v2831_v44 = vld [vmem:[#allocation14 + $0x198] sm:$0xff] }
 0x3e1   :  { %v2835_v21 = vld [vmem:[#allocation14 + $0x1b8] sm:$0xff]  ;;  %v6874_v30 = vcombine.high %v2830_v49, %v2834_v40  ;;  %v6873_v55 = vcombine.low %v2830_v49, %v2834_v40 }
 0x3e2   :  { %v6876_v26 = vcombine.high %v2831_v44, %v2835_v21  ;;  %v6875_v57 = vcombine.low %v2831_v44, %v2835_v21 }
 0x3e3   :  { %4181 = vmatpush1.bf16.msra.mxu0 %v6845_v41  ;;  %4234 = vmatpush1.bf16.msra.mxu1 %v6847_v39  ;;  %v2822_v41 = vld [vmem:[#allocation14 + $0x150] sm:$0xff] }
 0x3e4   :  { %4182 = vmatprep.subr.bf16.mxu0 %v6838_v45  ;;  %4235 = vmatprep.subr.bf16.mxu1 %v6840_v52  ;;  %v2826_v39 = vld [vmem:[#allocation14 + $0x170] sm:$0xff]  ;;  %v2823_v45 = vld [vmem:[#allocation14 + $0x158] sm:$0xff] }
 0x3e5   :  { %v2827_v52 = vld [vmem:[#allocation14 + $0x178] sm:$0xff]  ;;  %v6866_v29 = vcombine.high %v2822_v41, %v2826_v39  ;;  %v6865_v4 = vcombine.low %v2822_v41, %v2826_v39 }
 0x3e6   :  { %v6868_v56 = vcombine.high %v2823_v45, %v2827_v52  ;;  %v6867_v6 = vcombine.low %v2823_v45, %v2827_v52 }
 0x3e7   :  { %4183 = vmatpush1.bf16.msra.mxu0 %v6837_v18  ;;  %4236 = vmatpush1.bf16.msra.mxu1 %v6839_v61  ;;  %v2814_v18 = vld [vmem:[#allocation14 + $0x110] sm:$0xff] }
 0x3e8   :  { %4184 = vmatprep.subr.bf16.mxu0 %v6830_v7  ;;  %4237 = vmatprep.subr.bf16.mxu1 %v6832_v2  ;;  %v2818_v61 = vld [vmem:[#allocation14 + $0x130] sm:$0xff]  ;;  %v2815_v7 = vld [vmem:[#allocation14 + $0x118] sm:$0xff] }
 0x3e9   :  { %v2819_v2 = vld [vmem:[#allocation14 + $0x138] sm:$0xff]  ;;  %v6858_v53 = vcombine.high %v2814_v18, %v2818_v61  ;;  %v6857_v35 = vcombine.low %v2814_v18, %v2818_v61 }
 0x3ea   :  { %v6860_v8 = vcombine.high %v2815_v7, %v2819_v2  ;;  %v6859_v63 = vcombine.low %v2815_v7, %v2819_v2 }
 0x3eb   :  { %4185 = vmatpush1.bf16.msra.mxu0 %v6829_v54  ;;  %4238 = vmatpush1.bf16.msra.mxu1 %v6831_v43  ;;  %v2806_v54 = vld [vmem:[#allocation14 + $0xd0] sm:$0xff] }
 0x3ec   :  { %4186 = vmatprep.subr.bf16.mxu0 %v6822_v31  ;;  %4239 = vmatprep.subr.bf16.mxu1 %v6824_v11  ;;  %v2810_v43 = vld [vmem:[#allocation14 + $0xf0] sm:$0xff]  ;;  %v2807_v31 = vld [vmem:[#allocation14 + $0xd8] sm:$0xff] }
 0x3ed   :  { %v2811_v11 = vld [vmem:[#allocation14 + $0xf8] sm:$0xff]  ;;  %v6850_v5 = vcombine.high %v2806_v54, %v2810_v43  ;;  %v6849_v49 = vcombine.low %v2806_v54, %v2810_v43  ;;  %v7809_v54 = vld [vmem:[#allocation10 + $0x1b0] sm:$0xff]  }
 0x3ee   :  { %v6852_v20 = vcombine.high %v2807_v31, %v2811_v11  ;;  %v6851_v40 = vcombine.low %v2807_v31, %v2811_v11  ;;  %v7810_v43 = vld [vmem:[#allocation10 + $0x1f0] sm:$0xff]   ;;  %v7811_v31 = vld [vmem:[#allocation10 + $0x1a8] sm:$0xff]  }
 0x3ef   :  { %4187 = vmatpush1.bf16.msra.mxu0 %v6821_v22  ;;  %4240 = vmatpush1.bf16.msra.mxu1 %v6823_v12  ;;  %v2798_v22 = vld [vmem:[#allocation14 + $0x90] sm:$0xff]  ;;  %v7812_v11 = vld [vmem:[#allocation10 + $0x1e8] sm:$0xff]  }
 0x3f0   :  { %4278 = vmatprep.subr.bf16.mxu0 %v6882_v14  ;;  %4331 = vmatprep.subr.bf16.mxu1 %v6884_v3  ;;  %v2802_v12 = vld [vmem:[#allocation14 + $0xb0] sm:$0xff]  ;;  %v2799_v14 = vld [vmem:[#allocation14 + $0x98] sm:$0xff] }
 0x3f1   :  { %v2803_v3 = vld [vmem:[#allocation14 + $0xb8] sm:$0xff]  ;;  %v6842_v44 = vcombine.high %v2798_v22, %v2802_v12  ;;  %v6841_v41 = vcombine.low %v2798_v22, %v2802_v12  ;;  %v7825_v22 = vld [vmem:[#allocation10 + $0x228] sm:$0xff]  }
 0x3f2   :  { %4205 = vmatmul.mubr.bf16.vlgmr.msra.gmra.mxu0 %v8373_v13  ;;  %4258 = vmatmul.mubr.bf16.vlgmr.msra.gmra.mxu1 %v8373_v13  ;;  %v6844_v21 = vcombine.high %v2799_v14, %v2803_v3  ;;  %v6843_v39 = vcombine.low %v2799_v14, %v2803_v3  ;;  %v7826_v12 = vld [vmem:[#allocation10 + $0x220] sm:$0xff]   ;;  %v4856_v14 = vld [vmem:[#allocation14 + $0x5e0] sm:$0xff]  ;;  %v4853_v3 = vld [vmem:[#allocation14 + $0x5c8] sm:$0xff] }
 0x3f3   :  { %4279 = vmatpush1.bf16.msra.mxu0 %v6881_v25  ;;  %4332 = vmatpush1.bf16.msra.mxu1 %v6883_v58  ;;  %v2790_v25 = vld [vmem:[#allocation14 + $0x50] sm:$0xff] }
 0x3f4   :  { %4280 = vmatprep.subr.bf16.mxu0 %v6874_v30  ;;  %4333 = vmatprep.subr.bf16.mxu1 %v6876_v26  ;;  %v2794_v58 = vld [vmem:[#allocation14 + $0x70] sm:$0xff]  ;;  %v2791_v30 = vld [vmem:[#allocation14 + $0x58] sm:$0xff] }
 0x3f5   :  { %4214 = vmatprep.mubr.bf16.mxu0 %v9151_v37  ;;  %4267 = vmatprep.mubr.bf16.mxu1 %v9151_v37  ;;  %v2795_v26 = vld [vmem:[#allocation14 + $0x78] sm:$0xff]  ;;  %v6834_v45 = vcombine.high %v2790_v25, %v2794_v58  ;;  %v6833_v18 = vcombine.low %v2790_v25, %v2794_v58  ;;  %v4848_v25 = vld [vmem:[#allocation14 + $0x5a0] sm:$0xff]  ;;  %v4845_v58 = vld [vmem:[#allocation14 + $0x588] sm:$0xff] }
 0x3f6   :  { %v6836_v52 = vcombine.high %v2791_v30, %v2795_v26  ;;  %v6835_v61 = vcombine.low %v2791_v30, %v2795_v26  ;;  %v4849_v30 = vld [vmem:[#allocation14 + $0x5a8] sm:$0xff]  ;;  %v4836_v26 = vld [vmem:[#allocation14 + $0x540] sm:$0xff] }
 0x3f7   :  { %4281 = vmatpush1.bf16.msra.mxu0 %v6873_v55  ;;  %4334 = vmatpush1.bf16.msra.mxu1 %v6875_v57  ;;  %v2782_v55 = vld [vmem:[#allocation14 + $0x10] sm:$0xff] }
 0x3f8   :  { %4282 = vmatprep.subr.bf16.mxu0 %v6866_v29  ;;  %4335 = vmatprep.subr.bf16.mxu1 %v6868_v56  ;;  %v2786_v57 = vld [vmem:[#allocation14 + $0x30] sm:$0xff]  ;;  %v2783_v29 = vld [vmem:[#allocation14 + $0x18] sm:$0xff] }
 0x3f9   :  { %v2787_v56 = vld [vmem:[#allocation14 + $0x38] sm:$0xff]  ;;  %v6826_v7 = vcombine.high %v2782_v55, %v2786_v57 }
 0x3fa   :  { %4215 = vmatmul.mubr.bf16.gmra.mxu0 %v8370_v16  ;;  %4268 = vmatmul.mubr.bf16.gmra.mxu1 %v8370_v16  ;;  %v6828_v2 = vcombine.high %v2783_v29, %v2787_v56 }
 0x3fb   :  { %4283 = vmatpush1.bf16.msra.mxu0 %v6865_v4  ;;  %4336 = vmatpush1.bf16.msra.mxu1 %v6867_v6  ;;  %v6825_v4 = vcombine.low %v2782_v55, %v2786_v57  ;;  %v6827_v6 = vcombine.low %v2783_v29, %v2787_v56  ;;  %v6961_v56 = vcombine.low %v4845_v58, %v4849_v30 }
 0x3fc   :  { %4284 = vmatprep.subr.bf16.mxu0 %v6858_v53  ;;  %4337 = vmatprep.subr.bf16.mxu1 %v6860_v8  ;;  %v7807_v53 = vld [vmem:[#allocation10 + $0x1b8] sm:$0xff]  }
 0x3fd   :  { %4310 = vmatprep.mubr.bf16.mxu0 %v9151_v37  ;;  %4363 = vmatprep.mubr.bf16.mxu1 %v9151_v37  ;;  %v7808_v8 = vld [vmem:[#allocation10 + $0x1f8] sm:$0xff]  }
 0x3ff   :  { %4285 = vmatpush1.bf16.msra.mxu0 %v6857_v35  ;;  %4338 = vmatpush1.bf16.msra.mxu1 %v6859_v63  ;;  %v7813_v35 = vld [vmem:[#allocation10 + $0x1a0] sm:$0xff]  }
 0x400   :  { %4286 = vmatprep.subr.bf16.mxu0 %v6850_v5  ;;  %4339 = vmatprep.subr.bf16.mxu1 %v6852_v20  ;;  %v7814_v63 = vld [vmem:[#allocation10 + $0x1e0] sm:$0xff]   ;;  %v7816_v5 = vld [vmem:[#allocation10 + $0x1d8] sm:$0xff]   ;;  %v7817_v20 = vld [vmem:[#allocation10 + $0x190] sm:$0xff]  }
 0x403   :  { %4287 = vmatpush1.bf16.msra.mxu0 %v6849_v49  ;;  %4340 = vmatpush1.bf16.msra.mxu1 %v6851_v40 }
 0x404   :  { %4288 = vmatprep.subr.bf16.mxu0 %v6842_v44  ;;  %4341 = vmatprep.subr.bf16.mxu1 %v6844_v21  ;;  %v4857_v44 = vld [vmem:[#allocation14 + $0x5e8] sm:$0xff]  ;;  %v4844_v21 = vld [vmem:[#allocation14 + $0x580] sm:$0xff] }
 0x405   :  { %v6969_v32 = vcombine.low %v4853_v3, %v4857_v44  ;;  %v6970_v17 = vcombine.high %v4853_v3, %v4857_v44  ;;  %v6959_v29 = vcombine.low %v4844_v21, %v4848_v25  ;;  %v4812_v3 = vld [vmem:[#allocation14 + $0x480] sm:$0xff]  ;;  %v4813_v44 = vld [vmem:[#allocation14 + $0x488] sm:$0xff] }
 0x407   :  { %4289 = vmatpush1.bf16.msra.mxu0 %v6841_v41  ;;  %4342 = vmatpush1.bf16.msra.mxu1 %v6843_v39  ;;  %v6962_v41 = vcombine.high %v4845_v58, %v4849_v30  ;;  %v4840_v39 = vld [vmem:[#allocation14 + $0x560] sm:$0xff] }
 0x408   :  { %4290 = vmatprep.subr.bf16.mxu0 %v6834_v45  ;;  %4343 = vmatprep.subr.bf16.mxu1 %v6836_v52  ;;  %v4837_v45 = vld [vmem:[#allocation14 + $0x548] sm:$0xff]  ;;  %v4804_v30 = vld [vmem:[#allocation14 + $0x440] sm:$0xff] }
 0x409   :  { %v4841_v52 = vld [vmem:[#allocation14 + $0x568] sm:$0xff] }
 0x40b   :  { %4291 = vmatpush1.bf16.msra.mxu0 %v6833_v18  ;;  %4344 = vmatpush1.bf16.msra.mxu1 %v6835_v61  ;;  %v6952_v18 = vcombine.high %v4836_v26, %v4840_v39  ;;  %v6954_v61 = vcombine.high %v4837_v45, %v4841_v52 }
 0x40c   :  { %4292 = vmatprep.subr.bf16.mxu0 %v6826_v7  ;;  %4345 = vmatprep.subr.bf16.mxu1 %v6828_v2  ;;  %v4828_v7 = vld [vmem:[#allocation14 + $0x500] sm:$0xff] }
 0x40d   :  { %v4832_v2 = vld [vmem:[#allocation14 + $0x520] sm:$0xff] }
 0x40f   :  { %4293 = vmatpush1.bf16.msra.mxu0 %v6825_v4  ;;  %4346 = vmatpush1.bf16.msra.mxu1 %v6827_v6  ;;  %v4829_v4 = vld [vmem:[#allocation14 + $0x508] sm:$0xff] }
 0x410   :  { %7281 = vmatprep.subr.bf16.mxu0 %v7807_v53  ;;  %7301 = vmatprep.subr.bf16.mxu1 %v7808_v8  ;;  %v4833_v6 = vld [vmem:[#allocation14 + $0x528] sm:$0xff] }
 0x412   :  { %4311 = vmatmul.mubr.bf16.vlgmr.msra.gmra.mxu0 %v8373_v13  ;;  %4364 = vmatmul.mubr.bf16.vlgmr.msra.gmra.mxu1 %v8373_v13  ;;  %v7815_v13 = vld [vmem:[#allocation10 + $0x198] sm:$0xff]  }
 0x413   :  { %7282 = vmatpush3.bf16.msra.mxu0 %v7807_v53  ;;  %7302 = vmatpush3.bf16.msra.mxu1 %v7808_v8 }
 0x414   :  { %7283 = vmatprep.subr.bf16.mxu0 %v7809_v54  ;;  %7303 = vmatprep.subr.bf16.mxu1 %v7810_v43 }
 0x415   :  { %4320 = vmatprep.mubr.bf16.mxu0 %v9151_v37  ;;  %4373 = vmatprep.mubr.bf16.mxu1 %v9151_v37 }
 0x417   :  { %7284 = vmatpush3.bf16.msra.mxu0 %v7809_v54  ;;  %7304 = vmatpush3.bf16.msra.mxu1 %v7810_v43  ;;  %v6951_v54 = vcombine.low %v4836_v26, %v4840_v39  ;;  %v6953_v43 = vcombine.low %v4837_v45, %v4841_v52  ;;  %v4808_v26 = vld [vmem:[#allocation14 + $0x460] sm:$0xff]  ;;  %v4809_v45 = vld [vmem:[#allocation14 + $0x468] sm:$0xff] }
 0x418   :  { %7285 = vmatprep.subr.bf16.mxu0 %v7811_v31  ;;  %7305 = vmatprep.subr.bf16.mxu1 %v7812_v11  ;;  %v6920_v39 = vcombine.high %v4804_v30, %v4808_v26  ;;  %v6919_v52 = vcombine.low %v4804_v30, %v4808_v26 }
 0x41a   :  { %4321 = vmatmul.mubr.bf16.gmra.mxu0 %v8370_v16  ;;  %4374 = vmatmul.mubr.bf16.gmra.mxu1 %v8370_v16  ;;  %v7818_v16 = vld [vmem:[#allocation10 + $0x1d0] sm:$0xff]  }
 0x41b   :  { %7286 = vmatpush3.bf16.msra.mxu0 %v7811_v31  ;;  %7297 = vmatprep.mubr.bf16.mxu0 %v4435_v59  ;;  %v7824_v59 = vld [vmem:[#allocation10 + $0x230] sm:$0xff]   ;;  %v6944_v31 = vcombine.high %v4828_v7, %v4832_v2 }
 0x41c   :  { %7306 = vmatpush3.bf16.msra.mxu1 %v7812_v11  ;;  %7317 = vmatprep.mubr.bf16.mxu1 %v4416_v9  ;;  %v7823_v9 = vld [vmem:[#allocation10 + $0x238] sm:$0xff]   ;;  %v6946_v11 = vcombine.high %v4829_v4, %v4833_v6 }
 0x41d   :  { %7287 = vmatprep.subr.bf16.mxu0 %v7813_v35  ;;  %7307 = vmatprep.subr.bf16.mxu1 %v7814_v63 }
 0x41f   :  { %7288 = vmatpush3.bf16.msra.mxu0 %v7813_v35 }
 0x420   :  { %7308 = vmatpush3.bf16.msra.mxu1 %v7814_v63  ;;  %7289 = vmatprep.subr.bf16.mxu0 %v7815_v13 }
 0x421   :  { %7309 = vmatprep.subr.bf16.mxu1 %v7816_v5 }
 0x423   :  { %7290 = vmatpush3.bf16.msra.mxu0 %v7815_v13  ;;  %v6943_v13 = vcombine.low %v4828_v7, %v4832_v2  ;;  %v4796_v7 = vld [vmem:[#allocation14 + $0x400] sm:$0xff] }
 0x424   :  { %7310 = vmatpush3.bf16.msra.mxu1 %v7816_v5  ;;  %7291 = vmatprep.subr.bf16.mxu0 %v7817_v20  ;;  %v6945_v5 = vcombine.low %v4829_v4, %v4833_v6  ;;  %v4800_v2 = vld [vmem:[#allocation14 + $0x420] sm:$0xff]  ;;  %v4797_v4 = vld [vmem:[#allocation14 + $0x408] sm:$0xff] }
 0x425   :  { %7311 = vmatprep.subr.bf16.mxu1 %v7818_v16  ;;  %v6912_v6 = vcombine.high %v4796_v7, %v4800_v2 }
 0x427   :  { %7292 = vmatpush3.bf16.msra.mxu0 %v7817_v20 }
 0x428   :  { %7312 = vmatpush3.bf16.msra.mxu1 %v7818_v16  ;;  %7293 = vmatprep.subr.bf16.mxu0 %v7819_v28 }
 0x429   :  { %7313 = vmatprep.subr.bf16.mxu1 %v7820_v50 }
 0x42b   :  { %7294 = vmatpush3.bf16.msra.mxu0 %v7819_v28 }
 0x42c   :  { %7314 = vmatpush3.bf16.msra.mxu1 %v7820_v50  ;;  %7295 = vmatprep.subr.bf16.mxu0 %v7821_v19 }
 0x42d   :  { %7315 = vmatprep.subr.bf16.mxu1 %v7822_v1 }
 0x42f   :  { %7296 = vmatpush3.bf16.msra.mxu0 %v7821_v19  ;;  %v4820_v19 = vld [vmem:[#allocation14 + $0x4c0] sm:$0xff] }
 0x430   :  { %7316 = vmatpush3.bf16.msra.mxu1 %v7822_v1  ;;  %7321 = vmatprep.subr.bf16.mxu0 %v7823_v9  ;;  %v4824_v1 = vld [vmem:[#allocation14 + $0x4e0] sm:$0xff] }
 0x432   :  { %7298 = vmatmul.mubr.bf16.vlgmr.msra.gmra.mxu0 %v4436_v0 }
 0x433   :  { %7318 = vmatmul.mubr.bf16.vlgmr.msra.gmra.mxu1 %v4417_v62  ;;  %7322 = vmatpush3.bf16.msra.mxu0 %v7823_v9  ;;  %v4821_v9 = vld [vmem:[#allocation14 + $0x4c8] sm:$0xff] }
 0x434   :  { %7337 = vmatprep.mubr.bf16.mxu0 %v4647_v60  ;;  %7323 = vmatprep.subr.bf16.mxu0 %v7824_v59  ;;  %v4852_v60 = vld [vmem:[#allocation14 + $0x5c0] sm:$0xff] }
 0x435   :  { %5212 = vmatprep.mubr.bf16.mxu1 %v9151_v37  ;;  %v6967_v49 = vcombine.low %v4852_v60, %v4856_v14  ;;  %v6968_v40 = vcombine.high %v4852_v60, %v4856_v14 }
 0x437   :  { %7324 = vmatpush3.bf16.msra.mxu0 %v7824_v59  ;;  %5180 = vmatprep.subr.bf16.mxu1 %v6968_v40 }
 0x438   :  { %7325 = vmatprep.subr.bf16.mxu0 %v7825_v22  ;;  %5181 = vmatpush1.bf16.msra.mxu1 %v6967_v49  ;;  %v4816_v49 = vld [vmem:[#allocation14 + $0x4a0] sm:$0xff] }
 0x439   :  { %v6928_v40 = vcombine.high %v4812_v3, %v4816_v49 }
 0x43b   :  { %7326 = vmatpush3.bf16.msra.mxu0 %v7825_v22 }
 0x43c   :  { %7327 = vmatprep.subr.bf16.mxu0 %v7826_v12 }
 0x43f   :  { %7328 = vmatpush3.bf16.msra.mxu0 %v7826_v12  ;;  %v6936_v12 = vcombine.high %v4820_v19, %v4824_v1 }
 0x440   :  { %7329 = vmatprep.subr.bf16.mxu0 %v7827_v33 }
 0x443   :  { %7330 = vmatpush3.bf16.msra.mxu0 %v7827_v33  ;;  %v4825_v33 = vld [vmem:[#allocation14 + $0x4e8] sm:$0xff] }
 0x444   :  { %7331 = vmatprep.subr.bf16.mxu0 %v7828_v38 }
 0x447   :  { %7332 = vmatpush3.bf16.msra.mxu0 %v7828_v38  ;;  %v6935_v38 = vcombine.low %v4820_v19, %v4824_v1  ;;  %v8616_v19 = vld [vmem:[#allocation14 + $0x5d0] sm:$0xff] }
 0x448   :  { %7333 = vmatprep.subr.bf16.mxu0 %v7829_v10  ;;  %v8618_v1 = vld [vmem:[#allocation14 + $0x5f0] sm:$0xff] }
 0x44b   :  { %7334 = vmatpush3.bf16.msra.mxu0 %v7829_v10  ;;  %v6937_v10 = vcombine.low %v4821_v9, %v4825_v33 }
 0x44c   :  { %7335 = vmatprep.subr.bf16.mxu0 %v7830_v47 }
 0x44f   :  { %7336 = vmatpush3.bf16.msra.mxu0 %v7830_v47  ;;  %v6938_v47 = vcombine.high %v4821_v9, %v4825_v33  ;;  %v8620_v9 = vld [vmem:[#allocation14 + $0x5d8] sm:$0xff]  ;;  %v6972_v33 = vcombine.high %v8616_v19, %v8618_v1 }
 0x450   :  { %5233 = vmatprep.subr.bf16.mxu0 %v6970_v17 }
 0x452   :  { %7338 = vmatmul.mubr.bf16.vlgmr.msra.gmra.mxu0 %v4648_v51  ;;  %v6960_v51 = vcombine.high %v4844_v21, %v4848_v25  ;;  %v4817_v21 = vld [vmem:[#allocation14 + $0x4a8] sm:$0xff]  ;;  %v6927_v25 = vcombine.low %v4812_v3, %v4816_v49 }
 0x453   :  { %5265 = vmatprep.mubr.bf16.mxu0 %v9151_v37  ;;  %5234 = vmatpush1.bf16.msra.mxu0 %v6969_v32  ;;  %v6929_v32 = vcombine.low %v4813_v44, %v4817_v21  ;;  %v6930_v17 = vcombine.high %v4813_v44, %v4817_v21 }
 0x454   :  { %5182 = vmatprep.subr.bf16.mxu1 %v6960_v51  ;;  %5235 = vmatprep.subr.bf16.mxu0 %v6962_v41  ;;  %v4805_v41 = vld [vmem:[#allocation14 + $0x448] sm:$0xff] }
 0x455   :  { %5183 = vmatpush1.bf16.msra.mxu1 %v6959_v29  ;;  %v6921_v29 = vcombine.low %v4805_v41, %v4809_v45 }
 0x456   :  { %5184 = vmatprep.subr.bf16.mxu1 %v6952_v18 }
 0x457   :  { %5236 = vmatpush1.bf16.msra.mxu0 %v6961_v56  ;;  %v6922_v56 = vcombine.high %v4805_v41, %v4809_v45 }
 0x458   :  { %5237 = vmatprep.subr.bf16.mxu0 %v6954_v61 }
 0x459   :  { %5185 = vmatpush1.bf16.msra.mxu1 %v6951_v54  ;;  %v4801_v54 = vld [vmem:[#allocation14 + $0x428] sm:$0xff] }
 0x45a   :  { %5186 = vmatprep.subr.bf16.mxu1 %v6944_v31  ;;  %v6913_v31 = vcombine.low %v4797_v4, %v4801_v54 }
 0x45b   :  { %5238 = vmatpush1.bf16.msra.mxu0 %v6953_v43  ;;  %v6911_v43 = vcombine.low %v4796_v7, %v4800_v2 }
 0x45c   :  { %5239 = vmatprep.subr.bf16.mxu0 %v6946_v11  ;;  %v6914_v11 = vcombine.high %v4797_v4, %v4801_v54 }
 0x45d   :  { %5187 = vmatpush1.bf16.msra.mxu1 %v6943_v13 }
 0x45e   :  { %5188 = vmatprep.subr.bf16.mxu1 %v6936_v12 }
 0x45f   :  { %5240 = vmatpush1.bf16.msra.mxu0 %v6945_v5 }
 0x460   :  { %5241 = vmatprep.subr.bf16.mxu0 %v6938_v47 }
 0x461   :  { %5189 = vmatpush1.bf16.msra.mxu1 %v6935_v38  ;;  %v8626_v38 = vld [vmem:[#allocation14 + $0x5f8] sm:$0xff] }
 0x462   :  { %5190 = vmatprep.subr.bf16.mxu1 %v6928_v40  ;;  %v6974_v47 = vcombine.high %v8620_v9, %v8626_v38 }
 0x463   :  { %5242 = vmatpush1.bf16.msra.mxu0 %v6937_v10 }
 0x464   :  { %5243 = vmatprep.subr.bf16.mxu0 %v6930_v17 }
 0x465   :  { %5191 = vmatpush1.bf16.msra.mxu1 %v6927_v25 }
 0x466   :  { %5192 = vmatprep.subr.bf16.mxu1 %v6920_v39 }
 0x467   :  { %5244 = vmatpush1.bf16.msra.mxu0 %v6929_v32 }
 0x468   :  { %5245 = vmatprep.subr.bf16.mxu0 %v6922_v56 }
 0x469   :  { %5193 = vmatpush1.bf16.msra.mxu1 %v6919_v52 }
 0x46a   :  { %5194 = vmatprep.subr.bf16.mxu1 %v6912_v6 }
 0x46b   :  { %5246 = vmatpush1.bf16.msra.mxu0 %v6921_v29 }
 0x46c   :  { %5247 = vmatprep.subr.bf16.mxu0 %v6914_v11 }
 0x46d   :  { %5195 = vmatpush1.bf16.msra.mxu1 %v6911_v43 }
 0x46e   :  { %5286 = vmatprep.subr.bf16.mxu1 %v6972_v33 }
 0x46f   :  { %5248 = vmatpush1.bf16.msra.mxu0 %v6913_v31 }
 0x470   :  { %5339 = vmatprep.subr.bf16.mxu0 %v6974_v47 }
 0x472   :  { %v8568_v62 = vpop.f32.mrf.mxu0  ;;  %v8570_v48 = vpop.f32.mrf.mxu1 }
 0x474   :  { %v8572_v15 = vpop.f32.mrf.mxu0  ;;  %v8574_v0 = vpop.f32.mrf.mxu1 }
 0x476   :  { %v8576_v55 = vpop.f32.mrf.mxu0  ;;  %v8578_v57 = vpop.f32.mrf.mxu1 }
 0x478   :  { %v8580_v53 = vpop.f32.mrf.mxu0  ;;  %v8582_v8 = vpop.f32.mrf.mxu1 }
 0x47a   :  { %v8584_v35 = vpop.f32.mrf.mxu0  ;;  %v8586_v63 = vpop.f32.mrf.mxu1 }
 0x47c   :  { %v8588_v20 = vpop.f32.mrf.mxu0  ;;  %v8590_v16 = vpop.f32.mrf.mxu1 }
 0x47e   :  { %v8592_v28 = vpop.f32.mrf.mxu0  ;;  %v8594_v50 = vpop.f32.mrf.mxu1 }
 0x480   :  { %v8596_v59 = vpop.f32.mrf.mxu0  ;;  %v8598_v22 = vpop.f32.mrf.mxu1 }
 0x492   :  { %v8600_v60 = vpop.f32.mrf.mxu0  ;;  %v8602_v14 = vpop.f32.mrf.mxu1 }
 0x494   :  { %v8604_v51 = vpop.f32.mrf.mxu0  ;;  %v8606_v58 = vpop.f32.mrf.mxu1 }
 0x496   :  { %v8608_v18 = vpop.f32.mrf.mxu0  ;;  %v8610_v61 = vpop.f32.mrf.mxu1 }
 0x498   :  { %v8612_v13 = vpop.f32.mrf.mxu0  ;;  %v8614_v5 = vpop.f32.mrf.mxu1 }
 0x49a   :  { %v3790_v3 = vpop.f32.mrf.mxu0  ;;  %v3843_v49 = vpop.f32.mrf.mxu1 }
 0x49c   :  { %v3792_v40 = vpop.f32.mrf.mxu0  ;;  %v3845_v44 = vpop.f32.mrf.mxu1 }
 0x49e   :  { %v3794_v21 = vpop.f32.mrf.mxu0  ;;  %v3847_v25 = vpop.f32.mrf.mxu1 }
 0x4a0   :  { %v8632_v32 = vpop.f32.mrf.mxu0  ;;  %v8634_v17 = vpop.f32.mrf.mxu1 }
 0x4b2   :  { %v4206_v30 = vpop.f32.mrf.mxu0  ;;  %v4259_v26 = vpop.f32.mrf.mxu1 }
 0x4b3   :  { %v8637_v41 = vadd.f32 %v4206_v30, %v8568_v62  ;;  %v8640_v39 = vadd.f32 %v4259_v26, %v8570_v48 }
 0x4b4   :  { %v4208_v45 = vpop.f32.mrf.mxu0  ;;  %v4261_v52 = vpop.f32.mrf.mxu1 }
 0x4b5   :  { %v8643_v29 = vadd.f32 %v4208_v45, %v8572_v15  ;;  %v8646_v56 = vadd.f32 %v4261_v52, %v8574_v0 }
 0x4b6   :  { %v4210_v7 = vpop.f32.mrf.mxu0  ;;  %v4263_v2 = vpop.f32.mrf.mxu1 }
 0x4b7   :  { %v8649_v4 = vadd.f32 %v4210_v7, %v8576_v55  ;;  %v8652_v6 = vadd.f32 %v4263_v2, %v8578_v57 }
 0x4b8   :  { %v4212_v62 = vpop.f32.mrf.mxu0  ;;  %v4265_v54 = vpop.f32.mrf.mxu1 }
 0x4b9   :  { %v8655_v48 = vadd.f32 %v4212_v62, %v8580_v53  ;;  %v8658_v43 = vadd.f32 %v4265_v54, %v8582_v8 }
 0x4ba   :  { %v4216_v15 = vpop.f32.mrf.mxu0  ;;  %v4269_v31 = vpop.f32.mrf.mxu1 }
 0x4bb   :  { %v8661_v0 = vadd.f32 %v4216_v15, %v8584_v35  ;;  %v8664_v11 = vadd.f32 %v4269_v31, %v8586_v63 }
 0x4bc   :  { %v4218_v55 = vpop.f32.mrf.mxu0  ;;  %v4271_v33 = vpop.f32.mrf.mxu1 }
 0x4bd   :  { %v8667_v57 = vadd.f32 %v4218_v55, %v8588_v20  ;;  %v8670_v47 = vadd.f32 %v4271_v33, %v8590_v16 }
 0x4be   :  { %v4220_v53 = vpop.f32.mrf.mxu0  ;;  %v4273_v30 = vpop.f32.mrf.mxu1 }
 0x4bf   :  { %v8673_v8 = vadd.f32 %v4220_v53, %v8592_v28  ;;  %v8676_v26 = vadd.f32 %v4273_v30, %v8594_v50 }
 0x4c0   :  { %v4222_v35 = vpop.f32.mrf.mxu0  ;;  %v4275_v45 = vpop.f32.mrf.mxu1 }
 0x4c1   :  { %v8679_v63 = vadd.f32 %v4222_v35, %v8596_v59  ;;  %v8682_v52 = vadd.f32 %v4275_v45, %v8598_v22 }
 0x4d2   :  { %v4312_v20 = vpop.f32.mrf.mxu0  ;;  %v4365_v7 = vpop.f32.mrf.mxu1 }
 0x4d3   :  { %v8685_v16 = vadd.f32 %v4312_v20, %v8600_v60  ;;  %v8688_v2 = vadd.f32 %v4365_v7, %v8602_v14 }
 0x4d4   :  { %v4314_v28 = vpop.f32.mrf.mxu0  ;;  %v4367_v62 = vpop.f32.mrf.mxu1 }
 0x4d5   :  { %9153 = vst [vmem:[#allocation23_spill] sm:$0xff] %v8688_v2  ;;  %v8691_v50 = vadd.f32 %v4314_v28, %v8604_v51  ;;  %v8694_v54 = vadd.f32 %v4367_v62, %v8606_v58 }
 0x4d6   :  { %v4316_v59 = vpop.f32.mrf.mxu0  ;;  %v4369_v15 = vpop.f32.mrf.mxu1 }
 0x4d7   :  { %9154 = vst [vmem:[#allocation24_spill] sm:$0xff] %v8691_v50  ;;  %9155 = vst [vmem:[#allocation25_spill] sm:$0xff] %v8694_v54  ;;  %v8697_v22 = vadd.f32 %v4316_v59, %v8608_v18  ;;  %v8700_v31 = vadd.f32 %v4369_v15, %v8610_v61 }
 0x4d8   :  { %v4318_v60 = vpop.f32.mrf.mxu0  ;;  %v4371_v55 = vpop.f32.mrf.mxu1 }
 0x4d9   :  { %9156 = vst [vmem:[#allocation26_spill] sm:$0xff] %v8697_v22  ;;  %9157 = vst [vmem:[#allocation27_spill] sm:$0xff] %v8700_v31  ;;  %v8703_v14 = vadd.f32 %v4318_v60, %v8612_v13  ;;  %v8706_v33 = vadd.f32 %v4371_v55, %v8614_v5  ;;  %v4846_v31 = vld [vmem:[#allocation14 + $0x590] sm:$0xff]  ;;  %v4851_v22 = vld [vmem:[#allocation14 + $0x5b8] sm:$0xff] }
 0x4da   :  { %v4322_v51 = vpop.f32.mrf.mxu0  ;;  %v4375_v53 = vpop.f32.mrf.mxu1 }
 0x4db   :  { %9158 = vst [vmem:[#allocation28_spill] sm:$0xff] %v8703_v14  ;;  %9159 = vst [vmem:[#allocation29_spill] sm:$0xff] %v8706_v33  ;;  %v8708_v58 = vadd.f32 %v4322_v51, %v3790_v3  ;;  %v8710_v30 = vadd.f32 %v4375_v53, %v3843_v49 }
 0x4dc   :  { %v4324_v35 = vpop.f32.mrf.mxu0  ;;  %v4377_v18 = vpop.f32.mrf.mxu1 }
 0x4dd   :  { %9160 = vst [vmem:[#allocation30_spill] sm:$0xff] %v8708_v58  ;;  %v8712_v45 = vadd.f32 %v4324_v35, %v3792_v40  ;;  %v8714_v61 = vadd.f32 %v4377_v18, %v3845_v44 }
 0x4de   :  { %v4326_v20 = vpop.f32.mrf.mxu0  ;;  %v4379_v7 = vpop.f32.mrf.mxu1 }
 0x4df   :  { %9161 = vst [vmem:[#allocation31_spill] sm:$0xff] %v8712_v45  ;;  %v8716_v28 = vadd.f32 %v4326_v20, %v3794_v21  ;;  %v8718_v13 = vadd.f32 %v4379_v7, %v3847_v25  ;;  %v6909_v20 = vld [vmem:[#allocation11 + $0x2] ss:$0 sm:$0xff] }
 0x4e0   :  { %v4328_v5 = vpop.f32.mrf.mxu0  ;;  %v4381_v62 = vpop.f32.mrf.mxu1 }
 0x4e1   :  { %9162 = vst [vmem:[#allocation32_spill] sm:$0xff] %v8716_v28  ;;  %v8721_v59 = vadd.f32 %v4328_v5, %v8632_v32  ;;  %v8724_v3 = vadd.f32 %v4381_v62, %v8634_v17 }
 0x4e3   :  { %9163 = vst [vmem:[#allocation33_spill] sm:$0xff] %v8721_v59  ;;  %v6910_v59 = vld [vmem:[#allocation13 + $0x2] ss:$0 sm:$0xff] }
 0x4f2   :  { %v7299_v49 = vpop.f32.mrf.mxu0 }
 0x4f3   :  { %v7319_v15 = vpop.f32.mrf.mxu1 }
 0x4f4   :  { %v4535_v40 = vpop.f32.mrf.mxu0  ;;  %v4641_v17 = vadd.f32 %v7319_v15, %v7299_v49  ;;  %v4839_v15 = vld [vmem:[#allocation14 + $0x558] sm:$0xff] }
 0x4f5   :  { %v4632_v60 = vpop.f32.mrf.mxu1 }
 0x4f6   :  { %v7300_v44 = vpop.f32.mrf.mxu0  ;;  %v4633_v21 = vadd.f32 %v4632_v60, %v4535_v40  ;;  %v4850_v40 = vld [vmem:[#allocation14 + $0x5b0] sm:$0xff]  ;;  %v4847_v60 = vld [vmem:[#allocation14 + $0x598] sm:$0xff] }
 0x4f7   :  { %v7320_v55 = vpop.f32.mrf.mxu1  ;;  %v6966_v49 = vcombine.high %v4847_v60, %v4851_v22 }
 0x4f8   :  { %v4538_v51 = vpop.f32.mrf.mxu0  ;;  %v4644_v37 = vadd.f32 %v7320_v55, %v7300_v44 }
 0x4f9   :  { %v4635_v35 = vpop.f32.mrf.mxu1 }
 0x4fa   :  { %v4636_v32 = vadd.f32 %v4635_v35, %v4538_v51  ;;  %v6964_v51 = vcombine.high %v4846_v31, %v4850_v40 }
 0x512   :  { %v7339_v53 = vpop.f32.mrf.mxu0 }
 0x513   :  { %v4764_v28 = vadd.f32 %v7339_v53, %v4641_v17  ;;  %v4843_v53 = vld [vmem:[#allocation14 + $0x578] sm:$0xff]  ;;  %v4826_v17 = vld [vmem:[#allocation14 + $0x4f0] sm:$0xff] }
 0x514   :  { %v4747_v25 = vpop.f32.mrf.mxu0 }
 0x515   :  { %v4762_v18 = vadd.f32 %v4747_v25, %v4633_v21  ;;  %v4776_v21 = vmul.f32 %v6909_v20, %v4764_v28  ;;  %v6958_v28 = vcombine.high %v4839_v15, %v4843_v53 }
 0x516   :  { %v7340_v7 = vpop.f32.mrf.mxu0 }
 0x517   :  { %v4774_v5 = vmul.f32 %v6909_v20, %v4762_v18  ;;  %v4765_v62 = vadd.f32 %v7340_v7, %v4644_v37  ;;  %v4838_v37 = vld [vmem:[#allocation14 + $0x550] sm:$0xff]  ;;  %v4788_v35 = vadd.f32 %v6910_v59, %v4776_v21  ;;  %v9166_v18 = vmov 0   ;;  %v4831_v7 = vld [vmem:[#allocation14 + $0x518] sm:$0xff] }
 0x518   :  { %v4750_v10 = vpop.f32.mrf.mxu0 }
 0x519   :  { %v4763_v12 = vadd.f32 %v4750_v10, %v4636_v32  ;;  %v4786_v45 = vadd.f32 %v6910_v59, %v4774_v5  ;;  %v4777_v33 = vmul.f32 %v6909_v20, %v4765_v62  ;;  %v4842_v10 = vld [vmem:[#allocation14 + $0x570] sm:$0xff]  ;;  %v4823_v62 = vld [vmem:[#allocation14 + $0x4d8] sm:$0xff] }
 0x51a   :  { %v4822_v5 = vld [vmem:[#allocation14 + $0x4d0] sm:$0xff] }
 0x51b   :  { %v4775_v58 = vmul.f32 %v6909_v20, %v4763_v12  ;;  %v4790_v25 = vmax.f32 %v4786_v45, 0.0  ;;  %v4789_v44 = vadd.f32 %v6910_v59, %v4777_v33  ;;  %v9164_v12 = vcombine.low %v8616_v19, %v8618_v1  ;;  %v4834_v20 = vld [vmem:[#allocation14 + $0x530] sm:$0xff]  ;;  %v4835_v19 = vld [vmem:[#allocation14 + $0x538] sm:$0xff] }
 0x51c   :  { %v6965_v33 = vcombine.low %v4847_v60, %v4851_v22  ;;  %v6956_v45 = vcombine.high %v4838_v37, %v4842_v10  ;;  %v4792_v1 = vmax.f32 %v4788_v35, 0.0  ;;  %v6950_v32 = vcombine.high %v4831_v7, %v4835_v19 }
 0x51d   :  { %v4787_v14 = vadd.f32 %v6910_v59, %v4775_v58  ;;  %v4793_v58 = vmax.f32 %v4789_v44, 0.0  ;;  %v4830_v59 = vld [vmem:[#allocation14 + $0x510] sm:$0xff]  ;;  %v6949_v21 = vcombine.low %v4831_v7, %v4835_v19 }
 0x51e   :  { %v6948_v22 = vcombine.high %v4830_v59, %v4834_v20  ;;  %v6947_v60 = vcombine.low %v4830_v59, %v4834_v20  ;;  %v4798_v7 = vld [vmem:[#allocation14 + $0x410] sm:$0xff] }
 0x51f   :  { %v4791_v54 = vmax.f32 %v4787_v14, 0.0  ;;  %v9165_v14 = vcombine.low %v8620_v9, %v8626_v38  ;;  %v6955_v9 = vcombine.low %v4838_v37, %v4842_v10  ;;  %v6957_v38 = vcombine.low %v4839_v15, %v4843_v53  ;;  %v4815_v37 = vld [vmem:[#allocation14 + $0x498] sm:$0xff]  ;;  %v4802_v19 = vld [vmem:[#allocation14 + $0x430] sm:$0xff] }
 0x520   :  { %v4819_v10 = vld [vmem:[#allocation14 + $0x4b8] sm:$0xff]  ;;  %v6939_v15 = vcombine.low %v4822_v5, %v4826_v17 }
 0x521   :  { %v8726_v55 = vpack.c.bf16 %v4791_v54, %v4790_v25  ;;  %v6963_v54 = vcombine.low %v4846_v31, %v4850_v40  ;;  %v8738_v31 = vpack.c.bf16 %v4793_v58, %v4792_v1  ;;  %v4827_v40 = vld [vmem:[#allocation14 + $0x4f8] sm:$0xff]  ;;  %v6940_v25 = vcombine.high %v4822_v5, %v4826_v17  ;;  %v5480_v17 = vld [vmem:[#allocation14 + $0x7c0] sm:$0xff] }
 0x522   :  { %v6942_v44 = vcombine.high %v4823_v62, %v4827_v40  ;;  %v6941_v53 = vcombine.low %v4823_v62, %v4827_v40  ;;  %v4811_v58 = vld [vmem:[#allocation14 + $0x478] sm:$0xff]  ;;  %v5484_v62 = vld [vmem:[#allocation14 + $0x7e0] sm:$0xff]  ;;  %v5481_v40 = vld [vmem:[#allocation14 + $0x7c8] sm:$0xff] }
 0x523   :  { %5213 = vmatmul.mubr.bf16.vlgmr.msra.gmra.mxu1 %v8726_v55  ;;  %5266 = vmatmul.mubr.bf16.vlgmr.msra.gmra.mxu0 %v8726_v55  ;;  %v4799_v1 = vld [vmem:[#allocation14 + $0x418] sm:$0xff] }
 0x524   :  { %5287 = vmatpush1.bf16.msra.mxu1 %v9164_v12  ;;  %5340 = vmatpush1.bf16.msra.mxu0 %v9165_v14  ;;  %v6934_v12 = vcombine.high %v4815_v37, %v4819_v10  ;;  %v4806_v14 = vld [vmem:[#allocation14 + $0x450] sm:$0xff] }
 0x525   :  { %5288 = vmatprep.subr.bf16.mxu1 %v6964_v51  ;;  %5341 = vmatprep.subr.bf16.mxu0 %v6966_v49  ;;  %v4814_v51 = vld [vmem:[#allocation14 + $0x490] sm:$0xff] }
 0x526   :  { %5222 = vmatprep.mubr.bf16.mxu1 %v9166_v18  ;;  %5275 = vmatprep.mubr.bf16.mxu0 %v9166_v18  ;;  %v4818_v49 = vld [vmem:[#allocation14 + $0x4b0] sm:$0xff] }
 0x527   :  { %v6932_v35 = vcombine.high %v4814_v51, %v4818_v49 }
 0x528   :  { %5289 = vmatpush1.bf16.msra.mxu1 %v6963_v54  ;;  %5342 = vmatpush1.bf16.msra.mxu0 %v6965_v33  ;;  %v4810_v54 = vld [vmem:[#allocation14 + $0x470] sm:$0xff]  ;;  %v4807_v33 = vld [vmem:[#allocation14 + $0x458] sm:$0xff] }
 0x529   :  { %5290 = vmatprep.subr.bf16.mxu1 %v6956_v45  ;;  %5343 = vmatprep.subr.bf16.mxu0 %v6958_v28  ;;  %v6931_v45 = vcombine.low %v4814_v51, %v4818_v49  ;;  %v6933_v28 = vcombine.low %v4815_v37, %v4819_v10  ;;  %v6924_v59 = vcombine.high %v4806_v14, %v4810_v54  ;;  %v5472_v49 = vld [vmem:[#allocation14 + $0x780] sm:$0xff]  ;;  %v5473_v10 = vld [vmem:[#allocation14 + $0x788] sm:$0xff] }
 0x52a   :  { %v6926_v20 = vcombine.high %v4807_v33, %v4811_v58  ;;  %v5476_v37 = vld [vmem:[#allocation14 + $0x7a0] sm:$0xff] }
 0x52b   :  { %5223 = vmatmul.mubr.bf16.gmra.mxu1 %v8738_v31  ;;  %5276 = vmatmul.mubr.bf16.gmra.mxu0 %v8738_v31 }
 0x52c   :  { %5291 = vmatpush1.bf16.msra.mxu1 %v6955_v9  ;;  %5344 = vmatpush1.bf16.msra.mxu0 %v6957_v38  ;;  %v4803_v9 = vld [vmem:[#allocation14 + $0x438] sm:$0xff]  ;;  %v6923_v38 = vcombine.low %v4806_v14, %v4810_v54  ;;  %v5464_v54 = vld [vmem:[#allocation14 + $0x740] sm:$0xff] }
 0x52d   :  { %5292 = vmatprep.subr.bf16.mxu1 %v6948_v22  ;;  %5345 = vmatprep.subr.bf16.mxu0 %v6950_v32  ;;  %v6925_v22 = vcombine.low %v4807_v33, %v4811_v58  ;;  %v6916_v32 = vcombine.high %v4798_v7, %v4802_v19  ;;  %v6918_v5 = vcombine.high %v4799_v1, %v4803_v9  ;;  %v5468_v33 = vld [vmem:[#allocation14 + $0x760] sm:$0xff]  ;;  %v5465_v58 = vld [vmem:[#allocation14 + $0x748] sm:$0xff] }
 0x52e   :  { %5318 = vmatprep.mubr.bf16.mxu1 %v9166_v18  ;;  %5371 = vmatprep.mubr.bf16.mxu0 %v9166_v18 }
 0x530   :  { %5293 = vmatpush1.bf16.msra.mxu1 %v6947_v60  ;;  %5346 = vmatpush1.bf16.msra.mxu0 %v6949_v21  ;;  %v5485_v60 = vld [vmem:[#allocation14 + $0x7e8] sm:$0xff]  ;;  %v6915_v21 = vcombine.low %v4798_v7, %v4802_v19  ;;  %v5456_v19 = vld [vmem:[#allocation14 + $0x700] sm:$0xff] }
 0x531   :  { %5294 = vmatprep.subr.bf16.mxu1 %v6940_v25  ;;  %5347 = vmatprep.subr.bf16.mxu0 %v6942_v44  ;;  %v6917_v25 = vcombine.low %v4799_v1, %v4803_v9  ;;  %v7032_v44 = vcombine.high %v5480_v17, %v5484_v62  ;;  %v7034_v51 = vcombine.high %v5481_v40, %v5485_v60  ;;  %v5460_v1 = vld [vmem:[#allocation14 + $0x720] sm:$0xff]  ;;  %v5457_v9 = vld [vmem:[#allocation14 + $0x708] sm:$0xff] }
 0x534   :  { %5295 = vmatpush1.bf16.msra.mxu1 %v6939_v15  ;;  %5348 = vmatpush1.bf16.msra.mxu0 %v6941_v53  ;;  %v5477_v15 = vld [vmem:[#allocation14 + $0x7a8] sm:$0xff]  ;;  %v7031_v53 = vcombine.low %v5480_v17, %v5484_v62  ;;  %v5448_v17 = vld [vmem:[#allocation14 + $0x6c0] sm:$0xff] }
 0x535   :  { %5296 = vmatprep.subr.bf16.mxu1 %v6932_v35  ;;  %5349 = vmatprep.subr.bf16.mxu0 %v6934_v12  ;;  %v7033_v35 = vcombine.low %v5481_v40, %v5485_v60  ;;  %v7024_v12 = vcombine.high %v5472_v49, %v5476_v37  ;;  %v7026_v14 = vcombine.high %v5473_v10, %v5477_v15  ;;  %v5452_v62 = vld [vmem:[#allocation14 + $0x6e0] sm:$0xff]  ;;  %v5449_v40 = vld [vmem:[#allocation14 + $0x6c8] sm:$0xff] }
 0x536   :  { %v5453_v60 = vld [vmem:[#allocation14 + $0x6e8] sm:$0xff] }
 0x538   :  { %5297 = vmatpush1.bf16.msra.mxu1 %v6931_v45  ;;  %5350 = vmatpush1.bf16.msra.mxu0 %v6933_v28  ;;  %v5469_v45 = vld [vmem:[#allocation14 + $0x768] sm:$0xff]  ;;  %v7023_v28 = vcombine.low %v5472_v49, %v5476_v37  ;;  %v5440_v49 = vld [vmem:[#allocation14 + $0x680] sm:$0xff] }
 0x539   :  { %5298 = vmatprep.subr.bf16.mxu1 %v6924_v59  ;;  %5351 = vmatprep.subr.bf16.mxu0 %v6926_v20  ;;  %v7025_v59 = vcombine.low %v5473_v10, %v5477_v15  ;;  %v7016_v20 = vcombine.high %v5464_v54, %v5468_v33  ;;  %v7018_v7 = vcombine.high %v5465_v58, %v5469_v45  ;;  %v5444_v37 = vld [vmem:[#allocation14 + $0x6a0] sm:$0xff]  ;;  %v5441_v10 = vld [vmem:[#allocation14 + $0x688] sm:$0xff] }
 0x53a   :  { %v5445_v15 = vld [vmem:[#allocation14 + $0x6a8] sm:$0xff] }
 0x53c   :  { %5299 = vmatpush1.bf16.msra.mxu1 %v6923_v38  ;;  %5352 = vmatpush1.bf16.msra.mxu0 %v6925_v22  ;;  %v5461_v38 = vld [vmem:[#allocation14 + $0x728] sm:$0xff]  ;;  %v7015_v22 = vcombine.low %v5464_v54, %v5468_v33  ;;  %v5436_v54 = vld [vmem:[#allocation14 + $0x660] sm:$0xff] }
 0x53d   :  { %5300 = vmatprep.subr.bf16.mxu1 %v6916_v32  ;;  %5353 = vmatprep.subr.bf16.mxu0 %v6918_v5  ;;  %v7008_v32 = vcombine.high %v5456_v19, %v5460_v1  ;;  %v7010_v5 = vcombine.high %v5457_v9, %v5461_v38  ;;  %v5433_v33 = vld [vmem:[#allocation14 + $0x648] sm:$0xff] }
 0x540   :  { %5301 = vmatpush1.bf16.msra.mxu1 %v6915_v21  ;;  %5354 = vmatpush1.bf16.msra.mxu0 %v6917_v25  ;;  %v7007_v21 = vcombine.low %v5456_v19, %v5460_v1  ;;  %v7009_v25 = vcombine.low %v5457_v9, %v5461_v38  ;;  %v5428_v19 = vld [vmem:[#allocation14 + $0x620] sm:$0xff]  ;;  %v5425_v1 = vld [vmem:[#allocation14 + $0x608] sm:$0xff] }
 0x541   :  { %5808 = vmatprep.subr.bf16.mxu1 %v7032_v44  ;;  %5861 = vmatprep.subr.bf16.mxu0 %v7034_v51  ;;  %v7000_v44 = vcombine.high %v5448_v17, %v5452_v62  ;;  %v7002_v51 = vcombine.high %v5449_v40, %v5453_v60  ;;  %v5429_v9 = vld [vmem:[#allocation14 + $0x628] sm:$0xff] }
 0x543   :  { %5319 = vmatmul.mubr.bf16.vlgmr.msra.gmra.mxu1 %v8726_v55  ;;  %5372 = vmatmul.mubr.bf16.vlgmr.msra.gmra.mxu0 %v8726_v55  ;;  %v7017_v55 = vcombine.low %v5465_v58, %v5469_v45  ;;  %v5437_v58 = vld [vmem:[#allocation14 + $0x668] sm:$0xff]  ;;  %v6991_v45 = vcombine.low %v5440_v49, %v5444_v37 }
 0x544   :  { %5809 = vmatpush1.bf16.msra.mxu1 %v7031_v53  ;;  %5862 = vmatpush1.bf16.msra.mxu0 %v7033_v35  ;;  %v6999_v53 = vcombine.low %v5448_v17, %v5452_v62  ;;  %v6992_v35 = vcombine.high %v5440_v49, %v5444_v37  ;;  %v5486_v17 = vld [vmem:[#allocation14 + $0x7f0] sm:$0xff]  ;;  %v5483_v62 = vld [vmem:[#allocation14 + $0x7d8] sm:$0xff] }
 0x545   :  { %5810 = vmatprep.subr.bf16.mxu1 %v7024_v12  ;;  %5863 = vmatprep.subr.bf16.mxu0 %v7026_v14  ;;  %v6994_v12 = vcombine.high %v5441_v10, %v5445_v15  ;;  %v5432_v14 = vld [vmem:[#allocation14 + $0x640] sm:$0xff]  ;;  %v5478_v49 = vld [vmem:[#allocation14 + $0x7b0] sm:$0xff]  ;;  %v5475_v37 = vld [vmem:[#allocation14 + $0x798] sm:$0xff] }
 0x546   :  { %5328 = vmatprep.mubr.bf16.mxu1 %v9166_v18  ;;  %5381 = vmatprep.mubr.bf16.mxu0 %v9166_v18  ;;  %v6983_v38 = vcombine.low %v5432_v14, %v5436_v54 }
 0x548   :  { %5811 = vmatpush1.bf16.msra.mxu1 %v7023_v28  ;;  %5864 = vmatpush1.bf16.msra.mxu0 %v7025_v59  ;;  %v6993_v28 = vcombine.low %v5441_v10, %v5445_v15  ;;  %v6984_v59 = vcombine.high %v5432_v14, %v5436_v54  ;;  %v5479_v10 = vld [vmem:[#allocation14 + $0x7b8] sm:$0xff]  ;;  %v5470_v14 = vld [vmem:[#allocation14 + $0x770] sm:$0xff] }
 0x549   :  { %5812 = vmatprep.subr.bf16.mxu1 %v7016_v20  ;;  %5865 = vmatprep.subr.bf16.mxu0 %v7018_v7  ;;  %v6986_v20 = vcombine.high %v5433_v33, %v5437_v58  ;;  %v5424_v7 = vld [vmem:[#allocation14 + $0x600] sm:$0xff]  ;;  %v5467_v54 = vld [vmem:[#allocation14 + $0x758] sm:$0xff] }
 0x54b   :  { %5329 = vmatmul.mubr.bf16.gmra.mxu1 %v8738_v31  ;;  %5382 = vmatmul.mubr.bf16.gmra.mxu0 %v8738_v31  ;;  %v7001_v31 = vcombine.low %v5449_v40, %v5453_v60  ;;  %v5487_v40 = vld [vmem:[#allocation14 + $0x7f8] sm:$0xff]  ;;  %v6975_v60 = vcombine.low %v5424_v7, %v5428_v19 }
 0x54c   :  { %5813 = vmatpush1.bf16.msra.mxu1 %v7015_v22  ;;  %5866 = vmatpush1.bf16.msra.mxu0 %v7017_v55  ;;  %v6985_v22 = vcombine.low %v5433_v33, %v5437_v58  ;;  %v6976_v55 = vcombine.high %v5424_v7, %v5428_v19  ;;  %v5471_v33 = vld [vmem:[#allocation14 + $0x778] sm:$0xff]  ;;  %v5462_v7 = vld [vmem:[#allocation14 + $0x730] sm:$0xff] }
 0x54d   :  { %5814 = vmatprep.subr.bf16.mxu1 %v7008_v32  ;;  %5867 = vmatprep.subr.bf16.mxu0 %v7010_v5  ;;  %v6978_v32 = vcombine.high %v5425_v1, %v5429_v9  ;;  %v5482_v5 = vld [vmem:[#allocation14 + $0x7d0] sm:$0xff]  ;;  %v5459_v19 = vld [vmem:[#allocation14 + $0x718] sm:$0xff] }
 0x54e   :  { %5840 = vmatprep.mubr.bf16.mxu1 %v9166_v18  ;;  %5893 = vmatprep.mubr.bf16.mxu0 %v9166_v18  ;;  %v7035_v15 = vcombine.low %v5482_v5, %v5486_v17 }
 0x550   :  { %5815 = vmatpush1.bf16.msra.mxu1 %v7007_v21  ;;  %5868 = vmatpush1.bf16.msra.mxu0 %v7009_v25  ;;  %v6977_v21 = vcombine.low %v5425_v1, %v5429_v9  ;;  %v7036_v25 = vcombine.high %v5482_v5, %v5486_v17  ;;  %v5463_v1 = vld [vmem:[#allocation14 + $0x738] sm:$0xff]  ;;  %v5454_v5 = vld [vmem:[#allocation14 + $0x6f0] sm:$0xff] }
 0x551   :  { %5816 = vmatprep.subr.bf16.mxu1 %v7000_v44  ;;  %5869 = vmatprep.subr.bf16.mxu0 %v7002_v51  ;;  %v8752_v44 = vcombine.high %v5483_v62, %v5487_v40  ;;  %v5474_v51 = vld [vmem:[#allocation14 + $0x790] sm:$0xff]  ;;  %v5451_v17 = vld [vmem:[#allocation14 + $0x6d8] sm:$0xff] }
 0x552   :  { %v7027_v58 = vcombine.low %v5474_v51, %v5478_v49 }
 0x554   :  { %5817 = vmatpush1.bf16.msra.mxu1 %v6999_v53  ;;  %5870 = vmatpush1.bf16.msra.mxu0 %v7001_v31  ;;  %v8754_v53 = vcombine.low %v5483_v62, %v5487_v40  ;;  %v7028_v31 = vcombine.high %v5474_v51, %v5478_v49  ;;  %v5455_v62 = vld [vmem:[#allocation14 + $0x6f8] sm:$0xff]  ;;  %v5442_v51 = vld [vmem:[#allocation14 + $0x690] sm:$0xff] }
 0x555   :  { %5818 = vmatprep.subr.bf16.mxu1 %v6992_v35  ;;  %5871 = vmatprep.subr.bf16.mxu0 %v6994_v12  ;;  %v8757_v35 = vcombine.high %v5475_v37, %v5479_v10  ;;  %v5466_v12 = vld [vmem:[#allocation14 + $0x750] sm:$0xff] }
 0x556   :  { %v7019_v9 = vcombine.low %v5466_v12, %v5470_v14  ;;  %v5446_v49 = vld [vmem:[#allocation14 + $0x6b0] sm:$0xff] }
 0x558   :  { %5819 = vmatpush1.bf16.msra.mxu1 %v6991_v45  ;;  %5872 = vmatpush1.bf16.msra.mxu0 %v6993_v28  ;;  %v8762_v45 = vcombine.low %v5475_v37, %v5479_v10  ;;  %v7020_v28 = vcombine.high %v5466_v12, %v5470_v14  ;;  %v5443_v37 = vld [vmem:[#allocation14 + $0x698] sm:$0xff]  ;;  %v6996_v12 = vcombine.high %v5442_v51, %v5446_v49 }
 0x559   :  { %5820 = vmatprep.subr.bf16.mxu1 %v6984_v59  ;;  %5873 = vmatprep.subr.bf16.mxu0 %v6986_v20  ;;  %v8765_v59 = vcombine.high %v5467_v54, %v5471_v33  ;;  %v5458_v20 = vld [vmem:[#allocation14 + $0x710] sm:$0xff]  ;;  %v5447_v10 = vld [vmem:[#allocation14 + $0x6b8] sm:$0xff] }
 0x55a   :  { %v7011_v40 = vcombine.low %v5458_v20, %v5462_v7  ;;  %v6998_v14 = vcombine.high %v5443_v37, %v5447_v10 }
 0x55c   :  { %5821 = vmatpush1.bf16.msra.mxu1 %v6983_v38  ;;  %5874 = vmatpush1.bf16.msra.mxu0 %v6985_v22  ;;  %v8770_v38 = vcombine.low %v5467_v54, %v5471_v33  ;;  %v7012_v22 = vcombine.high %v5458_v20, %v5462_v7  ;;  %v5434_v54 = vld [vmem:[#allocation14 + $0x650] sm:$0xff]  ;;  %v6995_v20 = vcombine.low %v5442_v51, %v5446_v49 }
 0x55d   :  { %5822 = vmatprep.subr.bf16.mxu1 %v6976_v55  ;;  %5875 = vmatprep.subr.bf16.mxu0 %v6978_v32  ;;  %v8773_v55 = vcombine.high %v5459_v19, %v5463_v1  ;;  %v5450_v32 = vld [vmem:[#allocation14 + $0x6d0] sm:$0xff]  ;;  %v6997_v7 = vcombine.low %v5443_v37, %v5447_v10 }
 0x55e   :  { %v5438_v33 = vld [vmem:[#allocation14 + $0x670] sm:$0xff] }
 0x560   :  { %5823 = vmatpush1.bf16.msra.mxu1 %v6975_v60  ;;  %5876 = vmatpush1.bf16.msra.mxu0 %v6977_v21  ;;  %v7013_v60 = vcombine.low %v5459_v19, %v5463_v1  ;;  %v7004_v21 = vcombine.high %v5450_v32, %v5454_v5  ;;  %v6988_v19 = vcombine.high %v5434_v54, %v5438_v33 }
 0x561   :  { %5914 = vmatprep.subr.bf16.mxu1 %v7036_v25  ;;  %5967 = vmatprep.subr.bf16.mxu0 %v8752_v44  ;;  %v7006_v25 = vcombine.high %v5451_v17, %v5455_v62 }
 0x563   :  { %5841 = vmatmul.mubr.bf16.vlgmr.msra.gmra.mxu1 %v8353_v46  ;;  %5894 = vmatmul.mubr.bf16.vlgmr.msra.gmra.mxu0 %v8353_v46 }
 0x564   :  { %5915 = vmatpush1.bf16.msra.mxu1 %v7035_v15  ;;  %5968 = vmatpush1.bf16.msra.mxu0 %v8754_v53  ;;  %v7003_v15 = vcombine.low %v5450_v32, %v5454_v5  ;;  %v5427_v32 = vld [vmem:[#allocation14 + $0x618] sm:$0xff] }
 0x565   :  { %5916 = vmatprep.subr.bf16.mxu1 %v7028_v31  ;;  %5969 = vmatprep.subr.bf16.mxu0 %v8757_v35  ;;  %v7005_v31 = vcombine.low %v5451_v17, %v5455_v62  ;;  %v5431_v5 = vld [vmem:[#allocation14 + $0x638] sm:$0xff]  ;;  %v6987_v17 = vcombine.low %v5434_v54, %v5438_v33 }
 0x566   :  { %5850 = vmatprep.mubr.bf16.mxu1 %v9166_v18  ;;  %5903 = vmatprep.mubr.bf16.mxu0 %v9166_v18  ;;  %v6981_v49 = vcombine.low %v5427_v32, %v5431_v5 }
 0x568   :  { %5917 = vmatpush1.bf16.msra.mxu1 %v7027_v58  ;;  %5970 = vmatpush1.bf16.msra.mxu0 %v8762_v45  ;;  %v5435_v58 = vld [vmem:[#allocation14 + $0x658] sm:$0xff] }
 0x569   :  { %5918 = vmatprep.subr.bf16.mxu1 %v7020_v28  ;;  %5971 = vmatprep.subr.bf16.mxu0 %v8765_v59  ;;  %v5439_v28 = vld [vmem:[#allocation14 + $0x678] sm:$0xff] }
 0x56a   :  { %v6990_v1 = vcombine.high %v5435_v58, %v5439_v28  ;;  %v6989_v62 = vcombine.low %v5435_v58, %v5439_v28 }
 0x56b   :  { %5851 = vmatmul.mubr.bf16.gmra.mxu1 %v8362_v34  ;;  %5904 = vmatmul.mubr.bf16.gmra.mxu0 %v8362_v34 }
 0x56c   :  { %5919 = vmatpush1.bf16.msra.mxu1 %v7019_v9  ;;  %5972 = vmatpush1.bf16.msra.mxu0 %v8770_v38  ;;  %v5426_v9 = vld [vmem:[#allocation14 + $0x610] sm:$0xff] }
 0x56d   :  { %5920 = vmatprep.subr.bf16.mxu1 %v7012_v22  ;;  %5973 = vmatprep.subr.bf16.mxu0 %v8773_v55  ;;  %v5430_v22 = vld [vmem:[#allocation14 + $0x630] sm:$0xff] }
 0x56e   :  { %5946 = vmatprep.mubr.bf16.mxu1 %v9166_v18  ;;  %5999 = vmatprep.mubr.bf16.mxu0 %v9166_v18  ;;  %v6979_v51 = vcombine.low %v5426_v9, %v5430_v22 }
 0x570   :  { %5921 = vmatpush1.bf16.msra.mxu1 %v7011_v40  ;;  %5974 = vmatpush1.bf16.msra.mxu0 %v7013_v60  ;;  %v6980_v40 = vcombine.high %v5426_v9, %v5430_v22 }
 0x571   :  { %5922 = vmatprep.subr.bf16.mxu1 %v7004_v21  ;;  %5975 = vmatprep.subr.bf16.mxu0 %v7006_v25  ;;  %v6982_v21 = vcombine.high %v5427_v32, %v5431_v5 }
 0x574   :  { %5923 = vmatpush1.bf16.msra.mxu1 %v7003_v15  ;;  %5976 = vmatpush1.bf16.msra.mxu0 %v7005_v31 }
 0x575   :  { %5924 = vmatprep.subr.bf16.mxu1 %v6996_v12  ;;  %5977 = vmatprep.subr.bf16.mxu0 %v6998_v14 }
 0x578   :  { %5925 = vmatpush1.bf16.msra.mxu1 %v6995_v20  ;;  %5978 = vmatpush1.bf16.msra.mxu0 %v6997_v7 }
 0x579   :  { %5926 = vmatprep.subr.bf16.mxu1 %v6988_v19  ;;  %5979 = vmatprep.subr.bf16.mxu0 %v6990_v1 }
 0x57c   :  { %5927 = vmatpush1.bf16.msra.mxu1 %v6987_v17  ;;  %5980 = vmatpush1.bf16.msra.mxu0 %v6989_v62 }
 0x57d   :  { %5928 = vmatprep.subr.bf16.mxu1 %v6980_v40  ;;  %5981 = vmatprep.subr.bf16.mxu0 %v6982_v21 }
 0x580   :  { %5929 = vmatpush1.bf16.msra.mxu1 %v6979_v51  ;;  %5982 = vmatpush1.bf16.msra.mxu0 %v6981_v49 }
 0x581   :  { %7341 = vmatprep.subr.bf16.mxu1 %v8752_v44 }
 0x583   :  { %5947 = vmatmul.mubr.bf16.vlgmr.msra.gmra.mxu1 %v8353_v46  ;;  %6000 = vmatmul.mubr.bf16.vlgmr.msra.gmra.mxu0 %v8353_v46 }
 0x584   :  { %7349 = vmatpush1.bf16.msra.mxu1 %v8754_v53  ;;  %5956 = vmatprep.mubr.bf16.mxu1 %v9166_v18 }
 0x585   :  { %7342 = vmatprep.subr.bf16.mxu1 %v8757_v35 }
 0x588   :  { %7350 = vmatpush1.bf16.msra.mxu1 %v8762_v45 }
 0x589   :  { %7343 = vmatprep.subr.bf16.mxu1 %v8765_v59 }
 0x58b   :  { %5957 = vmatmul.mubr.bf16.gmra.mxu1 %v8362_v34 }
 0x58c   :  { %7351 = vmatpush1.bf16.msra.mxu1 %v8770_v38  ;;  %6009 = vmatprep.mubr.bf16.mxu1 %v9166_v18 }
 0x58d   :  { %7344 = vmatprep.subr.bf16.mxu1 %v8773_v55 }
 0x590   :  { %7352 = vmatpush1.bf16.msra.mxu1 %v7013_v60 }
 0x591   :  { %7345 = vmatprep.subr.bf16.mxu1 %v7006_v25 }
 0x594   :  { %7353 = vmatpush1.bf16.msra.mxu1 %v7005_v31 }
 0x595   :  { %7346 = vmatprep.subr.bf16.mxu1 %v6998_v14 }
 0x598   :  { %7354 = vmatpush1.bf16.msra.mxu1 %v6997_v7 }
 0x599   :  { %7347 = vmatprep.subr.bf16.mxu1 %v6990_v1 }
 0x59c   :  { %7355 = vmatpush1.bf16.msra.mxu1 %v6989_v62 }
 0x59d   :  { %7348 = vmatprep.subr.bf16.mxu1 %v6982_v21  ;;  %v8857_v21 = vld [vmem:[%s9148_s8] sm:$0xff]  ;;  %s8056_s8 = smov [#allocation16]  }
 0x5a0   :  { %7356 = vmatpush1.bf16.msra.mxu1 %v6981_v49  ;;  %v8876_v49 = vrot.slane %v8857_v21, %v8315_v36 }
 0x5a3   :  { %6010 = vmatmul.mubr.bf16.vlgmr.msra.gmra.mxu1 %v8362_v34 }
 0x5e3   :  { %v5267_v46 = vpop.f32.mrf.mxu0  ;;  %v5214_v44 = vpop.f32.mrf.mxu1 }
 0x5e5   :  { %v8794_v53 = vpop.f32.mrf.mxu0  ;;  %v8796_v35 = vpop.f32.mrf.mxu1 }
 0x5e7   :  { %v8798_v18 = vpop.f32.mrf.mxu0  ;;  %v8800_v45 = vpop.f32.mrf.mxu1 }
 0x5e9   :  { %v8802_v59 = vpop.f32.mrf.mxu0  ;;  %v8804_v38 = vpop.f32.mrf.mxu1 }
 0x5eb   :  { %v8806_v55 = vpop.f32.mrf.mxu0  ;;  %v8808_v60 = vpop.f32.mrf.mxu1 }
 0x5ed   :  { %v8810_v25 = vpop.f32.mrf.mxu0  ;;  %v8812_v34 = vpop.f32.mrf.mxu1 }
 0x5ef   :  { %v8814_v37 = vpop.f32.mrf.mxu0  ;;  %v8816_v10 = vpop.f32.mrf.mxu1 }
 0x5f1   :  { %v8818_v15 = vpop.f32.mrf.mxu0  ;;  %v8820_v31 = vpop.f32.mrf.mxu1 }
 0x603   :  { %v8822_v12 = vpop.f32.mrf.mxu0  ;;  %v8824_v14 = vpop.f32.mrf.mxu1 }
 0x604   :  { %9167 = vst [vmem:[#allocation34_spill] sm:$0xff] %v8822_v12  ;;  %9168 = vst [vmem:[#allocation35_spill] sm:$0xff] %v8824_v14  ;;  %v8926_v12 = vld [vmem:[#allocation2 + $0x60] sm:$0xff] }
 0x605   :  { %v8826_v54 = vpop.f32.mrf.mxu0  ;;  %v8830_v58 = vpop.f32.mrf.mxu1 }
 0x606   :  { %9169 = vst [vmem:[#allocation36_spill] sm:$0xff] %v8826_v54  ;;  %9171 = vst [vmem:[#allocation38_spill] sm:$0xff] %v8830_v58  ;;  %v8918_v54 = vld [vmem:[#allocation2 + $0x40] sm:$0xff] }
 0x607   :  { %v8828_v33 = vpop.f32.mrf.mxu0  ;;  %v8837_v19 = vpop.f32.mrf.mxu1 }
 0x608   :  { %9170 = vst [vmem:[#allocation37_spill] sm:$0xff] %v8828_v33  ;;  %9174 = vst [vmem:[#allocation41_spill] sm:$0xff] %v8837_v19  ;;  %v5392_v19 = vadd.f32 %v5214_v44, %v8637_v41  ;;  %v8929_v44 = vld [vmem:[#allocation2 + $0x68] sm:$0xff]  ;;  %v5400_v33 = vadd.f32 %v8800_v45, %v8649_v4  ;;  %v5401_v41 = vadd.f32 %v8804_v38, %v8655_v48 }
 0x609   :  { %v8832_v28 = vpop.f32.mrf.mxu0  ;;  %v8845_v5 = vpop.f32.mrf.mxu1  ;;  %v5408_v4 = vadd.f32 %v8808_v60, %v8661_v0  ;;  %v5409_v48 = vadd.f32 %v8812_v34, %v8667_v57  ;;  %v5416_v0 = vadd.f32 %v8816_v10, %v8673_v8 }
 0x60a   :  { %9172 = vst [vmem:[#allocation39_spill] sm:$0xff] %v8832_v28  ;;  %9177 = vst [vmem:[#allocation44_spill] sm:$0xff] %v8845_v5  ;;  %v8911_v5 = vld [vmem:[#allocation2 + $0x28] sm:$0xff]  ;;  %v5395_v28 = vadd.f32 %v8794_v53, %v8646_v56 }
 0x60b   :  { %v5383_v20 = vpop.f32.mrf.mxu0  ;;  %v8850_v40 = vpop.f32.mrf.mxu1 }
 0x60c   :  { %v8835_v7 = vadd.f32 %v5383_v20, %v8710_v30  ;;  %9179 = vst [vmem:[#allocation46_spill] sm:$0xff] %v8850_v40  ;;  %v8908_v40 = vld [vmem:[#allocation2 + $0x20] sm:$0xff] }
 0x60d   :  { %v5385_v1 = vpop.f32.mrf.mxu0  ;;  %v8852_v30 = vpop.f32.mrf.mxu1 }
 0x60e   :  { %9173 = vst [vmem:[#allocation40_spill] sm:$0xff] %v8835_v7  ;;  %v8840_v9 = vadd.f32 %v5385_v1, %v8714_v61  ;;  %9180 = vst [vmem:[#allocation47_spill] sm:$0xff] %v8852_v30  ;;  %v8862_v61 = vld [vmem:[%s9149_s9] sm:$0xff]  ;;  %s6413_s9 = sshll.u32 %s8056_s8, 4  ;;  %s6414_s9 = int_to_ptr.vmem [resolvable:$true] %s6413_s9 }
 0x60f   :  { %v5387_v22 = vpop.f32.mrf.mxu0  ;;  %v8872_v51 = vrot.slane %v8862_v61, %v8245_v24  ;;  %v8880_v20 = vrot.slane %v8862_v61, %v8315_v36  ;;  %v8882_v1 = vld [vmem:[#allocation2] sm:$0xff]  ;;  %v8898_v36 = vrot.slane %v8862_v61, %v8252_v27  ;;  %v8903_v7 = vrot.slane %v8862_v61, %v8318_v42  ;;  %s8007_s18 = scalar_lea.vmem %s6414_s9, 2048  ;;  %p8012_p13 = scmp.lt.s32.totalorder %s6414_s9, %s6414_s9 }
 0x610   :  { %9175 = vst [vmem:[#allocation42_spill] sm:$0xff] %v8840_v9  ;;  %v8843_v32 = vadd.f32 %v5387_v22, %v8718_v13  ;;  %v8864_v13 = vpop.f32.mrf.mxu1  ;;  %v6200_v22 = vunpack.c.l.bf16 %v8882_v1  ;;  %p8008_p12 = scmp.ne.s32.totalorder %s6414_s9, %s8007_s18  ;;  %p8013_p0 = scmp.lt.s32.totalorder %s8007_s18, %s8007_s18 }
 0x611   :  { %v5389_v17 = vpop.f32.mrf.mxu0  ;;  %9181 = vst [vmem:[#allocation48_spill] sm:$0xff] %v8864_v13 }
 0x612   :  { %9176 = vst [vmem:[#allocation43_spill] sm:$0xff] %v8843_v32  ;;  %v8848_v62 = vadd.f32 %v5389_v17, %v8724_v3  ;;  %v8868_v3 = vrot.slane %v8857_v21, %v8245_v24  ;;  %v8885_v17 = vld [vmem:[#allocation2 + $0x8] sm:$0xff]  ;;  %v8890_v24 = vrot.slane %v8857_v21, %v8252_v27  ;;  %v8894_v32 = vrot.slane %v8857_v21, %v8318_v42  ;;  %v8906_v30 = vpop.f32.mrf.mxu1  ;;  %p8014_p1 = por %p8013_p0, %p8012_p13 }
 0x613   :  { %9182 = vst [vmem:[#allocation49_spill] sm:$0xff] %v8906_v30  ;;  %v5394_v42 = vadd.f32 %v5267_v46, %v8640_v39  ;;  %v8921_v30 = vld [vmem:[#allocation2 + $0x48] sm:$0xff]  ;;  %v5393_v46 = vadd.f32 %v8796_v35, %v8643_v29  ;;  %v5402_v27 = vadd.f32 %v8798_v18, %v8652_v6  ;;  %v5403_v39 = vadd.f32 %v8802_v59, %v8658_v43 }
 0x614   :  { %9178 = vst [vmem:[#allocation45_spill] sm:$0xff] %v8848_v62  ;;  %v6202_v62 = vunpack.c.l.bf16 %v8885_v17  ;;  %v5410_v6 = vadd.f32 %v8806_v55, %v8664_v11  ;;  %v5411_v43 = vadd.f32 %v8810_v25, %v8670_v47  ;;  %v5418_v11 = vadd.f32 %v8814_v37, %v8676_v26  ;;  %p8015_p2 = pnand %p8014_p1, %p8008_p12 }
 0x615   :  { %v9183_v37 = vunpack.c.h.bf16 %v8882_v1  ;;  %v9185_v1 = vunpack.c.l.bf16 %v8908_v40 }
 0x623   :  { %v5842_v58 = vpop.f32.mrf.mxu1  ;;  %v5895_v50 = vpop.f32.mrf.mxu0 }
 0x624   :  { %v6020_v13 = vadd.f32 %v5842_v58, %v5392_v19  ;;  %v6022_v9 = vadd.f32 %v5895_v50, %v5394_v42 }
 0x625   :  { %v5844_v2 = vpop.f32.mrf.mxu1  ;;  %v5897_v14 = vpop.f32.mrf.mxu0 }
 0x626   :  { %v6094_v29 = vmul.f32 %v8868_v3, %v6020_v13  ;;  %v6096_v56 = vmul.f32 %v8876_v49, %v6022_v9  ;;  %v6021_v53 = vadd.f32 %v5844_v2, %v5393_v46  ;;  %v6023_v50 = vadd.f32 %v5897_v14, %v5395_v28 }
 0x627   :  { %v5846_v35 = vpop.f32.mrf.mxu1  ;;  %v5899_v18 = vpop.f32.mrf.mxu0 }
 0x628   :  { %v6168_v45 = vadd.f32 %v8872_v51, %v6094_v29  ;;  %v6170_v59 = vadd.f32 %v8880_v20, %v6096_v56  ;;  %v6095_v2 = vmul.f32 %v8890_v24, %v6021_v53  ;;  %v6097_v38 = vmul.f32 %v8894_v32, %v6023_v50 }
 0x629   :  { %v6028_v57 = vadd.f32 %v5846_v35, %v5400_v33  ;;  %v6030_v55 = vadd.f32 %v5899_v18, %v5402_v27  ;;  %v5848_v60 = vpop.f32.mrf.mxu1  ;;  %v5901_v47 = vpop.f32.mrf.mxu0 }
 0x62a   :  { %v6232_v25 = vadd.f32 %v6200_v22, %v6168_v45  ;;  %v6234_v34 = vadd.f32 %v6202_v62, %v6170_v59  ;;  %v6169_v14 = vadd.f32 %v8898_v36, %v6095_v2  ;;  %v6171_v58 = vadd.f32 %v8903_v7, %v6097_v38 }
 0x62b   :  { %v6102_v28 = vmul.f32 %v8868_v3, %v6028_v57  ;;  %v6104_v19 = vmul.f32 %v8876_v49, %v6030_v55  ;;  %v6029_v9 = vadd.f32 %v5848_v60, %v5401_v41  ;;  %v6031_v13 = vadd.f32 %v5901_v47, %v5403_v39  ;;  %v5852_v8 = vpop.f32.mrf.mxu1  ;;  %v5905_v10 = vpop.f32.mrf.mxu0 }
 0x62c   :  { %v6264_v42 = vmax.f32 %v6232_v25, 0.0  ;;  %v6266_v26 = vmax.f32 %v6234_v34, 0.0  ;;  %v6233_v33 = vadd.f32 %v9183_v37, %v6169_v14  ;;  %v9184_v22 = vunpack.c.h.bf16 %v8885_v17 }
 0x62d   :  { %v6176_v27 = vadd.f32 %v8872_v51, %v6102_v28  ;;  %v6178_v46 = vadd.f32 %v8880_v20, %v6104_v19  ;;  %v6103_v29 = vmul.f32 %v8890_v24, %v6029_v9  ;;  %v6105_v56 = vmul.f32 %v8894_v32, %v6031_v13  ;;  %v5854_v41 = vpop.f32.mrf.mxu1  ;;  %v5907_v39 = vpop.f32.mrf.mxu0 }
 0x62e   :  { %v6235_v62 = vadd.f32 %v9184_v22, %v6171_v58  ;;  %v6265_v53 = vmax.f32 %v6233_v33, 0.0  ;;  %v6036_v35 = vadd.f32 %v5852_v8, %v5408_v4  ;;  %v6038_v18 = vadd.f32 %v5905_v10, %v5410_v6 }
 0x62f   :  { %v6240_v45 = vadd.f32 %v9185_v1, %v6176_v27  ;;  %v9186_v17 = vunpack.c.l.bf16 %v8911_v5  ;;  %v6177_v2 = vadd.f32 %v8898_v36, %v6103_v29  ;;  %v6179_v38 = vadd.f32 %v8903_v7, %v6105_v56  ;;  %v5856_v25 = vpop.f32.mrf.mxu1  ;;  %v5909_v34 = vpop.f32.mrf.mxu0 }
 0x630   :  { %v6267_v50 = vmax.f32 %v6235_v62, 0.0  ;;  %v7055_v57 = vpack.c.bf16 %v6265_v53, %v6264_v42  ;;  %v6110_v60 = vmul.f32 %v8868_v3, %v6036_v35  ;;  %v6112_v47 = vmul.f32 %v8876_v49, %v6038_v18 }
 0x631   :  { %v6242_v59 = vadd.f32 %v9186_v17, %v6178_v46  ;;  %v6272_v4 = vmax.f32 %v6240_v45, 0.0  ;;  %v9187_v14 = vunpack.c.h.bf16 %v8908_v40  ;;  %v9188_v28 = vunpack.c.h.bf16 %v8911_v5  ;;  %v5858_v27 = vpop.f32.mrf.mxu1  ;;  %v5911_v46 = vpop.f32.mrf.mxu0 }
 0x632   :  { %v7056_v55 = vpack.c.bf16 %v6267_v50, %v6266_v26  ;;  %6392 = vst [vmem:[#allocation16] sm:$0xff] %v7055_v57  ;;  %v6184_v9 = vadd.f32 %v8872_v51, %v6110_v60  ;;  %v6186_v13 = vadd.f32 %v8880_v20, %v6112_v47  ;;  %v6037_v8 = vadd.f32 %v5854_v41, %v5409_v48 }
 0x633   :  { %v6274_v6 = vmax.f32 %v6242_v59, 0.0  ;;  %v6241_v58 = vadd.f32 %v9187_v14, %v6177_v2  ;;  %v6243_v19 = vadd.f32 %v9188_v28, %v6179_v38  ;;  %v6039_v10 = vadd.f32 %v5907_v39, %v5411_v43  ;;  %v9028_v28 = vld [vmem:[#allocation2 + $0x10] sm:$0xff] }
 0x634   :  { %6393 = vst [vmem:[#allocation16 + $0x8] sm:$0xff] %v7056_v55  ;;  %v6044_v37 = vadd.f32 %v5856_v25, %v5416_v0  ;;  %v6046_v33 = vadd.f32 %v5909_v34, %v5418_v11  ;;  %v5417_v22 = vadd.f32 %v8820_v31, %v8679_v63  ;;  %v5419_v40 = vadd.f32 %v8818_v15, %v8682_v52 }
 0x635   :  { %v6273_v42 = vmax.f32 %v6241_v58, 0.0  ;;  %v6275_v26 = vmax.f32 %v6243_v19, 0.0  ;;  %v6111_v5 = vmul.f32 %v8890_v24, %v6037_v8  ;;  %v6113_v62 = vmul.f32 %v8894_v32, %v6039_v10  ;;  %v9037_v10 = vld [vmem:[#allocation2 + $0x18] sm:$0xff] }
 0x636   :  { %v6118_v48 = vmul.f32 %v8868_v3, %v6044_v37  ;;  %v6120_v43 = vmul.f32 %v8876_v49, %v6046_v33  ;;  %v9189_v0 = vunpack.c.l.bf16 %v8918_v54  ;;  %v9190_v63 = vunpack.c.l.bf16 %v8921_v30 }
 0x637   :  { %v7059_v29 = vpack.c.bf16 %v6273_v42, %v6272_v4  ;;  %v7060_v56 = vpack.c.bf16 %v6275_v26, %v6274_v6  ;;  %v6185_v52 = vadd.f32 %v8898_v36, %v6111_v5  ;;  %v6187_v15 = vadd.f32 %v8903_v7, %v6113_v62  ;;  %v9195_v62 = vld [vmem:[#allocation35_spill] sm:$0xff] }
 0x638   :  { %v6248_v11 = vadd.f32 %v9189_v0, %v6184_v9  ;;  %v6250_v31 = vadd.f32 %v9190_v63, %v6186_v13  ;;  %v6192_v41 = vadd.f32 %v8872_v51, %v6118_v48  ;;  %v6194_v39 = vadd.f32 %v8880_v20, %v6120_v43 }
 0x639   :  { %6396 = vst [vmem:[#allocation16 + $0x20] sm:$0xff] %v7059_v29  ;;  %6397 = vst [vmem:[#allocation16 + $0x28] sm:$0xff] %v7060_v56  ;;  %v6045_v53 = vadd.f32 %v5858_v27, %v5417_v22  ;;  %v6047_v3 = vadd.f32 %v5911_v46, %v5419_v40  ;;  %v9191_v49 = vunpack.c.h.bf16 %v8918_v54  ;;  %v9192_v35 = vunpack.c.h.bf16 %v8921_v30  ;;  %v9196_v46 = vld [vmem:[#allocation23_spill] sm:$0xff]  ;;  %v9197_v29 = vld [vmem:[#allocation34_spill] sm:$0xff] }
 0x63a   :  { %v6225_v1 = vunpack.c.h.bf16 %v8926_v12  ;;  %v6227_v45 = vunpack.c.h.bf16 %v8929_v44  ;;  %v6072_v51 = vsub.s32 4, %v8242_v23  ;;  %v6080_v20 = vsub.s32 6, %v8242_v23 }
 0x63b   :  { %v6249_v50 = vadd.f32 %v9191_v49, %v6185_v52  ;;  %v6251_v18 = vadd.f32 %v9192_v35, %v6187_v15  ;;  %v6119_v17 = vmul.f32 %v8890_v24, %v6045_v53  ;;  %v6121_v59 = vmul.f32 %v8894_v32, %v6047_v3  ;;  %v9200_v53 = vld [vmem:[#allocation25_spill] sm:$0xff]  ;;  %v9201_v3 = vld [vmem:[#allocation36_spill] sm:$0xff] }
 0x63c   :  { %v6280_v2 = vmax.f32 %v6248_v11, 0.0  ;;  %v6282_v38 = vmax.f32 %v6250_v31, 0.0  ;;  %v9193_v55 = vunpack.c.l.bf16 %v8926_v12  ;;  %v9194_v60 = vunpack.c.l.bf16 %v8929_v44  ;;  %v9058_v11 = vld [vmem:[#allocation2 + $0x30] sm:$0xff]  ;;  %v9061_v31 = vld [vmem:[#allocation2 + $0x38] sm:$0xff] }
 0x63d   :  { %v6281_v57 = vmax.f32 %v6249_v50, 0.0  ;;  %v6283_v54 = vmax.f32 %v6251_v18, 0.0  ;;  %v6193_v25 = vadd.f32 %v8898_v36, %v6119_v17  ;;  %v6195_v24 = vadd.f32 %v8903_v7, %v6121_v59  ;;  %v9202_v18 = vld [vmem:[#allocation26_spill] sm:$0xff]  ;;  %v9204_v17 = vld [vmem:[#allocation27_spill] sm:$0xff]  ;;  %v9205_v59 = vld [vmem:[#allocation37_spill] sm:$0xff] }
 0x63e   :  { %v6256_v30 = vadd.f32 %v9193_v55, %v6192_v41  ;;  %v6258_v47 = vadd.f32 %v9194_v60, %v6194_v39  ;;  %v6076_v4 = vsub.s32 5, %v8242_v23  ;;  %v6084_v6 = vsub.s32 7, %v8242_v23  ;;  %v9199_v41 = vld [vmem:[#allocation38_spill] sm:$0xff] }
 0x63f   :  { %v7063_v34 = vpack.c.bf16 %v6281_v57, %v6280_v2  ;;  %v7064_v32 = vpack.c.bf16 %v6283_v54, %v6282_v38  ;;  %v6257_v14 = vadd.f32 %v6225_v1, %v6193_v25  ;;  %v6259_v58 = vadd.f32 %v6227_v45, %v6195_v24  ;;  %v9203_v1 = vld [vmem:[#allocation41_spill] sm:$0xff]  ;;  %v9074_v38 = vld [vmem:[#allocation2 + $0x50] sm:$0xff]  ;;  %v9206_v25 = vld [vmem:[#allocation28_spill] sm:$0xff] }
 0x640   :  { %v9023_v12 = vrot.slane %v8857_v21, %v6072_v51  ;;  %v9026_v44 = vrot.slane %v8862_v61, %v6072_v51  ;;  %v6204_v7 = vunpack.c.l.bf16 %v9028_v28  ;;  %v9032_v36 = vrot.slane %v8857_v21, %v6080_v20  ;;  %v9207_v24 = vld [vmem:[#allocation44_spill] sm:$0xff] }
 0x641   :  { %6400 = vst [vmem:[#allocation16 + $0x40] sm:$0xff] %v7063_v34  ;;  %6401 = vst [vmem:[#allocation16 + $0x48] sm:$0xff] %v7064_v32  ;;  %v6288_v19 = vmax.f32 %v6256_v30, 0.0  ;;  %v6290_v9 = vmax.f32 %v6258_v47, 0.0  ;;  %v6289_v23 = vmax.f32 %v6257_v14, 0.0  ;;  %v6291_v13 = vmax.f32 %v6259_v58, 0.0 }
 0x642   :  { %v9035_v8 = vrot.slane %v8862_v61, %v6080_v20  ;;  %v6206_v42 = vunpack.c.l.bf16 %v9037_v10  ;;  %v9041_v26 = vrot.slane %v8857_v21, %v6076_v4  ;;  %v9044_v37 = vrot.slane %v8857_v21, %v6084_v6  ;;  %v9208_v32 = vld [vmem:[#allocation29_spill] sm:$0xff]  ;;  %v9210_v14 = vld [vmem:[#allocation30_spill] sm:$0xff] }
 0x643   :  { %v7067_v33 = vpack.c.bf16 %v6289_v23, %v6288_v19  ;;  %v7068_v22 = vpack.c.bf16 %v6291_v13, %v6290_v9  ;;  %v9047_v40 = vrot.slane %v8862_v61, %v6076_v4  ;;  %v6205_v5 = vunpack.c.h.bf16 %v9028_v28  ;;  %v5948_v21 = vpop.f32.mrf.mxu1  ;;  %v6001_v0 = vpop.f32.mrf.mxu0  ;;  %v9209_v4 = vld [vmem:[#allocation39_spill] sm:$0xff]  ;;  %v9211_v58 = vld [vmem:[#allocation46_spill] sm:$0xff] }
 0x644   :  { %v5396_v27 = vadd.f32 %v9195_v62, %v8685_v16  ;;  %v5398_v56 = vadd.f32 %v9197_v29, %v9196_v46  ;;  %v9055_v48 = vrot.slane %v8862_v61, %v6084_v6  ;;  %v6207_v43 = vunpack.c.h.bf16 %v9037_v10  ;;  %v9198_v61 = vld [vmem:[#allocation24_spill] sm:$0xff]  ;;  %v9212_v19 = vld [vmem:[#allocation31_spill] sm:$0xff] }
 0x645   :  { %6404 = vst [vmem:[#allocation16 + $0x60] sm:$0xff] %v7067_v33  ;;  %6405 = vst [vmem:[#allocation16 + $0x68] sm:$0xff] %v7068_v22  ;;  %v6212_v63 = vunpack.c.l.bf16 %v9058_v11  ;;  %v6214_v16 = vunpack.c.l.bf16 %v9061_v31  ;;  %v6213_v52 = vunpack.c.h.bf16 %v9058_v11  ;;  %v6215_v15 = vunpack.c.h.bf16 %v9061_v31  ;;  %v5950_v20 = vpop.f32.mrf.mxu1  ;;  %v6003_v2 = vpop.f32.mrf.mxu0  ;;  %v9213_v9 = vld [vmem:[#allocation47_spill] sm:$0xff]  ;;  %v9214_v46 = vld [vmem:[#allocation32_spill] sm:$0xff] }
 0x646   :  { %v5397_v39 = vadd.f32 %v9199_v41, %v9198_v61  ;;  %v5399_v49 = vadd.f32 %v9201_v3, %v9200_v53  ;;  %v6024_v50 = vadd.f32 %v5948_v21, %v5396_v27  ;;  %v6026_v35 = vadd.f32 %v6001_v0, %v5398_v56  ;;  %v9215_v29 = vld [vmem:[#allocation48_spill] sm:$0xff]  ;;  %v9216_v21 = vld [vmem:[#allocation33_spill] sm:$0xff] }
 0x647   :  { %v5404_v45 = vadd.f32 %v9203_v1, %v9202_v18  ;;  %v5406_v51 = vadd.f32 %v9205_v59, %v9204_v17  ;;  %v6220_v57 = vunpack.c.l.bf16 %v9074_v38  ;;  %v6221_v54 = vunpack.c.h.bf16 %v9074_v38  ;;  %v5952_v13 = vpop.f32.mrf.mxu1  ;;  %v6005_v10 = vpop.f32.mrf.mxu0  ;;  %v9217_v0 = vld [vmem:[#allocation49_spill] sm:$0xff] }
 0x648   :  { %v6098_v55 = vmul.f32 %v9023_v12, %v6024_v50  ;;  %v6100_v30 = vmul.f32 %v9032_v36, %v6026_v35  ;;  %v6025_v60 = vadd.f32 %v5950_v20, %v5397_v39  ;;  %v6027_v47 = vadd.f32 %v6003_v2, %v5399_v49 }
 0x649   :  { %v5405_v34 = vadd.f32 %v9207_v24, %v9206_v25  ;;  %v5407_v6 = vadd.f32 %v9209_v4, %v9208_v32  ;;  %v5412_v28 = vadd.f32 %v9211_v58, %v9210_v14  ;;  %v5413_v23 = vadd.f32 %v9213_v9, %v9212_v19  ;;  %v5954_v53 = vpop.f32.mrf.mxu1  ;;  %v6007_v3 = vpop.f32.mrf.mxu0 }
 0x64a   :  { %v6172_v33 = vadd.f32 %v9026_v44, %v6098_v55  ;;  %v6174_v22 = vadd.f32 %v9035_v8, %v6100_v30  ;;  %v6099_v62 = vmul.f32 %v9041_v26, %v6025_v60  ;;  %v6101_v27 = vmul.f32 %v9044_v37, %v6027_v47 }
 0x64b   :  { %v5420_v56 = vadd.f32 %v9215_v29, %v9214_v46  ;;  %v5421_v61 = vadd.f32 %v9217_v0, %v9216_v21  ;;  %v6032_v41 = vadd.f32 %v5952_v13, %v5404_v45  ;;  %v6034_v39 = vadd.f32 %v6005_v10, %v5406_v51  ;;  %v5958_v2 = vpop.f32.mrf.mxu1 }
 0x64c   :  { %v6236_v49 = vadd.f32 %v6204_v7, %v6172_v33  ;;  %v6238_v50 = vadd.f32 %v6206_v42, %v6174_v22  ;;  %v6173_v35 = vadd.f32 %v9047_v40, %v6099_v62  ;;  %v6175_v18 = vadd.f32 %v9055_v48, %v6101_v27 }
 0x64d   :  { %v6106_v1 = vmul.f32 %v9023_v12, %v6032_v41  ;;  %v6108_v17 = vmul.f32 %v9032_v36, %v6034_v39  ;;  %v6033_v59 = vadd.f32 %v5954_v53, %v5405_v34  ;;  %v6035_v20 = vadd.f32 %v6007_v3, %v5407_v6  ;;  %v5960_v25 = vpop.f32.mrf.mxu1 }
 0x64e   :  { %v6268_v55 = vmax.f32 %v6236_v49, 0.0  ;;  %v6270_v30 = vmax.f32 %v6238_v50, 0.0  ;;  %v6237_v60 = vadd.f32 %v6205_v5, %v6173_v35  ;;  %v6239_v45 = vadd.f32 %v6207_v43, %v6175_v18 }
 0x64f   :  { %v6180_v51 = vadd.f32 %v9026_v44, %v6106_v1  ;;  %v6182_v7 = vadd.f32 %v9035_v8, %v6108_v17  ;;  %v6107_v42 = vmul.f32 %v9041_v26, %v6033_v59  ;;  %v6109_v47 = vmul.f32 %v9044_v37, %v6035_v20  ;;  %v5962_v43 = vpop.f32.mrf.mxu1 }
 0x650   :  { %v6269_v24 = vmax.f32 %v6237_v60, 0.0  ;;  %v6271_v32 = vmax.f32 %v6239_v45, 0.0  ;;  %v6040_v4 = vadd.f32 %v5958_v2, %v5412_v28  ;;  %v6041_v14 = vadd.f32 %v5960_v25, %v5413_v23  ;;  %v7844_v23 = vld [vmem:[#allocation2 + $0x70] sm:$0xff]  ;;  %v7845_v2 = vld [vmem:[#allocation2 + $0x58] sm:$0xff] }
 0x651   :  { %v6244_v34 = vadd.f32 %v6212_v63, %v6180_v51  ;;  %v6246_v6 = vadd.f32 %v6214_v16, %v6182_v7  ;;  %v6181_v58 = vadd.f32 %v9047_v40, %v6107_v42  ;;  %v6183_v5 = vadd.f32 %v9055_v48, %v6109_v47  ;;  %v5964_v16 = vpop.f32.mrf.mxu1  ;;  %v9220_v7 = vld [vmem:[#allocation43_spill] sm:$0xff]  ;;  %v7846_v47 = vld [vmem:[#allocation2 + $0x78] sm:$0xff] }
 0x652   :  { %v7057_v19 = vpack.c.bf16 %v6269_v24, %v6268_v55  ;;  %v7058_v9 = vpack.c.bf16 %v6271_v32, %v6270_v30  ;;  %v6114_v13 = vmul.f32 %v9023_v12, %v6040_v4  ;;  %v6115_v10 = vmul.f32 %v9041_v26, %v6041_v14  ;;  %v9219_v55 = vld [vmem:[#allocation42_spill] sm:$0xff] }
 0x653   :  { %v6245_v33 = vadd.f32 %v6213_v52, %v6181_v58  ;;  %v6247_v28 = vadd.f32 %v6215_v15, %v6183_v5  ;;  %v6228_v63 = vunpack.c.l.bf16 %v7844_v23  ;;  %v6229_v22 = vunpack.c.h.bf16 %v7844_v23 }
 0x654   :  { %6394 = vst [vmem:[#allocation16 + $0x10] sm:$0xff] %v7057_v19  ;;  %6395 = vst [vmem:[#allocation16 + $0x18] sm:$0xff] %v7058_v9  ;;  %v6188_v62 = vadd.f32 %v9026_v44, %v6114_v13  ;;  %v6189_v27 = vadd.f32 %v9047_v40, %v6115_v10  ;;  %v6048_v46 = vadd.f32 %v5962_v43, %v5420_v56  ;;  %v6276_v21 = vmax.f32 %v6244_v34, 0.0  ;;  %v9221_v34 = vld [vmem:[#allocation45_spill] sm:$0xff] }
 0x655   :  { %v6049_v29 = vadd.f32 %v5964_v16, %v5421_v61  ;;  %v6278_v0 = vmax.f32 %v6246_v6, 0.0  ;;  %v6277_v41 = vmax.f32 %v6245_v33, 0.0  ;;  %v6279_v11 = vmax.f32 %v6247_v28, 0.0 }
 0x656   :  { %v6252_v31 = vadd.f32 %v6220_v57, %v6188_v62  ;;  %v6253_v52 = vadd.f32 %v6221_v54, %v6189_v27  ;;  %v6122_v15 = vmul.f32 %v9023_v12, %v6048_v46  ;;  %v6223_v51 = vunpack.c.h.bf16 %v7845_v2 }
 0x657   :  { %v6123_v39 = vmul.f32 %v9041_v26, %v6049_v29  ;;  %v7061_v53 = vpack.c.bf16 %v6277_v41, %v6276_v21  ;;  %v7062_v3 = vpack.c.bf16 %v6279_v11, %v6278_v0  ;;  %v9218_v26 = vld [vmem:[#allocation40_spill] sm:$0xff]  ;;  %v6230_v25 = vunpack.c.l.bf16 %v7846_v47 }
 0x658   :  { %v6284_v49 = vmax.f32 %v6252_v31, 0.0  ;;  %v6285_v50 = vmax.f32 %v6253_v52, 0.0  ;;  %v6196_v56 = vadd.f32 %v9026_v44, %v6122_v15  ;;  %v6222_v44 = vunpack.c.l.bf16 %v7845_v2 }
 0x659   :  { %v6197_v61 = vadd.f32 %v9047_v40, %v6123_v39  ;;  %6398 = vst [vmem:[#allocation16 + $0x30] sm:$0xff] %v7061_v53  ;;  %6399 = vst [vmem:[#allocation16 + $0x38] sm:$0xff] %v7062_v3  ;;  %v6231_v19 = vunpack.c.h.bf16 %v7846_v47 }
 0x65a   :  { %v7065_v35 = vpack.c.bf16 %v6285_v50, %v6284_v49  ;;  %v6260_v18 = vadd.f32 %v6228_v63, %v6196_v56 }
 0x65b   :  { %v6261_v57 = vadd.f32 %v6229_v22, %v6197_v61 }
 0x65c   :  { %6402 = vst [vmem:[#allocation16 + $0x50] sm:$0xff] %v7065_v35  ;;  %v6292_v38 = vmax.f32 %v6260_v18, 0.0 }
 0x65d   :  { %v6293_v54 = vmax.f32 %v6261_v57, 0.0 }
 0x65f   :  { %v7069_v1 = vpack.c.bf16 %v6293_v54, %v6292_v38 }
 0x661   :  { %6406 = vst [vmem:[#allocation16 + $0x70] sm:$0xff] %v7069_v1 }
 0x663   :  { %v6011_v12 = vpop.f32.mrf.mxu1 }
 0x664   :  { %v6042_v17 = vadd.f32 %v6011_v12, %v9218_v26 }
 0x665   :  { %v6013_v59 = vpop.f32.mrf.mxu1 }
 0x666   :  { %v6116_v20 = vmul.f32 %v9032_v36, %v6042_v17  ;;  %v6043_v40 = vadd.f32 %v6013_v59, %v9219_v55 }
 0x667   :  { %v6015_v30 = vpop.f32.mrf.mxu1 }
 0x668   :  { %v6190_v60 = vadd.f32 %v9035_v8, %v6116_v20  ;;  %v6117_v45 = vmul.f32 %v9044_v37, %v6043_v40  ;;  %v6050_v42 = vadd.f32 %v6015_v30, %v9220_v7 }
 0x669   :  { %v6017_v24 = vpop.f32.mrf.mxu1 }
 0x66a   :  { %v6254_v32 = vadd.f32 %v6222_v44, %v6190_v60  ;;  %v6191_v4 = vadd.f32 %v9055_v48, %v6117_v45  ;;  %v6124_v14 = vmul.f32 %v9032_v36, %v6050_v42  ;;  %v6051_v6 = vadd.f32 %v6017_v24, %v9221_v34 }
 0x66c   :  { %v6255_v58 = vadd.f32 %v6223_v51, %v6191_v4  ;;  %v6198_v5 = vadd.f32 %v9035_v8, %v6124_v14  ;;  %v6125_v43 = vmul.f32 %v9044_v37, %v6051_v6  ;;  %v6286_v9 = vmax.f32 %v6254_v32, 0.0 }
 0x66e   :  { %v6287_v13 = vmax.f32 %v6255_v58, 0.0  ;;  %v6262_v10 = vadd.f32 %v6230_v25, %v6198_v5  ;;  %v6199_v33 = vadd.f32 %v9055_v48, %v6125_v43 }
 0x670   :  { %v7066_v28 = vpack.c.bf16 %v6287_v13, %v6286_v9  ;;  %v6263_v23 = vadd.f32 %v6231_v19, %v6199_v33  ;;  %v6294_v63 = vmax.f32 %v6262_v10, 0.0 }
 0x672   :  { %6403 = vst [vmem:[#allocation16 + $0x58] sm:$0xff] %v7066_v28  ;;  %v6295_v36 = vmax.f32 %v6263_v23, 0.0 }
 0x674   :  { %v7070_v16 = vpack.c.bf16 %v6295_v36, %v6294_v63 }
 0x676   :  { %6407 = vst [vmem:[#allocation16 + $0x78] sm:$0xff] %v7070_v16 }
 0x677   :  { %8018 = shalt.err (!%p8015_p2)
}
 0x678   :  { %6419 = dma.vmem_to_hbm [thread:$0]  %s6414_s9, 2048, %s9150_s10, [#allocation4], %s8046_s13, %s8046_s13, %s8047_s14  }
 0x679   :  { %8037 = dma.done.wait [#allocation4], 2048  }
 0x67a   :  { %8038 = vsyncadd [#allocation4], 4294965248 }
 0x67b   :  { %6423 = vsyncpa [#allocation3], 1 }
 0x67c   :  { %6424 = vsyncpa [#allocation6], 1 }
 0x67d   :  { %6425 = vsyncpa [#allocation9], 1 }
 0x67e   :  { %6426 = vsyncpa [#allocation12], 1 }
 0x67f   :  { %6427 = vsyncpa [#allocation15], 1 }
 0x680   :  { %6428 = vsyncpa [#allocation4], 1 }

</bundles_post_ra>
